<compile_context>
chip_gen: v6e
topology: v6e:2x2x1
jax: 0.10.0
libtpu: 0.0.40
codegen_flags: <defaults>
</compile_context>

<pallas_src>
import functools
import math

import jax
import jax.numpy as jnp
from jax.experimental import pallas as pl
from jax.experimental.pallas import tpu as pltpu


def _nbytes(shape, dtype):
    return math.prod(shape) * jnp.dtype(dtype).itemsize


def _fused_conv3x3_bn_kernel(*refs, H, W, OH, OW, stride, n_convs, relu_flags,
                             has_residual, inkernel_pad):
    """Fused 3x3 conv(s) + folded BN (+residual)(+ReLU); one batch element per step.

    Ref order:
      x_ref                    stride==1: (1, H, W, Cin)
                               stride>1 : (1, stride, Hp, Wq, Cin)  column-phase-split,
                                          zero-padded, bf16 (wrapper-prepared)
      [w_i, scale_i, bias_i]   per conv: (3,3,Cin,Cout_i) bf16, (1,Cout_i) f32, (1,Cout_i) f32
      res_ref                  optional (1, OH, OW, Cout_0), added to conv0 before ReLU
      out_i                    per conv: (1, OH, OW, Cout_i)
      xp_ref                   stride==1 only: (H+2, W+2, Cin) bf16 VMEM scratch
    """
    idx = 0
    x_ref = refs[idx]; idx += 1
    conv_refs = []
    for _ in range(n_convs):
        conv_refs.append(refs[idx:idx + 3])
        idx += 3
    res_ref = None
    if has_residual:
        res_ref = refs[idx]; idx += 1
    out_refs = refs[idx:idx + n_convs]; idx += n_convs
    xp_ref = refs[idx] if inkernel_pad else None

    Cin = x_ref.shape[-1]

    if inkernel_pad:
        # "same" padding done in VMEM (also casts the activation to bf16 once).
        xp_ref[...] = jnp.zeros_like(xp_ref)
        xp_ref[1:1 + H, 1:1 + W, :] = x_ref[0].astype(xp_ref.dtype)

    def tap_patch(kh, kw):
        if stride == 1:
            p = xp_ref[kh:kh + OH, kw:kw + OW, :]
        else:
            # Column phase q holds padded columns {q, q+stride, ...}; rows are
            # decimated with a free leading-dim reshape (no strided slicing needed).
            q, off = kw % stride, kw // stride
            slab = x_ref[0, q, kh:kh + stride * OH, off:off + OW, :]
            p = slab.reshape(OH, stride, OW, Cin)[:, 0]
        return p.reshape(OH * OW, Cin)

    accs = [jnp.zeros((OH * OW, w_ref.shape[-1]), jnp.float32)
            for (w_ref, _, _) in conv_refs]
    # 3x3 conv = 9 shifted (OH*OW, Cin) @ (Cin, Cout) bf16 MXU matmuls, f32 accumulate.
    # All convs in this call share the same input patch (single patch extraction).
    for kh in range(3):
        for kw in range(3):
            p = tap_patch(kh, kw)
            for ci, (w_ref, _, _) in enumerate(conv_refs):
                accs[ci] = accs[ci] + jnp.dot(
                    p, w_ref[kh, kw], preferred_element_type=jnp.float32)

    for ci, (w_ref, sc_ref, bi_ref) in enumerate(conv_refs):
        cout = w_ref.shape[-1]
        y = accs[ci] * sc_ref[0, :] + bi_ref[0, :]
        if ci == 0 and res_ref is not None:
            y = y + res_ref[0].astype(jnp.float32).reshape(OH * OW, cout)
        if relu_flags[ci]:
            y = jnp.maximum(y, 0.0)
        out_refs[ci][...] = y.reshape(1, OH, OW, cout).astype(out_refs[ci].dtype)


def fused_conv3x3_bn(x, convs, *, stride=1, relu_flags, residual=None, out_dtypes):
    """x: (N, H, W, Cin) NHWC. convs: list of (w_hwio, scale, bias) sharing input x.
    Returns one NHWC output per conv; `residual` (if given) is added to conv 0's
    output before its ReLU."""
    N, H, W, Cin = x.shape
    n_convs = len(convs)
    OH = (H - 1) // stride + 1
    OW = (W - 1) // stride + 1
    couts = [int(w.shape[-1]) for (w, _, _) in convs]

    args, in_specs, blk_bytes = [], [], []

    if stride == 1:
        x_in = x
        in_specs.append(pl.BlockSpec((1, H, W, Cin), lambda b: (b, 0, 0, 0)))
        blk_bytes.append(_nbytes((1, H, W, Cin), x_in.dtype))
    else:
        # Zero-pad (conv padding=1), split columns into `stride` phases and cast to
        # bf16 in one fused XLA layout pass; the kernel then computes the strided conv
        # directly at output resolution.
        Hp = max(H + 2, 2 + stride * OH)
        Wq = max(-(-(W + 2) // stride), 2 // stride + OW)
        xpad = jnp.zeros((N, Hp, Wq * stride, Cin), jnp.bfloat16)
        xpad = xpad.at[:, 1:1 + H, 1:1 + W, :].set(x.astype(jnp.bfloat16))
        x_in = xpad.reshape(N, Hp, Wq, stride, Cin).transpose(0, 3, 1, 2, 4)
        in_specs.append(pl.BlockSpec((1, stride, Hp, Wq, Cin),
                                     lambda b: (b, 0, 0, 0, 0)))
        blk_bytes.append(_nbytes((1, stride, Hp, Wq, Cin), jnp.bfloat16))
    args.append(x_in)

    for (w, sc, bi) in convs:
        cin_i, cout = int(w.shape[2]), int(w.shape[-1])
        args += [w.astype(jnp.bfloat16),
                 sc.reshape(1, cout).astype(jnp.float32),
                 bi.reshape(1, cout).astype(jnp.float32)]
        in_specs += [pl.BlockSpec((3, 3, cin_i, cout), lambda b: (0, 0, 0, 0)),
                     pl.BlockSpec((1, cout), lambda b: (0, 0)),
                     pl.BlockSpec((1, cout), lambda b: (0, 0))]
        blk_bytes += [_nbytes((3, 3, cin_i, cout), jnp.bfloat16),
                      _nbytes((1, cout), jnp.float32),
                      _nbytes((1, cout), jnp.float32)]

    if residual is not None:
        assert residual.shape == (N, OH, OW, couts[0]), residual.shape
        args.append(residual)
        in_specs.append(pl.BlockSpec((1, OH, OW, couts[0]), lambda b: (b, 0, 0, 0)))
        blk_bytes.append(_nbytes((1, OH, OW, couts[0]), residual.dtype))

    out_shape = tuple(jax.ShapeDtypeStruct((N, OH, OW, c), d)
                      for c, d in zip(couts, out_dtypes))
    out_specs = tuple(pl.BlockSpec((1, OH, OW, c), lambda b: (b, 0, 0, 0))
                      for c in couts)
    blk_bytes += [_nbytes((1, OH, OW, c), d) for c, d in zip(couts, out_dtypes)]

    scratch_shapes = []
    scratch_bytes = 0
    if stride == 1:
        scratch_shapes.append(pltpu.VMEM((H + 2, W + 2, Cin), jnp.bfloat16))
        scratch_bytes = _nbytes((H + 2, W + 2, Cin), jnp.bfloat16)

    # Explicit VMEM budget: double-buffered blocks + scratch + slack, clamped so it
    # stays inside every generation's physical VMEM (v7x: 64 MiB total).
    vmem_limit = int(min(max(2 * sum(blk_bytes) + scratch_bytes + (1 << 20), 4 << 20),
                         48 << 20))

    outs = pl.pallas_call(
        functools.partial(
            _fused_conv3x3_bn_kernel, H=H, W=W, OH=OH, OW=OW, stride=stride,
            n_convs=n_convs, relu_flags=tuple(relu_flags),
            has_residual=residual is not None, inkernel_pad=(stride == 1)),
        out_shape=out_shape,
        grid=(N,),
        in_specs=in_specs,
        out_specs=out_specs,
        scratch_shapes=scratch_shapes,
        compiler_params=pltpu.CompilerParams(
            dimension_semantics=("parallel",), vmem_limit_bytes=vmem_limit),
    )(*args)
    if not isinstance(outs, (tuple, list)):
        outs = (outs,)
    return outs


def _fold_bn(gamma, beta, mean, var, eps=1e-5):
    scale = gamma / jnp.sqrt(var + eps)
    bias = beta - mean * scale
    return scale, bias


def init_resblock_params(key, in_channel, out_channel, stride=1):
    ks = jax.random.split(key, 6)

    def conv_w(k, cin, cout):
        # HWIO weights, deterministic small init.
        return (0.1 * jax.random.normal(k, (3, 3, cin, cout))).astype(jnp.float32)

    def bn_params(k, c):
        k1, k2, k3, k4 = jax.random.split(k, 4)
        gamma = 1.0 + 0.1 * jax.random.normal(k1, (c,))
        beta = 0.05 * jax.random.normal(k2, (c,))
        mean = 0.1 * jax.random.normal(k3, (c,))
        var = 1.0 + jnp.abs(0.1 * jax.random.normal(k4, (c,)))
        return _fold_bn(gamma.astype(jnp.float32), beta.astype(jnp.float32),
                        mean.astype(jnp.float32), var.astype(jnp.float32))

    params = {
        "stride": stride,
        "w1": conv_w(ks[0], in_channel, out_channel),
        "w2": conv_w(ks[1], out_channel, out_channel),
    }
    params["s1"], params["b1"] = bn_params(ks[2], out_channel)
    params["s2"], params["b2"] = bn_params(ks[3], out_channel)
    if in_channel != out_channel or stride > 1:
        params["ws"] = conv_w(ks[4], in_channel, out_channel)
        params["ss"], params["bs"] = bn_params(ks[5], out_channel)
    else:
        params["ws"] = None
    return params


def resblock_forward(x_nchw, params):
    """Matches ResBlock.forward; input/output are NCHW like PyTorch."""
    stride = params["stride"]
    x = jnp.transpose(x_nchw, (0, 2, 3, 1))  # NCHW -> NHWC (once per block)

    if params["ws"] is not None:
        # conv1(+BN+ReLU) and the projection-shortcut conv(+BN) fused in one kernel:
        # x is read from HBM exactly once for both.
        h, short = fused_conv3x3_bn(
            x,
            [(params["w1"], params["s1"], params["b1"]),
             (params["ws"], params["ss"], params["bs"])],
            stride=stride, relu_flags=(True, False),
            out_dtypes=(jnp.bfloat16, jnp.float32))
    else:
        (h,) = fused_conv3x3_bn(
            x, [(params["w1"], params["s1"], params["b1"])],
            stride=stride, relu_flags=(True,), out_dtypes=(jnp.bfloat16,))
        short = x  # identity shortcut (in_channel == out_channel, stride == 1)

    # conv2 + BN + residual add + final ReLU fused in one kernel.
    (out,) = fused_conv3x3_bn(
        h, [(params["w2"], params["s2"], params["b2"])],
        stride=1, relu_flags=(True,), residual=short, out_dtypes=(jnp.float32,))
    return jnp.transpose(out, (0, 3, 1, 2))  # NHWC -> NCHW


# ---------------- pure-JAX reference (for correctness check) ----------------
def _ref_conv_bn(x, w, scale, bias, stride, relu=False, residual=None):
    y = jax.lax.conv_general_dilated(
        x, w, window_strides=(stride, stride), padding=((1, 1), (1, 1)),
        dimension_numbers=("NHWC", "HWIO", "NHWC"))
    y = y * scale + bias
    if residual is not None:
        y = y + residual
    if relu:
        y = jnp.maximum(y, 0.0)
    return y


def _ref_resblock(x_nchw, params):
    stride = params["stride"]
    x = jnp.transpose(x_nchw, (0, 2, 3, 1))
    h = _ref_conv_bn(x, params["w1"], params["s1"], params["b1"], stride, relu=True)
    short = x
    if params["ws"] is not None:
        short = _ref_conv_bn(x, params["ws"], params["ss"], params["bs"], stride)
    out = _ref_conv_bn(h, params["w2"], params["s2"], params["b2"], 1,
                       relu=True, residual=short)
    return jnp.transpose(out, (0, 3, 1, 2))


if __name__ == "__main__":
    key = jax.random.PRNGKey(0)

    # (name, N, in_channel, out_channel, H, W, stride)
    configs = [
        ("proj_stride1", 2, 4, 8, 16, 16, 1),   # channel change -> conv shortcut
        ("identity", 2, 8, 8, 16, 16, 1),       # identity shortcut
        ("proj_stride2", 2, 4, 8, 16, 16, 2),   # strided downsample block
    ]
    for name, N, cin, cout, H, W, stride in configs:
        key, k_x, k_p = jax.random.split(key, 3)
        x = jax.random.normal(k_x, (N, cin, H, W), dtype=jnp.float32)
        params = init_resblock_params(k_p, cin, cout, stride=stride)

        out = jax.block_until_ready(resblock_forward(x, params))
        ref = jax.block_until_ready(_ref_resblock(x, params))

        oh = (H - 1) // stride + 1
        ow = (W - 1) // stride + 1
        assert out.shape == (N, cout, oh, ow), (name, out.shape)
        err = float(jnp.max(jnp.abs(out - ref)))
        denom = max(1.0, float(jnp.max(jnp.abs(ref))))
        # bf16 MXU inputs -> tolerance looser than the old pure-f32 kernel.
        assert err / denom < 5e-2, (name, err, denom)

    print("KERNEL_OK")
</pallas_src>

<mosaic_0001>
module attributes {stable_mosaic.version = 11 : i64} {
  func.func @_fused_conv3x3_bn_kernel(%arg0: i32, %arg1: memref<1x16x16x4xf32, #tpu.memory_space<vmem>>, %arg2: memref<3x3x4x8xbf16, #tpu.memory_space<vmem>>, %arg3: memref<1x8xf32, #tpu.memory_space<vmem>>, %arg4: memref<1x8xf32, #tpu.memory_space<vmem>>, %arg5: memref<3x3x4x8xbf16, #tpu.memory_space<vmem>>, %arg6: memref<1x8xf32, #tpu.memory_space<vmem>>, %arg7: memref<1x8xf32, #tpu.memory_space<vmem>>, %arg8: memref<1x16x16x8xbf16, #tpu.memory_space<vmem>>, %arg9: memref<1x16x16x8xf32, #tpu.memory_space<vmem>>, %arg10: memref<18x18x4xbf16, #tpu.memory_space<vmem>>) attributes {dimension_semantics = [#tpu.dimension_semantics<parallel>], iteration_bounds = array<i64: 2>, scalar_prefetch = 0 : i64, scratch_operands = 1 : i64, tpu.core_type = #tpu.core_type<tc>, window_params = [{transform_indices = @transform_0, window_bounds = array<i64: 1, 16, 16, 4>}, {pipeline_mode = #tpu.pipeline_mode<synchronous>, transform_indices = @transform_1, window_bounds = array<i64: 3, 3, 4, 8>}, {pipeline_mode = #tpu.pipeline_mode<synchronous>, transform_indices = @transform_2, window_bounds = array<i64: 1, 8>}, {pipeline_mode = #tpu.pipeline_mode<synchronous>, transform_indices = @transform_3, window_bounds = array<i64: 1, 8>}, {pipeline_mode = #tpu.pipeline_mode<synchronous>, transform_indices = @transform_4, window_bounds = array<i64: 3, 3, 4, 8>}, {pipeline_mode = #tpu.pipeline_mode<synchronous>, transform_indices = @transform_5, window_bounds = array<i64: 1, 8>}, {pipeline_mode = #tpu.pipeline_mode<synchronous>, transform_indices = @transform_6, window_bounds = array<i64: 1, 8>}, {transform_indices = @transform_7, window_bounds = array<i64: 1, 16, 16, 8>}, {transform_indices = @transform_8, window_bounds = array<i64: 1, 16, 16, 8>}]} {
    %cst = arith.constant 0.000000e+00 : bf16
    %0 = vector.broadcast %cst : bf16 to vector<18x18x4xbf16>
    %c0 = arith.constant 0 : index
    %c0_0 = arith.constant 0 : index
    %c0_1 = arith.constant 0 : index
    %1 = vector.load %arg10[%c0, %c0_0, %c0_1] : memref<18x18x4xbf16, #tpu.memory_space<vmem>>, vector<18x18x4xbf16>
    tpu.vector_store %arg10[%c0, %c0_0, %c0_1], %0 {strides = array<i32>} : memref<18x18x4xbf16, #tpu.memory_space<vmem>>, vector<18x18x4xbf16>,
    %c0_2 = arith.constant 0 : index
    %c0_3 = arith.constant 0 : index
    %c0_4 = arith.constant 0 : index
    %c0_5 = arith.constant 0 : index
    %2 = vector.load %arg1[%c0_2, %c0_3, %c0_4, %c0_5] : memref<1x16x16x4xf32, #tpu.memory_space<vmem>>, vector<1x16x16x4xf32>
    %3 = vector.shape_cast %2 : vector<1x16x16x4xf32> to vector<16x16x4xf32>
    %4 = arith.truncf %3 : vector<16x16x4xf32> to vector<16x16x4xbf16>
    %c1 = arith.constant 1 : index
    %c1_6 = arith.constant 1 : index
    %c0_7 = arith.constant 0 : index
    %5 = vector.load %arg10[%c1, %c1_6, %c0_7] : memref<18x18x4xbf16, #tpu.memory_space<vmem>>, vector<16x16x4xbf16>
    tpu.vector_store %arg10[%c1, %c1_6, %c0_7], %4 {strides = array<i32>} : memref<18x18x4xbf16, #tpu.memory_space<vmem>>, vector<16x16x4xbf16>,
    %cst_8 = arith.constant 0.000000e+00 : f32
    %6 = vector.broadcast %cst_8 : f32 to vector<256x8xf32>
    %cst_9 = arith.constant 0.000000e+00 : f32
    %7 = vector.broadcast %cst_9 : f32 to vector<256x8xf32>
    %c0_10 = arith.constant 0 : index
    %c0_11 = arith.constant 0 : index
    %c0_12 = arith.constant 0 : index
    %8 = vector.load %arg10[%c0_10, %c0_11, %c0_12] : memref<18x18x4xbf16, #tpu.memory_space<vmem>>, vector<16x16x4xbf16>
    %9 = vector.shape_cast %8 : vector<16x16x4xbf16> to vector<256x4xbf16>
    %c0_13 = arith.constant 0 : index
    %c0_14 = arith.constant 0 : index
    %c0_15 = arith.constant 0 : index
    %c0_16 = arith.constant 0 : index
    %10 = vector.load %arg2[%c0_13, %c0_14, %c0_15, %c0_16] : memref<3x3x4x8xbf16, #tpu.memory_space<vmem>>, vector<1x1x4x8xbf16>
    %11 = vector.shape_cast %10 : vector<1x1x4x8xbf16> to vector<4x8xbf16>
    %cst_17 = arith.constant dense<0.000000e+00> : vector<256x8xf32>
    %12 = tpu.matmul %9, %11, %cst_17 {dimension_numbers = #tpu.dot_dimension_numbers<[1], [0], [0], [1], [0, 0, 1, 1], [], []>} : vector<256x4xbf16>, vector<4x8xbf16>, vector<256x8xf32> -> vector<256x8xf32>
    %13 = arith.addf %6, %12 : vector<256x8xf32>
    %c0_18 = arith.constant 0 : index
    %c0_19 = arith.constant 0 : index
    %c0_20 = arith.constant 0 : index
    %c0_21 = arith.constant 0 : index
    %14 = vector.load %arg5[%c0_18, %c0_19, %c0_20, %c0_21] : memref<3x3x4x8xbf16, #tpu.memory_space<vmem>>, vector<1x1x4x8xbf16>
    %15 = vector.shape_cast %14 : vector<1x1x4x8xbf16> to vector<4x8xbf16>
    %cst_22 = arith.constant dense<0.000000e+00> : vector<256x8xf32>
    %16 = tpu.matmul %9, %15, %cst_22 {dimension_numbers = #tpu.dot_dimension_numbers<[1], [0], [0], [1], [0, 0, 1, 1], [], []>} : vector<256x4xbf16>, vector<4x8xbf16>, vector<256x8xf32> -> vector<256x8xf32>
    %17 = arith.addf %7, %16 : vector<256x8xf32>
    %c0_23 = arith.constant 0 : index
    %c1_24 = arith.constant 1 : index
    %c0_25 = arith.constant 0 : index
    %18 = vector.load %arg10[%c0_23, %c1_24, %c0_25] : memref<18x18x4xbf16, #tpu.memory_space<vmem>>, vector<16x16x4xbf16>
    %19 = vector.shape_cast %18 : vector<16x16x4xbf16> to vector<256x4xbf16>
    %c0_26 = arith.constant 0 : index
    %c1_27 = arith.constant 1 : index
    %c0_28 = arith.constant 0 : index
    %c0_29 = arith.constant 0 : index
    %20 = vector.load %arg2[%c0_26, %c1_27, %c0_28, %c0_29] : memref<3x3x4x8xbf16, #tpu.memory_space<vmem>>, vector<1x1x4x8xbf16>
    %21 = vector.shape_cast %20 : vector<1x1x4x8xbf16> to vector<4x8xbf16>
    %cst_30 = arith.constant dense<0.000000e+00> : vector<256x8xf32>
    %22 = tpu.matmul %19, %21, %cst_30 {dimension_numbers = #tpu.dot_dimension_numbers<[1], [0], [0], [1], [0, 0, 1, 1], [], []>} : vector<256x4xbf16>, vector<4x8xbf16>, vector<256x8xf32> -> vector<256x8xf32>
    %23 = arith.addf %13, %22 : vector<256x8xf32>
    %c0_31 = arith.constant 0 : index
    %c1_32 = arith.constant 1 : index
    %c0_33 = arith.constant 0 : index
    %c0_34 = arith.constant 0 : index
    %24 = vector.load %arg5[%c0_31, %c1_32, %c0_33, %c0_34] : memref<3x3x4x8xbf16, #tpu.memory_space<vmem>>, vector<1x1x4x8xbf16>
    %25 = vector.shape_cast %24 : vector<1x1x4x8xbf16> to vector<4x8xbf16>
    %cst_35 = arith.constant dense<0.000000e+00> : vector<256x8xf32>
    %26 = tpu.matmul %19, %25, %cst_35 {dimension_numbers = #tpu.dot_dimension_numbers<[1], [0], [0], [1], [0, 0, 1, 1], [], []>} : vector<256x4xbf16>, vector<4x8xbf16>, vector<256x8xf32> -> vector<256x8xf32>
    %27 = arith.addf %17, %26 : vector<256x8xf32>
    %c0_36 = arith.constant 0 : index
    %c2 = arith.constant 2 : index
    %c0_37 = arith.constant 0 : index
    %28 = vector.load %arg10[%c0_36, %c2, %c0_37] : memref<18x18x4xbf16, #tpu.memory_space<vmem>>, vector<16x16x4xbf16>
    %29 = vector.shape_cast %28 : vector<16x16x4xbf16> to vector<256x4xbf16>
    %c0_38 = arith.constant 0 : index
    %c2_39 = arith.constant 2 : index
    %c0_40 = arith.constant 0 : index
    %c0_41 = arith.constant 0 : index
    %30 = vector.load %arg2[%c0_38, %c2_39, %c0_40, %c0_41] : memref<3x3x4x8xbf16, #tpu.memory_space<vmem>>, vector<1x1x4x8xbf16>
    %31 = vector.shape_cast %30 : vector<1x1x4x8xbf16> to vector<4x8xbf16>
    %cst_42 = arith.constant dense<0.000000e+00> : vector<256x8xf32>
    %32 = tpu.matmul %29, %31, %cst_42 {dimension_numbers = #tpu.dot_dimension_numbers<[1], [0], [0], [1], [0, 0, 1, 1], [], []>} : vector<256x4xbf16>, vector<4x8xbf16>, vector<256x8xf32> -> vector<256x8xf32>
    %33 = arith.addf %23, %32 : vector<256x8xf32>
    %c0_43 = arith.constant 0 : index
    %c2_44 = arith.constant 2 : index
    %c0_45 = arith.constant 0 : index
    %c0_46 = arith.constant 0 : index
    %34 = vector.load %arg5[%c0_43, %c2_44, %c0_45, %c0_46] : memref<3x3x4x8xbf16, #tpu.memory_space<vmem>>, vector<1x1x4x8xbf16>
    %35 = vector.shape_cast %34 : vector<1x1x4x8xbf16> to vector<4x8xbf16>
    %cst_47 = arith.constant dense<0.000000e+00> : vector<256x8xf32>
    %36 = tpu.matmul %29, %35, %cst_47 {dimension_numbers = #tpu.dot_dimension_numbers<[1], [0], [0], [1], [0, 0, 1, 1], [], []>} : vector<256x4xbf16>, vector<4x8xbf16>, vector<256x8xf32> -> vector<256x8xf32>
    %37 = arith.addf %27, %36 : vector<256x8xf32>
    %c1_48 = arith.constant 1 : index
    %c0_49 = arith.constant 0 : index
    %c0_50 = arith.constant 0 : index
    %38 = vector.load %arg10[%c1_48, %c0_49, %c0_50] : memref<18x18x4xbf16, #tpu.memory_space<vmem>>, vector<16x16x4xbf16>
    %39 = vector.shape_cast %38 : vector<16x16x4xbf16> to vector<256x4xbf16>
    %c1_51 = arith.constant 1 : index
    %c0_52 = arith.constant 0 : index
    %c0_53 = arith.constant 0 : index
    %c0_54 = arith.constant 0 : index
    %40 = vector.load %arg2[%c1_51, %c0_52, %c0_53, %c0_54] : memref<3x3x4x8xbf16, #tpu.memory_space<vmem>>, vector<1x1x4x8xbf16>
    %41 = vector.shape_cast %40 : vector<1x1x4x8xbf16> to vector<4x8xbf16>
    %cst_55 = arith.constant dense<0.000000e+00> : vector<256x8xf32>
    %42 = tpu.matmul %39, %41, %cst_55 {dimension_numbers = #tpu.dot_dimension_numbers<[1], [0], [0], [1], [0, 0, 1, 1], [], []>} : vector<256x4xbf16>, vector<4x8xbf16>, vector<256x8xf32> -> vector<256x8xf32>
    %43 = arith.addf %33, %42 : vector<256x8xf32>
    %c1_56 = arith.constant 1 : index
    %c0_57 = arith.constant 0 : index
    %c0_58 = arith.constant 0 : index
    %c0_59 = arith.constant 0 : index
    %44 = vector.load %arg5[%c1_56, %c0_57, %c0_58, %c0_59] : memref<3x3x4x8xbf16, #tpu.memory_space<vmem>>, vector<1x1x4x8xbf16>
    %45 = vector.shape_cast %44 : vector<1x1x4x8xbf16> to vector<4x8xbf16>
    %cst_60 = arith.constant dense<0.000000e+00> : vector<256x8xf32>
    %46 = tpu.matmul %39, %45, %cst_60 {dimension_numbers = #tpu.dot_dimension_numbers<[1], [0], [0], [1], [0, 0, 1, 1], [], []>} : vector<256x4xbf16>, vector<4x8xbf16>, vector<256x8xf32> -> vector<256x8xf32>
    %47 = arith.addf %37, %46 : vector<256x8xf32>
    %c1_61 = arith.constant 1 : index
    %c1_62 = arith.constant 1 : index
    %c0_63 = arith.constant 0 : index
    %48 = vector.load %arg10[%c1_61, %c1_62, %c0_63] : memref<18x18x4xbf16, #tpu.memory_space<vmem>>, vector<16x16x4xbf16>
    %49 = vector.shape_cast %48 : vector<16x16x4xbf16> to vector<256x4xbf16>
    %c1_64 = arith.constant 1 : index
    %c1_65 = arith.constant 1 : index
    %c0_66 = arith.constant 0 : index
    %c0_67 = arith.constant 0 : index
    %50 = vector.load %arg2[%c1_64, %c1_65, %c0_66, %c0_67] : memref<3x3x4x8xbf16, #tpu.memory_space<vmem>>, vector<1x1x4x8xbf16>
    %51 = vector.shape_cast %50 : vector<1x1x4x8xbf16> to vector<4x8xbf16>
    %cst_68 = arith.constant dense<0.000000e+00> : vector<256x8xf32>
    %52 = tpu.matmul %49, %51, %cst_68 {dimension_numbers = #tpu.dot_dimension_numbers<[1], [0], [0], [1], [0, 0, 1, 1], [], []>} : vector<256x4xbf16>, vector<4x8xbf16>, vector<256x8xf32> -> vector<256x8xf32>
    %53 = arith.addf %43, %52 : vector<256x8xf32>
    %c1_69 = arith.constant 1 : index
    %c1_70 = arith.constant 1 : index
    %c0_71 = arith.constant 0 : index
    %c0_72 = arith.constant 0 : index
    %54 = vector.load %arg5[%c1_69, %c1_70, %c0_71, %c0_72] : memref<3x3x4x8xbf16, #tpu.memory_space<vmem>>, vector<1x1x4x8xbf16>
    %55 = vector.shape_cast %54 : vector<1x1x4x8xbf16> to vector<4x8xbf16>
    %cst_73 = arith.constant dense<0.000000e+00> : vector<256x8xf32>
    %56 = tpu.matmul %49, %55, %cst_73 {dimension_numbers = #tpu.dot_dimension_numbers<[1], [0], [0], [1], [0, 0, 1, 1], [], []>} : vector<256x4xbf16>, vector<4x8xbf16>, vector<256x8xf32> -> vector<256x8xf32>
    %57 = arith.addf %47, %56 : vector<256x8xf32>
    %c1_74 = arith.constant 1 : index
    %c2_75 = arith.constant 2 : index
    %c0_76 = arith.constant 0 : index
    %58 = vector.load %arg10[%c1_74, %c2_75, %c0_76] : memref<18x18x4xbf16, #tpu.memory_space<vmem>>, vector<16x16x4xbf16>
    %59 = vector.shape_cast %58 : vector<16x16x4xbf16> to vector<256x4xbf16>
    %c1_77 = arith.constant 1 : index
    %c2_78 = arith.constant 2 : index
    %c0_79 = arith.constant 0 : index
    %c0_80 = arith.constant 0 : index
    %60 = vector.load %arg2[%c1_77, %c2_78, %c0_79, %c0_80] : memref<3x3x4x8xbf16, #tpu.memory_space<vmem>>, vector<1x1x4x8xbf16>
    %61 = vector.shape_cast %60 : vector<1x1x4x8xbf16> to vector<4x8xbf16>
    %cst_81 = arith.constant dense<0.000000e+00> : vector<256x8xf32>
    %62 = tpu.matmul %59, %61, %cst_81 {dimension_numbers = #tpu.dot_dimension_numbers<[1], [0], [0], [1], [0, 0, 1, 1], [], []>} : vector<256x4xbf16>, vector<4x8xbf16>, vector<256x8xf32> -> vector<256x8xf32>
    %63 = arith.addf %53, %62 : vector<256x8xf32>
    %c1_82 = arith.constant 1 : index
    %c2_83 = arith.constant 2 : index
    %c0_84 = arith.constant 0 : index
    %c0_85 = arith.constant 0 : index
    %64 = vector.load %arg5[%c1_82, %c2_83, %c0_84, %c0_85] : memref<3x3x4x8xbf16, #tpu.memory_space<vmem>>, vector<1x1x4x8xbf16>
    %65 = vector.shape_cast %64 : vector<1x1x4x8xbf16> to vector<4x8xbf16>
    %cst_86 = arith.constant dense<0.000000e+00> : vector<256x8xf32>
    %66 = tpu.matmul %59, %65, %cst_86 {dimension_numbers = #tpu.dot_dimension_numbers<[1], [0], [0], [1], [0, 0, 1, 1], [], []>} : vector<256x4xbf16>, vector<4x8xbf16>, vector<256x8xf32> -> vector<256x8xf32>
    %67 = arith.addf %57, %66 : vector<256x8xf32>
    %c2_87 = arith.constant 2 : index
    %c0_88 = arith.constant 0 : index
    %c0_89 = arith.constant 0 : index
    %68 = vector.load %arg10[%c2_87, %c0_88, %c0_89] : memref<18x18x4xbf16, #tpu.memory_space<vmem>>, vector<16x16x4xbf16>
    %69 = vector.shape_cast %68 : vector<16x16x4xbf16> to vector<256x4xbf16>
    %c2_90 = arith.constant 2 : index
    %c0_91 = arith.constant 0 : index
    %c0_92 = arith.constant 0 : index
    %c0_93 = arith.constant 0 : index
    %70 = vector.load %arg2[%c2_90, %c0_91, %c0_92, %c0_93] : memref<3x3x4x8xbf16, #tpu.memory_space<vmem>>, vector<1x1x4x8xbf16>
    %71 = vector.shape_cast %70 : vector<1x1x4x8xbf16> to vector<4x8xbf16>
    %cst_94 = arith.constant dense<0.000000e+00> : vector<256x8xf32>
    %72 = tpu.matmul %69, %71, %cst_94 {dimension_numbers = #tpu.dot_dimension_numbers<[1], [0], [0], [1], [0, 0, 1, 1], [], []>} : vector<256x4xbf16>, vector<4x8xbf16>, vector<256x8xf32> -> vector<256x8xf32>
    %73 = arith.addf %63, %72 : vector<256x8xf32>
    %c2_95 = arith.constant 2 : index
    %c0_96 = arith.constant 0 : index
    %c0_97 = arith.constant 0 : index
    %c0_98 = arith.constant 0 : index
    %74 = vector.load %arg5[%c2_95, %c0_96, %c0_97, %c0_98] : memref<3x3x4x8xbf16, #tpu.memory_space<vmem>>, vector<1x1x4x8xbf16>
    %75 = vector.shape_cast %74 : vector<1x1x4x8xbf16> to vector<4x8xbf16>
    %cst_99 = arith.constant dense<0.000000e+00> : vector<256x8xf32>
    %76 = tpu.matmul %69, %75, %cst_99 {dimension_numbers = #tpu.dot_dimension_numbers<[1], [0], [0], [1], [0, 0, 1, 1], [], []>} : vector<256x4xbf16>, vector<4x8xbf16>, vector<256x8xf32> -> vector<256x8xf32>
    %77 = arith.addf %67, %76 : vector<256x8xf32>
    %c2_100 = arith.constant 2 : index
    %c1_101 = arith.constant 1 : index
    %c0_102 = arith.constant 0 : index
    %78 = vector.load %arg10[%c2_100, %c1_101, %c0_102] : memref<18x18x4xbf16, #tpu.memory_space<vmem>>, vector<16x16x4xbf16>
    %79 = vector.shape_cast %78 : vector<16x16x4xbf16> to vector<256x4xbf16>
    %c2_103 = arith.constant 2 : index
    %c1_104 = arith.constant 1 : index
    %c0_105 = arith.constant 0 : index
    %c0_106 = arith.constant 0 : index
    %80 = vector.load %arg2[%c2_103, %c1_104, %c0_105, %c0_106] : memref<3x3x4x8xbf16, #tpu.memory_space<vmem>>, vector<1x1x4x8xbf16>
    %81 = vector.shape_cast %80 : vector<1x1x4x8xbf16> to vector<4x8xbf16>
    %cst_107 = arith.constant dense<0.000000e+00> : vector<256x8xf32>
    %82 = tpu.matmul %79, %81, %cst_107 {dimension_numbers = #tpu.dot_dimension_numbers<[1], [0], [0], [1], [0, 0, 1, 1], [], []>} : vector<256x4xbf16>, vector<4x8xbf16>, vector<256x8xf32> -> vector<256x8xf32>
    %83 = arith.addf %73, %82 : vector<256x8xf32>
    %c2_108 = arith.constant 2 : index
    %c1_109 = arith.constant 1 : index
    %c0_110 = arith.constant 0 : index
    %c0_111 = arith.constant 0 : index
    %84 = vector.load %arg5[%c2_108, %c1_109, %c0_110, %c0_111] : memref<3x3x4x8xbf16, #tpu.memory_space<vmem>>, vector<1x1x4x8xbf16>
    %85 = vector.shape_cast %84 : vector<1x1x4x8xbf16> to vector<4x8xbf16>
    %cst_112 = arith.constant dense<0.000000e+00> : vector<256x8xf32>
    %86 = tpu.matmul %79, %85, %cst_112 {dimension_numbers = #tpu.dot_dimension_numbers<[1], [0], [0], [1], [0, 0, 1, 1], [], []>} : vector<256x4xbf16>, vector<4x8xbf16>, vector<256x8xf32> -> vector<256x8xf32>
    %87 = arith.addf %77, %86 : vector<256x8xf32>
    %c2_113 = arith.constant 2 : index
    %c2_114 = arith.constant 2 : index
    %c0_115 = arith.constant 0 : index
    %88 = vector.load %arg10[%c2_113, %c2_114, %c0_115] : memref<18x18x4xbf16, #tpu.memory_space<vmem>>, vector<16x16x4xbf16>
    %89 = vector.shape_cast %88 : vector<16x16x4xbf16> to vector<256x4xbf16>
    %c2_116 = arith.constant 2 : index
    %c2_117 = arith.constant 2 : index
    %c0_118 = arith.constant 0 : index
    %c0_119 = arith.constant 0 : index
    %90 = vector.load %arg2[%c2_116, %c2_117, %c0_118, %c0_119] : memref<3x3x4x8xbf16, #tpu.memory_space<vmem>>, vector<1x1x4x8xbf16>
    %91 = vector.shape_cast %90 : vector<1x1x4x8xbf16> to vector<4x8xbf16>
    %cst_120 = arith.constant dense<0.000000e+00> : vector<256x8xf32>
    %92 = tpu.matmul %89, %91, %cst_120 {dimension_numbers = #tpu.dot_dimension_numbers<[1], [0], [0], [1], [0, 0, 1, 1], [], []>} : vector<256x4xbf16>, vector<4x8xbf16>, vector<256x8xf32> -> vector<256x8xf32>
    %93 = arith.addf %83, %92 : vector<256x8xf32>
    %c2_121 = arith.constant 2 : index
    %c2_122 = arith.constant 2 : index
    %c0_123 = arith.constant 0 : index
    %c0_124 = arith.constant 0 : index
    %94 = vector.load %arg5[%c2_121, %c2_122, %c0_123, %c0_124] : memref<3x3x4x8xbf16, #tpu.memory_space<vmem>>, vector<1x1x4x8xbf16>
    %95 = vector.shape_cast %94 : vector<1x1x4x8xbf16> to vector<4x8xbf16>
    %cst_125 = arith.constant dense<0.000000e+00> : vector<256x8xf32>
    %96 = tpu.matmul %89, %95, %cst_125 {dimension_numbers = #tpu.dot_dimension_numbers<[1], [0], [0], [1], [0, 0, 1, 1], [], []>} : vector<256x4xbf16>, vector<4x8xbf16>, vector<256x8xf32> -> vector<256x8xf32>
    %97 = arith.addf %87, %96 : vector<256x8xf32>
    %c0_126 = arith.constant 0 : index
    %c0_127 = arith.constant 0 : index
    %98 = vector.load %arg3[%c0_126, %c0_127] : memref<1x8xf32, #tpu.memory_space<vmem>>, vector<1x8xf32>
    %99 = vector.shape_cast %98 : vector<1x8xf32> to vector<8xf32>
    %100 = vector.shape_cast %99 : vector<8xf32> to vector<1x8xf32>
    %101 = vector.broadcast %100 : vector<1x8xf32> to vector<256x8xf32>
    %102 = arith.mulf %93, %101 : vector<256x8xf32>
    %c0_128 = arith.constant 0 : index
    %c0_129 = arith.constant 0 : index
    %103 = vector.load %arg4[%c0_128, %c0_129] : memref<1x8xf32, #tpu.memory_space<vmem>>, vector<1x8xf32>
    %104 = vector.shape_cast %103 : vector<1x8xf32> to vector<8xf32>
    %105 = vector.shape_cast %104 : vector<8xf32> to vector<1x8xf32>
    %106 = vector.broadcast %105 : vector<1x8xf32> to vector<256x8xf32>
    %107 = arith.addf %102, %106 : vector<256x8xf32>
    %cst_130 = arith.constant 0.000000e+00 : f32
    %108 = vector.broadcast %cst_130 : f32 to vector<256x8xf32>
    %109 = arith.maximumf %107, %108 : vector<256x8xf32>
    %110 = vector.shape_cast %109 : vector<256x8xf32> to vector<1x16x16x8xf32>
    %111 = arith.truncf %110 : vector<1x16x16x8xf32> to vector<1x16x16x8xbf16>
    %c0_131 = arith.constant 0 : index
    %c0_132 = arith.constant 0 : index
    %c0_133 = arith.constant 0 : index
    %c0_134 = arith.constant 0 : index
    %112 = vector.load %arg8[%c0_131, %c0_132, %c0_133, %c0_134] : memref<1x16x16x8xbf16, #tpu.memory_space<vmem>>, vector<1x16x16x8xbf16>
    tpu.vector_store %arg8[%c0_131, %c0_132, %c0_133, %c0_134], %111 {strides = array<i32>} : memref<1x16x16x8xbf16, #tpu.memory_space<vmem>>, vector<1x16x16x8xbf16>,
    %c0_135 = arith.constant 0 : index
    %c0_136 = arith.constant 0 : index
    %113 = vector.load %arg6[%c0_135, %c0_136] : memref<1x8xf32, #tpu.memory_space<vmem>>, vector<1x8xf32>
    %114 = vector.shape_cast %113 : vector<1x8xf32> to vector<8xf32>
    %115 = vector.shape_cast %114 : vector<8xf32> to vector<1x8xf32>
    %116 = vector.broadcast %115 : vector<1x8xf32> to vector<256x8xf32>
    %117 = arith.mulf %97, %116 : vector<256x8xf32>
    %c0_137 = arith.constant 0 : index
    %c0_138 = arith.constant 0 : index
    %118 = vector.load %arg7[%c0_137, %c0_138] : memref<1x8xf32, #tpu.memory_space<vmem>>, vector<1x8xf32>
    %119 = vector.shape_cast %118 : vector<1x8xf32> to vector<8xf32>
    %120 = vector.shape_cast %119 : vector<8xf32> to vector<1x8xf32>
    %121 = vector.broadcast %120 : vector<1x8xf32> to vector<256x8xf32>
    %122 = arith.addf %117, %121 : vector<256x8xf32>
    %123 = vector.shape_cast %122 : vector<256x8xf32> to vector<1x16x16x8xf32>
    %c0_139 = arith.constant 0 : index
    %c0_140 = arith.constant 0 : index
    %c0_141 = arith.constant 0 : index
    %c0_142 = arith.constant 0 : index
    %124 = vector.load %arg9[%c0_139, %c0_140, %c0_141, %c0_142] : memref<1x16x16x8xf32, #tpu.memory_space<vmem>>, vector<1x16x16x8xf32>
    tpu.vector_store %arg9[%c0_139, %c0_140, %c0_141, %c0_142], %123 {strides = array<i32>} : memref<1x16x16x8xf32, #tpu.memory_space<vmem>>, vector<1x16x16x8xf32>,
    return
  }
  func.func @transform_0(%arg0: i32) -> (i32, i32, i32, i32) {
    %c0_i32 = arith.constant 0 : i32
    %c0_i32_0 = arith.constant 0 : i32
    %c0_i32_1 = arith.constant 0 : i32
    %c0_i32_2 = arith.constant 0 : i32
    return %arg0, %c0_i32, %c0_i32_0, %c0_i32_1 : i32, i32, i32, i32
  }
  func.func @transform_1(%arg0: i32) -> (i32, i32, i32, i32) {
    %c0_i32 = arith.constant 0 : i32
    %c0_i32_0 = arith.constant 0 : i32
    %c0_i32_1 = arith.constant 0 : i32
    %c0_i32_2 = arith.constant 0 : i32
    %c0_i32_3 = arith.constant 0 : i32
    return %c0_i32, %c0_i32_0, %c0_i32_1, %c0_i32_2 : i32, i32, i32, i32
  }
  func.func @transform_2(%arg0: i32) -> (i32, i32) {
    %c0_i32 = arith.constant 0 : i32
    %c0_i32_0 = arith.constant 0 : i32
    %c0_i32_1 = arith.constant 0 : i32
    return %c0_i32, %c0_i32_0 : i32, i32
  }
  func.func @transform_3(%arg0: i32) -> (i32, i32) {
    %c0_i32 = arith.constant 0 : i32
    %c0_i32_0 = arith.constant 0 : i32
    %c0_i32_1 = arith.constant 0 : i32
    return %c0_i32, %c0_i32_0 : i32, i32
  }
  func.func @transform_4(%arg0: i32) -> (i32, i32, i32, i32) {
    %c0_i32 = arith.constant 0 : i32
    %c0_i32_0 = arith.constant 0 : i32
    %c0_i32_1 = arith.constant 0 : i32
    %c0_i32_2 = arith.constant 0 : i32
    %c0_i32_3 = arith.constant 0 : i32
    return %c0_i32, %c0_i32_0, %c0_i32_1, %c0_i32_2 : i32, i32, i32, i32
  }
  func.func @transform_5(%arg0: i32) -> (i32, i32) {
    %c0_i32 = arith.constant 0 : i32
    %c0_i32_0 = arith.constant 0 : i32
    %c0_i32_1 = arith.constant 0 : i32
    return %c0_i32, %c0_i32_0 : i32, i32
  }
  func.func @transform_6(%arg0: i32) -> (i32, i32) {
    %c0_i32 = arith.constant 0 : i32
    %c0_i32_0 = arith.constant 0 : i32
    %c0_i32_1 = arith.constant 0 : i32
    return %c0_i32, %c0_i32_0 : i32, i32
  }
  func.func @transform_7(%arg0: i32) -> (i32, i32, i32, i32) {
    %c0_i32 = arith.constant 0 : i32
    %c0_i32_0 = arith.constant 0 : i32
    %c0_i32_1 = arith.constant 0 : i32
    %c0_i32_2 = arith.constant 0 : i32
    return %arg0, %c0_i32, %c0_i32_0, %c0_i32_1 : i32, i32, i32, i32
  }
  func.func @transform_8(%arg0: i32) -> (i32, i32, i32, i32) {
    %c0_i32 = arith.constant 0 : i32
    %c0_i32_0 = arith.constant 0 : i32
    %c0_i32_1 = arith.constant 0 : i32
    %c0_i32_2 = arith.constant 0 : i32
    return %arg0, %c0_i32, %c0_i32_0, %c0_i32_1 : i32, i32, i32, i32
  }
}

</mosaic_0001>

<bundles_post_ra>
// kernel: tpu_custom_call.1
= control target key start
LH: loop header
LB: loop body
LE: loop exit
PB: predicated region body
PF: predicated region fallthrough
CT: control target
= control target key end

     0   :  { %s9420_s27 = smov 0   ;;  %s13554_s0 = inlined_call_operand.vmem [shape: f32[2,16,16,4], index: 0, kind: input, shape index: {}]   ;;  %s13555_s1 = inlined_call_operand.vmem [shape: bf16[3,3,4,8], index: 1, kind: input, shape index: {}]   ;;  %s13556_s2 = inlined_call_operand.vmem [shape: f32[1,8], index: 2, kind: input, shape index: {}]   ;;  %s13557_s3 = inlined_call_operand.vmem [shape: f32[1,8], index: 3, kind: input, shape index: {}]   ;;  %s13558_s4 = inlined_call_operand.vmem [shape: bf16[3,3,4,8], index: 4, kind: input, shape index: {}]   ;;  %s13559_s5 = inlined_call_operand.vmem [shape: f32[1,8], index: 5, kind: input, shape index: {}]   ;;  %s13560_s6 = inlined_call_operand.vmem [shape: f32[1,8], index: 6, kind: input, shape index: {}]   ;;  %s13561_s7 = inlined_call_operand.vmem [shape: bf16[2,16,16,8], index: 7, kind: output, shape index: {0}]   ;;  %s13562_s8 = inlined_call_operand.vmem [shape: f32[2,16,16,8], index: 8, kind: output, shape index: {1}]  }
   0x1 LB: > { %s7690_s28 = sadd.s32 4294967295, %s9372_s27   ;;  %p7694_p0 = scmp.ge.s32.totalorder %s9372_s27, 1  ;;  %s9372_s27 = sphi %s9420_s27, %s19_s27  }
   0x2   : > { %p265_p1 = scmp.lt.s32.totalorder %s9372_s27, 3 }
   0x4   : > { %p266_p2 = pnand %p7694_p0, %p265_p1 }
   0x6   : > { %269 = sbr.rel (%p266_p2) target bundleno = 898 (0x382), region = 48 }
   0xb   : > { %v977_v0 = vld [vmem:[%s13555_s1] sm:$0x3]  ;;  %vm1481_vm0 = vcmask 1041408   ;;  %vm320_vm1 = vcmask 27648   ;;  %v9374_v2 = vmov 0   ;;  %p9471_p3 = scmp.lt.s32.totalorder %s7690_s28, 1 }
   0xc   : > { %9253 = vmatprep.subr.msk.bf16.mxu1 %vm1481_vm0, %v977_v0  ;;  %v1775_v1 = vsel %vm1481_vm0, %v977_v0, 0  ;;  %321 = vst.msk [vmem:[#allocation2] sm:$0xf] %vm320_vm1, %v9374_v2  ;;  %322 = vst.msk [vmem:[#allocation2 + $0x4] sm:$0xf] %vm320_vm1, %v9374_v2  ;;  %vm323_vm2 = vcmask 24576  }
   0xd   : > { %325 = vst.msk [vmem:[#allocation2 + $0xc] sm:$0xf] %vm320_vm1, %v9374_v2  ;;  %326 = vst.msk [vmem:[#allocation2 + $0x10] sm:$0xf] %vm320_vm1, %v9374_v2  ;;  %8675 = vmatpush3.bf16.msra.mxu1 %v1775_v1  ;;  %v7733_v3 = vld [vmem:[%s13555_s1 + $0x2] sm:$0x3] }
   0xe   : > { %328 = vst.msk [vmem:[#allocation2 + $0x18] sm:$0xf] %vm320_vm1, %v9374_v2  ;;  %329 = vst.msk [vmem:[#allocation2 + $0x1c] sm:$0xf] %vm320_vm1, %v9374_v2  ;;  %s14177_s28 = smov (!%p9471_p3, %s7690_s28), 1  ;;  %9252 = vmatprep.subr.msk.bf16.mxu0 %vm1481_vm0, %v7733_v3  ;;  %v1483_v4 = vsel %vm1481_vm0, %v7733_v3, 0 }
   0xf   : > { %331 = vst.msk [vmem:[#allocation2 + $0x24] sm:$0xf] %vm320_vm1, %v9374_v2  ;;  %332 = vst.msk [vmem:[#allocation2 + $0x28] sm:$0xf] %vm320_vm1, %v9374_v2  ;;  %8641 = vmatpush3.bf16.msra.mxu0 %v1483_v4  ;;  %v7798_v5 = vld [vmem:[%s13558_s4 + $0x2] sm:$0x3] }
  0x10   : > { %334 = vst.msk [vmem:[#allocation2 + $0x30] sm:$0xf] %vm320_vm1, %v9374_v2  ;;  %335 = vst.msk [vmem:[#allocation2 + $0x34] sm:$0xf] %vm320_vm1, %v9374_v2  ;;  %v9510_v6 = vld [vmem:[%s13558_s4] sm:$0x3]  ;;  %9254 = vmatprep.subr.msk.bf16.mxu0 %vm1481_vm0, %v7798_v5 }
  0x11   : > { %337 = vst.msk [vmem:[#allocation2 + $0x3c] sm:$0xf] %vm320_vm1, %v9374_v2  ;;  %338 = vst.msk [vmem:[#allocation2 + $0x40] sm:$0xf] %vm320_vm1, %v9374_v2  ;;  %s8267_s16 = sshll.u32 %s14177_s28, 8  ;;  %9255 = vmatprep.subr.msk.bf16.mxu1 %vm1481_vm0, %v9510_v6  ;;  %vm1432_vm5 = vcmask 31744  }
  0x12   : > { %340 = vst.msk [vmem:[#allocation2 + $0x48] sm:$0xf] %vm320_vm1, %v9374_v2  ;;  %341 = vst.msk [vmem:[#allocation2 + $0x4c] sm:$0xf] %vm320_vm1, %v9374_v2  ;;  %s9521_s19 = scalar_lea.vmem %s13554_s0, %s8267_s16  ;;  %vm504_vm3 = vsmask.f32 256  ;;  %s13108_s20 = scalar_lea.vmem %s13562_s8, %s8267_s16 }
  0x13   : > { %343 = vst.msk [vmem:[#allocation2 + $0x54] sm:$0xf] %vm320_vm1, %v9374_v2  ;;  %344 = vst.msk [vmem:[#allocation2 + $0x58] sm:$0xf] %vm320_vm1, %v9374_v2  ;;  %vm505_vm4 = vsmask.f32 4368 }
  0x14   : > { %346 = vst.msk [vmem:[#allocation2 + $0x60] sm:$0xf] %vm320_vm1, %v9374_v2  ;;  %347 = vst.msk [vmem:[#allocation2 + $0x64] sm:$0xf] %vm320_vm1, %v9374_v2  ;;  %v376_v7 = vld [vmem:[%s9521_s19] sm:$0xff]  ;;  %v377_v8 = vld [vmem:[%s9521_s19 + $0x8] sm:$0xff] }
  0x15   : > { %349 = vst.msk [vmem:[#allocation2 + $0x6c] sm:$0xf] %vm320_vm1, %v9374_v2  ;;  %350 = vst.msk [vmem:[#allocation2 + $0x70] sm:$0xf] %vm320_vm1, %v9374_v2  ;;  %vm829_vm6 = vsmask.f32 7938  ;;  %v8270_v12 = vpack.c.bf16 %v376_v7, %v376_v7  ;;  %v8271_v13 = vpack.c.bf16 %v377_v8, %v377_v8 }
  0x16   : > { %352 = vst.msk [vmem:[#allocation2 + $0x78] sm:$0xf] %vm320_vm1, %v9374_v2  ;;  %353 = vst.msk [vmem:[#allocation2 + $0x7c] sm:$0xf] %vm320_vm1, %v9374_v2  ;;  %v378_v9 = vld [vmem:[%s9521_s19 + $0x10] sm:$0xff]  ;;  %v379_v18 = vld [vmem:[%s9521_s19 + $0x18] sm:$0xff] }
  0x17   : > { %355 = vst.msk [vmem:[#allocation2 + $0x84] sm:$0xf] %vm320_vm1, %v9374_v2  ;;  %356 = vst.msk [vmem:[#allocation2 + $0x88] sm:$0xf] %vm320_vm1, %v9374_v2  ;;  %v945_v10 = vld [vmem:[#allocation2] sm:$0xf]  ;;  %v8272_v14 = vpack.c.bf16 %v378_v9, %v378_v9  ;;  %v8273_v26 = vpack.c.bf16 %v379_v18, %v379_v18 }
  0x18   : > { %358 = vst.msk [vmem:[#allocation2 + $0x90] sm:$0xf] %vm320_vm1, %v9374_v2  ;;  %359 = vst.msk [vmem:[#allocation2 + $0x94] sm:$0xf] %vm320_vm1, %v9374_v2  ;;  %v9526_v11 = vld [vmem:[#allocation2 + $0x4] sm:$0xf] }
  0x19   : > { %361 = vst.msk [vmem:[#allocation2 + $0x9c] sm:$0xf] %vm320_vm1, %v9374_v2  ;;  %362 = vst.msk [vmem:[#allocation2 + $0xa0] sm:$0xf] %vm320_vm1, %v9374_v2  ;;  %vm995_vm7 = vsmask.f32 3328  ;;  %v9529_v17 = vcombine.low %v945_v10, %v9526_v11 }
  0x1a   : > { %364 = vst.msk [vmem:[#allocation2 + $0xa8] sm:$0xf] %vm320_vm1, %v9374_v2  ;;  %365 = vst.msk [vmem:[#allocation2 + $0xac] sm:$0xf] %vm320_vm1, %v9374_v2  ;;  %v999_v15 = vshrl.u32 %v945_v10, 16  ;;  %v1002_v16 = vshll.u32 %v945_v10, 16 }
  0x1b   : > { %367 = vst.msk [vmem:[#allocation2 + $0xb4] sm:$0xf] %vm320_vm1, %v9374_v2  ;;  %368 = vst.msk [vmem:[#allocation2 + $0xb8] sm:$0xf] %vm320_vm1, %v9374_v2  ;;  %vm996_vm8 = vsmask.f32 7440  ;;  %8676 = vmatprep.mubr.msk.bf16.mxu1 %vm1432_vm5, %v9529_v17 }
  0x1c   : > { %370 = vst.msk [vmem:[#allocation2 + $0xc0] sm:$0xf] %vm320_vm1, %v9374_v2  ;;  %371 = vst.msk [vmem:[#allocation2 + $0xc4] sm:$0xf] %vm320_vm1, %v9374_v2  ;;  %v1012_v19 = vshrl.u32 %v9526_v11, 16  ;;  %v508_v20 = vshrl.u32 %v8270_v12, 16 }
  0x1d   : > { %373 = vst.msk [vmem:[#allocation2 + $0xcc] sm:$0xf] %vm320_vm1, %v9374_v2  ;;  %374 = vst.msk [vmem:[#allocation2 + $0xd0] sm:$0xf] %vm320_vm1, %v9374_v2  ;;  %v511_v21 = vshll.u32 %v8270_v12, 16  ;;  %v516_v22 = vshrl.u32 %v8271_v13, 16 }
  0x1e   : > { %324 = vst.msk [vmem:[#allocation2 + $0x8] sm:$0x1] %vm323_vm2, %v9374_v2  ;;  %327 = vst.msk [vmem:[#allocation2 + $0x14] sm:$0x1] %vm323_vm2, %v9374_v2  ;;  %v1001_v23 = vrot.slane %v999_v15, 4  ;;  %v1004_v24 = vrot.slane %v1002_v16, 5 }
  0x1f   : > { %330 = vst.msk [vmem:[#allocation2 + $0x20] sm:$0x1] %vm323_vm2, %v9374_v2  ;;  %333 = vst.msk [vmem:[#allocation2 + $0x2c] sm:$0x1] %vm323_vm2, %v9374_v2  ;;  %v519_v25 = vshll.u32 %v8271_v13, 16  ;;  %v510_v28 = vrot.slane %v508_v20, 7 }
  0x20   : > { %336 = vst.msk [vmem:[#allocation2 + $0x38] sm:$0x1] %vm323_vm2, %v9374_v2  ;;  %339 = vst.msk [vmem:[#allocation2 + $0x44] sm:$0x1] %vm323_vm2, %v9374_v2  ;;  %v518_v29 = vrot.slane %v516_v22, 7  ;;  %v525_v30 = vshrl.u32 %v8272_v14, 16  ;;  %v1005_v37 = vor.u32 %v1004_v24, %v1001_v23 }
  0x21   : > { %342 = vst.msk [vmem:[#allocation2 + $0x50] sm:$0x1] %vm323_vm2, %v9374_v2  ;;  %345 = vst.msk [vmem:[#allocation2 + $0x5c] sm:$0x1] %vm323_vm2, %v9374_v2  ;;  %v9542_v31 = vsel %vm1481_vm0, %v7798_v5, 0  ;;  %v528_v34 = vshll.u32 %v8272_v14, 16  ;;  %v513_v38 = vor.u32 %v511_v21, %v510_v28 }
  0x22   : > { %348 = vst.msk [vmem:[#allocation2 + $0x68] sm:$0x1] %vm323_vm2, %v9374_v2  ;;  %351 = vst.msk [vmem:[#allocation2 + $0x74] sm:$0x1] %vm323_vm2, %v9374_v2  ;;  %v831_v33 = vld [vmem:[#allocation2 + $0xc] sm:$0xf]  ;;  %v521_v40 = vor.u32 %v519_v25, %v518_v29 }
  0x23   : > { %354 = vst.msk [vmem:[#allocation2 + $0x80] sm:$0x1] %vm323_vm2, %v9374_v2  ;;  %357 = vst.msk [vmem:[#allocation2 + $0x8c] sm:$0x1] %vm323_vm2, %v9374_v2  ;;  %v533_v35 = vshrl.u32 %v8273_v26, 16  ;;  %v536_v36 = vshll.u32 %v8273_v26, 16 }
  0x24   : > { %360 = vst.msk [vmem:[#allocation2 + $0x98] sm:$0x1] %vm323_vm2, %v9374_v2  ;;  %363 = vst.msk [vmem:[#allocation2 + $0xa4] sm:$0x1] %vm323_vm2, %v9374_v2  ;;  %v514_v39 = vrot.slane %v510_v28, 4  ;;  %v527_v41 = vrot.slane %v525_v30, 7 }
  0x25   : > { %366 = vst.msk [vmem:[#allocation2 + $0xb0] sm:$0x1] %vm323_vm2, %v9374_v2  ;;  %369 = vst.msk [vmem:[#allocation2 + $0xbc] sm:$0x1] %vm323_vm2, %v9374_v2  ;;  %v840_v42 = vld [vmem:[#allocation2 + $0x18] sm:$0xf] }
  0x26   : > { %372 = vst.msk [vmem:[#allocation2 + $0xc8] sm:$0x1] %vm323_vm2, %v9374_v2  ;;  %375 = vst.msk [vmem:[#allocation2 + $0xd4] sm:$0x1] %vm323_vm2, %v9374_v2  ;;  %v9550_v43 = vld [vmem:[#allocation2 + $0x8] sm:$0x1]  ;;  %v530_v52 = vor.u32 %v528_v34, %v527_v41 }
  0x27   : > { %vm9537_vm9 = vmor %vm504_vm3, %vm505_vm4  ;;  %v13563_v44 = vrot.slane %v9526_v11, 5  ;;  %v9553_v45 = vrot.slane %v533_v35, 7  ;;  %v1008_v46 = vshll.u32 %v9526_v11, 16  ;;  %v1014_v47 = vrot.slane %v1012_v19, 4  ;;  %v380_v48 = vld [vmem:[%s9521_s19 + $0x20] sm:$0xff]  ;;  %v381_v49 = vld [vmem:[%s9521_s19 + $0x28] sm:$0xff] }
  0x28   : > { %vm9546_vm10 = vmand %vm320_vm1, %vm829_vm6  ;;  %v522_v50 = vsel %vm9537_vm9, %v514_v39, %v521_v40  ;;  %v531_v53 = vrot.slane %v527_v41, 4  ;;  %v1006_v56 = vrot.slane %v1005_v37, 4  ;;  %v1018_v58 = vshll.u32 %v9550_v43, 16  ;;  %v837_v0 = vld [vmem:[#allocation2 + $0x14] sm:$0x1]  ;;  %v383_v7 = vld [vmem:[%s9521_s19 + $0x38] sm:$0xff] }
  0x29   : > { %v832_v51 = vsel %vm9546_vm10, %v513_v38, %v831_v33  ;;  %834 = vst.msk [vmem:[#allocation2 + $0x10] sm:$0xf] %vm320_vm1, %v522_v50  ;;  %vm9565_vm11 = vmand %vm323_vm2, %vm504_vm3  ;;  %v538_v55 = vor.u32 %v536_v36, %v9553_v45  ;;  %v1010_v57 = vrot.slane %v1008_v46, 5  ;;  %v841_v59 = vsel %vm9546_vm10, %v530_v52, %v840_v42  ;;  %v382_v1 = vld [vmem:[%s9521_s19 + $0x30] sm:$0xff]  ;;  %v847_v23 = vld [vmem:[#allocation2 + $0x24] sm:$0xf] }
  0x2a   : > { %833 = vst [vmem:[#allocation2 + $0xc] sm:$0xf] %v832_v51  ;;  %vm9575_vm12 = vmor %vm995_vm7, %vm996_vm8  ;;  %v13618_v60 = vmov 0  ;;  %v8274_v61 = vpack.c.bf16 %v380_v48, %v380_v48  ;;  %v8275_v62 = vpack.c.bf16 %v381_v49, %v381_v49  ;;  %v523_v63 = vrot.slane %v518_v29, 4  ;;  %v384_v39 = vld [vmem:[%s9521_s19 + $0x40] sm:$0xff]  ;;  %s8268_s24 = sshll.u32 %s14177_s28, 7 }
  0x2b   : > { %v13619_v60 = vsel %vm9575_vm12, 4294967295, %v13618_v60  ;;  %v539_v2 = vsel %vm9537_vm9, %v531_v53, %v538_v55  ;;  %842 = vst [vmem:[#allocation2 + $0x18] sm:$0xf] %v841_v59  ;;  %v1015_v3 = vor.u32 %v1014_v47, %v1010_v57  ;;  %v1020_v4 = vrot.slane %v1018_v58, 5  ;;  %s13268_s26 = scalar_lea.vmem %s13561_s7, %s8268_s24 }
  0x2c   : > { %13620 = vst [vmem:[#allocation3_spill] sm:$0xff] %v13619_v60  ;;  %v2105_v5 = vsel %vm1481_vm0, %v9510_v6, 0  ;;  %843 = vst.msk [vmem:[#allocation2 + $0x1c] sm:$0xf] %vm320_vm1, %v539_v2  ;;  %v542_v8 = vshrl.u32 %v8274_v61, 16  ;;  %v545_v9 = vshll.u32 %v8274_v61, 16  ;;  %v1011_v13 = vsel %vm9575_vm12, %v1006_v56, %v1010_v57 }
  0x2d   : > { %v550_v10 = vshrl.u32 %v8275_v62, 16  ;;  %v553_v12 = vshll.u32 %v8275_v62, 16  ;;  %v1016_v14 = vrot.slane %v1015_v3, 4  ;;  %v838_v15 = vsel %vm9565_vm11, %v523_v63, %v837_v0  ;;  %v844_v56 = vld [vmem:[#allocation2 + $0x20] sm:$0x1] }
  0x2e   : > { %v8276_v16 = vpack.c.bf16 %v382_v1, %v382_v1  ;;  %v9592_v18 = vrot.slane %v13563_v44, 4  ;;  %v544_v6 = vrot.slane %v542_v8, 7  ;;  %839 = vst [vmem:[#allocation2 + $0x14] sm:$0x1] %v838_v15  ;;  %v8277_v20 = vpack.c.bf16 %v383_v7, %v383_v7  ;;  %v854_v8 = vld [vmem:[#allocation2 + $0x30] sm:$0xf] }
  0x2f   : > { %v9594_v19 = vrot.slane %v550_v10, 7  ;;  %v1021_v21 = vsel %vm9575_vm12, %v1016_v14, %v1020_v4  ;;  %v540_v25 = vrot.slane %v9553_v45, 4  ;;  %v9622_v57 = vpack.c.bf16 %v384_v39, %v384_v39  ;;  %v385_v10 = vld [vmem:[%s9521_s19 + $0x48] sm:$0xff] }
  0x30   : > { %v559_v24 = vshrl.u32 %v8276_v16, 16  ;;  %v9600_v28 = vld [vmem:[#allocation2 + $0x10] sm:$0xf]  ;;  %v9602_v29 = vcombine.low %v1011_v13, %v1021_v21  ;;  %v547_v30 = vor.u32 %v545_v9, %v544_v6  ;;  %v548_v33 = vrot.slane %v544_v6, 4 }
  0x31   : > { %v947_v26 = vld [vmem:[#allocation2 + $0xc] sm:$0xf]  ;;  %v555_v34 = vor.u32 %v553_v12, %v9594_v19  ;;  %v1036_v37 = vshrl.u32 %v9600_v28, 16  ;;  %v1032_v45 = vshll.u32 %v9600_v28, 16  ;;  %v567_v46 = vshrl.u32 %v8277_v20, 16 }
  0x32   : > { %v1023_v35 = vshrl.u32 %v947_v26, 16  ;;  %v1026_v36 = vshll.u32 %v947_v26, 16  ;;  %v9607_v38 = vcombine.low %v947_v26, %v9600_v28  ;;  %v949_v40 = vld [vmem:[#allocation2 + $0x18] sm:$0xf]  ;;  %8642 = vmatprep.mubr.msk.bf16.mxu0 %vm1432_vm5, %v9602_v29  ;;  %v848_v42 = vsel %vm9546_vm10, %v547_v30, %v847_v23 }
  0x33   : > { %v556_v41 = vsel %vm9537_vm9, %v548_v33, %v555_v34  ;;  %v950_v49 = vld [vmem:[#allocation2 + $0x1c] sm:$0xf]  ;;  %v1047_v50 = vshrl.u32 %v949_v40, 16  ;;  %v1050_v51 = vshll.u32 %v949_v40, 16  ;;  %849 = vst [vmem:[#allocation2 + $0x24] sm:$0xf] %v848_v42  ;;  %v845_v9 = vsel %vm9565_vm11, %v540_v25, %v844_v56 }
  0x34   : > { %v1025_v47 = vrot.slane %v1023_v35, 4  ;;  %v1028_v48 = vrot.slane %v1026_v36, 5  ;;  %8677 = vmatmul.mubr.msk.bf16.vlgmr.msra.gmra.mxu1 %vm1432_vm5, %v9607_v38  ;;  %850 = vst.msk [vmem:[#allocation2 + $0x28] sm:$0xf] %vm320_vm1, %v556_v41  ;;  %v9620_v52 = vcombine.low %v949_v40, %v950_v49  ;;  %v1034_v53 = vrot.slane %v1032_v45, 5 }
  0x35   : > { %8743 = vmatpush3.bf16.msra.mxu1 %v2105_v5  ;;  %v562_v55 = vshll.u32 %v8276_v16, 16  ;;  %v1049_v58 = vrot.slane %v1047_v50, 4  ;;  %v1052_v59 = vrot.slane %v1050_v51, 5  ;;  %v980_v61 = vld [vmem:[#allocation2 + $0x14] sm:$0x1]  ;;  %v1038_v63 = vrot.slane %v1036_v37, 4 }
  0x36   : > { %v1029_v62 = vor.u32 %v1028_v48, %v1025_v47  ;;  %v1060_v0 = vshrl.u32 %v950_v49, 16  ;;  %8680 = vmatprep.mubr.msk.bf16.mxu1 %vm1432_vm5, %v9620_v52  ;;  %v1042_v1 = vshll.u32 %v980_v61, 16  ;;  %v561_v2 = vrot.slane %v559_v24, 7  ;;  %846 = vst [vmem:[#allocation2 + $0x20] sm:$0x1] %v845_v9 }
  0x37   : > { %v9626_v3 = vrot.slane %v567_v46, 7  ;;  %v1039_v5 = vor.u32 %v1038_v63, %v1034_v53  ;;  %v570_v7 = vshll.u32 %v8277_v20, 16  ;;  %v1053_v15 = vor.u32 %v1052_v59, %v1049_v58  ;;  %v851_v56 = vld [vmem:[#allocation2 + $0x2c] sm:$0x1]  ;;  %v2270_v27 = vld [vmem:[#allocation2 + $0x18] sm:$0xe] }
  0x38   : > { %v1030_v4 = vrot.slane %v1029_v62, 4  ;;  %v1044_v12 = vrot.slane %v1042_v1, 5  ;;  %v564_v13 = vor.u32 %v562_v55, %v561_v2  ;;  %v565_v14 = vrot.slane %v561_v2, 4 }
  0x39   : > { %v1040_v6 = vrot.slane %v1039_v5, 4  ;;  %v572_v21 = vor.u32 %v570_v7, %v9626_v3  ;;  %v1056_v23 = vshll.u32 %v950_v49, 16  ;;  %v1062_v30 = vrot.slane %v1060_v0, 4  ;;  %v861_v49 = vld [vmem:[#allocation2 + $0x3c] sm:$0xf]  ;;  %v386_v0 = vld [vmem:[%s9521_s19 + $0x50] sm:$0xff] }
  0x3a   : > { %v951_v24 = vld [vmem:[#allocation2 + $0x24] sm:$0xf]  ;;  %v1035_v20 = vsel %vm9575_vm12, %v1030_v4, %v1034_v53  ;;  %v855_v25 = vsel %vm9546_vm10, %v564_v13, %v854_v8  ;;  %v8279_v33 = vpack.c.bf16 %v385_v10, %v385_v10  ;;  %v1054_v37 = vrot.slane %v1053_v15, 4  ;;  %v387_v10 = vld [vmem:[%s9521_s19 + $0x58] sm:$0xff] }
  0x3b   : > { %v952_v26 = vld [vmem:[#allocation2 + $0x28] sm:$0xf]  ;;  %v1071_v34 = vshrl.u32 %v951_v24, 16  ;;  %v1074_v35 = vshll.u32 %v951_v24, 16  ;;  %856 = vst [vmem:[#allocation2 + $0x30] sm:$0xf] %v855_v25  ;;  %v1045_v39 = vsel %vm9575_vm12, %v1040_v6, %v1044_v12  ;;  %v573_v40 = vsel %vm9537_vm9, %v565_v14, %v572_v21 }
  0x3c   : > { %v9637_v36 = vcombine.low %v951_v24, %v952_v26  ;;  %v1058_v41 = vrot.slane %v1056_v23, 5  ;;  %v576_v42 = vshrl.u32 %v9622_v57, 16  ;;  %v9646_v47 = vcombine.low %v1035_v20, %v1045_v39  ;;  %857 = vst.msk [vmem:[#allocation2 + $0x34] sm:$0xf] %vm320_vm1, %v573_v40  ;;  %v7880_v6 = vld [vmem:[%s13558_s4 + $0x4] sm:$0x3] }
  0x3d   : > { %v1073_v45 = vrot.slane %v1071_v34, 4  ;;  %v1076_v46 = vrot.slane %v1074_v35, 5  ;;  %v579_v48 = vshll.u32 %v9622_v57, 16  ;;  %v1084_v50 = vshrl.u32 %v952_v26, 16  ;;  %v981_v58 = vld [vmem:[#allocation2 + $0x20] sm:$0x1]  ;;  %9257 = vmatprep.subr.msk.bf16.mxu1 %vm1481_vm0, %v7880_v6 }
  0x3e   : > { %8681 = vmatmul.mubr.msk.bf16.gmra.mxu1 %vm1432_vm5, %v9637_v36  ;;  %v1063_v51 = vor.u32 %v1062_v30, %v1058_v41  ;;  %v578_v53 = vrot.slane %v576_v42, 7  ;;  %v584_v55 = vshrl.u32 %v8279_v33, 16  ;;  %8643 = vmatmul.mubr.msk.bf16.vlgmr.msra.gmra.mxu0 %vm1432_vm5, %v9646_v47  ;;  %v587_v59 = vshll.u32 %v8279_v33, 16  ;;  %v858_v35 = vld [vmem:[#allocation2 + $0x38] sm:$0x1]  ;;  %v388_v39 = vld [vmem:[%s9521_s19 + $0x60] sm:$0xff] }
  0x3f   : > { %v557_v61 = vrot.slane %v9594_v19, 4  ;;  %v1077_v62 = vor.u32 %v1076_v46, %v1073_v45  ;;  %v1080_v63 = vshll.u32 %v952_v26, 16  ;;  %8709 = vmatpush3.bf16.msra.mxu0 %v9542_v31  ;;  %v1066_v1 = vshll.u32 %v981_v58, 16  ;;  %v7847_v19 = vld [vmem:[%s13555_s1 + $0x4] sm:$0x3] }
  0x40   : > { %v1064_v57 = vrot.slane %v1063_v51, 4  ;;  %v581_v2 = vor.u32 %v579_v48, %v578_v53  ;;  %v582_v4 = vrot.slane %v578_v53, 4  ;;  %v9655_v5 = vrot.slane %v584_v55, 7  ;;  %9256 = vmatprep.subr.msk.bf16.mxu0 %vm1481_vm0, %v7847_v19  ;;  %v868_v51 = vld [vmem:[#allocation2 + $0x48] sm:$0xf] }
  0x41   : > { %v852_v7 = vsel %vm9565_vm11, %v557_v61, %v851_v56  ;;  %v9659_v8 = vrot.slane %v1077_v62, 4  ;;  %v9661_v9 = vrot.slane %v1080_v63, 5  ;;  %v1068_v31 = vrot.slane %v1066_v1, 5 }
  0x42   : > { %v953_v12 = vld [vmem:[#allocation2 + $0x30] sm:$0xf]  ;;  %v862_v13 = vsel %vm9546_vm10, %v581_v2, %v861_v49  ;;  %853 = vst [vmem:[#allocation2 + $0x2c] sm:$0x1] %v852_v7  ;;  %v1086_v14 = vrot.slane %v1084_v50, 4  ;;  %v8280_v15 = vpack.c.bf16 %v386_v0, %v386_v0  ;;  %v1059_v24 = vsel %vm9575_vm12, %v1054_v37, %v1058_v41  ;;  %v389_v37 = vld [vmem:[%s9521_s19 + $0x68] sm:$0xff] }
  0x43   : > { %v1095_v21 = vshrl.u32 %v953_v12, 16  ;;  %v1098_v23 = vshll.u32 %v953_v12, 16  ;;  %v589_v26 = vor.u32 %v587_v59, %v9655_v5  ;;  %863 = vst [vmem:[#allocation2 + $0x3c] sm:$0xf] %v862_v13  ;;  %v954_v20 = vld [vmem:[#allocation2 + $0x34] sm:$0xf]  ;;  %v1069_v25 = vsel %vm9575_vm12, %v1064_v57, %v1068_v31 }
  0x44   : > { %v1087_v30 = vor.u32 %v1086_v14, %v9661_v9  ;;  %v8281_v33 = vpack.c.bf16 %v387_v10, %v387_v10  ;;  %v593_v34 = vshrl.u32 %v8280_v15, 16  ;;  %v1108_v45 = vshrl.u32 %v954_v20, 16 }
  0x45   : > { %v1097_v40 = vrot.slane %v1095_v21, 4  ;;  %v1100_v42 = vrot.slane %v1098_v23, 5  ;;  %v9681_v46 = vcombine.low %v953_v12, %v954_v20  ;;  %v9684_v41 = vcombine.low %v1059_v24, %v1069_v25 }
  0x46   : > { %v590_v48 = vsel %vm9537_vm9, %v582_v4, %v589_v26  ;;  %v1088_v49 = vrot.slane %v1087_v30, 4  ;;  %v595_v50 = vrot.slane %v593_v34, 7  ;;  %v596_v53 = vshll.u32 %v8280_v15, 16  ;;  %v865_v34 = vld [vmem:[#allocation2 + $0x44] sm:$0x1] }
  0x47   : > { %8684 = vmatprep.mubr.msk.bf16.mxu1 %vm1432_vm5, %v9681_v46  ;;  %864 = vst.msk [vmem:[#allocation2 + $0x40] sm:$0xf] %vm320_vm1, %v590_v48  ;;  %v601_v55 = vshrl.u32 %v8281_v33, 16  ;;  %v604_v56 = vshll.u32 %v8281_v33, 16  ;;  %v574_v58 = vrot.slane %v9626_v3, 4  ;;  %8646 = vmatprep.mubr.msk.bf16.mxu0 %vm1432_vm5, %v9684_v41  ;;  %v1101_v61 = vor.u32 %v1100_v42, %v1097_v40  ;;  %v390_v42 = vld [vmem:[%s9521_s19 + $0x70] sm:$0xff] }
  0x48   : > { %v599_v59 = vrot.slane %v595_v50, 4  ;;  %v1104_v62 = vshll.u32 %v954_v20, 16  ;;  %v1110_v63 = vrot.slane %v1108_v45, 4  ;;  %v598_v57 = vor.u32 %v596_v53, %v595_v50  ;;  %v875_v33 = vld [vmem:[#allocation2 + $0x54] sm:$0xf] }
  0x49   : > { %v982_v0 = vld [vmem:[#allocation2 + $0x2c] sm:$0x1]  ;;  %v9694_v1 = vrot.slane %v601_v55, 7  ;;  %v859_v2 = vsel %vm9565_vm11, %v574_v58, %v858_v35  ;;  %v8282_v4 = vpack.c.bf16 %v388_v39, %v388_v39  ;;  %v9698_v19 = vrot.slane %v1101_v61, 4  ;;  %v391_v58 = vld [vmem:[%s9521_s19 + $0x78] sm:$0xff] }
  0x4a   : > { %v955_v7 = vld [vmem:[#allocation2 + $0x3c] sm:$0xf]  ;;  %v1090_v10 = vshll.u32 %v982_v0, 16  ;;  %860 = vst [vmem:[#allocation2 + $0x38] sm:$0x1] %v859_v2  ;;  %v9700_v3 = vrot.slane %v1104_v62, 5  ;;  %v8283_v12 = vpack.c.bf16 %v389_v37, %v389_v37  ;;  %v869_v15 = vsel %vm9546_vm10, %v598_v57, %v868_v51 }
  0x4b   : > { %v1119_v31 = vshrl.u32 %v955_v7, 16  ;;  %v1122_v13 = vshll.u32 %v955_v7, 16  ;;  %v606_v14 = vor.u32 %v604_v56, %v9694_v1  ;;  %v1083_v6 = vsel %vm9575_vm12, %v9659_v8, %v9661_v9  ;;  %870 = vst [vmem:[#allocation2 + $0x48] sm:$0xf] %v869_v15 }
  0x4c   : > { %v1092_v21 = vrot.slane %v1090_v10, 5  ;;  %v1111_v23 = vor.u32 %v1110_v63, %v9700_v3  ;;  %v610_v24 = vshrl.u32 %v8282_v4, 16  ;;  %v613_v30 = vshll.u32 %v8282_v4, 16 }
  0x4d   : > { %v1121_v26 = vrot.slane %v1119_v31, 4  ;;  %v1124_v20 = vrot.slane %v1122_v13, 5  ;;  %v607_v25 = vsel %vm9537_vm9, %v599_v59, %v606_v14  ;;  %v618_v40 = vshrl.u32 %v8283_v12, 16 }
  0x4e   : > { %v956_v35 = vld [vmem:[#allocation2 + $0x40] sm:$0xf]  ;;  %v1093_v39 = vsel %vm9575_vm12, %v1088_v49, %v1092_v21  ;;  %871 = vst.msk [vmem:[#allocation2 + $0x4c] sm:$0xf] %vm320_vm1, %v607_v25  ;;  %v1112_v8 = vrot.slane %v1111_v23, 4  ;;  %v612_v9 = vrot.slane %v610_v24, 7  ;;  %v8284_v63 = vpack.c.bf16 %v390_v42, %v390_v42 }
  0x4f   : > { %v1132_v45 = vshrl.u32 %v956_v35, 16  ;;  %v9716_v37 = vcombine.low %v955_v7, %v956_v35  ;;  %v9718_v48 = vcombine.low %v1083_v6, %v1093_v39  ;;  %v621_v50 = vshll.u32 %v8283_v12, 16  ;;  %v882_v21 = vld [vmem:[#allocation2 + $0x60] sm:$0xf] }
  0x50   : > { %v615_v51 = vor.u32 %v613_v30, %v612_v9  ;;  %v616_v53 = vrot.slane %v612_v9, 4  ;;  %v9720_v55 = vrot.slane %v618_v40, 7  ;;  %v591_v56 = vrot.slane %v9655_v5, 4  ;;  %v872_v40 = vld [vmem:[#allocation2 + $0x50] sm:$0x1]  ;;  %v392_v42 = vld [vmem:[%s9521_s19 + $0x80] sm:$0xff] }
  0x51   : > { %8685 = vmatmul.mubr.msk.bf16.gmra.mxu1 %vm1432_vm5, %v9716_v37  ;;  %8647 = vmatmul.mubr.msk.bf16.gmra.mxu0 %vm1432_vm5, %v9718_v48  ;;  %v983_v49 = vld [vmem:[#allocation2 + $0x38] sm:$0x1]  ;;  %v1125_v59 = vor.u32 %v1124_v20, %v1121_v26  ;;  %v1128_v61 = vshll.u32 %v956_v35, 16  ;;  %v1134_v62 = vrot.slane %v1132_v45, 4  ;;  %v8285_v12 = vpack.c.bf16 %v391_v58, %v391_v58 }
  0x52   : > { %v1114_v0 = vshll.u32 %v983_v49, 16  ;;  %v623_v57 = vor.u32 %v621_v50, %v9720_v55  ;;  %v876_v2 = vsel %vm9546_vm10, %v615_v51, %v875_v33  ;;  %v866_v5 = vsel %vm9565_vm11, %v591_v56, %v865_v34  ;;  %v957_v4 = vld [vmem:[#allocation2 + $0x48] sm:$0xf] }
  0x53   : > { %877 = vst [vmem:[#allocation2 + $0x54] sm:$0xf] %v876_v2  ;;  %867 = vst [vmem:[#allocation2 + $0x44] sm:$0x1] %v866_v5  ;;  %v9733_v7 = vrot.slane %v1125_v59, 4  ;;  %v9735_v10 = vrot.slane %v1128_v61, 5  ;;  %v1107_v24 = vsel %vm9575_vm12, %v9698_v19, %v9700_v3 }
  0x54   : > { %v627_v31 = vshrl.u32 %v8284_v63, 16  ;;  %v1143_v13 = vshrl.u32 %v957_v4, 16  ;;  %v1146_v14 = vshll.u32 %v957_v4, 16  ;;  %v1116_v15 = vrot.slane %v1114_v0, 5  ;;  %v393_v56 = vld [vmem:[%s9521_s19 + $0x88] sm:$0xff] }
  0x55   : > { %v624_v6 = vsel %vm9537_vm9, %v616_v53, %v623_v57  ;;  %v958_v23 = vld [vmem:[#allocation2 + $0x4c] sm:$0xf]  ;;  %v1135_v26 = vor.u32 %v1134_v62, %v9735_v10  ;;  %v630_v25 = vshll.u32 %v8284_v63, 16  ;;  %v1131_v19 = vsel %vm9575_vm12, %v9733_v7, %v9735_v10 }
  0x56   : > { %878 = vst.msk [vmem:[#allocation2 + $0x58] sm:$0xf] %vm320_vm1, %v624_v6  ;;  %v629_v20 = vrot.slane %v627_v31, 7  ;;  %v1145_v30 = vrot.slane %v1143_v13, 4  ;;  %v1148_v33 = vrot.slane %v1146_v14, 5  ;;  %v1156_v34 = vshrl.u32 %v958_v23, 16 }
  0x57   : > { %v9745_v35 = vcombine.low %v957_v4, %v958_v23  ;;  %v1117_v39 = vsel %vm9575_vm12, %v1112_v8, %v1116_v15  ;;  %v1136_v3 = vrot.slane %v1135_v26, 4  ;;  %v635_v50 = vshrl.u32 %v8285_v12, 16 }
  0x58   : > { %v632_v9 = vor.u32 %v630_v25, %v629_v20  ;;  %v9756_v45 = vcombine.low %v1107_v24, %v1117_v39  ;;  %v638_v51 = vshll.u32 %v8285_v12, 16  ;;  %v608_v53 = vrot.slane %v9694_v1, 4 }
  0x59   : > { %8688 = vmatprep.mubr.msk.bf16.mxu1 %vm1432_vm5, %v9745_v35  ;;  %v633_v8 = vrot.slane %v629_v20, 4  ;;  %v1149_v49 = vor.u32 %v1148_v33, %v1145_v30  ;;  %v1152_v59 = vshll.u32 %v958_v23, 16  ;;  %v9764_v63 = vrot.slane %v635_v50, 7  ;;  %v889_v50 = vld [vmem:[#allocation2 + $0x6c] sm:$0xf] }
  0x5a   : > { %v883_v58 = vsel %vm9546_vm10, %v632_v9, %v882_v21  ;;  %8650 = vmatprep.mubr.msk.bf16.mxu0 %vm1432_vm5, %v9756_v45  ;;  %v959_v61 = vld [vmem:[#allocation2 + $0x54] sm:$0xf]  ;;  %v984_v62 = vld [vmem:[#allocation2 + $0x44] sm:$0x1]  ;;  %v873_v0 = vsel %vm9565_vm11, %v608_v53, %v872_v40  ;;  %v1158_v57 = vrot.slane %v1156_v34, 4  ;;  %v8286_v1 = vpack.c.bf16 %v392_v42, %v392_v42 }
  0x5b   : > { %884 = vst [vmem:[#allocation2 + $0x60] sm:$0xf] %v883_v58  ;;  %v1167_v2 = vshrl.u32 %v959_v61, 16  ;;  %v1170_v5 = vshll.u32 %v959_v61, 16  ;;  %v1138_v4 = vshll.u32 %v984_v62, 16  ;;  %v8287_v7 = vpack.c.bf16 %v393_v56, %v393_v56  ;;  %v394_v56 = vld [vmem:[%s9521_s19 + $0x90] sm:$0xff] }
  0x5c   : > { %874 = vst [vmem:[#allocation2 + $0x50] sm:$0x1] %v873_v0  ;;  %v640_v12 = vor.u32 %v638_v51, %v9764_v63  ;;  %v9769_v31 = vrot.slane %v1149_v49, 4  ;;  %v1154_v13 = vrot.slane %v1152_v59, 5  ;;  %v644_v14 = vshrl.u32 %v8286_v1, 16 }
  0x5d   : > { %v960_v10 = vld [vmem:[#allocation2 + $0x58] sm:$0xf]  ;;  %v1169_v15 = vrot.slane %v1167_v2, 4  ;;  %v1172_v6 = vrot.slane %v1170_v5, 5  ;;  %v647_v23 = vshll.u32 %v8286_v1, 16  ;;  %v1140_v26 = vrot.slane %v1138_v4, 5 }
  0x5e   : > { %v9771_v21 = vcombine.low %v959_v61, %v960_v10  ;;  %v1180_v24 = vshrl.u32 %v960_v10, 16  ;;  %v641_v20 = vsel %vm9537_vm9, %v633_v8, %v640_v12  ;;  %v1159_v25 = vor.u32 %v1158_v57, %v1154_v13  ;;  %v879_v9 = vld [vmem:[#allocation2 + $0x5c] sm:$0x1] }
  0x5f   : > { %885 = vst.msk [vmem:[#allocation2 + $0x64] sm:$0xf] %vm320_vm1, %v641_v20  ;;  %v646_v30 = vrot.slane %v644_v14, 7  ;;  %v652_v33 = vshrl.u32 %v8287_v7, 16  ;;  %v655_v34 = vshll.u32 %v8287_v7, 16  ;;  %v625_v39 = vrot.slane %v9720_v55, 4 }
  0x60   : > { %8689 = vmatmul.mubr.msk.bf16.gmra.mxu1 %vm1432_vm5, %v9771_v21  ;;  %v1141_v40 = vsel %vm9575_vm12, %v1136_v3, %v1140_v26  ;;  %v1155_v42 = vsel %vm9575_vm12, %v9769_v31, %v1154_v13  ;;  %v1173_v51 = vor.u32 %v1172_v6, %v1169_v15  ;;  %v1176_v53 = vshll.u32 %v960_v10, 16  ;;  %v395_v1 = vld [vmem:[%s9521_s19 + $0x98] sm:$0xff] }
  0x61   : > { %v9785_v8 = vcombine.low %v1131_v19, %v1141_v40  ;;  %v649_v49 = vor.u32 %v647_v23, %v646_v30  ;;  %v650_v59 = vrot.slane %v646_v30, 4  ;;  %v9787_v61 = vrot.slane %v652_v33, 7  ;;  %v886_v23 = vld [vmem:[#allocation2 + $0x68] sm:$0x1] }
  0x62   : > { %v961_v58 = vld [vmem:[#allocation2 + $0x60] sm:$0xf]  ;;  %v1160_v3 = vrot.slane %v1159_v25, 4  ;;  %v880_v57 = vsel %vm9565_vm11, %v625_v39, %v879_v9  ;;  %v9797_v4 = vrot.slane %v1176_v53, 5  ;;  %v9799_v10 = vrot.slane %v1173_v51, 4 }
  0x63   : > { %v1191_v55 = vshrl.u32 %v961_v58, 16  ;;  %v1194_v62 = vshll.u32 %v961_v58, 16  ;;  %v985_v0 = vld [vmem:[#allocation2 + $0x50] sm:$0x1]  ;;  %8651 = vmatmul.mubr.msk.bf16.gmra.mxu0 %vm1432_vm5, %v9785_v8  ;;  %v657_v19 = vor.u32 %v655_v34, %v9787_v61  ;;  %v890_v5 = vsel %vm9546_vm10, %v649_v49, %v889_v50  ;;  %881 = vst [vmem:[#allocation2 + $0x5c] sm:$0x1] %v880_v57 }
  0x64   : > { %v1162_v2 = vshll.u32 %v985_v0, 16  ;;  %891 = vst [vmem:[#allocation2 + $0x6c] sm:$0xf] %v890_v5  ;;  %v1182_v12 = vrot.slane %v1180_v24, 4  ;;  %v8288_v31 = vpack.c.bf16 %v394_v56, %v394_v56  ;;  %v8289_v6 = vpack.c.bf16 %v395_v1, %v395_v1  ;;  %v396_v34 = vld [vmem:[%s9521_s19 + $0xa0] sm:$0xff] }
  0x65   : > { %v1193_v7 = vrot.slane %v1191_v55, 4  ;;  %v1196_v13 = vrot.slane %v1194_v62, 5  ;;  %v658_v15 = vsel %vm9537_vm9, %v650_v59, %v657_v19  ;;  %v642_v33 = vrot.slane %v9764_v63, 4  ;;  %v896_v63 = vld [vmem:[#allocation2 + $0x78] sm:$0xf]  ;;  %v397_v62 = vld [vmem:[%s9521_s19 + $0xa8] sm:$0xff] }
  0x66   : > { %v1164_v14 = vrot.slane %v1162_v2, 5  ;;  %v962_v26 = vld [vmem:[#allocation2 + $0x64] sm:$0xf]  ;;  %892 = vst.msk [vmem:[#allocation2 + $0x70] sm:$0xf] %vm320_vm1, %v658_v15  ;;  %v1183_v20 = vor.u32 %v1182_v12, %v9797_v4  ;;  %v661_v25 = vshrl.u32 %v8288_v31, 16  ;;  %v8290_v1 = vpack.c.bf16 %v396_v34, %v396_v34 }
  0x67   : > { %v664_v30 = vshll.u32 %v8288_v31, 16  ;;  %v1204_v24 = vshrl.u32 %v962_v26, 16  ;;  %v9807_v39 = vcombine.low %v961_v58, %v962_v26  ;;  %v669_v40 = vshrl.u32 %v8289_v6, 16 }
  0x68   : > { %v1165_v9 = vsel %vm9575_vm12, %v1160_v3, %v1164_v14  ;;  %v1184_v51 = vrot.slane %v1183_v20, 4  ;;  %v663_v53 = vrot.slane %v661_v25, 7  ;;  %v672_v56 = vshll.u32 %v8289_v6, 16 }
  0x69   : > { %v9811_v50 = vcombine.low %v1155_v42, %v1165_v9  ;;  %8692 = vmatprep.mubr.msk.bf16.mxu1 %vm1432_vm5, %v9807_v39  ;;  %v9815_v49 = vrot.slane %v669_v40, 7  ;;  %v887_v59 = vsel %vm9565_vm11, %v642_v33, %v886_v23  ;;  %v1197_v58 = vor.u32 %v1196_v13, %v1193_v7  ;;  %v893_v9 = vld [vmem:[#allocation2 + $0x74] sm:$0x1] }
  0x6a   : > { %v1200_v55 = vshll.u32 %v962_v26, 16  ;;  %v986_v42 = vld [vmem:[#allocation2 + $0x5c] sm:$0x1]  ;;  %v666_v0 = vor.u32 %v664_v30, %v663_v53  ;;  %v667_v3 = vrot.slane %v663_v53, 4  ;;  %888 = vst [vmem:[#allocation2 + $0x68] sm:$0x1] %v887_v59  ;;  %v8291_v15 = vpack.c.bf16 %v397_v62, %v397_v62 }
  0x6b   : > { %8654 = vmatprep.mubr.msk.bf16.mxu0 %vm1432_vm5, %v9811_v50  ;;  %v1206_v57 = vrot.slane %v1204_v24, 4  ;;  %v963_v2 = vld [vmem:[#allocation2 + $0x6c] sm:$0xf]  ;;  %v1186_v19 = vshll.u32 %v986_v42, 16  ;;  %v674_v5 = vor.u32 %v672_v56, %v9815_v49  ;;  %v9823_v12 = vrot.slane %v1197_v58, 4  ;;  %v398_v56 = vld [vmem:[%s9521_s19 + $0xb0] sm:$0xff] }
  0x6c   : > { %v9825_v31 = vrot.slane %v1200_v55, 5  ;;  %v1215_v7 = vshrl.u32 %v963_v2, 16  ;;  %v1218_v13 = vshll.u32 %v963_v2, 16  ;;  %v897_v14 = vsel %vm9546_vm10, %v666_v0, %v896_v63 }
  0x6d   : > { %v964_v6 = vld [vmem:[#allocation2 + $0x70] sm:$0xf]  ;;  %v1179_v23 = vsel %vm9575_vm12, %v9799_v10, %v9797_v4  ;;  %v1188_v26 = vrot.slane %v1186_v19, 5  ;;  %v675_v20 = vsel %vm9537_vm9, %v667_v3, %v674_v5  ;;  %898 = vst [vmem:[#allocation2 + $0x78] sm:$0xf] %v897_v14  ;;  %v678_v40 = vshrl.u32 %v8290_v1, 16 }
  0x6e   : > { %v1207_v25 = vor.u32 %v1206_v57, %v9825_v31  ;;  %v1217_v30 = vrot.slane %v1215_v7, 4  ;;  %v1220_v33 = vrot.slane %v1218_v13, 5  ;;  %v9836_v34 = vcombine.low %v963_v2, %v964_v6  ;;  %899 = vst.msk [vmem:[#allocation2 + $0x7c] sm:$0xf] %vm320_vm1, %v675_v20  ;;  %v399_v2 = vld [vmem:[%s9521_s19 + $0xb8] sm:$0xff] }
  0x6f   : > { %v1203_v24 = vsel %vm9575_vm12, %v9823_v12, %v9825_v31  ;;  %v1228_v4 = vshrl.u32 %v964_v6, 16  ;;  %v1189_v10 = vsel %vm9575_vm12, %v1184_v51, %v1188_v26  ;;  %v681_v53 = vshll.u32 %v8290_v1, 16  ;;  %v903_v19 = vld [vmem:[#allocation2 + $0x84] sm:$0xf] }
  0x70   : > { %8693 = vmatmul.mubr.msk.bf16.gmra.mxu1 %vm1432_vm5, %v9836_v34  ;;  %v9848_v63 = vcombine.low %v1179_v23, %v1189_v10  ;;  %v686_v59 = vshrl.u32 %v8291_v15, 16  ;;  %v689_v58 = vshll.u32 %v8291_v15, 16  ;;  %v659_v55 = vrot.slane %v9787_v61, 4 }
  0x71   : > { %v9851_v62 = vld [vmem:[#allocation2 + $0x68] sm:$0x1]  ;;  %v1208_v42 = vrot.slane %v1207_v25, 4  ;;  %v680_v0 = vrot.slane %v678_v40, 7  ;;  %v1221_v3 = vor.u32 %v1220_v33, %v1217_v30  ;;  %v1224_v57 = vshll.u32 %v964_v6, 16 }
  0x72   : > { %13621 = vst [vmem:[#allocation4_spill] sm:$0xff] %v9851_v62  ;;  %8655 = vmatmul.mubr.msk.bf16.gmra.mxu0 %vm1432_vm5, %v9848_v63  ;;  %v1210_v51 = vshll.u32 %v9851_v62, 16  ;;  %v9857_v1 = vrot.slane %v686_v59, 7  ;;  %v894_v5 = vsel %vm9565_vm11, %v659_v55, %v893_v9  ;;  %v8292_v12 = vpack.c.bf16 %v398_v56, %v398_v56  ;;  %v900_v56 = vld [vmem:[#allocation2 + $0x80] sm:$0x1] }
  0x73   : > { %v683_v61 = vor.u32 %v681_v53, %v680_v0  ;;  %v684_v31 = vrot.slane %v680_v0, 4  ;;  %895 = vst [vmem:[#allocation2 + $0x74] sm:$0x1] %v894_v5  ;;  %v9861_v7 = vrot.slane %v1224_v57, 5  ;;  %v1230_v13 = vrot.slane %v1228_v4, 4 }
  0x74   : > { %v965_v14 = vld [vmem:[#allocation2 + $0x78] sm:$0xf]  ;;  %v1212_v15 = vrot.slane %v1210_v51, 5  ;;  %v691_v6 = vor.u32 %v689_v58, %v9857_v1  ;;  %v8293_v23 = vpack.c.bf16 %v399_v2, %v399_v2  ;;  %v695_v26 = vshrl.u32 %v8292_v12, 16  ;;  %v910_v51 = vld [vmem:[#allocation2 + $0x90] sm:$0xf] }
  0x75   : > { %v9864_v20 = vld [vmem:[#allocation2 + $0x7c] sm:$0xf]  ;;  %v1239_v25 = vshrl.u32 %v965_v14, 16  ;;  %v1242_v30 = vshll.u32 %v965_v14, 16  ;;  %v904_v33 = vsel %vm9546_vm10, %v683_v61, %v903_v19  ;;  %v1222_v9 = vrot.slane %v1221_v3, 4 }
  0x76   : > { %v1252_v10 = vshrl.u32 %v9864_v20, 16  ;;  %v9870_v40 = vcombine.low %v965_v14, %v9864_v20  ;;  %v1213_v4 = vsel %vm9575_vm12, %v1208_v42, %v1212_v15  ;;  %v692_v53 = vsel %vm9537_vm9, %v684_v31, %v691_v6  ;;  %905 = vst [vmem:[#allocation2 + $0x84] sm:$0xf] %v904_v33  ;;  %v400_v31 = vld [vmem:[%s9521_s19 + $0xc0] sm:$0xff]  ;;  %v924_v62 = vld [vmem:[#allocation2 + $0xa8] sm:$0xf] }
  0x77   : > { %v1241_v59 = vrot.slane %v1239_v25, 4  ;;  %v1244_v58 = vrot.slane %v1242_v30, 5  ;;  %v9876_v55 = vcombine.low %v1203_v24, %v1213_v4  ;;  %906 = vst.msk [vmem:[#allocation2 + $0x88] sm:$0xf] %vm320_vm1, %v692_v53  ;;  %v1231_v0 = vor.u32 %v1230_v13, %v9861_v7 }
  0x78   : > { %8696 = vmatprep.mubr.msk.bf16.mxu1 %vm1432_vm5, %v9870_v40  ;;  %v697_v3 = vrot.slane %v695_v26, 7  ;;  %v698_v42 = vshll.u32 %v8292_v12, 16  ;;  %v703_v57 = vshrl.u32 %v8293_v23, 16  ;;  %v706_v2 = vshll.u32 %v8293_v23, 16  ;;  %v401_v23 = vld [vmem:[%s9521_s19 + $0xc8] sm:$0xff] }
  0x79   : > { %8658 = vmatprep.mubr.msk.bf16.mxu0 %vm1432_vm5, %v9876_v55  ;;  %v1227_v24 = vsel %vm9575_vm12, %v1222_v9, %v9861_v7  ;;  %v676_v19 = vrot.slane %v9815_v49, 4  ;;  %v1245_v5 = vor.u32 %v1244_v58, %v1241_v59  ;;  %v1248_v61 = vshll.u32 %v9864_v20, 16 }
  0x7a   : > { %v9890_v13 = vld [vmem:[#allocation2 + $0x74] sm:$0x1]  ;;  %v700_v14 = vor.u32 %v698_v42, %v697_v3  ;;  %v701_v12 = vrot.slane %v697_v3, 4  ;;  %v9892_v15 = vrot.slane %v703_v57, 7  ;;  %v1254_v6 = vrot.slane %v1252_v10, 4 }
  0x7b   : > { %13622 = vst [vmem:[#allocation5_spill] sm:$0xff] %v9890_v13  ;;  %v1232_v26 = vrot.slane %v1231_v0, 4  ;;  %v1234_v25 = vshll.u32 %v9890_v13, 16  ;;  %v901_v7 = vsel %vm9565_vm11, %v676_v19, %v900_v56  ;;  %v9898_v30 = vrot.slane %v1248_v61, 5  ;;  %v907_v0 = vld [vmem:[#allocation2 + $0x8c] sm:$0x1] }
  0x7c   : > { %v708_v49 = vor.u32 %v706_v2, %v9892_v15  ;;  %v911_v33 = vsel %vm9546_vm10, %v700_v14, %v910_v51  ;;  %902 = vst [vmem:[#allocation2 + $0x80] sm:$0x1] %v901_v7  ;;  %v9903_v9 = vrot.slane %v1245_v5, 4  ;;  %v8294_v4 = vpack.c.bf16 %v400_v31, %v400_v31  ;;  %v402_v19 = vld [vmem:[%s9521_s19 + $0xd0] sm:$0xff]  ;;  %v403_v7 = vld [vmem:[%s9521_s19 + $0xd8] sm:$0xff] }
  0x7d   : > { %v967_v10 = vld [vmem:[#allocation2 + $0x84] sm:$0xf]  ;;  %v1236_v53 = vrot.slane %v1234_v25, 5  ;;  %912 = vst [vmem:[#allocation2 + $0x90] sm:$0xf] %v911_v33  ;;  %v1255_v59 = vor.u32 %v1254_v6, %v9898_v30  ;;  %v8295_v58 = vpack.c.bf16 %v401_v23, %v401_v23  ;;  %v693_v56 = vrot.slane %v9857_v1, 4 }
  0x7e   : > { %v9907_v3 = vld [vmem:[#allocation2 + $0x88] sm:$0xf]  ;;  %v1263_v42 = vshrl.u32 %v967_v10, 16  ;;  %v1266_v57 = vshll.u32 %v967_v10, 16  ;;  %v709_v2 = vsel %vm9537_vm9, %v701_v12, %v708_v49  ;;  %v712_v51 = vshrl.u32 %v8294_v4, 16 }
  0x7f   : > { %v1276_v5 = vshrl.u32 %v9907_v3, 16  ;;  %v9914_v61 = vcombine.low %v967_v10, %v9907_v3  ;;  %v1237_v31 = vsel %vm9575_vm12, %v1232_v26, %v1236_v53  ;;  %913 = vst.msk [vmem:[#allocation2 + $0x94] sm:$0xf] %vm320_vm1, %v709_v2  ;;  %v1256_v1 = vrot.slane %v1255_v59, 4  ;;  %v917_v53 = vld [vmem:[#allocation2 + $0x9c] sm:$0xf] }
  0x80   : > { %v1265_v14 = vrot.slane %v1263_v42, 4  ;;  %v1268_v6 = vrot.slane %v1266_v57, 5  ;;  %v9919_v23 = vcombine.low %v1227_v24, %v1237_v31  ;;  %v714_v25 = vrot.slane %v712_v51, 7 }
  0x81   : > { %13623 = vst [vmem:[#allocation6_spill] sm:$0xff] %v9914_v61  ;;  %8697 = vmatmul.mubr.msk.bf16.gmra.mxu1 %vm1432_vm5, %v9914_v61  ;;  %v715_v12 = vshll.u32 %v8294_v4, 16  ;;  %v720_v49 = vshrl.u32 %v8295_v58, 16  ;;  %v723_v33 = vshll.u32 %v8295_v58, 16  ;;  %v908_v10 = vsel %vm9565_vm11, %v693_v56, %v907_v0 }
  0x82   : > { %13624 = vst [vmem:[#allocation7_spill] sm:$0xff] %v9919_v23  ;;  %8659 = vmatmul.mubr.msk.bf16.gmra.mxu0 %vm1432_vm5, %v9919_v23  ;;  %v718_v26 = vrot.slane %v714_v25, 4  ;;  %909 = vst [vmem:[#allocation2 + $0x8c] sm:$0x1] %v908_v10  ;;  %v1269_v59 = vor.u32 %v1268_v6, %v1265_v14  ;;  %v1272_v24 = vshll.u32 %v9907_v3, 16  ;;  %v1278_v42 = vrot.slane %v1276_v5, 4 }
  0x83   : > { %v9929_v57 = vld [vmem:[#allocation2 + $0x80] sm:$0x1]  ;;  %v717_v2 = vor.u32 %v715_v12, %v714_v25  ;;  %v9931_v51 = vrot.slane %v720_v49, 7  ;;  %v8296_v4 = vpack.c.bf16 %v402_v19, %v402_v19  ;;  %v8297_v58 = vpack.c.bf16 %v403_v7, %v403_v7  ;;  %v914_v25 = vld [vmem:[#allocation2 + $0x98] sm:$0x1] }
  0x84   : > { %v969_v31 = vld [vmem:[#allocation2 + $0x90] sm:$0xf]  ;;  %v1258_v56 = vshll.u32 %v9929_v57, 16  ;;  %v1270_v0 = vrot.slane %v1269_v59, 4  ;;  %v1274_v22 = vrot.slane %v1272_v24, 5  ;;  %v710_v44 = vrot.slane %v9892_v15, 4 }
  0x85   : > { %v1287_v10 = vshrl.u32 %v969_v31, 16  ;;  %v1290_v14 = vshll.u32 %v969_v31, 16  ;;  %v725_v6 = vor.u32 %v723_v33, %v9931_v51  ;;  %v918_v5 = vsel %vm9546_vm10, %v717_v2, %v917_v53  ;;  %v404_v53 = vld [vmem:[%s9521_s19 + $0xe0] sm:$0xff] }
  0x86   : > { %v9938_v12 = vld [vmem:[#allocation2 + $0x94] sm:$0xf]  ;;  %v1251_v19 = vsel %vm9575_vm12, %v9903_v9, %v9898_v30  ;;  %v1260_v7 = vrot.slane %v1258_v56, 5  ;;  %919 = vst [vmem:[#allocation2 + $0x9c] sm:$0xf] %v918_v5  ;;  %v1279_v49 = vor.u32 %v1278_v42, %v1274_v22  ;;  %v729_v15 = vshrl.u32 %v8296_v4, 16 }
  0x87   : > { %v1289_v59 = vrot.slane %v1287_v10, 4  ;;  %v1292_v24 = vrot.slane %v1290_v14, 5  ;;  %v1300_v33 = vshrl.u32 %v9938_v12, 16  ;;  %v9946_v16 = vcombine.low %v969_v31, %v9938_v12  ;;  %v405_v5 = vld [vmem:[%s9521_s19 + $0xe8] sm:$0xff] }
  0x88   : > { %v1261_v2 = vsel %vm9575_vm12, %v1256_v1, %v1260_v7  ;;  %v726_v13 = vsel %vm9537_vm9, %v718_v26, %v725_v6  ;;  %v1280_v30 = vrot.slane %v1279_v49, 4  ;;  %v731_v9 = vrot.slane %v729_v15, 7 }
  0x89   : > { %13625 = vst [vmem:[#allocation8_spill] sm:$0xff] %v9946_v16  ;;  %8700 = vmatprep.mubr.msk.bf16.mxu1 %vm1432_vm5, %v9946_v16  ;;  %v9955_v42 = vcombine.low %v1251_v19, %v1261_v2  ;;  %920 = vst.msk [vmem:[#allocation2 + $0xa0] sm:$0xf] %vm320_vm1, %v726_v13  ;;  %v9958_v56 = vld [vmem:[#allocation2 + $0x8c] sm:$0x1]  ;;  %v732_v31 = vshll.u32 %v8296_v4, 16  ;;  %v915_v26 = vsel %vm9565_vm11, %v710_v44, %v914_v25 }
  0x8a   : > { %v737_v10 = vshrl.u32 %v8297_v58, 16  ;;  %v740_v14 = vshll.u32 %v8297_v58, 16  ;;  %v1282_v1 = vshll.u32 %v9958_v56, 16  ;;  %v735_v7 = vrot.slane %v731_v9, 4  ;;  %916 = vst [vmem:[#allocation2 + $0x98] sm:$0x1] %v915_v26 }
  0x8b   : > { %13626 = vst [vmem:[#allocation9_spill] sm:$0xff] %v9955_v42  ;;  %v1293_v6 = vor.u32 %v1292_v24, %v1289_v59  ;;  %8662 = vmatprep.mubr.msk.bf16.mxu0 %vm1432_vm5, %v9955_v42  ;;  %v734_v19 = vor.u32 %v732_v31, %v731_v9  ;;  %v1296_v13 = vshll.u32 %v9938_v12, 16  ;;  %v1302_v4 = vrot.slane %v1300_v33, 4  ;;  %v2268_v42 = vld [vmem:[#allocation2] sm:$0xe] }
  0x8c   : > { %v739_v49 = vrot.slane %v737_v10, 7  ;;  %v1275_v58 = vsel %vm9575_vm12, %v1270_v0, %v1274_v22  ;;  %v1284_v15 = vrot.slane %v1282_v1, 5  ;;  %v8298_v2 = vpack.c.bf16 %v404_v53, %v404_v53 }
  0x8d   : > { %v8299_v23 = vpack.c.bf16 %v405_v5, %v405_v5  ;;  %v971_v16 = vld [vmem:[#allocation2 + $0x9c] sm:$0xf]  ;;  %v925_v44 = vsel %vm9546_vm10, %v734_v19, %v924_v62  ;;  %v9971_v25 = vrot.slane %v1296_v13, 5  ;;  %v727_v59 = vrot.slane %v9931_v51, 4  ;;  %v931_v62 = vld [vmem:[#allocation2 + $0xb4] sm:$0xf] }
  0x8e   : > { %v742_v61 = vor.u32 %v740_v14, %v739_v49  ;;  %v1311_v24 = vshrl.u32 %v971_v16, 16  ;;  %v1314_v9 = vshll.u32 %v971_v16, 16  ;;  %v1285_v33 = vsel %vm9575_vm12, %v1280_v30, %v1284_v15  ;;  %926 = vst [vmem:[#allocation2 + $0xa8] sm:$0xf] %v925_v44  ;;  %v921_v14 = vld [vmem:[#allocation2 + $0xa4] sm:$0x1] }
  0x8f   : > { %v746_v31 = vshrl.u32 %v8298_v2, 16  ;;  %v9976_v22 = vcombine.low %v1275_v58, %v1285_v33  ;;  %v1294_v53 = vrot.slane %v1293_v6, 4  ;;  %v1303_v10 = vor.u32 %v1302_v4, %v9971_v25  ;;  %v928_v33 = vld [vmem:[#allocation2 + $0xb0] sm:$0x1] }
  0x90   : > { %v743_v0 = vsel %vm9537_vm9, %v735_v7, %v742_v61  ;;  %v9981_v5 = vld [vmem:[#allocation2 + $0xa0] sm:$0xf]  ;;  %v1313_v51 = vrot.slane %v1311_v24, 4  ;;  %v1316_v1 = vrot.slane %v1314_v9, 5  ;;  %v749_v30 = vshll.u32 %v8298_v2, 16 }
  0x91   : > { %13627 = vst [vmem:[#allocation10_spill] sm:$0xff] %v9976_v22  ;;  %927 = vst.msk [vmem:[#allocation2 + $0xac] sm:$0xf] %vm320_vm1, %v743_v0  ;;  %v748_v26 = vrot.slane %v746_v31, 7  ;;  %v1324_v19 = vshrl.u32 %v9981_v5, 16  ;;  %v9986_v13 = vcombine.low %v971_v16, %v9981_v5  ;;  %8663 = vmatmul.mubr.msk.bf16.gmra.mxu0 %vm1432_vm5, %v9976_v22  ;;  %v1304_v61 = vrot.slane %v1303_v10, 4 }
  0x92   : > { %v754_v7 = vshrl.u32 %v8299_v23, 16  ;;  %v9990_v6 = vld [vmem:[#allocation2 + $0x98] sm:$0x1]  ;;  %v757_v15 = vshll.u32 %v8299_v23, 16  ;;  %v922_v44 = vsel %vm9565_vm11, %v727_v59, %v921_v14  ;;  %v1317_v24 = vor.u32 %v1316_v1, %v1313_v51  ;;  %v935_v10 = vld [vmem:[#allocation2 + $0xbc] sm:$0x1] }
  0x93   : > { %13628 = vst [vmem:[#allocation11_spill] sm:$0xff] %v9986_v13  ;;  %v751_v4 = vor.u32 %v749_v30, %v748_v26  ;;  %v752_v58 = vrot.slane %v748_v26, 4  ;;  %8701 = vmatmul.mubr.msk.bf16.gmra.mxu1 %vm1432_vm5, %v9986_v13  ;;  %v1306_v2 = vshll.u32 %v9990_v6, 16  ;;  %923 = vst [vmem:[#allocation2 + $0xa4] sm:$0x1] %v922_v44  ;;  %v1320_v9 = vshll.u32 %v9981_v5, 16 }
  0x94   : > { %v756_v16 = vrot.slane %v754_v7, 7  ;;  %v1299_v31 = vsel %vm9575_vm12, %v1294_v53, %v9971_v25  ;;  %v1326_v0 = vrot.slane %v1324_v19, 4  ;;  %v744_v59 = vrot.slane %v739_v49, 4 }
  0x95   : > { %v932_v23 = vsel %vm9546_vm10, %v751_v4, %v931_v62  ;;  %v973_v14 = vld [vmem:[#allocation2 + $0xa8] sm:$0xf]  ;;  %v1308_v26 = vrot.slane %v1306_v2, 5  ;;  %v1318_v7 = vrot.slane %v1317_v24, 4  ;;  %v1322_v44 = vrot.slane %v1320_v9, 5 }
  0x96   : > { %v759_v30 = vor.u32 %v757_v15, %v756_v16  ;;  %933 = vst [vmem:[#allocation2 + $0xb4] sm:$0xf] %v932_v23  ;;  %v1335_v51 = vshrl.u32 %v973_v14, 16  ;;  %v1338_v1 = vshll.u32 %v973_v14, 16  ;;  %v929_v22 = vsel %vm9565_vm11, %v744_v59, %v928_v33 }
  0x97   : > { %v761_v13 = vrot.slane %v756_v16, 4  ;;  %v1309_v53 = vsel %vm9575_vm12, %v1304_v61, %v1308_v26  ;;  %v1327_v62 = vor.u32 %v1326_v0, %v1322_v44  ;;  %930 = vst [vmem:[#allocation2 + $0xb0] sm:$0x1] %v929_v22  ;;  %v13629_v16 = vrot.slane %v9600_v28, 5  ;;  %v2269_v22 = vld [vmem:[#allocation2 + $0xc] sm:$0xe] }
  0x98   : > { %v10005_v25 = vld [vmem:[#allocation2 + $0xac] sm:$0xf]  ;;  %v760_v49 = vsel %vm9537_vm9, %v752_v58, %v759_v30  ;;  %v1337_v19 = vrot.slane %v1335_v51, 4  ;;  %v1340_v4 = vrot.slane %v1338_v1, 5  ;;  %v10018_v9 = vcombine.low %v1299_v31, %v1309_v53 }
  0x99   : > { %v1348_v15 = vshrl.u32 %v10005_v25, 16  ;;  %v10013_v2 = vcombine.low %v973_v14, %v10005_v25  ;;  %934 = vst.msk [vmem:[#allocation2 + $0xb8] sm:$0xf] %vm320_vm1, %v760_v49  ;;  %v2330_v24 = vrot.slane %v13629_v16, 4  ;;  %v1344_v61 = vshll.u32 %v10005_v25, 16 }
  0x9a   : > { %v936_v58 = vsel %vm9565_vm11, %v761_v13, %v935_v10  ;;  %v10025_v33 = vld [vmem:[#allocation2 + $0xa4] sm:$0x1]  ;;  %v1328_v23 = vrot.slane %v1327_v62, 4  ;;  %v1341_v0 = vor.u32 %v1340_v4, %v1337_v19  ;;  %vm2316_vm13 = vcmask 1042432   ;;  %8666 = vmatprep.mubr.msk.bf16.mxu0 %vm1432_vm5, %v10018_v9  ;;  %v9327_v13 = vld [vmem:[#allocation2 + $0x14] sm:$0x1] }
  0x9b   : > { %8704 = vmatprep.mubr.msk.bf16.mxu1 %vm1432_vm5, %v10013_v2  ;;  %v1350_v59 = vrot.slane %v1348_v15, 4  ;;  %937 = vst [vmem:[#allocation2 + $0xbc] sm:$0x1] %v936_v58  ;;  %v1330_v31 = vshll.u32 %v10025_v33, 16  ;;  %v1346_v14 = vrot.slane %v1344_v61, 5  ;;  %vm2317_vm14 = vcmask 1046532  }
  0x9c   : > { %v7831_v26 = vrot.slane %v2268_v42, 9  ;;  %v2331_v10 = vrot.slane %v9327_v13, 5  ;;  %v1323_v51 = vsel %vm9575_vm12, %v1318_v7, %v1322_v44  ;;  %v1342_v1 = vrot.slane %v1341_v0, 4  ;;  %vm10032_vm15 = vmor %vm2316_vm13, %vm2317_vm14 }
  0x9d   : > { %v975_v30 = vld [vmem:[#allocation2 + $0xb4] sm:$0xf]  ;;  %v13630_v53 = vmov 0  ;;  %v7832_v49 = vrot.slane %v2269_v22, 9  ;;  %v1332_v4 = vrot.slane %v1330_v31, 5  ;;  %v1351_v15 = vor.u32 %v1350_v59, %v1346_v14 }
  0x9e   : > { %v13631_v53 = vsel %vm10032_vm15, 4294967295, %v13630_v53  ;;  %v1359_v62 = vshrl.u32 %v975_v30, 16  ;;  %v1362_v19 = vshll.u32 %v975_v30, 16  ;;  %v10036_v16 = vld [vmem:[#allocation2 + $0xb0] sm:$0x1]  ;;  %v1347_v42 = vsel %vm9575_vm12, %v1342_v1, %v1346_v14 }
  0x9f   : > { %13632 = vst [vmem:[#allocation12_spill] sm:$0xff] %v13631_v53  ;;  %v13633_v61 = vrot.slane %v9526_v11, 5  ;;  %v13634_v44 = vrot.slane %v9550_v43, 5  ;;  %v13635_v22 = vrot.slane %v9600_v28, 5  ;;  %v1333_v11 = vsel %vm9575_vm12, %v1328_v23, %v1332_v4 }
  0xa0   : > { %v10053_v59 = vld [vmem:[#allocation2 + $0xb8] sm:$0xf]  ;;  %v1361_v31 = vrot.slane %v1359_v62, 4  ;;  %v1364_v14 = vrot.slane %v1362_v19, 5  ;;  %v1352_v13 = vrot.slane %v1351_v15, 4  ;;  %v10061_v1 = vcombine.low %v1323_v51, %v1333_v11 }
  0xa1   : > { %v2322_v7 = vsel %vm10032_vm15, %v7831_v26, %v13633_v61  ;;  %v2325_v58 = vsel %vm10032_vm15, %v9592_v18, %v13634_v44  ;;  %v2329_v0 = vsel %vm10032_vm15, %v7832_v49, %v13635_v22  ;;  %v1372_v26 = vshrl.u32 %v10053_v59, 16 }
  0xa2   : > { %v10059_v43 = vcombine.low %v975_v30, %v10053_v59  ;;  %v1354_v18 = vshll.u32 %v10036_v16, 16  ;;  %v10064_v28 = vld [vmem:[#allocation2 + $0xbc] sm:$0x1]  ;;  %v1365_v49 = vor.u32 %v1364_v14, %v1361_v31  ;;  %v1368_v61 = vshll.u32 %v10053_v59, 16  ;;  %8667 = vmatmul.mubr.msk.bf16.gmra.mxu0 %vm1432_vm5, %v10061_v1 }
  0xa3   : > { %v10067_v62 = vcombine.low %v2322_v7, %v2325_v58  ;;  %v2332_v23 = vsel %vm10032_vm15, %v2330_v24, %v2331_v10  ;;  %v1374_v51 = vrot.slane %v1372_v26, 4  ;;  %v1378_v19 = vshll.u32 %v10064_v28, 16  ;;  %v2279_v26 = vld [vmem:[#allocation2 + $0x84] sm:$0xe] }
  0xa4   : > { %8705 = vmatmul.mubr.msk.bf16.gmra.mxu1 %vm1432_vm5, %v10059_v43  ;;  %v1356_v30 = vrot.slane %v1354_v18, 5  ;;  %v10076_v4 = vcombine.low %v2329_v0, %v2332_v23  ;;  %v1366_v15 = vrot.slane %v1365_v49, 4  ;;  %v1370_v7 = vrot.slane %v1368_v61, 5  ;;  %v10120_v18 = vld [vmem:[%s13555_s1 + $0x6] sm:$0x3] }
  0xa5   : > { %8744 = vmatprep.mubr.msk.bf16.mxu1 %vm1432_vm5, %v9529_v17  ;;  %v1380_v58 = vrot.slane %v1378_v19, 5  ;;  %v9328_v17 = vld [vmem:[%s13558_s4 + $0x4] sm:$0x3]  ;;  %v2391_v61 = vrot.slane %v9864_v20, 5  ;;  %v2398_v23 = vrot.slane %v9907_v3, 5  ;;  %v7833_v32 = vrot.slane %v2270_v27, 9 }
  0xa6   : > { %v1357_v24 = vsel %vm9575_vm12, %v1352_v13, %v1356_v30  ;;  %v1375_v44 = vor.u32 %v1374_v51, %v1370_v7  ;;  %v1371_v22 = vsel %vm9575_vm12, %v1366_v15, %v1370_v7  ;;  %v2728_v31 = vsel %vm1481_vm0, %v9328_v17, 0  ;;  %v2278_v13 = vld [vmem:[#allocation2 + $0x78] sm:$0xe]  ;;  %v2280_v30 = vld [vmem:[#allocation2 + $0x90] sm:$0xe] }
  0xa7   : > { %v10082_v10 = vcombine.low %v1347_v42, %v1357_v24  ;;  %v10097_v42 = vld [vmem:[%s13558_s4 + $0x6] sm:$0x3]  ;;  %v7841_v49 = vrot.slane %v2278_v13, 9  ;;  %v2393_v19 = vrot.slane %v2391_v61, 4  ;;  %v2281_v15 = vld [vmem:[#allocation2 + $0x9c] sm:$0xe] }
  0xa8   : > { %v1376_v0 = vrot.slane %v1375_v44, 4  ;;  %v2400_v20 = vrot.slane %v2398_v23, 4  ;;  %v7843_v3 = vrot.slane %v2280_v30, 9  ;;  %v2405_v7 = vrot.slane %v9938_v12, 5  ;;  %v2282_v44 = vld [vmem:[#allocation2 + $0xa8] sm:$0xe] }
  0xa9   : > { %8670 = vmatprep.mubr.msk.bf16.mxu0 %vm1432_vm5, %v10082_v10  ;;  %v2392_v51 = vsel %vm10032_vm15, %v7841_v49, %v2391_v61  ;;  %v2408_v24 = vrot.slane %v9990_v6, 5  ;;  %v2415_v12 = vrot.slane %v10025_v33, 5  ;;  %v2426_v61 = vrot.slane %v10053_v59, 5  ;;  %v2275_v27 = vld [vmem:[#allocation2 + $0x54] sm:$0xe] }
  0xaa   : > { %v1381_v14 = vsel %vm9575_vm12, %v1376_v0, %v1380_v58  ;;  %v2283_v0 = vld [vmem:[#allocation2 + $0xb4] sm:$0xe] }
  0xab   : > { %v10101_v11 = vcombine.low %v1371_v22, %v1381_v14  ;;  %v7844_v22 = vrot.slane %v2281_v15, 9  ;;  %v2407_v14 = vrot.slane %v2405_v7, 4  ;;  %v7846_v49 = vrot.slane %v2283_v0, 9  ;;  %v13638_v15 = vld [vmem:[#allocation7_spill] sm:$0xff] }
  0xac   : > { %8745 = vmatmul.mubr.msk.bf16.vlgmr.msra.gmra.mxu1 %vm1432_vm5, %v9607_v38  ;;  %v9329_v38 = vld [vmem:[%s13555_s1 + $0x4] sm:$0x3]  ;;  %v2428_v59 = vrot.slane %v2426_v61, 4 }
  0xad   : > { %8748 = vmatprep.mubr.msk.bf16.mxu1 %vm1432_vm5, %v9620_v52  ;;  %8811 = vmatpush3.bf16.msra.mxu1 %v2728_v31  ;;  %v2530_v52 = vsel %vm1481_vm0, %v9329_v38, 0  ;;  %v2406_v31 = vsel %vm10032_vm15, %v7843_v3, %v2405_v7  ;;  %v2419_v38 = vrot.slane %v10005_v25, 5  ;;  %v938_v7 = vld [vmem:[#allocation2 + $0xc0] sm:$0xf] }
  0xae   : > { %8671 = vmatmul.mubr.msk.bf16.gmra.mxu0 %vm1432_vm5, %v10101_v11  ;;  %9259 = vmatprep.subr.msk.bf16.mxu1 %vm1481_vm0, %v10097_v42 }
  0xaf   : > { %8710 = vmatprep.mubr.msk.bf16.mxu0 %vm1432_vm5, %v9602_v29  ;;  %v2394_v29 = vrot.slane %v9929_v57, 5  ;;  %v2401_v57 = vrot.slane %v9958_v56, 5  ;;  %v2412_v56 = vrot.slane %v9981_v5, 5  ;;  %v2409_v5 = vsel %vm10032_vm15, %v2407_v14, %v2408_v24  ;;  %v9331_v14 = vld [vmem:[#allocation2 + $0x20] sm:$0x1] }
  0xb0   : > { %v10163_v33 = vcombine.low %v2406_v31, %v2409_v5 }
  0xb1   : > { %v2413_v6 = vsel %vm10032_vm15, %v7844_v22, %v2412_v56  ;;  %v2414_v13 = vrot.slane %v2412_v56, 4  ;;  %v13641_v22 = vld [vmem:[#allocation10_spill] sm:$0xff]  ;;  %v9330_v56 = vld [vmem:[#allocation2 + $0x1c] sm:$0xf] }
  0xb2   : > { %v2335_v0 = vrot.slane %v9330_v56, 5  ;;  %v10275_v56 = vld [vmem:[%s13555_s1 + $0x8] sm:$0x3] }
  0xb4   : > { %8749 = vmatmul.mubr.msk.bf16.gmra.mxu1 %vm1432_vm5, %v9637_v36  ;;  %v7842_v36 = vrot.slane %v2279_v26, 9  ;;  %v7845_v26 = vrot.slane %v2282_v44, 9  ;;  %v2337_v31 = vrot.slane %v2335_v0, 4 }
  0xb5   : > { %8752 = vmatprep.mubr.msk.bf16.mxu1 %vm1432_vm5, %v9681_v46 }
  0xb6   : > { %8711 = vmatmul.mubr.msk.bf16.vlgmr.msra.gmra.mxu0 %vm1432_vm5, %v9646_v47  ;;  %v2399_v46 = vsel %vm10032_vm15, %v7842_v36, %v2398_v23  ;;  %v2395_v47 = vsel %vm10032_vm15, %v2393_v19, %v2394_v29  ;;  %v2416_v29 = vsel %vm10032_vm15, %v2414_v13, %v2415_v12  ;;  %v2420_v25 = vsel %vm10032_vm15, %v7845_v26, %v2419_v38 }
  0xb7   : > { %8777 = vmatpush3.bf16.msra.mxu0 %v2530_v52  ;;  %8714 = vmatprep.mubr.msk.bf16.mxu0 %vm1432_vm5, %v9684_v41  ;;  %v10142_v58 = vcombine.low %v2392_v51, %v2395_v47  ;;  %v2402_v41 = vsel %vm10032_vm15, %v2400_v20, %v2401_v57  ;;  %v2422_v52 = vrot.slane %v10036_v16, 5  ;;  %v10171_v36 = vcombine.low %v2413_v6, %v2416_v29  ;;  %v9332_v6 = vld [vmem:[#allocation2 + $0x28] sm:$0xf]  ;;  %v9334_v29 = vld [vmem:[#allocation2 + $0x2c] sm:$0x1] }
  0xb8   : > { %9258 = vmatprep.subr.msk.bf16.mxu0 %vm1481_vm0, %v10120_v18  ;;  %v10147_v17 = vcombine.low %v2399_v46, %v2402_v41  ;;  %v2427_v16 = vsel %vm10032_vm15, %v7846_v49, %v2426_v61  ;;  %v13640_v41 = vld [vmem:[#allocation11_spill] sm:$0xff]  ;;  %v2338_v12 = vrot.slane %v9331_v14, 5  ;;  %v2342_v13 = vrot.slane %v9332_v6, 5  ;;  %v2276_v14 = vld [vmem:[#allocation2 + $0x60] sm:$0xe] }
  0xb9   : > { %v7838_v6 = vrot.slane %v2275_v27, 9 }
  0xba   : > { %v2339_v26 = vsel %vm10032_vm15, %v2337_v31, %v2338_v12  ;;  %v2344_v61 = vrot.slane %v2342_v13, 4 }
  0xbc   : > { %8753 = vmatmul.mubr.msk.bf16.gmra.mxu1 %vm1432_vm5, %v9716_v37  ;;  %v2421_v37 = vrot.slane %v2419_v38, 4  ;;  %v9333_v38 = vld [vmem:[#allocation2 + $0x34] sm:$0xf] }
  0xbd   : > { %8756 = vmatprep.mubr.msk.bf16.mxu1 %vm1432_vm5, %v9745_v35  ;;  %v2429_v35 = vrot.slane %v10064_v28, 5  ;;  %v2349_v5 = vrot.slane %v9333_v38, 5  ;;  %v7839_v38 = vrot.slane %v2276_v14, 9 }
  0xbe   : > { %8715 = vmatmul.mubr.msk.bf16.gmra.mxu0 %vm1432_vm5, %v9718_v48  ;;  %v2423_v23 = vsel %vm10032_vm15, %v2421_v37, %v2422_v52 }
  0xbf   : > { %8718 = vmatprep.mubr.msk.bf16.mxu0 %vm1432_vm5, %v9756_v45  ;;  %v10180_v30 = vcombine.low %v2420_v25, %v2423_v23  ;;  %v2430_v48 = vsel %vm10032_vm15, %v2428_v59, %v2429_v35  ;;  %v406_v45 = vld [vmem:[%s9521_s19 + $0xf0] sm:$0xff]  ;;  %v2345_v25 = vrot.slane %v9334_v29, 5  ;;  %v9335_v59 = vld [vmem:[#allocation2 + $0x38] sm:$0x1]  ;;  %v10245_v23 = vld [vmem:[%s13558_s4 + $0x8] sm:$0x3] }
  0xc0   : > { %v10184_v51 = vcombine.low %v2427_v16, %v2430_v48  ;;  %v2351_v16 = vrot.slane %v2349_v5, 4  ;;  %v2352_v35 = vrot.slane %v9335_v59, 5  ;;  %v9336_v48 = vld [vmem:[#allocation2 + $0x40] sm:$0xf]  ;;  %v9343_v29 = vld [vmem:[#allocation2 + $0x70] sm:$0xf] }
  0xc1   : > { %v2277_v59 = vld [vmem:[#allocation2 + $0x6c] sm:$0xe] }
  0xc4   : > { %8757 = vmatmul.mubr.msk.bf16.gmra.mxu1 %vm1432_vm5, %v9771_v21  ;;  %v407_v21 = vld [vmem:[%s9521_s19 + $0xf8] sm:$0xff] }
  0xc5   : > { %8760 = vmatprep.mubr.msk.bf16.mxu1 %vm1432_vm5, %v9807_v39  ;;  %v8300_v39 = vpack.c.bf16 %v406_v45, %v406_v45  ;;  %v8301_v28 = vpack.c.bf16 %v407_v21, %v407_v21  ;;  %v2356_v45 = vrot.slane %v9336_v48, 5 }
  0xc6   : > { %8719 = vmatmul.mubr.msk.bf16.gmra.mxu0 %vm1432_vm5, %v9785_v8  ;;  %v13636_v8 = vld [vmem:[#allocation6_spill] sm:$0xff] }
  0xc7   : > { %8722 = vmatprep.mubr.msk.bf16.mxu0 %vm1432_vm5, %v9811_v50  ;;  %v13637_v50 = vld [vmem:[#allocation8_spill] sm:$0xff]  ;;  %v771_v19 = vshrl.u32 %v8301_v28, 16  ;;  %v774_v20 = vshll.u32 %v8301_v28, 16  ;;  %v2273_v28 = vld [vmem:[#allocation2 + $0x3c] sm:$0xe] }
  0xc9   : > { %v10212_v46 = vrot.slane %v771_v19, 7 }
  0xcb   : > { %v776_v3 = vor.u32 %v774_v20, %v10212_v46 }
  0xcc   : > { %8761 = vmatmul.mubr.msk.bf16.gmra.mxu1 %vm1432_vm5, %v9836_v34  ;;  %v763_v34 = vshrl.u32 %v8300_v39, 16 }
  0xcd   : > { %8764 = vmatprep.mubr.msk.bf16.mxu1 %vm1432_vm5, %v9870_v40  ;;  %v13639_v40 = vld [vmem:[#allocation9_spill] sm:$0xff] }
  0xce   : > { %8723 = vmatmul.mubr.msk.bf16.gmra.mxu0 %vm1432_vm5, %v9848_v63  ;;  %v765_v63 = vrot.slane %v763_v34, 7  ;;  %v2274_v34 = vld [vmem:[#allocation2 + $0x48] sm:$0xe] }
  0xcf   : > { %8726 = vmatprep.mubr.msk.bf16.mxu0 %vm1432_vm5, %v9876_v55  ;;  %v766_v55 = vshll.u32 %v8300_v39, 16  ;;  %v2353_v39 = vsel %vm10032_vm15, %v2351_v16, %v2352_v35  ;;  %v7837_v20 = vrot.slane %v2274_v34, 9 }
  0xd0   : > { %v769_v47 = vrot.slane %v765_v63, 4 }
  0xd1   : > { %v768_v57 = vor.u32 %v766_v55, %v765_v63  ;;  %v9338_v63 = vld [vmem:[#allocation2 + $0x44] sm:$0x1] }
  0xd2   : > { %v777_v24 = vsel %vm9537_vm9, %v769_v47, %v776_v3  ;;  %v2359_v55 = vrot.slane %v9338_v63, 5  ;;  %v9339_v47 = vld [vmem:[#allocation2 + $0x50] sm:$0x1] }
  0xd3   : > { %v939_v44 = vsel %vm9546_vm10, %v768_v57, %v938_v7  ;;  %941 = vst.msk [vmem:[#allocation2 + $0xc4] sm:$0xf] %vm320_vm1, %v777_v24  ;;  %v2366_v3 = vrot.slane %v9339_v47, 5  ;;  %v3086_v7 = vsel %vm1481_vm0, %v10120_v18, 0  ;;  %vm7458_vm1 = vcmask 60416  }
  0xd4   : > { %8765 = vmatmul.mubr.msk.bf16.gmra.mxu1 %vm1432_vm5, %v13636_v8  ;;  %940 = vst [vmem:[#allocation2 + $0xc0] sm:$0xf] %v939_v44  ;;  %v9337_v8 = vld [vmem:[#allocation2 + $0x4c] sm:$0xf]  ;;  %v9340_v44 = vld [vmem:[#allocation2 + $0x58] sm:$0xf] }
  0xd5   : > { %8768 = vmatprep.mubr.msk.bf16.mxu1 %vm1432_vm5, %v13637_v50  ;;  %v2363_v50 = vrot.slane %v9337_v8, 5 }
  0xd6   : > { %8727 = vmatmul.mubr.msk.bf16.gmra.mxu0 %vm1432_vm5, %v13638_v15 }
  0xd7   : > { %8730 = vmatprep.mubr.msk.bf16.mxu0 %vm1432_vm5, %v13639_v40  ;;  %v7836_v40 = vrot.slane %v2273_v28, 9  ;;  %v2365_v57 = vrot.slane %v2363_v50, 4  ;;  %v2364_v18 = vsel %vm10032_vm15, %v7837_v20, %v2363_v50 }
  0xdc   : > { %8769 = vmatmul.mubr.msk.bf16.gmra.mxu1 %vm1432_vm5, %v13640_v41  ;;  %v2370_v41 = vrot.slane %v9340_v44, 5 }
  0xdd   : > { %8772 = vmatprep.mubr.msk.bf16.mxu1 %vm1432_vm5, %v10013_v2  ;;  %v2271_v2 = vld [vmem:[#allocation2 + $0x24] sm:$0xe] }
  0xde   : > { %8731 = vmatmul.mubr.msk.bf16.gmra.mxu0 %vm1432_vm5, %v13641_v22  ;;  %v7834_v49 = vrot.slane %v2271_v2, 9 }
  0xdf   : > { %8734 = vmatprep.mubr.msk.bf16.mxu0 %vm1432_vm5, %v10018_v9  ;;  %v2336_v9 = vsel %vm10032_vm15, %v7833_v32, %v2335_v0  ;;  %v2367_v0 = vsel %vm10032_vm15, %v2365_v57, %v2366_v3  ;;  %v9341_v32 = vld [vmem:[#allocation2 + $0x64] sm:$0xf] }
  0xe0   : > { %v7850_v52 = vcombine.low %v2336_v9, %v2339_v26  ;;  %v2377_v31 = vrot.slane %v9341_v32, 5  ;;  %v7854_v2 = vcombine.low %v2364_v18, %v2367_v0  ;;  %v778_v32 = vrot.slane %v10212_v46, 4 }
  0xe4   : > { %8773 = vmatmul.mubr.msk.bf16.gmra.mxu1 %vm1432_vm5, %v10059_v43  ;;  %v2272_v43 = vld [vmem:[#allocation2 + $0x30] sm:$0xe] }
  0xe5   : > { %8812 = vmatprep.mubr.msk.bf16.mxu1 %vm1432_vm5, %v10067_v62  ;;  %v7835_v37 = vrot.slane %v2272_v43, 9  ;;  %v13642_v43 = vld [vmem:[#allocation4_spill] sm:$0xff] }
  0xe6   : > { %8735 = vmatmul.mubr.msk.bf16.gmra.mxu0 %vm1432_vm5, %v10061_v1  ;;  %v3284_v1 = vsel %vm1481_vm0, %v10097_v42, 0  ;;  %v2346_v42 = vsel %vm10032_vm15, %v2344_v61, %v2345_v25  ;;  %v2384_v25 = vrot.slane %v9343_v29, 5  ;;  %v10382_v29 = vld [vmem:[#allocation2 + $0x3c] sm:$0xff]  }
  0xe7   : > { %8738 = vmatprep.mubr.msk.bf16.mxu0 %vm1432_vm5, %v10082_v10  ;;  %v2343_v10 = vsel %vm10032_vm15, %v7834_v49, %v2342_v13  ;;  %v2350_v21 = vsel %vm10032_vm15, %v7835_v37, %v2349_v5  ;;  %v9342_v13 = vld [vmem:[#allocation2 + $0x5c] sm:$0x1]  ;;  %v2379_v5 = vrot.slane %v2377_v31, 4  ;;  %v2380_v49 = vrot.slane %v13642_v43, 5 }
  0xe8   : > { %v7851_v19 = vcombine.low %v2343_v10, %v2346_v42  ;;  %v7852_v15 = vcombine.low %v2350_v21, %v2353_v39  ;;  %v2373_v9 = vrot.slane %v9342_v13, 5  ;;  %v2378_v37 = vsel %vm10032_vm15, %v7839_v38, %v2377_v31  ;;  %v9295_v31 = vld [vmem:[#allocation2 + $0xc] sm:$0xff]   ;;  %v9297_v13 = vld [vmem:[#allocation2 + $0x24] sm:$0xff]  }
  0xe9   : > { %v2381_v16 = vsel %vm10032_vm15, %v2379_v5, %v2380_v49  ;;  %v7840_v42 = vrot.slane %v2277_v59, 9  ;;  %v2386_v48 = vrot.slane %v2384_v25, 4  ;;  %v4208_v38 = vsel %vm1481_vm0, %v10245_v23, 0 }
  0xea   : > { %v7856_v10 = vcombine.low %v2378_v37, %v2381_v16  ;;  %v3482_v16 = vld [vmem:[#allocation2 + $0x18] sm:$0xf] }
  0xec   : > { %8813 = vmatmul.mubr.msk.bf16.vlgmr.msra.gmra.mxu1 %vm1432_vm5, %v10076_v4 }
  0xed   : > { %8816 = vmatprep.mubr.msk.bf16.mxu1 %vm1432_vm5, %v7850_v52  ;;  %8879 = vmatpush3.bf16.msra.mxu1 %v3284_v1 }
  0xee   : > { %8739 = vmatmul.mubr.msk.bf16.gmra.mxu0 %vm1432_vm5, %v10101_v11  ;;  %9261 = vmatprep.subr.msk.bf16.mxu1 %vm1481_vm0, %v10245_v23  ;;  %v2358_v11 = vrot.slane %v2356_v45, 4  ;;  %v3479_v23 = vld [vmem:[#allocation2 + $0xc] sm:$0xf] }
  0xef   : > { %8778 = vmatprep.mubr.msk.bf16.mxu0 %vm1432_vm5, %v10067_v62  ;;  %v2357_v62 = vsel %vm10032_vm15, %v7836_v40, %v2356_v45  ;;  %v13643_v45 = vld [vmem:[#allocation5_spill] sm:$0xff]  ;;  %v3531_v37 = vshll.u32 %v3479_v23, 16 }
  0xf0   : > { %v2360_v24 = vsel %vm10032_vm15, %v2358_v11, %v2359_v55  ;;  %v2387_v21 = vrot.slane %v13643_v45, 5  ;;  %v3555_v45 = vshll.u32 %v3482_v16, 16 }
  0xf1   : > { %v7853_v12 = vcombine.low %v2357_v62, %v2360_v24 }
  0xf4   : > { %8817 = vmatmul.mubr.msk.bf16.gmra.mxu1 %vm1432_vm5, %v7851_v19  ;;  %v8678_v22 = vpop.f32.mrf.mxu1 }
  0xf5   : > { %8820 = vmatprep.mubr.msk.bf16.mxu1 %vm1432_vm5, %v7852_v15 }
  0xf6   : > { %8779 = vmatmul.mubr.msk.bf16.vlgmr.msra.gmra.mxu0 %vm1432_vm5, %v10076_v4  ;;  %v2372_v4 = vrot.slane %v2370_v41, 4  ;;  %v1811_v26 = vpop.f32.mrf.mxu1 }
  0xf7   : > { %8845 = vmatpush3.bf16.msra.mxu0 %v3086_v7  ;;  %8782 = vmatprep.mubr.msk.bf16.mxu0 %vm1432_vm5, %v7850_v52  ;;  %v2371_v52 = vsel %vm10032_vm15, %v7838_v6, %v2370_v41 }
  0xf8   : > { %9260 = vmatprep.subr.msk.bf16.mxu0 %vm1481_vm0, %v10275_v56  ;;  %v2374_v61 = vsel %vm10032_vm15, %v2372_v4, %v2373_v9  ;;  %v8679_v1 = vpop.f32.mrf.mxu1  ;;  %v9296_v4 = vld [vmem:[#allocation2 + $0x18] sm:$0xff]  }
  0xf9   : > { %v7855_v35 = vcombine.low %v2371_v52, %v2374_v61  ;;  %v3480_v52 = vld [vmem:[#allocation2 + $0x10] sm:$0xf] }
  0xfa   : > { %v10300_v39 = vpop.f32.mrf.mxu1  ;;  %v10380_v61 = vld [vmem:[#allocation2 + $0x30] sm:$0xff]   ;;  %v3537_v59 = vshll.u32 %v3480_v52, 16 }
  0xfb   : > { %13644 = vst [vmem:[#allocation6_spill] sm:$0xff] %v10300_v39 }
  0xfc   : > { %8821 = vmatmul.mubr.msk.bf16.gmra.mxu1 %vm1432_vm5, %v7853_v12 }
  0xfd   : > { %8824 = vmatprep.mubr.msk.bf16.mxu1 %vm1432_vm5, %v7854_v2 }
  0xfe   : > { %8783 = vmatmul.mubr.msk.bf16.gmra.mxu0 %vm1432_vm5, %v7851_v19  ;;  %v8644_v28 = vpop.f32.mrf.mxu0  ;;  %v2385_v19 = vsel %vm10032_vm15, %v7840_v42, %v2384_v25  ;;  %v8682_v40 = vpop.f32.mrf.mxu1  ;;  %v3541_v42 = vshrl.u32 %v3480_v52, 16 }
  0xff   : > { %8786 = vmatprep.mubr.msk.bf16.mxu0 %vm1432_vm5, %v7852_v15  ;;  %v10302_v8 = vadd.f32 %v8678_v22, %v8644_v28  ;;  %v2388_v15 = vsel %vm10032_vm15, %v2386_v48, %v2387_v21  ;;  %v3552_v48 = vshrl.u32 %v3482_v16, 16  ;;  %v3485_v21 = vld [vmem:[#allocation2 + $0x24] sm:$0xf] }
 0x100   : > { %v1519_v50 = vpop.f32.mrf.mxu0  ;;  %v7857_v55 = vcombine.low %v2385_v19, %v2388_v15  ;;  %v1827_v20 = vpop.f32.mrf.mxu1  ;;  %v10396_v15 = vrot.slane %v3531_v37, 5 }
 0x101   : > { %13645 = vst [vmem:[#allocation8_spill] sm:$0xff] %v10302_v8  ;;  %v10305_v34 = vadd.f32 %v1811_v26, %v1519_v50 }
 0x102   : > { %v8645_v11 = vpop.f32.mrf.mxu0  ;;  %v8683_v57 = vpop.f32.mrf.mxu1 }
 0x103   : > { %13646 = vst [vmem:[#allocation7_spill] sm:$0xff] %v10305_v34  ;;  %v10313_v63 = vadd.f32 %v8679_v1, %v8645_v11  ;;  %v3528_v1 = vshrl.u32 %v3479_v23, 16 }
 0x104   : > { %8825 = vmatmul.mubr.msk.bf16.gmra.mxu1 %vm1432_vm5, %v7855_v35  ;;  %v10321_v47 = vpop.f32.mrf.mxu0  ;;  %v10323_v3 = vpop.f32.mrf.mxu1 }
 0x105   : > { %8828 = vmatprep.mubr.msk.bf16.mxu1 %vm1432_vm5, %v7856_v10  ;;  %13647 = vst [vmem:[#allocation9_spill] sm:$0xff] %v10313_v63  ;;  %13648 = vst [vmem:[#allocation11_spill] sm:$0xff] %v10321_v47  ;;  %v10394_v19 = vrot.slane %v3528_v1, 4  ;;  %v3486_v1 = vld [vmem:[#allocation2 + $0x28] sm:$0xf] }
 0x106   : > { %8787 = vmatmul.mubr.msk.bf16.gmra.mxu0 %vm1432_vm5, %v7853_v12  ;;  %13649 = vst [vmem:[#allocation10_spill] sm:$0xff] %v10323_v3 }
 0x107   : > { %8790 = vmatprep.mubr.msk.bf16.mxu0 %vm1432_vm5, %v7854_v2 }
 0x10c   : > { %8829 = vmatmul.mubr.msk.bf16.gmra.mxu1 %vm1432_vm5, %v7857_v55 }
 0x10d   : > { %8832 = vmatprep.mubr.msk.bf16.mxu1 %vm1432_vm5, %v10142_v58 }
 0x10e   : > { %8791 = vmatmul.mubr.msk.bf16.gmra.mxu0 %vm1432_vm5, %v7855_v35  ;;  %v3483_v35 = vld [vmem:[#allocation2 + $0x1c] sm:$0xf] }
 0x10f   : > { %8794 = vmatprep.mubr.msk.bf16.mxu0 %vm1432_vm5, %v7856_v10 }
 0x111   : > { %v8648_v7 = vpop.f32.mrf.mxu0  ;;  %v8686_v24 = vpop.f32.mrf.mxu1 }
 0x112   : > { %v10327_v62 = vadd.f32 %v8682_v40, %v8648_v7  ;;  %v10403_v40 = vld [vmem:[#allocation2 + $0x4c] sm:$0xf]  ;;  %v3565_v7 = vshrl.u32 %v3483_v35, 16 }
 0x113   : > { %v1535_v44 = vpop.f32.mrf.mxu0  ;;  %v1843_v0 = vpop.f32.mrf.mxu1 }
 0x114   : > { %8833 = vmatmul.mubr.msk.bf16.gmra.mxu1 %vm1432_vm5, %v10147_v17  ;;  %13650 = vst [vmem:[#allocation4_spill] sm:$0xff] %v10327_v62  ;;  %v10332_v41 = vadd.f32 %v1827_v20, %v1535_v44  ;;  %v10406_v20 = vrot.slane %v3537_v59, 5  ;;  %v3567_v52 = vrot.slane %v3565_v7, 4 }
 0x115   : > { %8836 = vmatprep.mubr.msk.bf16.mxu1 %vm1432_vm5, %v10163_v33  ;;  %v8649_v22 = vpop.f32.mrf.mxu0  ;;  %v8687_v27 = vpop.f32.mrf.mxu1 }
 0x116   : > { %8795 = vmatmul.mubr.msk.bf16.gmra.mxu0 %vm1432_vm5, %v7857_v55  ;;  %13651 = vst [vmem:[#allocation5_spill] sm:$0xff] %v10332_v41  ;;  %v10336_v18 = vadd.f32 %v8683_v57, %v8649_v22  ;;  %v3481_v55 = vld [vmem:[#allocation2 + $0x14] sm:$0x1]  ;;  %v3561_v57 = vshll.u32 %v3483_v35, 16  ;;  %v3576_v22 = vshrl.u32 %v3485_v21, 16 }
 0x117   : > { %8798 = vmatprep.mubr.msk.bf16.mxu0 %vm1432_vm5, %v10142_v58  ;;  %v942_v58 = vld [vmem:[#allocation2 + $0xc8] sm:$0x1]  ;;  %v1846_v14 = vpop.f32.mrf.mxu1  ;;  %v10347_v12 = vpop.f32.mrf.mxu0  ;;  %v3484_v35 = vld [vmem:[#allocation2 + $0x20] sm:$0x1]  ;;  %v10592_v41 = vld [vmem:[#allocation2 + $0x44] sm:$0x1] }
 0x118   : > { %13652 = vst [vmem:[#allocation13_spill] sm:$0xff] %v10336_v18  ;;  %13653 = vst [vmem:[#allocation14_spill] sm:$0xff] %v10347_v12  ;;  %v943_v2 = vsel %vm9565_vm11, %v778_v32, %v942_v58  ;;  %v4408_v32 = vld [vmem:[#allocation2 + $0x48] sm:$0xe]  ;;  %v10425_v23 = vrot.slane %v3561_v57, 5  ;;  %v3571_v7 = vshll.u32 %v3484_v35, 16 }
 0x119   : > { %944 = vst [vmem:[#allocation2 + $0xc8] sm:$0x1] %v943_v2  ;;  %v10414_v58 = vld [vmem:[#allocation2 + $0x48] sm:$0xff]   ;;  %v8002_v2 = vrot.slane %v4408_v32, 9  ;;  %v10590_v18 = vld [vmem:[#allocation2 + $0x9c] sm:$0xff]   ;;  %13671 = vst [vmem:[#allocation32_spill] sm:$0xff] %v10592_v41 }
 0x11a   : > { %v4411_v12 = vld [vmem:[#allocation2 + $0x6c] sm:$0xe] }
 0x11b   : > { %v8005_v39 = vrot.slane %v4411_v12, 9 }
 0x11c   : > { %8837 = vmatmul.mubr.msk.bf16.gmra.mxu1 %vm1432_vm5, %v10171_v36 }
 0x11d   : > { %8840 = vmatprep.mubr.msk.bf16.mxu1 %vm1432_vm5, %v10180_v30 }
 0x11e   : > { %8799 = vmatmul.mubr.msk.bf16.gmra.mxu0 %vm1432_vm5, %v10147_v17 }
 0x11f   : > { %8802 = vmatprep.mubr.msk.bf16.mxu0 %vm1432_vm5, %v10163_v33 }
 0x120   : > { %v8690_v17 = vpop.f32.mrf.mxu1 }
 0x122   : > { %v1859_v9 = vpop.f32.mrf.mxu1 }
 0x123   : > { %v8652_v6 = vpop.f32.mrf.mxu0 }
 0x124   : > { %8841 = vmatmul.mubr.msk.bf16.gmra.mxu1 %vm1432_vm5, %v10184_v51  ;;  %v10356_v33 = vadd.f32 %v8686_v24, %v8652_v6  ;;  %v8691_v49 = vpop.f32.mrf.mxu1  ;;  %v4504_v24 = vrot.slane %v10403_v40, 5 }
 0x125   : > { %8880 = vmatprep.mubr.msk.bf16.mxu1 %vm1432_vm5, %v9295_v31  ;;  %v1551_v46 = vpop.f32.mrf.mxu0 }
 0x126   : > { %8803 = vmatmul.mubr.msk.bf16.gmra.mxu0 %vm1432_vm5, %v10171_v36  ;;  %13654 = vst [vmem:[#allocation15_spill] sm:$0xff] %v10356_v33  ;;  %v10360_v54 = vadd.f32 %v1843_v0, %v1551_v46  ;;  %v10369_v36 = vld [vmem:[%s13558_s4 + $0xa] sm:$0x3]  ;;  %v1862_v25 = vpop.f32.mrf.mxu1  ;;  %v3579_v0 = vshll.u32 %v3485_v21, 16  ;;  %v10419_v46 = vld [vmem:[#allocation2 + $0x54] sm:$0xff]   ;;  %v4505_v37 = vsel %vm10032_vm15, %v8002_v2, %v4504_v24 }
 0x127   : > { %8806 = vmatprep.mubr.msk.bf16.mxu0 %vm1432_vm5, %v10180_v30  ;;  %v8653_v26 = vpop.f32.mrf.mxu0  ;;  %v3487_v21 = vld [vmem:[#allocation2 + $0x2c] sm:$0x1]  ;;  %v4410_v2 = vld [vmem:[#allocation2 + $0x60] sm:$0xe] }
 0x128   : > { %13655 = vst [vmem:[#allocation16_spill] sm:$0xff] %v10360_v54  ;;  %v10364_v5 = vadd.f32 %v8687_v27, %v8653_v26  ;;  %v10412_v27 = vld [vmem:[#allocation2 + $0x50] sm:$0x1]  ;;  %v3554_v26 = vrot.slane %v3552_v48, 4 }
 0x129   : > { %v1554_v43 = vpop.f32.mrf.mxu0  ;;  %v4507_v6 = vrot.slane %v10412_v27, 5 }
 0x12a   : > { %13656 = vst [vmem:[#allocation17_spill] sm:$0xff] %v10364_v5  ;;  %v10372_v30 = vadd.f32 %v1846_v14, %v1554_v43  ;;  %v3543_v14 = vrot.slane %v3541_v42, 4  ;;  %v3488_v42 = vld [vmem:[#allocation2 + $0x30] sm:$0xf] }
 0x12c   : > { %8881 = vmatmul.mubr.msk.bf16.vlgmr.msra.gmra.mxu1 %vm1432_vm5, %v9296_v4  ;;  %13657 = vst [vmem:[#allocation18_spill] sm:$0xff] %v10372_v30  ;;  %v10520_v30 = vld [vmem:[#allocation2 + $0x84] sm:$0xff]  }
 0x12d   : > { %8884 = vmatprep.mubr.msk.bf16.mxu1 %vm1432_vm5, %v9297_v13  ;;  %8947 = vmatpush3.bf16.msra.mxu1 %v4208_v38  ;;  %v3557_v38 = vrot.slane %v3555_v45, 5  ;;  %v3534_v45 = vor.u32 %v10396_v15, %v10394_v19  ;;  %v3568_v15 = vor.u32 %v3567_v52, %v10425_v23 }
 0x12e   : > { %8807 = vmatmul.mubr.msk.bf16.gmra.mxu0 %vm1432_vm5, %v10184_v51  ;;  %9263 = vmatprep.subr.msk.bf16.mxu1 %vm1481_vm0, %v10369_v36  ;;  %v4010_v51 = vsel %vm1481_vm0, %v10275_v56, 0  ;;  %v10401_v56 = vld [vmem:[%s13555_s1 + $0xa] sm:$0x3] }
 0x12f   : > { %8846 = vmatprep.mubr.msk.bf16.mxu0 %vm1432_vm5, %v9295_v31  ;;  %v3558_v19 = vor.u32 %v3557_v38, %v3554_v26  ;;  %v3603_v38 = vshll.u32 %v3488_v42, 16 }
 0x130   : > { %v10390_v28 = vpop.f32.mrf.mxu1 }
 0x132   : > { %v8656_v10 = vpop.f32.mrf.mxu0 }
 0x133   : > { %v10392_v50 = vadd.f32 %v8690_v17, %v8656_v10  ;;  %v4506_v17 = vrot.slane %v4504_v24, 4  ;;  %v3589_v24 = vshrl.u32 %v3486_v1, 16 }
 0x134   : > { %8885 = vmatmul.mubr.msk.bf16.gmra.mxu1 %vm1432_vm5, %v10380_v61  ;;  %v1567_v11 = vpop.f32.mrf.mxu0 }
 0x135   : > { %8888 = vmatprep.mubr.msk.bf16.mxu1 %vm1432_vm5, %v10382_v29  ;;  %13658 = vst [vmem:[#allocation19_spill] sm:$0xff] %v10392_v50  ;;  %v10410_v44 = vadd.f32 %v1859_v9, %v1567_v11  ;;  %v3547_v9 = vshll.u32 %v3481_v55, 16  ;;  %v4508_v16 = vsel %vm10032_vm15, %v4506_v17, %v4507_v6  ;;  %v3585_v11 = vshll.u32 %v3486_v1, 16  ;;  %v10444_v55 = vld [vmem:[#allocation2 + $0x64] sm:$0xf]  ;;  %v10461_v1 = vld [vmem:[#allocation2 + $0x6c] sm:$0xff]  }
 0x136   : > { %8847 = vmatmul.mubr.msk.bf16.vlgmr.msra.gmra.mxu0 %vm1432_vm5, %v9296_v4  ;;  %v8657_v31 = vpop.f32.mrf.mxu0  ;;  %v10421_v4 = vpop.f32.mrf.mxu1  ;;  %v10433_v10 = vcombine.low %v4505_v37, %v4508_v16  ;;  %v3595_v17 = vshll.u32 %v3487_v21, 16  ;;  %v8004_v6 = vrot.slane %v4410_v2, 9  ;;  %v10463_v16 = vrot.slane %v3534_v45, 4 }
 0x137   : > { %8913 = vmatpush3.bf16.msra.mxu0 %v4010_v51  ;;  %8850 = vmatprep.mubr.msk.bf16.mxu0 %vm1432_vm5, %v9297_v13  ;;  %13659 = vst [vmem:[#allocation20_spill] sm:$0xff] %v10410_v44  ;;  %v10423_v13 = vadd.f32 %v8691_v49, %v8657_v31  ;;  %v3578_v51 = vrot.slane %v3576_v22, 4  ;;  %v3581_v49 = vrot.slane %v3579_v0, 5  ;;  %v10448_v57 = vrot.slane %v3547_v9, 5  ;;  %v10450_v22 = vld [vmem:[#allocation2 + $0x34] sm:$0xf] }
 0x138   : > { %9262 = vmatprep.subr.msk.bf16.mxu0 %vm1481_vm0, %v10401_v56  ;;  %v1570_v43 = vpop.f32.mrf.mxu0  ;;  %13662 = vst [vmem:[#allocation23_spill] sm:$0xff] %v10433_v10  ;;  %v10439_v48 = vpop.f32.mrf.mxu1  ;;  %v4518_v0 = vrot.slane %v10444_v55, 5  ;;  %v3600_v31 = vshrl.u32 %v3488_v42, 16  ;;  %v10467_v26 = vrot.slane %v3585_v11, 5  ;;  %v3591_v52 = vrot.slane %v3589_v24, 4 }
 0x139   : > { %13660 = vst [vmem:[#allocation21_spill] sm:$0xff] %v10423_v13  ;;  %v10431_v59 = vadd.f32 %v1862_v25, %v1570_v43  ;;  %v3544_v25 = vor.u32 %v3543_v14, %v10406_v20  ;;  %v3582_v32 = vor.u32 %v3581_v49, %v3578_v51  ;;  %v10456_v14 = vld [vmem:[#allocation2 + $0x68] sm:$0x1]  ;;  %v3609_v35 = vshll.u32 %v10450_v22, 16 }
 0x13a   : > { %v4520_v9 = vrot.slane %v4518_v0, 4  ;;  %v4521_v43 = vrot.slane %v10456_v14, 5  ;;  %v1878_v37 = vpop.f32.mrf.mxu1  ;;  %v4519_v51 = vsel %vm10032_vm15, %v8004_v6, %v4518_v0  ;;  %v10474_v21 = vrot.slane %v3558_v19, 4  ;;  %v10489_v19 = vld [vmem:[#allocation2 + $0x70] sm:$0xf] }
 0x13b   : > { %13661 = vst [vmem:[#allocation22_spill] sm:$0xff] %v10431_v59  ;;  %v10476_v2 = vrot.slane %v3568_v15, 4  ;;  %v10478_v45 = vrot.slane %v3571_v7, 5  ;;  %v10484_v11 = vrot.slane %v3582_v32, 4  ;;  %v10486_v24 = vrot.slane %v3595_v17, 5 }
 0x13c   : > { %8889 = vmatmul.mubr.msk.bf16.gmra.mxu1 %vm1432_vm5, %v10414_v58  ;;  %v4522_v49 = vsel %vm10032_vm15, %v4520_v9, %v4521_v43  ;;  %v3602_v0 = vrot.slane %v3600_v31, 4  ;;  %v3613_v6 = vshrl.u32 %v10450_v22, 16  ;;  %v3605_v9 = vrot.slane %v3603_v38, 5  ;;  %v10498_v43 = vld [vmem:[#allocation2 + $0x74] sm:$0x1]  ;;  %v10513_v38 = vld [vmem:[#allocation2 + $0x78] sm:$0xff]  }
 0x13d   : > { %8892 = vmatprep.mubr.msk.bf16.mxu1 %vm1432_vm5, %v10419_v46  ;;  %v10480_v3 = vcombine.low %v4519_v51, %v4522_v49  ;;  %v10500_v32 = vld [vmem:[#allocation2 + $0x7c] sm:$0xf]  ;;  %v4525_v17 = vrot.slane %v10489_v19, 5  ;;  %v3592_v31 = vor.u32 %v3591_v52, %v10467_v26  ;;  %v10506_v51 = vrot.slane %v3609_v35, 5  ;;  %v10508_v49 = vld [vmem:[#allocation2 + $0x80] sm:$0x1] }
 0x13e   : > { %8851 = vmatmul.mubr.msk.bf16.gmra.mxu0 %vm1432_vm5, %v10380_v61  ;;  %v10458_v61 = vld [vmem:[#allocation2 + $0x60] sm:$0xff]   ;;  %v4528_v47 = vrot.slane %v10498_v43, 5  ;;  %v4412_v52 = vld [vmem:[#allocation2 + $0x78] sm:$0xe]  ;;  %v3491_v59 = vld [vmem:[#allocation2 + $0x3c] sm:$0xf] }
 0x13f   : > { %8854 = vmatprep.mubr.msk.bf16.mxu0 %vm1432_vm5, %v10382_v29  ;;  %v10465_v29 = vrot.slane %v3544_v25, 4  ;;  %v3490_v25 = vld [vmem:[#allocation2 + $0x38] sm:$0x1]  ;;  %13663 = vst [vmem:[#allocation24_spill] sm:$0xff] %v10480_v3  ;;  %v8006_v13 = vrot.slane %v4412_v52, 9  ;;  %v4535_v50 = vrot.slane %v10508_v49, 5  ;;  %v4526_v12 = vsel %vm10032_vm15, %v8005_v39, %v4525_v17 }
 0x140   : > { %v10531_v52 = vld [vmem:[#allocation2 + $0x40] sm:$0xf] }
 0x141   : > { %v10493_v7 = vpop.f32.mrf.mxu1  ;;  %13667 = vst [vmem:[#allocation28_spill] sm:$0xff] %v10531_v52 }
 0x142   : > { %v8660_v42 = vpop.f32.mrf.mxu0 }
 0x143   : > { %v10496_v15 = vadd.f32 %v10390_v28, %v8660_v42  ;;  %v4532_v28 = vrot.slane %v10500_v32, 5 }
 0x144   : > { %8893 = vmatmul.mubr.msk.bf16.gmra.mxu1 %vm1432_vm5, %v10458_v61  ;;  %v1583_v22 = vpop.f32.mrf.mxu0 }
 0x145   : > { %8896 = vmatprep.mubr.msk.bf16.mxu1 %vm1432_vm5, %v10461_v1  ;;  %13664 = vst [vmem:[#allocation25_spill] sm:$0xff] %v10496_v15  ;;  %v10516_v42 = vadd.f32 %v10421_v4, %v1583_v22  ;;  %v3619_v15 = vshll.u32 %v3490_v25, 16  ;;  %v4534_v44 = vrot.slane %v4532_v28, 4  ;;  %v3615_v4 = vrot.slane %v3613_v6, 4 }
 0x146   : > { %8855 = vmatmul.mubr.msk.bf16.gmra.mxu0 %vm1432_vm5, %v10414_v58  ;;  %v4527_v58 = vrot.slane %v4525_v17, 4  ;;  %v8661_v35 = vpop.f32.mrf.mxu0  ;;  %v4533_v33 = vsel %vm10032_vm15, %v8006_v13, %v4532_v28  ;;  %v3624_v6 = vshrl.u32 %v3491_v59, 16  ;;  %v10551_v17 = vld [vmem:[#allocation2 + $0x88] sm:$0xf]  ;;  %v3633_v13 = vshll.u32 %v10531_v52, 16 }
 0x147   : > { %8858 = vmatprep.mubr.msk.bf16.mxu0 %vm1432_vm5, %v10419_v46  ;;  %13665 = vst [vmem:[#allocation26_spill] sm:$0xff] %v10516_v42  ;;  %v10522_v46 = vpop.f32.mrf.mxu1  ;;  %v10525_v5 = vadd.f32 %v10439_v48, %v8661_v35  ;;  %v3606_v42 = vor.u32 %v3605_v9, %v3602_v0  ;;  %v4536_v48 = vsel %vm10032_vm15, %v4534_v44, %v4535_v50  ;;  %v10547_v0 = vrot.slane %v3619_v15, 5  ;;  %v10549_v9 = vld [vmem:[#allocation2 + $0x48] sm:$0xf] }
 0x148   : > { %v4529_v22 = vsel %vm10032_vm15, %v4527_v58, %v4528_v47  ;;  %v1586_v25 = vpop.f32.mrf.mxu0  ;;  %v10541_v39 = vcombine.low %v4533_v33, %v4536_v48  ;;  %v10545_v47 = vrot.slane %v3592_v31, 4  ;;  %v4539_v15 = vrot.slane %v10551_v17, 5  ;;  %v10587_v31 = vld [vmem:[#allocation2 + $0x90] sm:$0xff]  }
 0x149   : > { %13666 = vst [vmem:[#allocation27_spill] sm:$0xff] %v10525_v5  ;;  %v10533_v54 = vcombine.low %v4526_v12, %v4529_v22  ;;  %v10539_v35 = vadd.f32 %v1878_v37, %v1586_v25  ;;  %v3627_v5 = vshll.u32 %v3491_v59, 16  ;;  %v10555_v50 = vpop.f32.mrf.mxu1  ;;  %v10566_v59 = vld [vmem:[#allocation2 + $0x8c] sm:$0x1]  ;;  %v10568_v37 = vld [vmem:[#allocation2 + $0x94] sm:$0xf]  ;;  %v3616_v58 = vor.u32 %v3615_v4, %v10506_v51 }
 0x14a   : > { %13670 = vst [vmem:[#allocation31_spill] sm:$0xff] %v10541_v39  ;;  %v10577_v28 = vrot.slane %v3606_v42, 4  ;;  %v10580_v12 = vld [vmem:[#allocation2 + $0x98] sm:$0x1]  ;;  %v4413_v22 = vld [vmem:[#allocation2 + $0x84] sm:$0xe] }
 0x14b   : > { %13668 = vst [vmem:[#allocation29_spill] sm:$0xff] %v10533_v54  ;;  %13669 = vst [vmem:[#allocation30_spill] sm:$0xff] %v10539_v35  ;;  %v4546_v25 = vrot.slane %v10568_v37, 5  ;;  %v3637_v48 = vshrl.u32 %v10531_v52, 16  ;;  %v4541_v33 = vrot.slane %v4539_v15, 4  ;;  %v4542_v44 = vrot.slane %v10566_v59, 5  ;;  %v1894_v3 = vpop.f32.mrf.mxu1 }
 0x14c   : > { %8897 = vmatmul.mubr.msk.bf16.gmra.mxu1 %vm1432_vm5, %v10513_v38  ;;  %v4414_v35 = vld [vmem:[#allocation2 + $0x90] sm:$0xe]  ;;  %v3626_v42 = vrot.slane %v3624_v6, 4  ;;  %v4549_v54 = vrot.slane %v10580_v12, 5  ;;  %v3648_v62 = vshrl.u32 %v10549_v9, 16  ;;  %v10599_v63 = vrot.slane %v3616_v58, 4 }
 0x14d   : > { %8900 = vmatprep.mubr.msk.bf16.mxu1 %vm1432_vm5, %v10520_v30  ;;  %v8008_v39 = vrot.slane %v4414_v35, 9  ;;  %v4548_v4 = vrot.slane %v4546_v25, 4  ;;  %v4543_v10 = vsel %vm10032_vm15, %v4541_v33, %v4542_v44  ;;  %v10641_v44 = vld [vmem:[#allocation2 + $0xa4] sm:$0x1]  ;;  %v4415_v58 = vld [vmem:[#allocation2 + $0x9c] sm:$0xe] }
 0x14e   : > { %8859 = vmatmul.mubr.msk.bf16.gmra.mxu0 %vm1432_vm5, %v10458_v61  ;;  %v8007_v61 = vrot.slane %v4413_v22, 9 }
 0x14f   : > { %8862 = vmatprep.mubr.msk.bf16.mxu0 %vm1432_vm5, %v10461_v1  ;;  %v3629_v1 = vrot.slane %v3627_v5, 5  ;;  %v4547_v6 = vsel %vm10032_vm15, %v8008_v39, %v4546_v25  ;;  %v4550_v34 = vsel %vm10032_vm15, %v4548_v4, %v4549_v54  ;;  %v3574_v5 = vsel %vm9575_vm12, %v10476_v2, %v10478_v45 }
 0x150   : > { %v4540_v22 = vsel %vm10032_vm15, %v8007_v61, %v4539_v15  ;;  %v10611_v15 = vrot.slane %v3633_v13, 5  ;;  %v3639_v61 = vrot.slane %v3637_v48, 4  ;;  %v10613_v33 = vcombine.low %v4547_v6, %v4550_v34  ;;  %v10629_v34 = vld [vmem:[#allocation2 + $0xa0] sm:$0xf] }
 0x151   : > { %v10601_v35 = vcombine.low %v4540_v22, %v4543_v10  ;;  %v8664_v8 = vpop.f32.mrf.mxu0  ;;  %v3588_v54 = vsel %vm9575_vm12, %v10484_v11, %v10467_v26  ;;  %v3598_v2 = vsel %vm9575_vm12, %v10545_v47, %v10486_v24  ;;  %v3643_v45 = vshll.u32 %v10592_v41, 16  ;;  %v10643_v24 = vld [vmem:[#allocation2 + $0xac] sm:$0xf] }
 0x152   : > { %13673 = vst [vmem:[#allocation34_spill] sm:$0xff] %v10613_v33  ;;  %v10618_v10 = vadd.f32 %v10493_v7, %v8664_v8  ;;  %v3612_v26 = vsel %vm9575_vm12, %v10577_v28, %v10506_v51  ;;  %v3630_v11 = vor.u32 %v3629_v1, %v3626_v42  ;;  %v10639_v7 = vrot.slane %v3648_v62, 4  ;;  %v10656_v28 = vld [vmem:[#allocation2 + $0xb0] sm:$0x1]  ;;  %v4416_v1 = vld [vmem:[#allocation2 + $0xa8] sm:$0xe] }
 0x153   : > { %13672 = vst [vmem:[#allocation33_spill] sm:$0xff] %v10601_v35  ;;  %v10633_v39 = vpop.f32.mrf.mxu1  ;;  %v1599_v8 = vpop.f32.mrf.mxu0  ;;  %v4553_v47 = vrot.slane %v10629_v34, 5  ;;  %v3622_v51 = vsel %vm9575_vm12, %v10599_v63, %v10547_v0  ;;  %v3651_v62 = vshll.u32 %v10549_v9, 16  ;;  %v4560_v25 = vrot.slane %v10643_v24, 5  ;;  %v10663_v22 = vld [vmem:[#allocation2 + $0xa8] sm:$0xff]  }
 0x154   : > { %8901 = vmatmul.mubr.msk.bf16.gmra.mxu1 %vm1432_vm5, %v10587_v31  ;;  %13674 = vst [vmem:[#allocation35_spill] sm:$0xff] %v10618_v10  ;;  %v10649_v13 = vadd.f32 %v10522_v46, %v1599_v8  ;;  %v8009_v46 = vrot.slane %v4415_v58, 9  ;;  %v4556_v4 = vrot.slane %v10641_v44, 5  ;;  %v8010_v9 = vrot.slane %v4416_v1, 9  ;;  %v3497_v1 = vld [vmem:[#allocation2 + $0x54] sm:$0xf] }
 0x155   : > { %8904 = vmatprep.mubr.msk.bf16.mxu1 %vm1432_vm5, %v10590_v18  ;;  %v8665_v48 = vpop.f32.mrf.mxu0  ;;  %v4555_v42 = vrot.slane %v4553_v47, 4  ;;  %v10665_v63 = vpop.f32.mrf.mxu1  ;;  %v4562_v6 = vrot.slane %v4560_v25, 4  ;;  %v4563_v8 = vrot.slane %v10656_v28, 5  ;;  %v10677_v58 = vrot.slane %v3630_v11, 4 }
 0x156   : > { %8863 = vmatmul.mubr.msk.bf16.gmra.mxu0 %vm1432_vm5, %v10513_v38  ;;  %13675 = vst [vmem:[#allocation36_spill] sm:$0xff] %v10649_v13  ;;  %v3640_v38 = vor.u32 %v3639_v61, %v10611_v15  ;;  %v10668_v0 = vadd.f32 %v10555_v50, %v8665_v48  ;;  %v10671_v13 = vld [vmem:[#allocation2 + $0xb4] sm:$0xff]   ;;  %v10675_v61 = vsel %vm1481_vm0, %v10401_v56, 0  ;;  %v4554_v10 = vsel %vm10032_vm15, %v8009_v46, %v4553_v47 }
 0x157   : > { %8866 = vmatprep.mubr.msk.bf16.mxu0 %vm1432_vm5, %v10520_v30  ;;  %v1602_v30 = vpop.f32.mrf.mxu0  ;;  %v4557_v50 = vsel %vm10032_vm15, %v4555_v42, %v4556_v4  ;;  %v4561_v33 = vsel %vm10032_vm15, %v8010_v9, %v4560_v25  ;;  %v4564_v56 = vsel %vm10032_vm15, %v4562_v6, %v4563_v8  ;;  %v10691_v35 = vrot.slane %v3643_v45, 5  ;;  %v10717_v42 = vld [vmem:[#allocation2 + $0x58] sm:$0xf]  ;;  %v10739_v6 = vld [vmem:[#allocation2 + $0xc0] sm:$0xff]  }
 0x158   : > { %13676 = vst [vmem:[#allocation37_spill] sm:$0xff] %v10668_v0  ;;  %v10683_v48 = vadd.f32 %v1894_v3, %v1602_v30  ;;  %v10685_v0 = vcombine.low %v4554_v10, %v4557_v50  ;;  %v10693_v11 = vrot.slane %v3651_v62, 5  ;;  %v3657_v47 = vshll.u32 %v10403_v40, 16  ;;  %v10700_v3 = vpop.f32.mrf.mxu1  ;;  %13682 = vst [vmem:[#allocation41_spill] sm:$0xff] %v10717_v42  ;;  %v10719_v4 = vld [vmem:[#allocation2 + $0xb8] sm:$0xf] }
 0x159   : > { %v10696_v46 = vcombine.low %v4561_v33, %v4564_v56  ;;  %v13680_v10 = vsel %vm9575_vm12, %v10465_v29, %v10448_v57  ;;  %v13681_v45 = vsel %vm9575_vm12, %v10463_v16, %v10406_v20  ;;  %v10714_v25 = vrot.slane %v3640_v38, 4  ;;  %v10732_v38 = vld [vmem:[#allocation2 + $0xbc] sm:$0x1] }
 0x15a   : > { %13677 = vst [vmem:[#allocation38_spill] sm:$0xff] %v10683_v48  ;;  %13678 = vst [vmem:[#allocation39_spill] sm:$0xff] %v10685_v0  ;;  %v10712_v62 = vcombine.low %v13681_v45, %v13680_v10  ;;  %v3661_v33 = vshrl.u32 %v10403_v40, 16  ;;  %v13683_v57 = vsel %vm9575_vm12, %v10474_v21, %v10425_v23  ;;  %v10730_v20 = vcombine.low %v3588_v54, %v3598_v2  ;;  %v10734_v40 = vld [vmem:[#allocation2 + $0xc4] sm:$0xf]  ;;  %v1910_v56 = vpop.f32.mrf.mxu1 }
 0x15b   : > { %13679 = vst [vmem:[#allocation40_spill] sm:$0xff] %v10696_v46  ;;  %v10728_v29 = vcombine.low %v13683_v57, %v3574_v5  ;;  %v3672_v16 = vshrl.u32 %v3497_v1, 16  ;;  %13684 = vst [vmem:[#allocation42_spill] sm:$0xff] %v10732_v38  ;;  %v4567_v9 = vrot.slane %v10719_v4, 5  ;;  %v10741_v8 = vcombine.low %v3612_v26, %v3622_v51  ;;  %v10747_v5 = vld [vmem:[#allocation2 + $0xc8] sm:$0x1] }
 0x15c   : > { %8905 = vmatmul.mubr.msk.bf16.gmra.mxu1 %vm1432_vm5, %v10663_v22  ;;  %13685 = vst [vmem:[#allocation43_spill] sm:$0xff] %v10734_v40  ;;  %v3675_v21 = vshll.u32 %v3497_v1, 16  ;;  %13686 = vst [vmem:[#allocation44_spill] sm:$0xff] %v10747_v5  ;;  %v4417_v54 = vld [vmem:[#allocation2 + $0xb4] sm:$0xe]  ;;  %v4574_v2 = vrot.slane %v10734_v40, 5 }
 0x15d   : > { %8908 = vmatprep.mubr.msk.bf16.mxu1 %vm1432_vm5, %v10671_v13  ;;  %v8011_v30 = vrot.slane %v4417_v54, 9  ;;  %v4569_v50 = vrot.slane %v4567_v9, 4  ;;  %v4570_v26 = vrot.slane %v10732_v38, 5  ;;  %v4418_v51 = vld [vmem:[#allocation2 + $0xc0] sm:$0xe]  ;;  %v3685_v10 = vshrl.u32 %v10717_v42, 16 }
 0x15e   : > { %8867 = vmatmul.mubr.msk.bf16.gmra.mxu0 %vm1432_vm5, %v10587_v31  ;;  %v3681_v31 = vshll.u32 %v10717_v42, 16  ;;  %v3500_v45 = vld [vmem:[#allocation2 + $0x60] sm:$0xf]  ;;  %v8012_v1 = vrot.slane %v4418_v51, 9  ;;  %v4576_v57 = vrot.slane %v4574_v2, 4  ;;  %v4577_v23 = vrot.slane %v10747_v5, 5 }
 0x15f   : > { %8870 = vmatprep.mubr.msk.bf16.mxu0 %vm1432_vm5, %v10590_v18  ;;  %v10756_v48 = vrot.slane %v3657_v47, 5  ;;  %v3663_v46 = vrot.slane %v3661_v33, 4  ;;  %v4568_v18 = vsel %vm10032_vm15, %v8011_v30, %v4567_v9  ;;  %v4571_v54 = vsel %vm10032_vm15, %v4569_v50, %v4570_v26  ;;  %v3503_v40 = vld [vmem:[#allocation2 + $0x6c] sm:$0xf]  ;;  %v10785_v50 = vld [vmem:[#allocation2 + $0x5c] sm:$0x1] }
 0x160   : > { %v3674_v0 = vrot.slane %v3672_v16, 4  ;;  %v10762_v41 = vcombine.low %v4568_v18, %v4571_v54  ;;  %v4575_v42 = vsel %vm10032_vm15, %v8012_v1, %v4574_v2  ;;  %v4578_v51 = vsel %vm10032_vm15, %v4576_v57, %v4577_v23 }
 0x161   : > { %v3677_v52 = vrot.slane %v3675_v21, 5  ;;  %v3696_v5 = vshrl.u32 %v3500_v45, 16  ;;  %v3699_v47 = vshll.u32 %v3500_v45, 16  ;;  %v10768_v33 = vcombine.low %v4575_v42, %v4578_v51 }
 0x162   : > { %v8668_v16 = vpop.f32.mrf.mxu0  ;;  %v3654_v9 = vor.u32 %v10693_v11, %v10639_v7  ;;  %v3667_v2 = vshll.u32 %v10412_v27, 16  ;;  %v10777_v30 = vrot.slane %v3681_v31, 5  ;;  %v3687_v23 = vrot.slane %v3685_v10, 4 }
 0x163   : > { %v10780_v21 = vadd.f32 %v10633_v39, %v8668_v16  ;;  %v3664_v42 = vor.u32 %v3663_v46, %v10756_v48  ;;  %v3705_v26 = vshll.u32 %v10444_v55, 16  ;;  %v3709_v45 = vshrl.u32 %v10444_v55, 16 }
 0x164   : > { %v10770_v38 = vpop.f32.mrf.mxu1  ;;  %8909 = vmatmul.mubr.msk.bf16.gmra.mxu1 %vm1432_vm5, %v10739_v6  ;;  %v1615_v7 = vpop.f32.mrf.mxu0  ;;  %v4876_v39 = vsel %vm1481_vm0, %v10369_v36, 0  ;;  %v3646_v11 = vsel %vm9575_vm12, %v10714_v25, %v10691_v35  ;;  %v3720_v46 = vshrl.u32 %v3503_v40, 16  ;;  %v3723_v31 = vshll.u32 %v3503_v40, 16 }
 0x165   : > { %8948 = vmatprep.mubr.msk.bf16.mxu1 %vm1432_vm5, %v10712_v62  ;;  %v10800_v10 = vadd.f32 %v10665_v63, %v1615_v7  ;;  %v3678_v55 = vor.u32 %v3677_v52, %v3674_v0  ;;  %v3701_v1 = vrot.slane %v3699_v47, 5  ;;  %v10806_v36 = vrot.slane %v3654_v9, 4  ;;  %v10835_v7 = vld [vmem:[%s13558_s4 + $0xc] sm:$0x3] }
 0x166   : > { %8871 = vmatmul.mubr.msk.bf16.gmra.mxu0 %vm1432_vm5, %v10663_v22  ;;  %v10791_v27 = vpop.f32.mrf.mxu1  ;;  %v3698_v22 = vrot.slane %v3696_v5, 4  ;;  %v8669_v18 = vpop.f32.mrf.mxu0  ;;  %v10808_v54 = vrot.slane %v3667_v2, 5  ;;  %v3688_v35 = vor.u32 %v3687_v23, %v10777_v30  ;;  %v3691_v25 = vshll.u32 %v10785_v50, 16  ;;  %v3506_v2 = vld [vmem:[#allocation2 + $0x78] sm:$0xf] }
 0x167   : > { %13687 = vst [vmem:[#allocation45_spill] sm:$0xff] %v10800_v10  ;;  %8874 = vmatprep.mubr.msk.bf16.mxu0 %vm1432_vm5, %v10671_v13  ;;  %v10813_v63 = vadd.f32 %v10700_v3, %v8669_v18  ;;  %v10815_v40 = vrot.slane %v3664_v42, 4  ;;  %v10817_v13 = vrot.slane %v3705_v26, 5  ;;  %v3711_v52 = vrot.slane %v3709_v45, 4 }
 0x168   : > { %v10804_v57 = vpop.f32.mrf.mxu1  ;;  %v1618_v5 = vpop.f32.mrf.mxu0  ;;  %v3722_v51 = vrot.slane %v3720_v46, 4  ;;  %v3725_v47 = vrot.slane %v3723_v31, 5  ;;  %v3729_v16 = vshll.u32 %v10489_v19, 16  ;;  %v3733_v9 = vshrl.u32 %v10489_v19, 16 }
 0x169   : > { %13688 = vst [vmem:[#allocation46_spill] sm:$0xff] %v10813_v63  ;;  %v10823_v23 = vadd.f32 %v1910_v56, %v1618_v5  ;;  %v13690_v3 = vsel %vm9575_vm12, %v10677_v58, %v10611_v15  ;;  %v3679_v26 = vrot.slane %v3678_v55, 4  ;;  %v3702_v45 = vor.u32 %v3701_v1, %v3698_v22  ;;  %v3509_v1 = vld [vmem:[#allocation2 + $0x84] sm:$0xf] }
 0x16a   : > { %v10819_v0 = vpop.f32.mrf.mxu1  ;;  %v10830_v42 = vcombine.low %v13690_v3, %v3646_v11  ;;  %v3660_v19 = vsel %vm9575_vm12, %v10806_v36, %v10756_v48  ;;  %v3689_v15 = vrot.slane %v3688_v35, 4  ;;  %v3693_v58 = vrot.slane %v3691_v25, 5 }
 0x16b   : > { %13689 = vst [vmem:[#allocation47_spill] sm:$0xff] %v10823_v23  ;;  %v3715_v56 = vshll.u32 %v10456_v14, 16  ;;  %v3670_v11 = vsel %vm9575_vm12, %v10815_v40, %v10808_v54  ;;  %v3712_v31 = vor.u32 %v3711_v52, %v10817_v13  ;;  %v3744_v55 = vshrl.u32 %v3506_v2, 16 }
 0x16c   : > { %v10837_v46 = vpop.f32.mrf.mxu1  ;;  %8949 = vmatmul.mubr.msk.bf16.vlgmr.msra.gmra.mxu1 %vm1432_vm5, %v10728_v29  ;;  %v3747_v22 = vshll.u32 %v3506_v2, 16  ;;  %v3726_v14 = vor.u32 %v3725_v47, %v3722_v51  ;;  %v10857_v36 = vrot.slane %v3729_v16, 5  ;;  %v3753_v35 = vshll.u32 %v10500_v32, 16 }
 0x16d   : > { %8952 = vmatprep.mubr.msk.bf16.mxu1 %vm1432_vm5, %v10730_v20  ;;  %9015 = vmatpush3.bf16.msra.mxu1 %v4876_v39  ;;  %v3735_v39 = vrot.slane %v3733_v9, 4  ;;  %v10870_v25 = vrot.slane %v3702_v45, 4  ;;  %v3757_v40 = vshrl.u32 %v10500_v32, 16  ;;  %v3694_v51 = vsel %vm9575_vm12, %v3689_v15, %v3693_v58 }
 0x16e   : > { %v8672_v18 = vpop.f32.mrf.mxu0  ;;  %8875 = vmatmul.mubr.msk.bf16.gmra.mxu0 %vm1432_vm5, %v10739_v6  ;;  %v10855_v48 = vpop.f32.mrf.mxu1  ;;  %9265 = vmatprep.subr.msk.bf16.mxu1 %vm1481_vm0, %v10835_v7  ;;  %v3684_v6 = vsel %vm9575_vm12, %v3679_v26, %v10777_v30  ;;  %v10877_v47 = vrot.slane %v3715_v56, 5  ;;  %v3771_v16 = vshll.u32 %v3509_v1, 16  ;;  %v10882_v9 = vrot.slane %v3712_v31, 4 }
 0x16f   : > { %v10863_v54 = vadd.f32 %v10770_v38, %v8672_v18  ;;  %8914 = vmatprep.mubr.msk.bf16.mxu0 %vm1432_vm5, %v10712_v62  ;;  %v3768_v38 = vshrl.u32 %v3509_v1, 16  ;;  %v3746_v30 = vrot.slane %v3744_v55, 4  ;;  %v3749_v2 = vrot.slane %v3747_v22, 5 }
 0x170   : > { %v1631_v52 = vpop.f32.mrf.mxu0  ;;  %v10873_v5 = vpop.f32.mrf.mxu1  ;;  %v10886_v32 = vrot.slane %v3726_v14, 4  ;;  %v3736_v45 = vor.u32 %v3735_v39, %v10857_v36  ;;  %v3739_v15 = vshll.u32 %v10498_v43, 16  ;;  %v10890_v58 = vrot.slane %v3753_v35, 5 }
 0x171   : > { %13691 = vst [vmem:[#allocation48_spill] sm:$0xff] %v10863_v54  ;;  %v10880_v62 = vadd.f32 %v10791_v27, %v1631_v52  ;;  %v3759_v27 = vrot.slane %v3757_v40, 4  ;;  %v3763_v31 = vshll.u32 %v10508_v49, 16  ;;  %v3777_v55 = vshll.u32 %v10551_v17, 16 }
 0x172   : > { %v8673_v3 = vpop.f32.mrf.mxu0  ;;  %v10884_v26 = vpop.f32.mrf.mxu1  ;;  %v10901_v18 = vcombine.low %v3660_v19, %v3670_v11  ;;  %v3770_v14 = vrot.slane %v3768_v38, 4  ;;  %v3773_v43 = vrot.slane %v3771_v16, 5  ;;  %v3781_v39 = vshrl.u32 %v10551_v17, 16  ;;  %v3512_v19 = vld [vmem:[#allocation2 + $0x90] sm:$0xf] }
 0x173   : > { %13692 = vst [vmem:[#allocation49_spill] sm:$0xff] %v10880_v62  ;;  %v10893_v56 = vadd.f32 %v10804_v57, %v8673_v3  ;;  %v10909_v49 = vcombine.low %v3684_v6, %v3694_v51  ;;  %v3708_v35 = vsel %vm9575_vm12, %v10870_v25, %v10817_v13  ;;  %v3750_v40 = vor.u32 %v3749_v2, %v3746_v30  ;;  %v10918_v11 = vld [vmem:[%s13555_s1 + $0xc] sm:$0x3]  ;;  %v3515_v16 = vld [vmem:[#allocation2 + $0x9c] sm:$0xf] }
 0x174   : > { %v1634_v22 = vpop.f32.mrf.mxu0  ;;  %v10897_v1 = vpop.f32.mrf.mxu1  ;;  %8953 = vmatmul.mubr.msk.bf16.gmra.mxu1 %vm1432_vm5, %v10741_v8  ;;  %v3718_v6 = vsel %vm9575_vm12, %v10882_v9, %v10877_v47  ;;  %v3732_v13 = vsel %vm9575_vm12, %v10886_v32, %v10857_v36  ;;  %v3737_v25 = vrot.slane %v3736_v45, 4  ;;  %v3741_v52 = vrot.slane %v3739_v15, 5 }
 0x175   : > { %13693 = vst [vmem:[#allocation50_spill] sm:$0xff] %v10893_v56  ;;  %v10905_v57 = vadd.f32 %v10819_v0, %v1634_v22  ;;  %8956 = vmatprep.mubr.msk.bf16.mxu1 %vm1432_vm5, %v10830_v42  ;;  %v10939_v38 = vrot.slane %v3763_v31, 5  ;;  %v10941_v47 = vrot.slane %v3777_v55, 5  ;;  %v3774_v36 = vor.u32 %v3773_v43, %v3770_v14 }
 0x176   : > { %v8712_v17 = vpop.f32.mrf.mxu0  ;;  %8915 = vmatmul.mubr.msk.bf16.vlgmr.msra.gmra.mxu0 %vm1432_vm5, %v10728_v29  ;;  %v10922_v0 = vpop.f32.mrf.mxu1  ;;  %v3760_v29 = vor.u32 %v3759_v27, %v10890_v58  ;;  %v3783_v2 = vrot.slane %v3781_v39, 4  ;;  %v3792_v3 = vshrl.u32 %v3512_v19, 16  ;;  %v3795_v32 = vshll.u32 %v3512_v19, 16 }
 0x177   : > { %13694 = vst [vmem:[#allocation51_spill] sm:$0xff] %v10905_v57  ;;  %v10933_v51 = vadd.f32 %v10837_v46, %v8712_v17  ;;  %8981 = vmatpush3.bf16.msra.mxu0 %v10675_v61  ;;  %8918 = vmatprep.mubr.msk.bf16.mxu0 %vm1432_vm5, %v10730_v20  ;;  %v10948_v20 = vrot.slane %v3750_v40, 4  ;;  %v3801_v46 = vshll.u32 %v10568_v37, 16  ;;  %v3805_v45 = vshrl.u32 %v10568_v37, 16 }
 0x178   : > { %v1977_v9 = vpop.f32.mrf.mxu0  ;;  %v8751_v30 = vpop.f32.mrf.mxu1  ;;  %9264 = vmatprep.subr.msk.bf16.mxu0 %vm1481_vm0, %v10918_v11  ;;  %v3742_v31 = vsel %vm9575_vm12, %v3737_v25, %v3741_v52  ;;  %v3787_v55 = vshll.u32 %v10566_v59, 16  ;;  %v3816_v22 = vshrl.u32 %v3515_v16, 16  ;;  %v3819_v14 = vshll.u32 %v3515_v16, 16 }
 0x179   : > { %v10946_v61 = vadd.f32 %v10855_v48, %v1977_v9  ;;  %v10958_v48 = vrot.slane %v3760_v29, 4  ;;  %v3825_v39 = vshll.u32 %v10629_v34, 16  ;;  %v3829_v40 = vshrl.u32 %v10629_v34, 16 }
 0x17a   : > { %v8713_v15 = vpop.f32.mrf.mxu0  ;;  %v2160_v27 = vpop.f32.mrf.mxu1  ;;  %v10966_v17 = vrot.slane %v3774_v36, 4  ;;  %v3784_v59 = vor.u32 %v3783_v2, %v10941_v47  ;;  %v3794_v25 = vrot.slane %v3792_v3, 4  ;;  %v3797_v52 = vrot.slane %v3795_v32, 5 }
 0x17b   : > { %v10956_v43 = vadd.f32 %v10873_v5, %v8713_v15  ;;  %v10974_v29 = vrot.slane %v3801_v46, 5  ;;  %v3807_v34 = vrot.slane %v3805_v45, 4  ;;  %v3811_v16 = vshll.u32 %v10580_v12, 16 }
 0x17c   : > { %v1980_v19 = vpop.f32.mrf.mxu0  ;;  %v10962_v37 = vpop.f32.mrf.mxu1  ;;  %8957 = vmatmul.mubr.msk.bf16.gmra.mxu1 %vm1432_vm5, %v10901_v18  ;;  %v10979_v15 = vcombine.low %v3708_v35, %v3718_v6  ;;  %v10981_v2 = vcombine.low %v3732_v13, %v3742_v31  ;;  %v3818_v3 = vrot.slane %v3816_v22, 4  ;;  %v3756_v12 = vsel %vm9575_vm12, %v10948_v20, %v10890_v58  ;;  %v3518_v35 = vld [vmem:[#allocation2 + $0xa8] sm:$0xf] }
 0x17d   : > { %v10970_v5 = vadd.f32 %v10884_v26, %v1980_v19  ;;  %8960 = vmatprep.mubr.msk.bf16.mxu1 %vm1432_vm5, %v10909_v49  ;;  %v3821_v26 = vrot.slane %v3819_v14, 5  ;;  %v10992_v46 = vrot.slane %v3825_v39, 5  ;;  %v3785_v45 = vrot.slane %v3784_v59, 4  ;;  %v3521_v39 = vld [vmem:[#allocation2 + $0xb4] sm:$0xf] }
 0x17e   : > { %v8716_v9 = vpop.f32.mrf.mxu0  ;;  %8919 = vmatmul.mubr.msk.bf16.gmra.mxu0 %vm1432_vm5, %v10741_v8  ;;  %v2173_v36 = vpop.f32.mrf.mxu1  ;;  %v3831_v8 = vrot.slane %v3829_v40, 4  ;;  %v3789_v31 = vrot.slane %v3787_v55, 5  ;;  %v3798_v22 = vor.u32 %v3797_v52, %v3794_v25  ;;  %v3780_v58 = vsel %vm9575_vm12, %v10966_v17, %v10941_v47 }
 0x17f   : > { %v10984_v32 = vadd.f32 %v10897_v1, %v8716_v9  ;;  %8922 = vmatprep.mubr.msk.bf16.mxu0 %vm1432_vm5, %v10830_v42  ;;  %v3766_v1 = vsel %vm9575_vm12, %v10958_v48, %v10939_v38  ;;  %v3808_v20 = vor.u32 %v3807_v34, %v10974_v29  ;;  %v11006_v14 = vrot.slane %v3811_v16, 5 }
 0x180   : > { %v1993_v6 = vpop.f32.mrf.mxu0  ;;  %v8755_v13 = vpop.f32.mrf.mxu1  ;;  %v3822_v9 = vor.u32 %v3821_v26, %v3818_v3  ;;  %v3835_v38 = vshll.u32 %v10641_v44, 16  ;;  %v3840_v55 = vshrl.u32 %v3518_v35, 16  ;;  %v3843_v48 = vshll.u32 %v3518_v35, 16 }
 0x181   : > { %v10999_v42 = vadd.f32 %v10922_v0, %v1993_v6  ;;  %v3832_v0 = vor.u32 %v3831_v8, %v10992_v46  ;;  %v3849_v25 = vshll.u32 %v10643_v24, 16  ;;  %v3853_v47 = vshrl.u32 %v10643_v24, 16 }
 0x182   : > { %v8717_v40 = vpop.f32.mrf.mxu0  ;;  %v2176_v19 = vpop.f32.mrf.mxu1  ;;  %v3790_v34 = vsel %vm9575_vm12, %v3785_v45, %v3789_v31  ;;  %v3799_v16 = vrot.slane %v3798_v22, 4  ;;  %v3864_v44 = vshrl.u32 %v3521_v39, 16  ;;  %v3867_v3 = vshll.u32 %v3521_v39, 16 }
 0x183   : > { %v11009_v59 = vadd.f32 %v8751_v30, %v8717_v40  ;;  %v3809_v30 = vrot.slane %v3808_v20, 4  ;;  %v3873_v8 = vshll.u32 %v10719_v4, 16  ;;  %v3877_v24 = vshrl.u32 %v10719_v4, 16 }
 0x184   : > { %v1996_v17 = vpop.f32.mrf.mxu0  ;;  %v8758_v52 = vpop.f32.mrf.mxu1  ;;  %8961 = vmatmul.mubr.msk.bf16.gmra.mxu1 %vm1432_vm5, %v10979_v15  ;;  %v3823_v40 = vrot.slane %v3822_v9, 4  ;;  %v3837_v45 = vrot.slane %v3835_v38, 5  ;;  %v3842_v31 = vrot.slane %v3840_v55, 4  ;;  %v3845_v22 = vrot.slane %v3843_v48, 5  ;;  %v3524_v48 = vld [vmem:[#allocation2 + $0xc0] sm:$0xf] }
 0x185   : > { %v11018_v26 = vadd.f32 %v2160_v27, %v1996_v17  ;;  %8964 = vmatprep.mubr.msk.bf16.mxu1 %vm1432_vm5, %v10981_v2  ;;  %v3833_v20 = vrot.slane %v3832_v0, 4  ;;  %v11031_v39 = vrot.slane %v3849_v25, 5  ;;  %v3855_v17 = vrot.slane %v3853_v47, 4 }
 0x186   : > { %v8720_v35 = vpop.f32.mrf.mxu0  ;;  %8923 = vmatmul.mubr.msk.bf16.gmra.mxu0 %vm1432_vm5, %v10901_v18  ;;  %v2189_v6 = vpop.f32.mrf.mxu1  ;;  %v11033_v56 = vcombine.low %v3756_v12, %v3766_v1  ;;  %v3866_v18 = vrot.slane %v3864_v44, 4  ;;  %v3869_v62 = vrot.slane %v3867_v3, 5  ;;  %v11037_v38 = vcombine.low %v3780_v58, %v3790_v34 }
 0x187   : > { %v11027_v27 = vadd.f32 %v10962_v37, %v8720_v35  ;;  %8926 = vmatprep.mubr.msk.bf16.mxu0 %vm1432_vm5, %v10909_v49  ;;  %v11039_v55 = vrot.slane %v3873_v8, 5  ;;  %v3879_v37 = vrot.slane %v3877_v24, 4  ;;  %v3804_v0 = vsel %vm9575_vm12, %v3799_v16, %v10974_v29  ;;  %v13695_v16 = vld [vmem:[#allocation42_spill] sm:$0xff] }
 0x188   : > { %v2009_v4 = vpop.f32.mrf.mxu0  ;;  %v8759_v57 = vpop.f32.mrf.mxu1  ;;  %v3814_v12 = vsel %vm9575_vm12, %v3809_v30, %v11006_v14  ;;  %v3859_v1 = vshll.u32 %v10656_v28, 16  ;;  %v3838_v25 = vsel %vm9575_vm12, %v3833_v20, %v3837_v45  ;;  %v3846_v47 = vor.u32 %v3845_v22, %v3842_v31 }
 0x189   : > { %v11035_v9 = vadd.f32 %v2173_v36, %v2009_v4  ;;  %v3828_v36 = vsel %vm9575_vm12, %v3823_v40, %v10992_v46  ;;  %v3856_v34 = vor.u32 %v3855_v17, %v11031_v39  ;;  %v3870_v14 = vor.u32 %v3869_v62, %v3866_v18 }
 0x18a   : > { %v8721_v35 = vpop.f32.mrf.mxu0  ;;  %v2192_v49 = vpop.f32.mrf.mxu1  ;;  %v3883_v3 = vshll.u32 %v13695_v16, 16  ;;  %v3888_v30 = vshrl.u32 %v3524_v48, 16  ;;  %v3891_v46 = vshll.u32 %v3524_v48, 16  ;;  %v3880_v28 = vor.u32 %v3879_v37, %v11039_v55 }
 0x18b   : > { %v11051_v58 = vadd.f32 %v8755_v13, %v8721_v35  ;;  %v13696_v13 = vld [vmem:[#allocation43_spill] sm:$0xff]  ;;  %v11068_v31 = vcombine.low %v3804_v0, %v3814_v12  ;;  %v3861_v22 = vrot.slane %v3859_v1, 5  ;;  %v3847_v17 = vrot.slane %v3846_v47, 4 }
 0x18c   : > { %v2012_v44 = vpop.f32.mrf.mxu0  ;;  %v8762_v29 = vpop.f32.mrf.mxu1  ;;  %8965 = vmatmul.mubr.msk.bf16.gmra.mxu1 %vm1432_vm5, %v11033_v56  ;;  %v3897_v24 = vshll.u32 %v13696_v13, 16  ;;  %v3901_v40 = vshrl.u32 %v13696_v13, 16  ;;  %v3857_v4 = vrot.slane %v3856_v34, 4  ;;  %v3871_v48 = vrot.slane %v3870_v14, 4 }
 0x18d   : > { %v11059_v8 = vadd.f32 %v2176_v19, %v2012_v44  ;;  %8968 = vmatprep.mubr.msk.bf16.mxu1 %vm1432_vm5, %v11037_v38  ;;  %v11074_v19 = vcombine.low %v3828_v36, %v3838_v25  ;;  %v3885_v35 = vrot.slane %v3883_v3, 5  ;;  %v3890_v44 = vrot.slane %v3888_v30, 4  ;;  %v13697_v30 = vld [vmem:[#allocation44_spill] sm:$0xff] }
 0x18e   : > { %v8724_v45 = vpop.f32.mrf.mxu0  ;;  %8927 = vmatmul.mubr.msk.bf16.gmra.mxu0 %vm1432_vm5, %v10979_v15  ;;  %v2205_v62 = vpop.f32.mrf.mxu1  ;;  %v3893_v16 = vrot.slane %v3891_v46, 5  ;;  %v3881_v0 = vrot.slane %v3880_v28, 4  ;;  %v11078_v12 = vrot.slane %v3897_v24, 5  ;;  %v3852_v25 = vsel %vm9575_vm12, %v3847_v17, %v11031_v39  ;;  %v9344_v24 = vld [vmem:[#allocation2 + $0x10] sm:$0xf] }
 0x18f   : > { %v11070_v20 = vadd.f32 %v8758_v52, %v8724_v45  ;;  %8930 = vmatprep.mubr.msk.bf16.mxu0 %vm1432_vm5, %v10981_v2  ;;  %v3903_v52 = vrot.slane %v3901_v40, 4  ;;  %v3876_v47 = vsel %vm9575_vm12, %v3871_v48, %v11039_v55  ;;  %v3907_v39 = vshll.u32 %v13697_v30, 16 }
 0x190   : > { %v2025_v18 = vpop.f32.mrf.mxu0  ;;  %v8763_v37 = vpop.f32.mrf.mxu1  ;;  %v3894_v34 = vor.u32 %v3893_v16, %v3890_v44  ;;  %v4469_v55 = vrot.slane %v9344_v24, 5  ;;  %v9347_v24 = vld [vmem:[#allocation2 + $0x28] sm:$0xf] }
 0x191   : > { %v11076_v15 = vadd.f32 %v2189_v6, %v2025_v18  ;;  %v3862_v6 = vsel %vm9575_vm12, %v3857_v4, %v3861_v22  ;;  %v3904_v3 = vor.u32 %v3903_v52, %v11078_v12  ;;  %v3909_v16 = vrot.slane %v3907_v39, 5 }
 0x192   : > { %v8725_v1 = vpop.f32.mrf.mxu0  ;;  %v2208_v13 = vpop.f32.mrf.mxu1  ;;  %v7961_v4 = vcombine.low %v3852_v25, %v3862_v6 }
 0x193   : > { %v11080_v45 = vadd.f32 %v8759_v57, %v8725_v1  ;;  %v3886_v57 = vsel %vm9575_vm12, %v3881_v0, %v3885_v35  ;;  %v3895_v35 = vrot.slane %v3894_v34, 4  ;;  %v3905_v44 = vrot.slane %v3904_v3, 4  ;;  %v9346_v34 = vld [vmem:[#allocation2 + $0x1c] sm:$0xf] }
 0x194   : > { %v2028_v2 = vpop.f32.mrf.mxu0  ;;  %v8766_v36 = vpop.f32.mrf.mxu1  ;;  %8969 = vmatmul.mubr.msk.bf16.gmra.mxu1 %vm1432_vm5, %v11068_v31  ;;  %v11106_v18 = vcombine.low %v3876_v47, %v3886_v57  ;;  %v4471_v1 = vrot.slane %v4469_v55, 4  ;;  %v4404_v47 = vld [vmem:[#allocation2 + $0x18] sm:$0xe] }
 0x195   : > { %v11092_v14 = vadd.f32 %v2192_v49, %v2028_v2  ;;  %8972 = vmatprep.mubr.msk.bf16.mxu1 %vm1432_vm5, %v11074_v19  ;;  %v4403_v49 = vld [vmem:[#allocation2 + $0xc] sm:$0xe]  ;;  %v3910_v6 = vsel %vm9575_vm12, %v3905_v44, %v3909_v16 }
 0x196   : > { %v8728_v46 = vpop.f32.mrf.mxu0  ;;  %8931 = vmatmul.mubr.msk.bf16.gmra.mxu0 %vm1432_vm5, %v11033_v56  ;;  %v2221_v28 = vpop.f32.mrf.mxu1  ;;  %v7997_v52 = vrot.slane %v4403_v49, 9  ;;  %v4483_v49 = vrot.slane %v9347_v24, 5 }
 0x197   : > { %v11102_v40 = vadd.f32 %v8762_v29, %v8728_v46  ;;  %8934 = vmatprep.mubr.msk.bf16.mxu0 %vm1432_vm5, %v11037_v38  ;;  %v9345_v29 = vld [vmem:[#allocation2 + $0x14] sm:$0x1] }
 0x198   : > { %v2041_v22 = vpop.f32.mrf.mxu0  ;;  %v8767_v17 = vpop.f32.mrf.mxu1  ;;  %v4472_v2 = vrot.slane %v9345_v29, 5 }
 0x199   : > { %v11108_v48 = vadd.f32 %v2205_v62, %v2041_v22  ;;  %v3900_v62 = vsel %vm9575_vm12, %v3895_v35, %v11078_v12  ;;  %v4405_v22 = vld [vmem:[#allocation2 + $0x24] sm:$0xe] }
 0x19a   : > { %v8729_v56 = vpop.f32.mrf.mxu0  ;;  %v2224_v0 = vpop.f32.mrf.mxu1  ;;  %v4473_v39 = vsel %vm10032_vm15, %v4471_v1, %v4472_v2  ;;  %v7963_v16 = vcombine.low %v3900_v62, %v3910_v6 }
 0x19b   : > { %v11110_v30 = vadd.f32 %v8763_v37, %v8729_v56  ;;  %v4476_v37 = vrot.slane %v9346_v34, 5  ;;  %v7998_v56 = vrot.slane %v4404_v47, 9  ;;  %v7999_v34 = vrot.slane %v4405_v22, 9  ;;  %v4406_v47 = vld [vmem:[#allocation2 + $0x30] sm:$0xe] }
 0x19c   : > { %v2044_v38 = vpop.f32.mrf.mxu0  ;;  %v8770_v46 = vpop.f32.mrf.mxu1  ;;  %8973 = vmatmul.mubr.msk.bf16.gmra.mxu1 %vm1432_vm5, %v7961_v4 }
 0x19d   : > { %v11113_v25 = vadd.f32 %v2208_v13, %v2044_v38  ;;  %8976 = vmatprep.mubr.msk.bf16.mxu1 %vm1432_vm5, %v11106_v18  ;;  %v4470_v13 = vsel %vm10032_vm15, %v7997_v52, %v4469_v55  ;;  %v4478_v55 = vrot.slane %v4476_v37, 4  ;;  %v9348_v52 = vld [vmem:[#allocation2 + $0x20] sm:$0x1] }
 0x19e   : > { %v8732_v57 = vpop.f32.mrf.mxu0  ;;  %8935 = vmatmul.mubr.msk.bf16.gmra.mxu0 %vm1432_vm5, %v11068_v31  ;;  %v2237_v3 = vpop.f32.mrf.mxu1  ;;  %v11134_v29 = vcombine.low %v4470_v13, %v4473_v39  ;;  %v4479_v38 = vrot.slane %v9348_v52, 5  ;;  %v9350_v13 = vld [vmem:[#allocation2 + $0x34] sm:$0xf]  ;;  %v13698_v52 = vld [vmem:[#allocation28_spill] sm:$0xff] }
 0x19f   : > { %v11128_v12 = vadd.f32 %v8766_v36, %v8732_v57  ;;  %8938 = vmatprep.mubr.msk.bf16.mxu0 %vm1432_vm5, %v11074_v19  ;;  %v4485_v36 = vrot.slane %v4483_v49, 4  ;;  %v9349_v57 = vld [vmem:[#allocation2 + $0x2c] sm:$0x1]  ;;  %v4490_v39 = vrot.slane %v9350_v13, 5 }
 0x1a0   : > { %v2057_v35 = vpop.f32.mrf.mxu0  ;;  %v8771_v44 = vpop.f32.mrf.mxu1  ;;  %v4486_v24 = vrot.slane %v9349_v57, 5  ;;  %v4480_v6 = vsel %vm10032_vm15, %v4478_v55, %v4479_v38 }
 0x1a1   : > { %v11132_v31 = vadd.f32 %v2221_v28, %v2057_v35  ;;  %v4477_v28 = vsel %vm10032_vm15, %v7998_v56, %v4476_v37  ;;  %v4407_v37 = vld [vmem:[#allocation2 + $0x3c] sm:$0xe]  ;;  %v4492_v23 = vrot.slane %v4490_v39, 4 }
 0x1a2   : > { %v8733_v1 = vpop.f32.mrf.mxu0  ;;  %v2240_v2 = vpop.f32.mrf.mxu1  ;;  %v4487_v35 = vsel %vm10032_vm15, %v4485_v36, %v4486_v24  ;;  %v8015_v38 = vcombine.low %v4477_v28, %v4480_v6  ;;  %v8001_v24 = vrot.slane %v4407_v37, 9 }
 0x1a3   : > { %v11136_v60 = vadd.f32 %v8767_v17, %v8733_v1  ;;  %v4497_v1 = vrot.slane %v13698_v52, 5  ;;  %v13699_v52 = vld [vmem:[#allocation32_spill] sm:$0xff] }
 0x1a4   : > { %v2060_v19 = vpop.f32.mrf.mxu0  ;;  %v8774_v54 = vpop.f32.mrf.mxu1  ;;  %8977 = vmatmul.mubr.msk.bf16.gmra.mxu1 %vm1432_vm5, %v7963_v16 }
 0x1a5   : > { %v11139_v62 = vadd.f32 %v2224_v0, %v2060_v19  ;;  %9016 = vmatprep.mubr.msk.bf16.mxu1 %vm1432_vm5, %v11134_v29  ;;  %v4484_v0 = vsel %vm10032_vm15, %v7999_v34, %v4483_v49  ;;  %v8000_v19 = vrot.slane %v4406_v47, 9  ;;  %v9351_v49 = vld [vmem:[#allocation2 + $0x38] sm:$0x1]  ;;  %v4498_v37 = vsel %vm10032_vm15, %v8001_v24, %v4497_v1 }
 0x1a6   : > { %v8736_v17 = vpop.f32.mrf.mxu0  ;;  %8939 = vmatmul.mubr.msk.bf16.gmra.mxu0 %vm1432_vm5, %v7961_v4  ;;  %v2253_v22 = vpop.f32.mrf.mxu1  ;;  %v8016_v13 = vcombine.low %v4484_v0, %v4487_v35  ;;  %v4493_v34 = vrot.slane %v9351_v49, 5 }
 0x1a7   : > { %v11153_v57 = vadd.f32 %v8770_v46, %v8736_v17  ;;  %8942 = vmatprep.mubr.msk.bf16.mxu0 %vm1432_vm5, %v11106_v18  ;;  %v5433_v46 = vsel %vm1481_vm0, %v10835_v7, 0  ;;  %v4499_v17 = vrot.slane %v4497_v1, 4  ;;  %v4500_v18 = vrot.slane %v13699_v52, 5 }
 0x1a8   : > { %v2073_v56 = vpop.f32.mrf.mxu0  ;;  %v8775_v55 = vpop.f32.mrf.mxu1  ;;  %v4491_v47 = vsel %vm10032_vm15, %v8000_v19, %v4490_v39  ;;  %v13700_v39 = vld [vmem:[#allocation41_spill] sm:$0xff] }
 0x1a9   : > { %v11157_v4 = vadd.f32 %v2237_v3, %v2073_v56  ;;  %v11167_v3 = vld [vmem:[%s13558_s4 + $0xe] sm:$0x3]  ;;  %v4511_v56 = vrot.slane %v13700_v39, 5 }
 0x1aa   : > { %v8737_v63 = vpop.f32.mrf.mxu0  ;;  %v2256_v36 = vpop.f32.mrf.mxu1 }
 0x1ab   : > { %v11162_v10 = vadd.f32 %v8771_v44, %v8737_v63  ;;  %v4494_v63 = vsel %vm10032_vm15, %v4492_v23, %v4493_v34 }
 0x1ac   : > { %v2076_v28 = vpop.f32.mrf.mxu0  ;;  %v8814_v6 = vpop.f32.mrf.mxu1  ;;  %9017 = vmatmul.mubr.msk.bf16.vlgmr.msra.gmra.mxu1 %vm1432_vm5, %v8015_v38  ;;  %v8017_v1 = vcombine.low %v4491_v47, %v4494_v63 }
 0x1ad   : > { %v11172_v0 = vadd.f32 %v2240_v2, %v2076_v28  ;;  %v11175_v7 = vadd.f32 %v8814_v6, %v10933_v51  ;;  %9020 = vmatprep.mubr.msk.bf16.mxu1 %vm1432_vm5, %v8016_v13  ;;  %9083 = vmatpush3.bf16.msra.mxu1 %v5433_v46  ;;  %v4501_v2 = vsel %vm10032_vm15, %v4499_v17, %v4500_v18  ;;  %v4513_v18 = vrot.slane %v4511_v56, 4 }
 0x1ae   : > { %v8740_v44 = vpop.f32.mrf.mxu0  ;;  %8943 = vmatmul.mubr.msk.bf16.gmra.mxu0 %vm1432_vm5, %v7963_v16  ;;  %v2764_v35 = vpop.f32.mrf.mxu1  ;;  %9267 = vmatprep.subr.msk.bf16.mxu1 %vm1481_vm0, %v11167_v3  ;;  %v4409_v16 = vld [vmem:[#allocation2 + $0x54] sm:$0xe]  ;;  %v8018_v24 = vcombine.low %v4498_v37, %v4501_v2 }
 0x1af   : > { %v11188_v51 = vadd.f32 %v8774_v54, %v8740_v44  ;;  %v11191_v23 = vadd.f32 %v2764_v35, %v10946_v61  ;;  %8982 = vmatprep.mubr.msk.bf16.mxu0 %vm1432_vm5, %v11134_v29  ;;  %v8003_v54 = vrot.slane %v4409_v16, 9  ;;  %v4514_v61 = vrot.slane %v10785_v50, 5  ;;  %v11218_v50 = vld [vmem:[%s13555_s1 + $0xe] sm:$0x3] }
 0x1b0   : > { %v2089_v19 = vpop.f32.mrf.mxu0  ;;  %v8815_v49 = vpop.f32.mrf.mxu1 }
 0x1b1   : > { %v11195_v34 = vadd.f32 %v2253_v22, %v2089_v19  ;;  %v11198_v46 = vadd.f32 %v8815_v49, %v10956_v43  ;;  %v5235_v43 = vsel %vm1481_vm0, %v10918_v11, 0  ;;  %v4512_v63 = vsel %vm10032_vm15, %v8003_v54, %v4511_v56 }
 0x1b2   : > { %v8741_v17 = vpop.f32.mrf.mxu0  ;;  %v2767_v52 = vpop.f32.mrf.mxu1  ;;  %v4515_v11 = vsel %vm10032_vm15, %v4513_v18, %v4514_v61  ;;  %v13704_v18 = vld [vmem:[#allocation23_spill] sm:$0xff] }
 0x1b3   : > { %v11201_v28 = vadd.f32 %v8775_v55, %v8741_v17  ;;  %v11204_v29 = vadd.f32 %v2767_v52, %v10970_v5  ;;  %v8020_v16 = vcombine.low %v4512_v63, %v4515_v11  ;;  %v13703_v17 = vld [vmem:[#allocation9_spill] sm:$0xff] }
 0x1b4   : > { %v2092_v6 = vpop.f32.mrf.mxu0  ;;  %v8818_v44 = vpop.f32.mrf.mxu1  ;;  %9021 = vmatmul.mubr.msk.bf16.gmra.mxu1 %vm1432_vm5, %v8017_v1  ;;  %v13706_v63 = vld [vmem:[#allocation5_spill] sm:$0xff] }
 0x1b5   : > { %v11209_v22 = vadd.f32 %v2256_v36, %v2092_v6  ;;  %v11212_v47 = vadd.f32 %v8818_v44, %v10984_v32  ;;  %9024 = vmatprep.mubr.msk.bf16.mxu1 %vm1432_vm5, %v8018_v24  ;;  %v13701_v36 = vld [vmem:[#allocation8_spill] sm:$0xff] }
 0x1b6   : > { %v8780_v5 = vpop.f32.mrf.mxu0  ;;  %8983 = vmatmul.mubr.msk.bf16.vlgmr.msra.gmra.mxu0 %vm1432_vm5, %v8015_v38  ;;  %v2780_v55 = vpop.f32.mrf.mxu1  ;;  %v13702_v38 = vld [vmem:[#allocation7_spill] sm:$0xff]  ;;  %v13705_v44 = vld [vmem:[#allocation4_spill] sm:$0xff] }
 0x1b7   : > { %v11226_v32 = vadd.f32 %v8780_v5, %v13701_v36  ;;  %9049 = vmatpush3.bf16.msra.mxu0 %v5235_v43  ;;  %v11229_v35 = vadd.f32 %v2780_v55, %v10999_v42  ;;  %8986 = vmatprep.mubr.msk.bf16.mxu0 %vm1432_vm5, %v8016_v13 }
 0x1b8   : > { %v2566_v37 = vpop.f32.mrf.mxu0  ;;  %v8819_v2 = vpop.f32.mrf.mxu1  ;;  %9266 = vmatprep.subr.msk.bf16.mxu0 %vm1481_vm0, %v11218_v50 }
 0x1b9   : > { %v11235_v39 = vadd.f32 %v2566_v37, %v13702_v38  ;;  %v11238_v56 = vadd.f32 %v8819_v2, %v11009_v59 }
 0x1ba   : > { %v8781_v19 = vpop.f32.mrf.mxu0  ;;  %v2783_v49 = vpop.f32.mrf.mxu1 }
 0x1bb   : > { %v11241_v52 = vadd.f32 %v8781_v19, %v13703_v17  ;;  %v11244_v42 = vadd.f32 %v2783_v49, %v11018_v26  ;;  %v13709_v17 = vld [vmem:[#allocation29_spill] sm:$0xff] }
 0x1bc   : > { %v11246_v13 = vpop.f32.mrf.mxu0  ;;  %v8822_v54 = vpop.f32.mrf.mxu1  ;;  %9025 = vmatmul.mubr.msk.bf16.gmra.mxu1 %vm1432_vm5, %v13704_v18 }
 0x1bd   : > { %v11251_v61 = vadd.f32 %v8822_v54, %v11027_v27  ;;  %9028 = vmatprep.mubr.msk.bf16.mxu1 %vm1432_vm5, %v8020_v16 }
 0x1be   : > { %v8784_v59 = vpop.f32.mrf.mxu0  ;;  %8987 = vmatmul.mubr.msk.bf16.gmra.mxu0 %vm1432_vm5, %v8017_v1  ;;  %v2796_v6 = vpop.f32.mrf.mxu1  ;;  %v13707_v1 = vld [vmem:[#allocation13_spill] sm:$0xff] }
 0x1bf   : > { %v11256_v43 = vadd.f32 %v8784_v59, %v13705_v44  ;;  %v11259_v26 = vadd.f32 %v2796_v6, %v11035_v9  ;;  %8990 = vmatprep.mubr.msk.bf16.mxu0 %vm1432_vm5, %v8018_v24  ;;  %v13708_v24 = vld [vmem:[#allocation24_spill] sm:$0xff]  ;;  %v13710_v59 = vld [vmem:[#allocation15_spill] sm:$0xff] }
 0x1c0   : > { %v2582_v5 = vpop.f32.mrf.mxu0  ;;  %v8823_v55 = vpop.f32.mrf.mxu1 }
 0x1c1   : > { %v11263_v11 = vadd.f32 %v2582_v5, %v13706_v63  ;;  %v11266_v27 = vadd.f32 %v8823_v55, %v11051_v58 }
 0x1c2   : > { %v8785_v36 = vpop.f32.mrf.mxu0  ;;  %v2799_v37 = vpop.f32.mrf.mxu1 }
 0x1c3   : > { %v11269_v2 = vadd.f32 %v8785_v36, %v13707_v1  ;;  %v11272_v38 = vadd.f32 %v2799_v37, %v11059_v8 }
 0x1c4   : > { %v11274_v9 = vpop.f32.mrf.mxu0  ;;  %v8826_v19 = vpop.f32.mrf.mxu1  ;;  %9029 = vmatmul.mubr.msk.bf16.gmra.mxu1 %vm1432_vm5, %v13708_v24 }
 0x1c5   : > { %v11279_v49 = vadd.f32 %v8826_v19, %v11070_v20  ;;  %9032 = vmatprep.mubr.msk.bf16.mxu1 %vm1432_vm5, %v13709_v17  ;;  %v13711_v20 = vld [vmem:[#allocation16_spill] sm:$0xff] }
 0x1c6   : > { %v8788_v58 = vpop.f32.mrf.mxu0  ;;  %8991 = vmatmul.mubr.msk.bf16.gmra.mxu0 %vm1432_vm5, %v13704_v18  ;;  %v2812_v54 = vpop.f32.mrf.mxu1  ;;  %v13712_v18 = vld [vmem:[#allocation17_spill] sm:$0xff] }
 0x1c7   : > { %v11286_v8 = vadd.f32 %v8788_v58, %v13710_v59  ;;  %v11289_v6 = vadd.f32 %v2812_v54, %v11076_v15  ;;  %8994 = vmatprep.mubr.msk.bf16.mxu0 %vm1432_vm5, %v8020_v16  ;;  %v13713_v54 = vld [vmem:[#allocation31_spill] sm:$0xff]  ;;  %v13714_v16 = vld [vmem:[#allocation18_spill] sm:$0xff] }
 0x1c8   : > { %v2598_v44 = vpop.f32.mrf.mxu0  ;;  %v8827_v5 = vpop.f32.mrf.mxu1 }
 0x1c9   : > { %v11293_v55 = vadd.f32 %v2598_v44, %v13711_v20  ;;  %v11296_v63 = vadd.f32 %v8827_v5, %v11080_v45  ;;  %v13717_v45 = vld [vmem:[#allocation33_spill] sm:$0xff]  ;;  %v13718_v20 = vld [vmem:[#allocation19_spill] sm:$0xff] }
 0x1ca   : > { %v8789_v36 = vpop.f32.mrf.mxu0  ;;  %v2815_v37 = vpop.f32.mrf.mxu1 }
 0x1cb   : > { %v11299_v1 = vadd.f32 %v8789_v36, %v13712_v18  ;;  %v11302_v19 = vadd.f32 %v2815_v37, %v11092_v14 }
 0x1cc   : > { %v2601_v15 = vpop.f32.mrf.mxu0  ;;  %v8830_v58 = vpop.f32.mrf.mxu1  ;;  %9033 = vmatmul.mubr.msk.bf16.gmra.mxu1 %vm1432_vm5, %v13713_v54 }
 0x1cd   : > { %v11307_v59 = vadd.f32 %v2601_v15, %v13714_v16  ;;  %v11310_v44 = vadd.f32 %v8830_v58, %v11102_v40  ;;  %9036 = vmatprep.mubr.msk.bf16.mxu1 %vm1432_vm5, %v13717_v45  ;;  %v13720_v15 = vld [vmem:[#allocation20_spill] sm:$0xff] }
 0x1ce   : > { %v8792_v5 = vpop.f32.mrf.mxu0  ;;  %8995 = vmatmul.mubr.msk.bf16.gmra.mxu0 %vm1432_vm5, %v13708_v24  ;;  %v2828_v14 = vpop.f32.mrf.mxu1 }
 0x1cf   : > { %13715 = vst [vmem:[#allocation42_spill] sm:$0xff] %v11307_v59  ;;  %13716 = vst [vmem:[#allocation43_spill] sm:$0xff] %v11310_v44  ;;  %v11317_v36 = vadd.f32 %v8792_v5, %v13718_v20  ;;  %v11320_v37 = vadd.f32 %v2828_v14, %v11108_v48  ;;  %8998 = vmatprep.mubr.msk.bf16.mxu0 %vm1432_vm5, %v13709_v17  ;;  %v13721_v44 = vld [vmem:[#allocation21_spill] sm:$0xff]  ;;  %v13723_v20 = vld [vmem:[#allocation34_spill] sm:$0xff] }
 0x1d0   : > { %v2614_v18 = vpop.f32.mrf.mxu0  ;;  %v8831_v40 = vpop.f32.mrf.mxu1  ;;  %v13724_v17 = vld [vmem:[#allocation22_spill] sm:$0xff] }
 0x1d1   : > { %13719 = vst [vmem:[#allocation44_spill] sm:$0xff] %v11320_v37  ;;  %v11325_v58 = vadd.f32 %v2614_v18, %v13720_v15  ;;  %v11328_v16 = vadd.f32 %v8831_v40, %v11110_v30  ;;  %v13727_v30 = vld [vmem:[#allocation39_spill] sm:$0xff] }
 0x1d2   : > { %v8793_v53 = vpop.f32.mrf.mxu0  ;;  %v2831_v24 = vpop.f32.mrf.mxu1 }
 0x1d3   : > { %v11331_v59 = vadd.f32 %v8793_v53, %v13721_v44  ;;  %v11334_v5 = vadd.f32 %v2831_v24, %v11113_v25  ;;  %v13728_v25 = vld [vmem:[#allocation25_spill] sm:$0xff] }
 0x1d4   : > { %v2617_v48 = vpop.f32.mrf.mxu0  ;;  %v8834_v14 = vpop.f32.mrf.mxu1  ;;  %9037 = vmatmul.mubr.msk.bf16.gmra.mxu1 %vm1432_vm5, %v13723_v20 }
 0x1d5   : > { %13722 = vst [vmem:[#allocation28_spill] sm:$0xff] %v11334_v5  ;;  %v11339_v37 = vadd.f32 %v2617_v48, %v13724_v17  ;;  %v11342_v18 = vadd.f32 %v8834_v14, %v11128_v12  ;;  %9040 = vmatprep.mubr.msk.bf16.mxu1 %vm1432_vm5, %v13727_v30  ;;  %v13731_v48 = vld [vmem:[#allocation26_spill] sm:$0xff] }
 0x1d6   : > { %v8796_v40 = vpop.f32.mrf.mxu0  ;;  %8999 = vmatmul.mubr.msk.bf16.gmra.mxu0 %vm1432_vm5, %v13713_v54  ;;  %v2844_v53 = vpop.f32.mrf.mxu1 }
 0x1d7   : > { %13725 = vst [vmem:[#allocation32_spill] sm:$0xff] %v11339_v37  ;;  %13726 = vst [vmem:[#allocation41_spill] sm:$0xff] %v11342_v18  ;;  %v11349_v44 = vadd.f32 %v8796_v40, %v13728_v25  ;;  %v11352_v15 = vadd.f32 %v2844_v53, %v11132_v31  ;;  %9002 = vmatprep.mubr.msk.bf16.mxu0 %vm1432_vm5, %v13717_v45  ;;  %v13734_v37 = vld [vmem:[#allocation27_spill] sm:$0xff]  ;;  %v13737_v25 = vld [vmem:[#allocation40_spill] sm:$0xff] }
 0x1d8   : > { %v2630_v24 = vpop.f32.mrf.mxu0  ;;  %v8835_v12 = vpop.f32.mrf.mxu1  ;;  %v13738_v45 = vld [vmem:[#allocation30_spill] sm:$0xff] }
 0x1d9   : > { %13729 = vst [vmem:[#allocation8_spill] sm:$0xff] %v11349_v44  ;;  %13730 = vst [vmem:[#allocation7_spill] sm:$0xff] %v11352_v15  ;;  %v11357_v14 = vadd.f32 %v2630_v24, %v13731_v48  ;;  %v11360_v17 = vadd.f32 %v8835_v12, %v11136_v60 }
 0x1da   : > { %v8797_v18 = vpop.f32.mrf.mxu0  ;;  %v2847_v54 = vpop.f32.mrf.mxu1 }
 0x1db   : > { %13732 = vst [vmem:[#allocation9_spill] sm:$0xff] %v11357_v14  ;;  %13733 = vst [vmem:[#allocation23_spill] sm:$0xff] %v11360_v17  ;;  %v11363_v5 = vadd.f32 %v8797_v18, %v13734_v37  ;;  %v11366_v40 = vadd.f32 %v2847_v54, %v11139_v62  ;;  %v13741_v37 = vld [vmem:[#allocation35_spill] sm:$0xff]  ;;  %v13744_v54 = vld [vmem:[#allocation36_spill] sm:$0xff] }
 0x1dc   : > { %v2633_v31 = vpop.f32.mrf.mxu0  ;;  %v8838_v53 = vpop.f32.mrf.mxu1  ;;  %9041 = vmatmul.mubr.msk.bf16.gmra.mxu1 %vm1432_vm5, %v13737_v25  ;;  %v11551_v14 = vld [vmem:[#allocation2 + $0x54] sm:$0xff]  }
 0x1dd   : > { %13735 = vst [vmem:[#allocation4_spill] sm:$0xff] %v11363_v5  ;;  %13736 = vst [vmem:[#allocation5_spill] sm:$0xff] %v11366_v40  ;;  %v11371_v15 = vadd.f32 %v2633_v31, %v13738_v45  ;;  %v11374_v24 = vadd.f32 %v8838_v53, %v11153_v57  ;;  %9044 = vmatprep.mubr.msk.bf16.mxu1 %vm1432_vm5, %v10762_v41  ;;  %v11394_v45 = vld [vmem:[#allocation2 + $0x18] sm:$0xff]   ;;  %v13758_v40 = vld [vmem:[#allocation46_spill] sm:$0xff] }
 0x1de   : > { %v8800_v60 = vpop.f32.mrf.mxu0  ;;  %9003 = vmatmul.mubr.msk.bf16.gmra.mxu0 %vm1432_vm5, %v13723_v20  ;;  %v2860_v62 = vpop.f32.mrf.mxu1  ;;  %v5628_v20 = vld [vmem:[#allocation2 + $0x18] sm:$0xf] }
 0x1df   : > { %13739 = vst [vmem:[#allocation13_spill] sm:$0xff] %v11371_v15  ;;  %13740 = vst [vmem:[#allocation24_spill] sm:$0xff] %v11374_v24  ;;  %v11381_v18 = vadd.f32 %v8800_v60, %v13741_v37  ;;  %v11384_v12 = vadd.f32 %v2860_v62, %v11157_v4  ;;  %9006 = vmatprep.mubr.msk.bf16.mxu0 %vm1432_vm5, %v13727_v30  ;;  %v13747_v37 = vld [vmem:[#allocation37_spill] sm:$0xff]  ;;  %v5629_v30 = vld [vmem:[#allocation2 + $0x1c] sm:$0xf] }
 0x1e0   : > { %v2646_v48 = vpop.f32.mrf.mxu0  ;;  %v8839_v57 = vpop.f32.mrf.mxu1  ;;  %v5631_v62 = vld [vmem:[#allocation2 + $0x24] sm:$0xf] }
 0x1e1   : > { %13742 = vst [vmem:[#allocation29_spill] sm:$0xff] %v11381_v18  ;;  %13743 = vst [vmem:[#allocation15_spill] sm:$0xff] %v11384_v12  ;;  %v11389_v31 = vadd.f32 %v2646_v48, %v13744_v54  ;;  %v11392_v53 = vadd.f32 %v8839_v57, %v11162_v10  ;;  %v5677_v10 = vshrl.u32 %v5628_v20, 16  ;;  %v5680_v48 = vshll.u32 %v5628_v20, 16  ;;  %v13750_v57 = vld [vmem:[#allocation38_spill] sm:$0xff] }
 0x1e2   : > { %v8801_v24 = vpop.f32.mrf.mxu0  ;;  %v2863_v60 = vpop.f32.mrf.mxu1 }
 0x1e3   : > { %13745 = vst [vmem:[#allocation16_spill] sm:$0xff] %v11389_v31  ;;  %13746 = vst [vmem:[#allocation17_spill] sm:$0xff] %v11392_v53  ;;  %v11397_v18 = vadd.f32 %v8801_v24, %v13747_v37  ;;  %v11400_v4 = vadd.f32 %v2863_v60, %v11172_v0  ;;  %v5686_v60 = vshll.u32 %v5629_v30, 16  ;;  %v5690_v37 = vshrl.u32 %v5629_v30, 16 }
 0x1e4   : > { %v2649_v12 = vpop.f32.mrf.mxu0  ;;  %v8842_v15 = vpop.f32.mrf.mxu1  ;;  %9045 = vmatmul.mubr.msk.bf16.gmra.mxu1 %vm1432_vm5, %v10768_v33 }
 0x1e5   : > { %13748 = vst [vmem:[#allocation31_spill] sm:$0xff] %v11397_v18  ;;  %13749 = vst [vmem:[#allocation18_spill] sm:$0xff] %v11400_v4  ;;  %v11405_v54 = vadd.f32 %v2649_v12, %v13750_v57  ;;  %v11408_v53 = vadd.f32 %v8842_v15, %v11188_v51  ;;  %9084 = vmatprep.mubr.msk.bf16.mxu1 %vm1432_vm5, %v11394_v45  ;;  %v5701_v4 = vshrl.u32 %v5631_v62, 16  ;;  %v5704_v18 = vshll.u32 %v5631_v62, 16  ;;  %v11422_v57 = vld [vmem:[#allocation2 + $0x24] sm:$0xff]  }
 0x1e6   : > { %v8804_v0 = vpop.f32.mrf.mxu0  ;;  %9007 = vmatmul.mubr.msk.bf16.gmra.mxu0 %vm1432_vm5, %v13737_v25  ;;  %v2876_v24 = vpop.f32.mrf.mxu1  ;;  %v5682_v25 = vrot.slane %v5680_v48, 5  ;;  %v5632_v62 = vld [vmem:[#allocation2 + $0x28] sm:$0xf] }
 0x1e7   : > { %13751 = vst [vmem:[#allocation33_spill] sm:$0xff] %v11405_v54  ;;  %13752 = vst [vmem:[#allocation19_spill] sm:$0xff] %v11408_v53  ;;  %v11415_v20 = vadd.f32 %v8804_v0, %v10780_v21  ;;  %v11418_v12 = vadd.f32 %v2876_v24, %v11195_v34  ;;  %9010 = vmatprep.mubr.msk.bf16.mxu0 %vm1432_vm5, %v10762_v41  ;;  %v5679_v53 = vrot.slane %v5677_v10, 4  ;;  %v13755_v54 = vld [vmem:[#allocation45_spill] sm:$0xff]  ;;  %v11430_v21 = vld [vmem:[#allocation2 + $0x30] sm:$0xff]   ;;  %v6357_v34 = vsel %vm1481_vm0, %v11167_v3, 0 }
 0x1e8   : > { %v2662_v51 = vpop.f32.mrf.mxu0  ;;  %v8843_v15 = vpop.f32.mrf.mxu1  ;;  %v5630_v24 = vld [vmem:[#allocation2 + $0x20] sm:$0x1]  ;;  %v5703_v10 = vrot.slane %v5701_v4, 4  ;;  %v5706_v48 = vrot.slane %v5704_v18, 5  ;;  %v13761_v4 = vld [vmem:[#allocation47_spill] sm:$0xff] }
 0x1e9   : > { %13753 = vst [vmem:[#allocation20_spill] sm:$0xff] %v11415_v20  ;;  %13754 = vst [vmem:[#allocation21_spill] sm:$0xff] %v11418_v12  ;;  %v11425_v31 = vadd.f32 %v2662_v51, %v13755_v54  ;;  %v11428_v30 = vadd.f32 %v8843_v15, %v11201_v28  ;;  %v11434_v12 = vrot.slane %v5686_v60, 5  ;;  %v5692_v20 = vrot.slane %v5690_v37, 4  ;;  %v11445_v51 = vld [vmem:[%s13558_s4 + $0x10] sm:$0x3] }
 0x1ea   : > { %v8805_v0 = vpop.f32.mrf.mxu0  ;;  %v2879_v41 = vpop.f32.mrf.mxu1  ;;  %v5683_v60 = vor.u32 %v5682_v25, %v5679_v53  ;;  %v5633_v37 = vld [vmem:[#allocation2 + $0x2c] sm:$0x1]  ;;  %v5707_v25 = vor.u32 %v5706_v48, %v5703_v10 }
 0x1eb   : > { %13756 = vst [vmem:[#allocation34_spill] sm:$0xff] %v11425_v31  ;;  %13757 = vst [vmem:[#allocation22_spill] sm:$0xff] %v11428_v30  ;;  %v11437_v54 = vadd.f32 %v8805_v0, %v13758_v40  ;;  %v11440_v28 = vadd.f32 %v2879_v41, %v11209_v22  ;;  %v5696_v22 = vshll.u32 %v5630_v24, 16  ;;  %v5710_v0 = vshll.u32 %v5632_v62, 16  ;;  %v5634_v24 = vld [vmem:[#allocation2 + $0x30] sm:$0xf] }
 0x1ec   : > { %v2665_v3 = vpop.f32.mrf.mxu0  ;;  %v8882_v15 = vpop.f32.mrf.mxu1  ;;  %9085 = vmatmul.mubr.msk.bf16.vlgmr.msra.gmra.mxu1 %vm1432_vm5, %v11422_v57  ;;  %v5693_v53 = vor.u32 %v5692_v20, %v11434_v12  ;;  %v13769_v20 = vld [vmem:[#allocation14_spill] sm:$0xff]  ;;  %v5725_v5 = vshrl.u32 %v5634_v24, 16 }
 0x1ed   : > { %13759 = vst [vmem:[#allocation39_spill] sm:$0xff] %v11437_v54  ;;  %13760 = vst [vmem:[#allocation25_spill] sm:$0xff] %v11440_v28  ;;  %v11450_v18 = vadd.f32 %v2665_v3, %v13761_v4  ;;  %v11453_v40 = vadd.f32 %v8882_v15, %v11175_v7  ;;  %9088 = vmatprep.mubr.msk.bf16.mxu1 %vm1432_vm5, %v11430_v21  ;;  %9151 = vmatpush3.bf16.msra.mxu1 %v6357_v34  ;;  %v5714_v54 = vshrl.u32 %v5632_v62, 16  ;;  %v13764_v7 = vld [vmem:[#allocation48_spill] sm:$0xff]  ;;  %v13768_v4 = vld [vmem:[#allocation6_spill] sm:$0xff] }
 0x1ee   : > { %v8808_v41 = vpop.f32.mrf.mxu0  ;;  %9011 = vmatmul.mubr.msk.bf16.gmra.mxu0 %vm1432_vm5, %v10768_v33  ;;  %v3320_v28 = vpop.f32.mrf.mxu1  ;;  %9269 = vmatprep.subr.msk.bf16.mxu1 %vm1481_vm0, %v11445_v51  ;;  %v5720_v34 = vshll.u32 %v5633_v37, 16  ;;  %v13767_v33 = vld [vmem:[#allocation11_spill] sm:$0xff]  ;;  %v13770_v62 = vld [vmem:[#allocation10_spill] sm:$0xff]  ;;  %v13771_v37 = vld [vmem:[#allocation49_spill] sm:$0xff]  ;;  %v11496_v31 = vrot.slane %v5693_v53, 4 }
 0x1ef   : > { %13762 = vst [vmem:[#allocation26_spill] sm:$0xff] %v11450_v18  ;;  %13763 = vst [vmem:[#allocation27_spill] sm:$0xff] %v11453_v40  ;;  %v11463_v3 = vadd.f32 %v8808_v41, %v13764_v7  ;;  %v11466_v15 = vadd.f32 %v3320_v28, %v11191_v23  ;;  %9050 = vmatprep.mubr.msk.bf16.mxu0 %vm1432_vm5, %v11394_v45  ;;  %v11472_v40 = vadd.f32 %v13768_v4, %v13767_v33  ;;  %v11478_v41 = vld [vmem:[#allocation2 + $0x3c] sm:$0xff]   ;;  %v11482_v28 = vld [vmem:[#allocation2 + $0x48] sm:$0xff]  }
 0x1f0   : > { %v11476_v10 = vadd.f32 %v13770_v62, %v13769_v20  ;;  %v2678_v48 = vpop.f32.mrf.mxu0  ;;  %v8883_v18 = vpop.f32.mrf.mxu1  ;;  %v6159_v23 = vsel %vm1481_vm0, %v11218_v50, 0  ;;  %v11484_v45 = vrot.slane %v5683_v60, 4  ;;  %v11492_v4 = vrot.slane %v5696_v22, 5  ;;  %v5635_v62 = vld [vmem:[#allocation2 + $0x34] sm:$0xf] }
 0x1f1   : > { %13765 = vst [vmem:[#allocation40_spill] sm:$0xff] %v11463_v3  ;;  %13766 = vst [vmem:[#allocation30_spill] sm:$0xff] %v11466_v15  ;;  %v11487_v7 = vadd.f32 %v2678_v48, %v13771_v37  ;;  %v11490_v33 = vadd.f32 %v8883_v18, %v11198_v46  ;;  %v11494_v20 = vrot.slane %v5710_v0, 5  ;;  %v5637_v15 = vld [vmem:[#allocation2 + $0x3c] sm:$0xf]  ;;  %v11498_v50 = vrot.slane %v5707_v25, 4 }
 0x1f2   : > { %v8809_v3 = vpop.f32.mrf.mxu0  ;;  %v3323_v30 = vpop.f32.mrf.mxu1  ;;  %v11500_v60 = vrot.slane %v5714_v54, 4  ;;  %v5638_v48 = vld [vmem:[#allocation2 + $0x40] sm:$0xf]  ;;  %v13774_v37 = vld [vmem:[#allocation50_spill] sm:$0xff]  ;;  %v11508_v18 = vrot.slane %v5720_v34, 5  ;;  %v5728_v22 = vshll.u32 %v5634_v24, 16  ;;  %v5689_v53 = vsel %vm9575_vm12, %v11484_v45, %v11434_v12 }
 0x1f3   : > { %13772 = vst [vmem:[#allocation35_spill] sm:$0xff] %v11487_v7  ;;  %13773 = vst [vmem:[#allocation36_spill] sm:$0xff] %v11490_v33  ;;  %v11503_v7 = vadd.f32 %v8809_v3, %v13774_v37  ;;  %v11506_v46 = vadd.f32 %v3323_v30, %v11204_v29  ;;  %v5734_v25 = vshll.u32 %v5635_v62, 16  ;;  %v5738_v17 = vshrl.u32 %v5635_v62, 16  ;;  %v13778_v37 = vld [vmem:[#allocation51_spill] sm:$0xff] }
 0x1f4   : > { %v2681_v0 = vpop.f32.mrf.mxu0  ;;  %v8886_v33 = vpop.f32.mrf.mxu1  ;;  %9089 = vmatmul.mubr.msk.bf16.gmra.mxu1 %vm1432_vm5, %v11478_v41  ;;  %v5749_v3 = vshrl.u32 %v5637_v15, 16  ;;  %v11524_v30 = vld [vmem:[#allocation2 + $0x38] sm:$0x1]  ;;  %v5752_v34 = vshll.u32 %v5637_v15, 16  ;;  %v5758_v24 = vshll.u32 %v5638_v48, 16  ;;  %v2694_v44 = vadd.f32 %v11246_v13, %v11472_v40 }
 0x1f5   : > { %13775 = vst [vmem:[#allocation37_spill] sm:$0xff] %v11503_v7  ;;  %13776 = vst [vmem:[#allocation38_spill] sm:$0xff] %v11506_v46  ;;  %v11517_v7 = vadd.f32 %v2681_v0, %v13778_v37  ;;  %v11520_v29 = vadd.f32 %v8886_v33, %v11212_v47  ;;  %9092 = vmatprep.mubr.msk.bf16.mxu1 %vm1432_vm5, %v11482_v28  ;;  %v11529_v12 = vld [vmem:[%s13555_s1 + $0x10] sm:$0x3]  ;;  %v5699_v47 = vsel %vm9575_vm12, %v11496_v31, %v11492_v4 }
 0x1f6   : > { %v8848_v45 = vpop.f32.mrf.mxu0  ;;  %9051 = vmatmul.mubr.msk.bf16.vlgmr.msra.gmra.mxu0 %vm1432_vm5, %v11422_v57  ;;  %v3336_v62 = vpop.f32.mrf.mxu1  ;;  %v5717_v33 = vor.u32 %v11500_v60, %v11494_v20  ;;  %v5727_v0 = vrot.slane %v5725_v5, 4  ;;  %v5730_v31 = vrot.slane %v5728_v22, 5  ;;  %v5762_v4 = vshrl.u32 %v5638_v48, 16  ;;  %v11564_v48 = vld [vmem:[#allocation2 + $0x60] sm:$0xff]  }
 0x1f7   : > { %13779 = vst [vmem:[#allocation45_spill] sm:$0xff] %v11517_v7  ;;  %13780 = vst [vmem:[#allocation46_spill] sm:$0xff] %v11520_v29  ;;  %v11544_v37 = vadd.f32 %v8848_v45, %v11226_v32  ;;  %9117 = vmatpush3.bf16.msra.mxu0 %v6159_v23  ;;  %v11547_v57 = vadd.f32 %v3336_v62, %v11229_v35  ;;  %9054 = vmatprep.mubr.msk.bf16.mxu0 %vm1432_vm5, %v11430_v21  ;;  %v5640_v29 = vld [vmem:[#allocation2 + $0x48] sm:$0xf]  ;;  %v5641_v7 = vld [vmem:[#allocation2 + $0x4c] sm:$0xf] }
 0x1f8   : > { %v3122_v46 = vpop.f32.mrf.mxu0  ;;  %v8887_v15 = vpop.f32.mrf.mxu1  ;;  %v11553_v60 = vrot.slane %v5734_v25, 5  ;;  %v5740_v5 = vrot.slane %v5738_v17, 4  ;;  %v5744_v32 = vshll.u32 %v11524_v30, 16  ;;  %v5751_v23 = vrot.slane %v5749_v3, 4  ;;  %9268 = vmatprep.subr.msk.bf16.mxu0 %vm1481_vm0, %v11529_v12  ;;  %v5639_v17 = vld [vmem:[#allocation2 + $0x44] sm:$0x1] }
 0x1f9   : > { %13781 = vst [vmem:[#allocation47_spill] sm:$0xff] %v11544_v37  ;;  %13782 = vst [vmem:[#allocation48_spill] sm:$0xff] %v11547_v57  ;;  %v11559_v35 = vadd.f32 %v3122_v46, %v11235_v39  ;;  %v11562_v21 = vadd.f32 %v8887_v15, %v11238_v56  ;;  %v5754_v22 = vrot.slane %v5752_v34, 5  ;;  %v11566_v45 = vrot.slane %v5758_v24, 5 }
 0x1fa   : > { %v8849_v25 = vpop.f32.mrf.mxu0  ;;  %v3339_v62 = vpop.f32.mrf.mxu1  ;;  %v5773_v57 = vshrl.u32 %v5640_v29, 16  ;;  %v5776_v30 = vshll.u32 %v5640_v29, 16  ;;  %v5782_v3 = vshll.u32 %v5641_v7, 16  ;;  %v5786_v37 = vshrl.u32 %v5641_v7, 16 }
 0x1fb   : > { %13783 = vst [vmem:[#allocation11_spill] sm:$0xff] %v11562_v21  ;;  %v11571_v39 = vadd.f32 %v8849_v25, %v11241_v52  ;;  %v11574_v56 = vadd.f32 %v3339_v62, %v11244_v42  ;;  %v5764_v46 = vrot.slane %v5762_v4, 4  ;;  %v11578_v15 = vcombine.low %v5689_v53, %v5699_v47  ;;  %v5643_v4 = vld [vmem:[#allocation2 + $0x54] sm:$0xf] }
 0x1fc   : > { %v3125_v34 = vpop.f32.mrf.mxu0  ;;  %v8890_v24 = vpop.f32.mrf.mxu1  ;;  %9093 = vmatmul.mubr.msk.bf16.gmra.mxu1 %vm1432_vm5, %v11551_v14  ;;  %v11580_v29 = vrot.slane %v5717_v33, 4  ;;  %v5731_v7 = vor.u32 %v5730_v31, %v5727_v0  ;;  %v5741_v21 = vor.u32 %v5740_v5, %v11553_v60  ;;  %v5755_v42 = vor.u32 %v5754_v22, %v5751_v23  ;;  %v5642_v22 = vld [vmem:[#allocation2 + $0x50] sm:$0x1] }
 0x1fd   : > { %v11583_v13 = vadd.f32 %v3125_v34, %v2694_v44  ;;  %v11586_v52 = vadd.f32 %v8890_v24, %v11251_v61  ;;  %9096 = vmatprep.mubr.msk.bf16.mxu1 %vm1432_vm5, %v11564_v48  ;;  %v5768_v40 = vshll.u32 %v5639_v17, 16  ;;  %v5775_v47 = vrot.slane %v5773_v57, 4  ;;  %v11603_v57 = vld [vmem:[#allocation2 + $0x6c] sm:$0xff]   ;;  %v11611_v34 = vld [vmem:[#allocation2 + $0x78] sm:$0xff]  }
 0x1fe   : > { %v8852_v25 = vpop.f32.mrf.mxu0  ;;  %9055 = vmatmul.mubr.msk.bf16.gmra.mxu0 %vm1432_vm5, %v11478_v41  ;;  %v3352_v53 = vpop.f32.mrf.mxu1  ;;  %v5778_v33 = vrot.slane %v5776_v30, 5  ;;  %v11592_v0 = vrot.slane %v5782_v3, 5  ;;  %v5788_v44 = vrot.slane %v5786_v37, 4  ;;  %v5746_v5 = vrot.slane %v5744_v32, 5 }
 0x1ff   : > { %v11595_v31 = vadd.f32 %v8852_v25, %v11256_v43  ;;  %v11598_v61 = vadd.f32 %v3352_v53, %v11259_v26  ;;  %9058 = vmatprep.mubr.msk.bf16.mxu0 %vm1432_vm5, %v11482_v28  ;;  %v5765_v23 = vor.u32 %v5764_v46, %v11566_v45  ;;  %v5732_v17 = vrot.slane %v5731_v7, 4 }
 0x200   : > { %v3138_v41 = vpop.f32.mrf.mxu0  ;;  %v8891_v62 = vpop.f32.mrf.mxu1  ;;  %v5742_v30 = vrot.slane %v5741_v21, 4  ;;  %v5797_v37 = vshrl.u32 %v5643_v4, 16  ;;  %v5800_v3 = vshll.u32 %v5643_v4, 16  ;;  %v5723_v28 = vsel %vm9575_vm12, %v11580_v29, %v11508_v18 }
 0x201   : > { %v11606_v43 = vadd.f32 %v3138_v41, %v11263_v11  ;;  %v11609_v26 = vadd.f32 %v8891_v62, %v11266_v27  ;;  %v5770_v32 = vrot.slane %v5768_v40, 5  ;;  %v5756_v7 = vrot.slane %v5755_v42, 4  ;;  %v5644_v11 = vld [vmem:[#allocation2 + $0x58] sm:$0xf] }
 0x202   : > { %v8853_v46 = vpop.f32.mrf.mxu0  ;;  %v3355_v24 = vpop.f32.mrf.mxu1  ;;  %v5779_v21 = vor.u32 %v5778_v33, %v5775_v47  ;;  %v5789_v4 = vor.u32 %v5788_v44, %v11592_v0  ;;  %v5792_v25 = vshll.u32 %v5642_v22, 16  ;;  %v2698_v27 = vadd.f32 %v11274_v9, %v11476_v10  ;;  %v5645_v47 = vld [vmem:[#allocation2 + $0x5c] sm:$0x1] }
 0x203   : > { %13784 = vst [vmem:[#allocation6_spill] sm:$0xff] %v11606_v43  ;;  %13785 = vst [vmem:[#allocation14_spill] sm:$0xff] %v11609_v26  ;;  %v11621_v53 = vadd.f32 %v8853_v46, %v11269_v2  ;;  %v11624_v41 = vadd.f32 %v3355_v24, %v11272_v38  ;;  %v5766_v62 = vrot.slane %v5765_v23, 4  ;;  %v5737_v42 = vsel %vm9575_vm12, %v5732_v17, %v11553_v60  ;;  %v11640_v23 = vld [vmem:[#allocation2 + $0x60] sm:$0xf]  ;;  %v11664_v24 = vld [vmem:[#allocation2 + $0x84] sm:$0xff]  }
 0x204   : > { %v3141_v18 = vpop.f32.mrf.mxu0  ;;  %v8894_v29 = vpop.f32.mrf.mxu1  ;;  %9097 = vmatmul.mubr.msk.bf16.gmra.mxu1 %vm1432_vm5, %v11603_v57  ;;  %v5747_v40 = vsel %vm9575_vm12, %v5742_v30, %v5746_v5  ;;  %v5799_v9 = vrot.slane %v5797_v37, 4  ;;  %v5802_v10 = vrot.slane %v5800_v3, 5  ;;  %v5806_v33 = vshll.u32 %v5644_v11, 16 }
 0x205   : > { %13786 = vst [vmem:[#allocation10_spill] sm:$0xff] %v11621_v53  ;;  %13787 = vst [vmem:[#allocation49_spill] sm:$0xff] %v11624_v41  ;;  %v11633_v2 = vadd.f32 %v3141_v18, %v2698_v27  ;;  %v11636_v38 = vadd.f32 %v8894_v29, %v11279_v49  ;;  %9100 = vmatprep.mubr.msk.bf16.mxu1 %vm1432_vm5, %v11611_v34  ;;  %v5810_v44 = vshrl.u32 %v5644_v11, 16  ;;  %v5780_v17 = vrot.slane %v5779_v21, 4  ;;  %v5647_v11 = vld [vmem:[#allocation2 + $0x64] sm:$0xf] }
 0x206   : > { %v8856_v22 = vpop.f32.mrf.mxu0  ;;  %9059 = vmatmul.mubr.msk.bf16.gmra.mxu0 %vm1432_vm5, %v11551_v14  ;;  %v3368_v60 = vpop.f32.mrf.mxu1  ;;  %v13790_v5 = vsel %vm9575_vm12, %v11498_v50, %v11494_v20  ;;  %v5790_v30 = vrot.slane %v5789_v4, 4  ;;  %v5794_v37 = vrot.slane %v5792_v25, 5  ;;  %v5761_v14 = vsel %vm9575_vm12, %v5756_v7, %v11566_v45  ;;  %v11675_v45 = vld [vmem:[#allocation2 + $0x90] sm:$0xff]  }
 0x207   : > { %13788 = vst [vmem:[#allocation50_spill] sm:$0xff] %v11633_v2  ;;  %13789 = vst [vmem:[#allocation3_spill] sm:$0xff] %v11636_v38  ;;  %v11649_v49 = vcombine.low %v13790_v5, %v5723_v28  ;;  %v11652_v3 = vadd.f32 %v8856_v22, %v11286_v8  ;;  %v11655_v46 = vadd.f32 %v3368_v60, %v11289_v6  ;;  %9062 = vmatprep.mubr.msk.bf16.mxu0 %vm1432_vm5, %v11564_v48  ;;  %v11713_v60 = vld [vmem:[#allocation2 + $0x6c] sm:$0xf]  ;;  %v11824_v38 = vld [vmem:[#allocation2 + $0xb4] sm:$0xff]  }
 0x208   : > { %v5771_v20 = vsel %vm9575_vm12, %v5766_v62, %v5770_v32  ;;  %v3154_v50 = vpop.f32.mrf.mxu0  ;;  %v8895_v28 = vpop.f32.mrf.mxu1  ;;  %v11666_v21 = vcombine.low %v5737_v42, %v5747_v40  ;;  %v5803_v8 = vor.u32 %v5802_v10, %v5799_v9  ;;  %v5816_v4 = vshll.u32 %v5645_v47, 16  ;;  %v11702_v10 = vld [vmem:[#allocation2 + $0x68] sm:$0x1]  ;;  %v6561_v47 = vld [vmem:[#allocation2 + $0x84] sm:$0xe] }
 0x209   : > { %13791 = vst [vmem:[#allocation51_spill] sm:$0xff] %v11652_v3  ;;  %13792 = vst [vmem:[#allocation52_spill] sm:$0xff] %v11655_v46  ;;  %v5821_v6 = vshrl.u32 %v11640_v23, 16  ;;  %v11670_v25 = vadd.f32 %v3154_v50, %v11293_v55  ;;  %v11673_v48 = vadd.f32 %v8895_v28, %v11296_v63  ;;  %v11677_v7 = vrot.slane %v5806_v33, 5  ;;  %v11826_v2 = vld [vmem:[#allocation2 + $0x70] sm:$0xf] }
 0x20a   : > { %v11679_v32 = vrot.slane %v5810_v44, 4  ;;  %v8857_v27 = vpop.f32.mrf.mxu0  ;;  %v3371_v62 = vpop.f32.mrf.mxu1  ;;  %v11681_v18 = vcombine.low %v5761_v14, %v5771_v20  ;;  %v11685_v29 = vsel %vm1481_vm0, %v11529_v12, 0  ;;  %v5785_v55 = vsel %vm9575_vm12, %v5780_v17, %v11592_v0  ;;  %v13799_v17 = vld [vmem:[#allocation43_spill] sm:$0xff]  ;;  %v11727_v14 = vld [vmem:[#allocation2 + $0x88] sm:$0xf]  ;;  %13822 = vst [vmem:[#allocation64_spill] sm:$0xff] %v11826_v2 }
 0x20b   : > { %13793 = vst [vmem:[#allocation53_spill] sm:$0xff] %v11670_v25  ;;  %13794 = vst [vmem:[#allocation54_spill] sm:$0xff] %v11673_v48  ;;  %v5795_v63 = vsel %vm9575_vm12, %v5790_v30, %v5794_v37  ;;  %v11693_v42 = vadd.f32 %v8857_v27, %v11299_v1  ;;  %v11696_v40 = vadd.f32 %v3371_v62, %v11302_v19  ;;  %v11700_v9 = vsel %vm1481_vm0, %v11445_v51, 0  ;;  %v13797_v51 = vld [vmem:[#allocation42_spill] sm:$0xff] }
 0x20c   : > { %v5824_v12 = vshll.u32 %v11640_v23, 16  ;;  %v3157_v33 = vpop.f32.mrf.mxu0  ;;  %v8898_v0 = vpop.f32.mrf.mxu1  ;;  %9101 = vmatmul.mubr.msk.bf16.gmra.mxu1 %vm1432_vm5, %v11664_v24  ;;  %v11707_v44 = vrot.slane %v5803_v8, 4  ;;  %v11709_v1 = vrot.slane %v5816_v4, 5  ;;  %v11711_v19 = vrot.slane %v5821_v6, 4  ;;  %v6562_v27 = vld [vmem:[#allocation2 + $0x90] sm:$0xe] }
 0x20d   : > { %13795 = vst [vmem:[#allocation55_spill] sm:$0xff] %v11693_v42  ;;  %13796 = vst [vmem:[#allocation56_spill] sm:$0xff] %v11696_v40  ;;  %v5830_v22 = vshll.u32 %v5647_v11, 16  ;;  %v11716_v5 = vadd.f32 %v3157_v33, %v13797_v51  ;;  %v11719_v23 = vadd.f32 %v8898_v0, %v13799_v17  ;;  %9104 = vmatprep.mubr.msk.bf16.mxu1 %vm1432_vm5, %v11675_v45  ;;  %v5834_v28 = vshrl.u32 %v5647_v11, 16  ;;  %v11744_v11 = vld [vmem:[#allocation2 + $0x8c] sm:$0x1] }
 0x20e   : > { %v11723_v30 = vcombine.low %v5785_v55, %v5795_v63  ;;  %v8860_v20 = vpop.f32.mrf.mxu0  ;;  %9063 = vmatmul.mubr.msk.bf16.gmra.mxu0 %vm1432_vm5, %v11603_v57  ;;  %v3384_v50 = vpop.f32.mrf.mxu1  ;;  %v8172_v4 = vrot.slane %v6561_v47, 9  ;;  %v6681_v6 = vrot.slane %v11727_v14, 5  ;;  %v13802_v55 = vld [vmem:[#allocation44_spill] sm:$0xff]  ;;  %v11741_v33 = vrot.slane %v5824_v12, 5  ;;  %v6563_v0 = vld [vmem:[#allocation2 + $0x9c] sm:$0xe] }
 0x20f   : > { %13798 = vst [vmem:[#allocation42_spill] sm:$0xff] %v11716_v5  ;;  %13800 = vst [vmem:[#allocation43_spill] sm:$0xff] %v11719_v23  ;;  %v11734_v62 = vadd.f32 %v8860_v20, %v11317_v36  ;;  %v11737_v63 = vadd.f32 %v3384_v50, %v13802_v55  ;;  %9066 = vmatprep.mubr.msk.bf16.mxu0 %vm1432_vm5, %v11611_v34  ;;  %v5845_v57 = vshrl.u32 %v11713_v60, 16  ;;  %v11746_v17 = vld [vmem:[#allocation2 + $0x9c] sm:$0xff]   ;;  %v11748_v8 = vrot.slane %v5830_v22, 5 }
 0x210   : > { %v3170_v47 = vpop.f32.mrf.mxu0  ;;  %v8899_v51 = vpop.f32.mrf.mxu1  ;;  %v11750_v36 = vld [vmem:[#allocation2 + $0x94] sm:$0xf]  ;;  %v6682_v50 = vsel %vm10032_vm15, %v8172_v4, %v6681_v6  ;;  %v6683_v55 = vrot.slane %v6681_v6, 4  ;;  %v6684_v34 = vrot.slane %v11744_v11, 5  ;;  %v8173_v22 = vrot.slane %v6562_v27, 9 }
 0x211   : > { %13801 = vst [vmem:[#allocation57_spill] sm:$0xff] %v11734_v62  ;;  %13803 = vst [vmem:[#allocation44_spill] sm:$0xff] %v11737_v63  ;;  %v11756_v12 = vadd.f32 %v3170_v47, %v11325_v58  ;;  %v11759_v37 = vadd.f32 %v8899_v51, %v11328_v16  ;;  %v11761_v63 = vld [vmem:[#allocation2 + $0xa8] sm:$0xff]   ;;  %v11763_v62 = vld [vmem:[#allocation2 + $0x98] sm:$0x1]  ;;  %v6688_v23 = vrot.slane %v11750_v36, 5 }
 0x212   : > { %v8861_v5 = vpop.f32.mrf.mxu0  ;;  %v3387_v40 = vpop.f32.mrf.mxu1  ;;  %v11766_v42 = vrot.slane %v5834_v28, 4  ;;  %v6685_v4 = vsel %vm10032_vm15, %v6683_v55, %v6684_v34  ;;  %v6691_v58 = vrot.slane %v11763_v62, 5  ;;  %v8174_v6 = vrot.slane %v6563_v0, 9  ;;  %v13808_v47 = vld [vmem:[#allocation28_spill] sm:$0xff]  ;;  %v11787_v0 = vld [vmem:[#allocation2 + $0xac] sm:$0xf] }
 0x213   : > { %13805 = vst [vmem:[#allocation12_spill] sm:$0xff] %v11756_v12  ;;  %13806 = vst [vmem:[#allocation58_spill] sm:$0xff] %v11759_v37  ;;  %v11772_v16 = vadd.f32 %v8861_v5, %v11331_v59  ;;  %v11775_v51 = vadd.f32 %v3387_v40, %v13808_v47  ;;  %v11777_v37 = vrot.slane %v5845_v57, 4  ;;  %v11779_v27 = vld [vmem:[#allocation2 + $0xa0] sm:$0xf]  ;;  %v11783_v28 = vcombine.low %v6682_v50, %v6685_v4  ;;  %v13813_v50 = vld [vmem:[#allocation41_spill] sm:$0xff] }
 0x214   : > { %v11781_v12 = vld [vmem:[#allocation2 + $0xa4] sm:$0x1]  ;;  %v3173_v48 = vpop.f32.mrf.mxu0  ;;  %v8902_v25 = vpop.f32.mrf.mxu1  ;;  %9105 = vmatmul.mubr.msk.bf16.gmra.mxu1 %vm1432_vm5, %v11746_v17  ;;  %v6689_v59 = vsel %vm10032_vm15, %v8173_v22, %v6688_v23  ;;  %v6690_v40 = vrot.slane %v6688_v23, 4  ;;  %v6695_v5 = vrot.slane %v11779_v27, 5  ;;  %v6702_v22 = vrot.slane %v11787_v0, 5 }
 0x215   : > { %13807 = vst [vmem:[#allocation59_spill] sm:$0xff] %v11772_v16  ;;  %13809 = vst [vmem:[#allocation28_spill] sm:$0xff] %v11775_v51  ;;  %v6698_v57 = vrot.slane %v11781_v12, 5  ;;  %v13811_v55 = vld [vmem:[#allocation32_spill] sm:$0xff]  ;;  %v11797_v4 = vadd.f32 %v8902_v25, %v13813_v50  ;;  %9108 = vmatprep.mubr.msk.bf16.mxu1 %vm1432_vm5, %v11761_v63  ;;  %v6564_v50 = vld [vmem:[#allocation2 + $0xa8] sm:$0xe] }
 0x216   : > { %13810 = vst [vmem:[#allocation60_spill] sm:$0xff] %v11783_v28  ;;  %v11794_v34 = vadd.f32 %v3173_v48, %v13811_v55  ;;  %v11802_v28 = vld [vmem:[#allocation2 + $0xb8] sm:$0xf]  ;;  %v8864_v23 = vpop.f32.mrf.mxu0  ;;  %9067 = vmatmul.mubr.msk.bf16.gmra.mxu0 %vm1432_vm5, %v11664_v24  ;;  %v3400_v51 = vpop.f32.mrf.mxu1  ;;  %v6692_v48 = vsel %vm10032_vm15, %v6690_v40, %v6691_v58  ;;  %v6696_v25 = vsel %vm10032_vm15, %v8174_v6, %v6695_v5  ;;  %v6697_v55 = vrot.slane %v6695_v5, 4  ;;  %v13816_v47 = vld [vmem:[#allocation8_spill] sm:$0xff] }
 0x217   : > { %13814 = vst [vmem:[#allocation41_spill] sm:$0xff] %v11797_v4  ;;  %13815 = vst [vmem:[#allocation61_spill] sm:$0xff] %v11802_v28  ;;  %v6709_v4 = vrot.slane %v11802_v28, 5  ;;  %v13818_v16 = vld [vmem:[#allocation7_spill] sm:$0xff]  ;;  %9070 = vmatprep.mubr.msk.bf16.mxu0 %vm1432_vm5, %v11675_v45  ;;  %v11820_v24 = vld [vmem:[#allocation2 + $0xb0] sm:$0x1]  ;;  %v11822_v3 = vcombine.low %v6689_v59, %v6692_v48 }
 0x218   : > { %13812 = vst [vmem:[#allocation32_spill] sm:$0xff] %v11794_v34  ;;  %v11813_v34 = vadd.f32 %v8864_v23, %v13816_v47  ;;  %v11816_v46 = vadd.f32 %v3400_v51, %v13818_v16  ;;  %13820 = vst [vmem:[#allocation62_spill] sm:$0xff] %v11820_v24  ;;  %v8175_v58 = vrot.slane %v6564_v50, 9  ;;  %v6565_v40 = vld [vmem:[#allocation2 + $0xb4] sm:$0xe]  ;;  %v3186_v6 = vpop.f32.mrf.mxu0  ;;  %v8903_v5 = vpop.f32.mrf.mxu1  ;;  %v6699_v47 = vsel %vm10032_vm15, %v6697_v55, %v6698_v57  ;;  %v13823_v45 = vld [vmem:[#allocation9_spill] sm:$0xff] }
 0x219   : > { %13821 = vst [vmem:[#allocation63_spill] sm:$0xff] %v11822_v3  ;;  %v6704_v16 = vrot.slane %v6702_v22, 4  ;;  %v6705_v51 = vrot.slane %v11820_v24, 5  ;;  %v8176_v23 = vrot.slane %v6565_v40, 9  ;;  %v13825_v59 = vld [vmem:[#allocation23_spill] sm:$0xff]  ;;  %v11837_v50 = vld [vmem:[#allocation2 + $0xc0] sm:$0xff]   ;;  %v11843_v41 = vcombine.low %v6696_v25, %v6699_v47 }
 0x21a   : > { %13817 = vst [vmem:[#allocation8_spill] sm:$0xff] %v11813_v34  ;;  %13819 = vst [vmem:[#allocation7_spill] sm:$0xff] %v11816_v46  ;;  %v11832_v46 = vadd.f32 %v3186_v6, %v13823_v45  ;;  %v11835_v48 = vadd.f32 %v8903_v5, %v13825_v59  ;;  %v11839_v3 = vld [vmem:[#allocation2 + $0x78] sm:$0xf]  ;;  %v11841_v34 = vld [vmem:[#allocation2 + $0xbc] sm:$0x1]  ;;  %v6703_v57 = vsel %vm10032_vm15, %v8175_v58, %v6702_v22  ;;  %v8865_v55 = vpop.f32.mrf.mxu0  ;;  %v3403_v53 = vpop.f32.mrf.mxu1 }
 0x21b   : > { %13827 = vst [vmem:[#allocation65_spill] sm:$0xff] %v11841_v34  ;;  %13828 = vst [vmem:[#allocation66_spill] sm:$0xff] %v11843_v41  ;;  %v6706_v40 = vsel %vm10032_vm15, %v6704_v16, %v6705_v51  ;;  %v6710_v6 = vsel %vm10032_vm15, %v8176_v23, %v6709_v4  ;;  %v6711_v5 = vrot.slane %v6709_v4, 4  ;;  %v6712_v45 = vrot.slane %v11841_v34, 5  ;;  %v13829_v59 = vld [vmem:[#allocation4_spill] sm:$0xff] }
 0x21c   : > { %13824 = vst [vmem:[#allocation9_spill] sm:$0xff] %v11832_v46  ;;  %13826 = vst [vmem:[#allocation23_spill] sm:$0xff] %v11835_v48  ;;  %v11853_v48 = vadd.f32 %v8865_v55, %v13829_v59  ;;  %v13831_v46 = vld [vmem:[#allocation5_spill] sm:$0xff]  ;;  %v5854_v47 = vshll.u32 %v11826_v2, 16  ;;  %v11859_v22 = vld [vmem:[#allocation2 + $0x7c] sm:$0xf]  ;;  %v11861_v58 = vcombine.low %v6703_v57, %v6706_v40  ;;  %v3189_v41 = vpop.f32.mrf.mxu0  ;;  %v8906_v16 = vpop.f32.mrf.mxu1  ;;  %9109 = vmatmul.mubr.msk.bf16.gmra.mxu1 %vm1432_vm5, %v11824_v38 }
 0x21d   : > { %v11856_v25 = vadd.f32 %v3403_v53, %v13831_v46  ;;  %13833 = vst [vmem:[#allocation67_spill] sm:$0xff] %v11859_v22  ;;  %v5858_v4 = vshrl.u32 %v11826_v2, 16  ;;  %v5869_v51 = vshrl.u32 %v11839_v3, 16  ;;  %v5872_v23 = vshll.u32 %v11839_v3, 16  ;;  %v11868_v55 = vld [vmem:[#allocation2 + $0xc4] sm:$0xf]  ;;  %9112 = vmatprep.mubr.msk.bf16.mxu1 %vm1432_vm5, %v11837_v50 }
 0x21e   : > { %13830 = vst [vmem:[#allocation4_spill] sm:$0xff] %v11853_v48  ;;  %13834 = vst [vmem:[#allocation68_spill] sm:$0xff] %v11861_v58  ;;  %v6713_v53 = vsel %vm10032_vm15, %v6711_v5, %v6712_v45  ;;  %v13836_v46 = vld [vmem:[#allocation13_spill] sm:$0xff]  ;;  %v13838_v57 = vld [vmem:[#allocation24_spill] sm:$0xff]  ;;  %v6716_v3 = vrot.slane %v11868_v55, 5  ;;  %9071 = vmatmul.mubr.msk.bf16.gmra.mxu0 %vm1432_vm5, %v11746_v17  ;;  %v3416_v5 = vpop.f32.mrf.mxu1  ;;  %v5837_v45 = vor.u32 %v11766_v42, %v11748_v8  ;;  %v13850_v24 = vshll.u32 %v11713_v60, 16 }
 0x21f   : > { %13832 = vst [vmem:[#allocation5_spill] sm:$0xff] %v11856_v25  ;;  %13835 = vst [vmem:[#allocation69_spill] sm:$0xff] %v11868_v55  ;;  %v11873_v59 = vadd.f32 %v3189_v41, %v13836_v46  ;;  %v11876_v40 = vadd.f32 %v8906_v16, %v13838_v57  ;;  %v11880_v58 = vld [vmem:[#allocation2 + $0xd0] sm:$0xf]  ;;  %v11882_v2 = vcombine.low %v6710_v6, %v6713_v53  ;;  %v8868_v25 = vpop.f32.mrf.mxu0  ;;  %v5878_v16 = vshll.u32 %v11859_v22, 16  ;;  %v13843_v53 = vld [vmem:[#allocation29_spill] sm:$0xff] }
 0x220   : > { %13840 = vst [vmem:[#allocation70_spill] sm:$0xff] %v11880_v58  ;;  %v5827_v41 = vor.u32 %v11741_v33, %v11711_v19  ;;  %v11892_v46 = vld [vmem:[#allocation2 + $0xc8] sm:$0x1]  ;;  %v6566_v57 = vld [vmem:[#allocation2 + $0xc0] sm:$0xe]  ;;  %v6723_v6 = vrot.slane %v11880_v58, 5  ;;  %9074 = vmatprep.mubr.msk.bf16.mxu0 %vm1432_vm5, %v11761_v63  ;;  %v8907_v34 = vpop.f32.mrf.mxu1 }
 0x221   : > { %13837 = vst [vmem:[#allocation13_spill] sm:$0xff] %v11873_v59  ;;  %13839 = vst [vmem:[#allocation24_spill] sm:$0xff] %v11876_v40  ;;  %v13845_v40 = vld [vmem:[#allocation15_spill] sm:$0xff]  ;;  %v11903_v19 = vld [vmem:[#allocation2 + $0xd4] sm:$0x1]  ;;  %v8177_v33 = vrot.slane %v6566_v57, 9  ;;  %v3202_v48 = vpop.f32.mrf.mxu0 }
 0x222   : > { %13841 = vst [vmem:[#allocation71_spill] sm:$0xff] %v11882_v2  ;;  %13842 = vst [vmem:[#allocation72_spill] sm:$0xff] %v11892_v46  ;;  %v11896_v2 = vadd.f32 %v8868_v25, %v13843_v53  ;;  %v11899_v59 = vadd.f32 %v3416_v5, %v13845_v40  ;;  %v6718_v42 = vrot.slane %v6716_v3, 4  ;;  %v6567_v17 = vld [vmem:[#allocation2 + $0xcc] sm:$0xe]  ;;  %v6719_v58 = vrot.slane %v11892_v46, 5  ;;  %v3419_v43 = vpop.f32.mrf.mxu1 }
 0x223   : > { %v11905_v55 = vld [vmem:[#allocation2 + $0xcc] sm:$0xff]   ;;  %v8178_v28 = vrot.slane %v6567_v17, 9  ;;  %v6725_v25 = vrot.slane %v6723_v6, 4  ;;  %v6726_v53 = vrot.slane %v11903_v19, 5  ;;  %v13847_v40 = vld [vmem:[#allocation16_spill] sm:$0xff]  ;;  %v5882_v57 = vshrl.u32 %v11859_v22, 16  ;;  %v8869_v26 = vpop.f32.mrf.mxu0 }
 0x224   : > { %13844 = vst [vmem:[#allocation29_spill] sm:$0xff] %v11896_v2  ;;  %13846 = vst [vmem:[#allocation15_spill] sm:$0xff] %v11899_v59  ;;  %v11910_v5 = vadd.f32 %v3202_v48, %v13847_v40  ;;  %v13848_v59 = vld [vmem:[#allocation17_spill] sm:$0xff]  ;;  %v6717_v2 = vsel %vm10032_vm15, %v8177_v33, %v6716_v3  ;;  %v5850_v46 = vrot.slane %v13850_v24, 5  ;;  %v6720_v17 = vsel %vm10032_vm15, %v6718_v42, %v6719_v58  ;;  %v13852_v22 = vld [vmem:[#allocation18_spill] sm:$0xff]  ;;  %v8910_v24 = vpop.f32.mrf.mxu1 }
 0x225   : > { %v11913_v63 = vadd.f32 %v8907_v34, %v13848_v59  ;;  %v6724_v48 = vsel %vm10032_vm15, %v8178_v28, %v6723_v6  ;;  %v6727_v34 = vsel %vm10032_vm15, %v6725_v25, %v6726_v53  ;;  %v13851_v59 = vld [vmem:[#allocation31_spill] sm:$0xff]  ;;  %v11932_v3 = vcombine.low %v6717_v2, %v6720_v17  ;;  %v3205_v60 = vpop.f32.mrf.mxu0  ;;  %9113 = vmatmul.mubr.msk.bf16.gmra.mxu1 %vm1432_vm5, %v11905_v55  ;;  %v11938_v58 = vld [vmem:[#allocation2 + $0x74] sm:$0x1]  ;;  %v13856_v25 = vld [vmem:[#allocation33_spill] sm:$0xff] }
 0x226   : > { %v11927_v40 = vadd.f32 %v8869_v26, %v13851_v59  ;;  %v11934_v33 = vcombine.low %v6724_v48, %v6727_v34  ;;  %13855 = vst [vmem:[#allocation18_spill] sm:$0xff] %v11938_v58  ;;  %v11940_v28 = vrot.slane %v5854_v47, 5  ;;  %v5860_v6 = vrot.slane %v5858_v4, 4  ;;  %9152 = vmatprep.mubr.msk.bf16.mxu1 %vm1432_vm5, %v11578_v15  ;;  %v5655_v34 = vld [vmem:[#allocation2 + $0x84] sm:$0xf]  ;;  %9075 = vmatmul.mubr.msk.bf16.gmra.mxu0 %vm1432_vm5, %v11824_v38  ;;  %v3432_v4 = vpop.f32.mrf.mxu1 }
 0x227   : > { %13849 = vst [vmem:[#allocation16_spill] sm:$0xff] %v11913_v63  ;;  %v11930_v63 = vadd.f32 %v3419_v43, %v13852_v22  ;;  %13853 = vst [vmem:[#allocation17_spill] sm:$0xff] %v11932_v3  ;;  %v5871_v42 = vrot.slane %v5869_v51, 4  ;;  %v5874_v26 = vrot.slane %v5872_v23, 5  ;;  %v11943_v53 = vadd.f32 %v3205_v60, %v13856_v25  ;;  %v13857_v43 = vld [vmem:[#allocation19_spill] sm:$0xff]  ;;  %v8872_v47 = vpop.f32.mrf.mxu0  ;;  %9078 = vmatprep.mubr.msk.bf16.mxu0 %vm1432_vm5, %v11837_v50 }
 0x228   : > { %13854 = vst [vmem:[#allocation31_spill] sm:$0xff] %v11934_v33  ;;  %v11946_v2 = vadd.f32 %v8910_v24, %v13857_v43  ;;  %v11950_v22 = vld [vmem:[#allocation2 + $0x80] sm:$0x1]  ;;  %v11952_v17 = vrot.slane %v5878_v16, 5  ;;  %v5884_v48 = vrot.slane %v5882_v57, 4  ;;  %v13859_v51 = vor.u32 %v11679_v32, %v11677_v7  ;;  %v13862_v43 = vld [vmem:[#allocation21_spill] sm:$0xff] }
 0x229   : > { %13858 = vst [vmem:[#allocation33_spill] sm:$0xff] %v11950_v22  ;;  %v11961_v59 = vrot.slane %v5827_v41, 4  ;;  %v11963_v60 = vrot.slane %v5837_v45, 4  ;;  %v13860_v24 = vshll.u32 %v11702_v10, 16  ;;  %v13861_v57 = vld [vmem:[#allocation20_spill] sm:$0xff]  ;;  %v11973_v33 = vadd.f32 %v3432_v4, %v13862_v43  ;;  %v3218_v41 = vpop.f32.mrf.mxu0  ;;  %v8911_v45 = vpop.f32.mrf.mxu1  ;;  %v13865_v4 = vld [vmem:[#allocation22_spill] sm:$0xff] }
 0x22a   : > { %v11959_v23 = vrot.slane %v13859_v51, 4  ;;  %v11970_v25 = vadd.f32 %v8872_v47, %v13861_v57  ;;  %v5851_v38 = vor.u32 %v5850_v46, %v11777_v37  ;;  %v5864_v32 = vshll.u32 %v11938_v58, 16  ;;  %v13863_v47 = vld [vmem:[#allocation34_spill] sm:$0xff] }
 0x22b   : > { %v11967_v16 = vrot.slane %v13860_v24, 5  ;;  %v5861_v51 = vor.u32 %v5860_v6, %v11940_v28  ;;  %v5875_v10 = vor.u32 %v5874_v26, %v5871_v42  ;;  %v5888_v24 = vshll.u32 %v11950_v22, 16  ;;  %v8873_v46 = vpop.f32.mrf.mxu0  ;;  %v3435_v58 = vpop.f32.mrf.mxu1  ;;  %v13943_v54 = vld [vmem:[#allocation15_spill] sm:$0xff] }
 0x22c   : > { %v5893_v3 = vshrl.u32 %v5655_v34, 16  ;;  %v11982_v57 = vadd.f32 %v3218_v41, %v13863_v47  ;;  %v11985_v43 = vadd.f32 %v8911_v45, %v13865_v4  ;;  %v5809_v37 = vsel %vm9575_vm12, %v11707_v44, %v11677_v7  ;;  %v13867_v44 = vld [vmem:[#allocation39_spill] sm:$0xff]  ;;  %v13868_v41 = vld [vmem:[#allocation25_spill] sm:$0xff] }
 0x22d   : > { %v5885_v50 = vor.u32 %v5884_v48, %v11952_v17  ;;  %v5819_v6 = vsel %vm9575_vm12, %v11959_v23, %v11709_v1  ;;  %v5833_v42 = vsel %vm9575_vm12, %v11961_v59, %v11748_v8  ;;  %v5843_v26 = vsel %vm9575_vm12, %v11963_v60, %v11967_v16  ;;  %v5658_v1 = vld [vmem:[#allocation2 + $0x90] sm:$0xf]  ;;  %v3221_v23 = vpop.f32.mrf.mxu0  ;;  %v8950_v22 = vpop.f32.mrf.mxu1  ;;  %9153 = vmatmul.mubr.msk.bf16.vlgmr.msra.gmra.mxu1 %vm1432_vm5, %v11649_v49  ;;  %v13870_v16 = vld [vmem:[#allocation27_spill] sm:$0xff] }
 0x22e   : > { %13864 = vst [vmem:[#allocation19_spill] sm:$0xff] %v11982_v57  ;;  %13866 = vst [vmem:[#allocation20_spill] sm:$0xff] %v11985_v43  ;;  %v5896_v7 = vshll.u32 %v5655_v34, 16  ;;  %v12005_v48 = vadd.f32 %v8873_v46, %v13867_v44  ;;  %v12008_v45 = vadd.f32 %v3435_v58, %v13868_v41  ;;  %v5852_v47 = vrot.slane %v5851_v38, 4  ;;  %v13869_v60 = vld [vmem:[#allocation26_spill] sm:$0xff]  ;;  %9156 = vmatprep.mubr.msk.bf16.mxu1 %vm1432_vm5, %v11666_v21 }
 0x22f   : > { %v5866_v4 = vrot.slane %v5864_v32, 5  ;;  %v5862_v8 = vrot.slane %v5861_v51, 4  ;;  %v5876_v59 = vrot.slane %v5875_v10, 4  ;;  %v5890_v43 = vrot.slane %v5888_v24, 5  ;;  %9219 = vmatpush3.bf16.msra.mxu1 %v11700_v9  ;;  %v8876_v32 = vpop.f32.mrf.mxu0  ;;  %9079 = vmatmul.mubr.msk.bf16.gmra.mxu0 %vm1432_vm5, %v11905_v55  ;;  %v4244_v51 = vpop.f32.mrf.mxu1 }
 0x230   : > { %v5895_v57 = vrot.slane %v5893_v3, 4  ;;  %v12013_v34 = vadd.f32 %v3221_v23, %v13869_v60  ;;  %v12016_v46 = vadd.f32 %v8950_v22, %v13870_v16  ;;  %v5886_v58 = vrot.slane %v5885_v50, 4  ;;  %v13872_v22 = vld [vmem:[#allocation40_spill] sm:$0xff]  ;;  %v13874_v23 = vld [vmem:[#allocation30_spill] sm:$0xff]  ;;  %9118 = vmatprep.mubr.msk.bf16.mxu0 %vm1432_vm5, %v11578_v15  ;;  %v13876_v15 = vld [vmem:[#allocation35_spill] sm:$0xff] }
 0x231   : > { %v5902_v38 = vshll.u32 %v11727_v14, 16  ;;  %v5898_v3 = vrot.slane %v5896_v7, 5  ;;  %v5906_v10 = vshrl.u32 %v11727_v14, 16  ;;  %v5917_v24 = vshrl.u32 %v5658_v1, 16  ;;  %v3234_v55 = vpop.f32.mrf.mxu0  ;;  %v8951_v16 = vpop.f32.mrf.mxu1 }
 0x232   : > { %13871 = vst [vmem:[#allocation21_spill] sm:$0xff] %v12016_v46  ;;  %v5920_v44 = vshll.u32 %v5658_v1, 16  ;;  %v12026_v41 = vadd.f32 %v8876_v32, %v13872_v22  ;;  %v12029_v60 = vadd.f32 %v4244_v51, %v13874_v23  ;;  %v5926_v9 = vshll.u32 %v11750_v36, 16  ;;  %v13877_v22 = vld [vmem:[#allocation36_spill] sm:$0xff] }
 0x233   : > { %v5930_v50 = vshrl.u32 %v11750_v36, 16  ;;  %v5857_v14 = vsel %vm9575_vm12, %v5852_v47, %v11940_v28  ;;  %v5867_v7 = vsel %vm9575_vm12, %v5862_v8, %v5866_v4  ;;  %v5881_v1 = vsel %vm9575_vm12, %v5876_v59, %v11952_v17  ;;  %v5661_v28 = vld [vmem:[#allocation2 + $0x9c] sm:$0xf]  ;;  %v8877_v47 = vpop.f32.mrf.mxu0  ;;  %v4247_v4 = vpop.f32.mrf.mxu1  ;;  %v13879_v59 = vld [vmem:[#allocation37_spill] sm:$0xff] }
 0x234   : > { %13873 = vst [vmem:[#allocation34_spill] sm:$0xff] %v12026_v41  ;;  %13875 = vst [vmem:[#allocation22_spill] sm:$0xff] %v12029_v60  ;;  %v5912_v32 = vshll.u32 %v11744_v11, 16  ;;  %v12045_v51 = vadd.f32 %v3234_v55, %v13876_v15  ;;  %v12048_v36 = vadd.f32 %v8951_v16, %v13877_v22  ;;  %v5891_v23 = vsel %vm9575_vm12, %v5886_v58, %v5890_v43  ;;  %v13880_v55 = vld [vmem:[#allocation38_spill] sm:$0xff] }
 0x235   : > { %v12052_v60 = vrot.slane %v5902_v38, 5  ;;  %v5899_v8 = vor.u32 %v5898_v3, %v5895_v57  ;;  %v5908_v41 = vrot.slane %v5906_v10, 4  ;;  %v5919_v46 = vrot.slane %v5917_v24, 4  ;;  %v8954_v43 = vpop.f32.mrf.mxu1  ;;  %9157 = vmatmul.mubr.msk.bf16.gmra.mxu1 %vm1432_vm5, %v11681_v18  ;;  %v13881_v10 = vld [vmem:[#allocation45_spill] sm:$0xff] }
 0x236   : > { %13878 = vst [vmem:[#allocation39_spill] sm:$0xff] %v12048_v36  ;;  %v5922_v17 = vrot.slane %v5920_v44, 5  ;;  %v12055_v11 = vadd.f32 %v8877_v47, %v13879_v59  ;;  %v12058_v15 = vadd.f32 %v4247_v4, %v13880_v55  ;;  %v12060_v16 = vrot.slane %v5926_v9, 5  ;;  %v3237_v36 = vpop.f32.mrf.mxu0  ;;  %v13882_v44 = vld [vmem:[#allocation46_spill] sm:$0xff]  ;;  %9160 = vmatprep.mubr.msk.bf16.mxu1 %vm1432_vm5, %v11723_v30  ;;  %v13883_v59 = vld [vmem:[#allocation47_spill] sm:$0xff] }
 0x237   : > { %v5932_v22 = vrot.slane %v5930_v50, 4  ;;  %v12064_v58 = vcombine.low %v5809_v37, %v5819_v6  ;;  %v12066_v57 = vcombine.low %v5833_v42, %v5843_v26  ;;  %v5941_v38 = vshrl.u32 %v5661_v28, 16  ;;  %9119 = vmatmul.mubr.msk.bf16.vlgmr.msra.gmra.mxu0 %vm1432_vm5, %v11649_v49  ;;  %v4260_v37 = vpop.f32.mrf.mxu1 }
 0x238   : > { %v5944_v3 = vshll.u32 %v5661_v28, 16  ;;  %v12069_v24 = vadd.f32 %v3237_v36, %v13881_v10  ;;  %v12072_v47 = vadd.f32 %v8954_v43, %v13882_v44  ;;  %v12076_v9 = vcombine.low %v5857_v14, %v5867_v7  ;;  %v8916_v4 = vpop.f32.mrf.mxu0  ;;  %v5664_v28 = vld [vmem:[#allocation2 + $0xa8] sm:$0xf]  ;;  %9185 = vmatpush3.bf16.msra.mxu0 %v11685_v29  ;;  %v13884_v14 = vld [vmem:[#allocation48_spill] sm:$0xff]  ;;  %9122 = vmatprep.mubr.msk.bf16.mxu0 %vm1432_vm5, %v11666_v21  ;;  %v13885_v43 = vld [vmem:[#allocation11_spill] sm:$0xff] }
 0x239   : > { %v12078_v50 = vcombine.low %v5881_v1, %v5891_v23  ;;  %v12082_v6 = vrot.slane %v5899_v8, 4  ;;  %v5909_v42 = vor.u32 %v5908_v41, %v12052_v60  ;;  %v12085_v26 = vrot.slane %v5912_v32, 5  ;;  %v8955_v32 = vpop.f32.mrf.mxu1 }
 0x23a   : > { %v5923_v36 = vor.u32 %v5922_v17, %v5919_v46  ;;  %v12088_v55 = vadd.f32 %v8916_v4, %v13883_v59  ;;  %v12092_v7 = vadd.f32 %v4260_v37, %v13884_v14  ;;  %v5933_v49 = vor.u32 %v5932_v22, %v12060_v16  ;;  %v4046_v41 = vpop.f32.mrf.mxu0 }
 0x23b   : > { %v5936_v1 = vshll.u32 %v11763_v62, 16  ;;  %v5943_v23 = vrot.slane %v5941_v38, 4  ;;  %v5946_v46 = vrot.slane %v5944_v3, 5  ;;  %v5950_v8 = vshll.u32 %v11779_v27, 16  ;;  %v4263_v22 = vpop.f32.mrf.mxu1 }
 0x23c   : > { %v5954_v17 = vshrl.u32 %v11779_v27, 16  ;;  %v12101_v29 = vadd.f32 %v4046_v41, %v11559_v35  ;;  %v12104_v10 = vadd.f32 %v8955_v32, %v13885_v43  ;;  %v5965_v44 = vshrl.u32 %v5664_v28, 16  ;;  %v8917_v4 = vpop.f32.mrf.mxu0 }
 0x23d   : > { %v5968_v21 = vshll.u32 %v5664_v28, 16  ;;  %v12106_v37 = vrot.slane %v5909_v42, 4  ;;  %v12108_v62 = vrot.slane %v5923_v36, 4  ;;  %v5974_v38 = vshll.u32 %v11787_v0, 16  ;;  %v8958_v41 = vpop.f32.mrf.mxu1  ;;  %9161 = vmatmul.mubr.msk.bf16.gmra.mxu1 %vm1432_vm5, %v12064_v58 }
 0x23e   : > { %v5978_v3 = vshrl.u32 %v11787_v0, 16  ;;  %v12113_v27 = vadd.f32 %v8917_v4, %v11571_v39  ;;  %v12116_v35 = vadd.f32 %v4263_v22, %v11574_v56  ;;  %v12118_v59 = vrot.slane %v5933_v49, 4  ;;  %v4049_v28 = vpop.f32.mrf.mxu0  ;;  %9164 = vmatprep.mubr.msk.bf16.mxu1 %vm1432_vm5, %v12066_v57  ;;  %v13888_v4 = vld [vmem:[#allocation62_spill] sm:$0xff]  ;;  %v5670_v22 = vld [vmem:[#allocation2 + $0xc0] sm:$0xf] }
 0x23f   : > { %v12120_v14 = vrot.slane %v5936_v1, 5  ;;  %v5947_v42 = vor.u32 %v5946_v46, %v5943_v23  ;;  %v12124_v36 = vrot.slane %v5950_v8, 5  ;;  %v5956_v32 = vrot.slane %v5954_v17, 4  ;;  %9123 = vmatmul.mubr.msk.bf16.gmra.mxu0 %vm1432_vm5, %v11681_v18  ;;  %v4276_v23 = vpop.f32.mrf.mxu1  ;;  %v5667_v8 = vld [vmem:[#allocation2 + $0xb4] sm:$0xf] }
 0x240   : > { %v5960_v0 = vshll.u32 %v11781_v12, 16  ;;  %v12128_v39 = vadd.f32 %v4049_v28, %v11583_v13  ;;  %v12131_v56 = vadd.f32 %v8958_v41, %v11586_v52  ;;  %v5967_v49 = vrot.slane %v5965_v44, 4  ;;  %v8920_v43 = vpop.f32.mrf.mxu0  ;;  %9126 = vmatprep.mubr.msk.bf16.mxu0 %vm1432_vm5, %v11723_v30 }
 0x241   : > { %v5970_v1 = vrot.slane %v5968_v21, 5  ;;  %v5905_v12 = vsel %vm9575_vm12, %v12082_v6, %v12052_v60  ;;  %v5915_v13 = vsel %vm9575_vm12, %v12106_v37, %v12085_v26  ;;  %v12145_v52 = vrot.slane %v5974_v38, 5  ;;  %v8959_v44 = vpop.f32.mrf.mxu1  ;;  %v13889_v37 = vld [vmem:[#allocation6_spill] sm:$0xff] }
 0x242   : > { %v5980_v46 = vrot.slane %v5978_v3, 4  ;;  %v12148_v17 = vadd.f32 %v8920_v43, %v11595_v31  ;;  %v12151_v18 = vadd.f32 %v4276_v23, %v11598_v61  ;;  %v5929_v60 = vsel %vm9575_vm12, %v12108_v62, %v12060_v16  ;;  %v4062_v26 = vpop.f32.mrf.mxu0  ;;  %v13891_v16 = vld [vmem:[#allocation14_spill] sm:$0xff]  ;;  %v13893_v43 = vld [vmem:[#allocation61_spill] sm:$0xff] }
 0x243   : > { %v5939_v6 = vsel %vm9575_vm12, %v12118_v59, %v12120_v14  ;;  %v12163_v31 = vrot.slane %v5947_v42, 4  ;;  %v5957_v61 = vor.u32 %v5956_v32, %v12124_v36  ;;  %v12166_v21 = vrot.slane %v5960_v0, 5  ;;  %v4279_v14 = vpop.f32.mrf.mxu1  ;;  %v13894_v23 = vld [vmem:[#allocation10_spill] sm:$0xff] }
 0x244   : > { %13886 = vst [vmem:[#allocation25_spill] sm:$0xff] %v12148_v17  ;;  %13887 = vst [vmem:[#allocation26_spill] sm:$0xff] %v12151_v18  ;;  %v5984_v30 = vshll.u32 %v13888_v4, 16  ;;  %v12170_v38 = vadd.f32 %v4062_v26, %v13889_v37  ;;  %v12173_v62 = vadd.f32 %v8959_v44, %v13891_v16  ;;  %v5971_v3 = vor.u32 %v5970_v1, %v5967_v49  ;;  %v8921_v59 = vpop.f32.mrf.mxu0  ;;  %v13896_v18 = vld [vmem:[#allocation49_spill] sm:$0xff] }
 0x245   : > { %v5989_v28 = vshrl.u32 %v5667_v8, 16  ;;  %v5981_v41 = vor.u32 %v5980_v46, %v12145_v52  ;;  %v5992_v42 = vshll.u32 %v5667_v8, 16  ;;  %v5998_v32 = vshll.u32 %v13893_v43, 16  ;;  %v8962_v49 = vpop.f32.mrf.mxu1  ;;  %9165 = vmatmul.mubr.msk.bf16.gmra.mxu1 %vm1432_vm5, %v12076_v9  ;;  %v13898_v8 = vld [vmem:[#allocation69_spill] sm:$0xff] }
 0x246   : > { %13890 = vst [vmem:[#allocation27_spill] sm:$0xff] %v12170_v38  ;;  %13892 = vst [vmem:[#allocation40_spill] sm:$0xff] %v12173_v62  ;;  %v6002_v0 = vshrl.u32 %v13893_v43, 16  ;;  %v12179_v4 = vadd.f32 %v8921_v59, %v13894_v23  ;;  %v12182_v26 = vadd.f32 %v4279_v14, %v13896_v18  ;;  %v6013_v37 = vshrl.u32 %v5670_v22, 16  ;;  %v4065_v16 = vpop.f32.mrf.mxu0  ;;  %v13899_v43 = vld [vmem:[#allocation50_spill] sm:$0xff]  ;;  %v13901_v59 = vld [vmem:[#allocation3_spill] sm:$0xff]  ;;  %9168 = vmatprep.mubr.msk.bf16.mxu1 %vm1432_vm5, %v12078_v50 }
 0x247   : > { %v6016_v44 = vshll.u32 %v5670_v22, 16  ;;  %v5958_v1 = vrot.slane %v5957_v61, 4  ;;  %v5986_v46 = vrot.slane %v5984_v30, 5  ;;  %v6022_v62 = vshll.u32 %v13898_v8, 16  ;;  %9127 = vmatmul.mubr.msk.bf16.gmra.mxu0 %vm1432_vm5, %v12064_v58  ;;  %v4292_v61 = vpop.f32.mrf.mxu1 }
 0x248   : > { %13895 = vst [vmem:[#allocation30_spill] sm:$0xff] %v12179_v4  ;;  %13897 = vst [vmem:[#allocation35_spill] sm:$0xff] %v12182_v26  ;;  %v6026_v38 = vshrl.u32 %v13898_v8, 16  ;;  %v12189_v17 = vadd.f32 %v4065_v16, %v13899_v43  ;;  %v12192_v23 = vadd.f32 %v8962_v49, %v13901_v59  ;;  %v5972_v18 = vrot.slane %v5971_v3, 4  ;;  %v8924_v14 = vpop.f32.mrf.mxu0  ;;  %v13903_v16 = vld [vmem:[#allocation51_spill] sm:$0xff]  ;;  %v13904_v49 = vld [vmem:[#allocation52_spill] sm:$0xff]  ;;  %9130 = vmatprep.mubr.msk.bf16.mxu0 %vm1432_vm5, %v12066_v57 }
 0x249   : > { %v5991_v22 = vrot.slane %v5989_v28, 4  ;;  %v5982_v30 = vrot.slane %v5981_v41, 4  ;;  %v5994_v26 = vrot.slane %v5992_v42, 5  ;;  %v12198_v4 = vrot.slane %v5998_v32, 5 }
 0x24a   : > { %13900 = vst [vmem:[#allocation36_spill] sm:$0xff] %v12189_v17  ;;  %13902 = vst [vmem:[#allocation37_spill] sm:$0xff] %v12192_v23  ;;  %v6004_v8 = vrot.slane %v6002_v0, 4  ;;  %v12201_v43 = vadd.f32 %v8924_v14, %v13903_v16  ;;  %v12204_v59 = vadd.f32 %v4292_v61, %v13904_v49  ;;  %v6015_v3 = vrot.slane %v6013_v37, 4  ;;  %v4078_v23 = vpop.f32.mrf.mxu0  ;;  %v8963_v17 = vpop.f32.mrf.mxu1  ;;  %v13905_v0 = vld [vmem:[#allocation53_spill] sm:$0xff]  ;;  %v13906_v16 = vld [vmem:[#allocation54_spill] sm:$0xff] }
 0x24b   : > { %v6018_v28 = vrot.slane %v6016_v44, 5  ;;  %v12208_v58 = vcombine.low %v5905_v12, %v5915_v13  ;;  %v12210_v41 = vcombine.low %v5929_v60, %v5939_v6  ;;  %v12212_v42 = vrot.slane %v6022_v62, 5  ;;  %v5673_v13 = vld [vmem:[#allocation2 + $0xcc] sm:$0xf] }
 0x24c   : > { %v6028_v32 = vrot.slane %v6026_v38, 4  ;;  %v12215_v14 = vadd.f32 %v4078_v23, %v13905_v0  ;;  %v12218_v61 = vadd.f32 %v8963_v17, %v13906_v16  ;;  %v5953_v57 = vsel %vm9575_vm12, %v12163_v31, %v12124_v36  ;;  %v8925_v60 = vpop.f32.mrf.mxu0  ;;  %v4295_v6 = vpop.f32.mrf.mxu1  ;;  %v13907_v37 = vld [vmem:[#allocation65_spill] sm:$0xff]  ;;  %v13908_v23 = vld [vmem:[#allocation55_spill] sm:$0xff]  ;;  %v13910_v36 = vld [vmem:[#allocation56_spill] sm:$0xff] }
 0x24d   : > { %v5963_v12 = vsel %vm9575_vm12, %v5958_v1, %v12166_v21  ;;  %v5977_v38 = vsel %vm9575_vm12, %v5972_v18, %v12145_v52  ;;  %v5987_v17 = vsel %vm9575_vm12, %v5982_v30, %v5986_v46  ;;  %v5995_v62 = vor.u32 %v5994_v26, %v5991_v22  ;;  %9169 = vmatmul.mubr.msk.bf16.gmra.mxu1 %vm1432_vm5, %v12208_v58  ;;  %v13912_v46 = vld [vmem:[#allocation72_spill] sm:$0xff]  ;;  %v13913_v30 = vld [vmem:[#allocation42_spill] sm:$0xff] }
 0x24e   : > { %v6008_v44 = vshll.u32 %v13907_v37, 16  ;;  %v12234_v49 = vadd.f32 %v8925_v60, %v13908_v23  ;;  %v12237_v31 = vadd.f32 %v4295_v6, %v13910_v36  ;;  %v6005_v21 = vor.u32 %v6004_v8, %v12198_v4  ;;  %v4081_v0 = vpop.f32.mrf.mxu0  ;;  %v8966_v16 = vpop.f32.mrf.mxu1  ;;  %v13915_v37 = vld [vmem:[#allocation43_spill] sm:$0xff]  ;;  %9172 = vmatprep.mubr.msk.bf16.mxu1 %vm1432_vm5, %v12210_v41  ;;  %v13917_v8 = vld [vmem:[#allocation70_spill] sm:$0xff] }
 0x24f   : > { %v6019_v1 = vor.u32 %v6018_v28, %v6015_v3  ;;  %v6029_v52 = vor.u32 %v6028_v32, %v12212_v42  ;;  %v6032_v26 = vshll.u32 %v13912_v46, 16  ;;  %v6037_v18 = vshrl.u32 %v5673_v13, 16  ;;  %9131 = vmatmul.mubr.msk.bf16.gmra.mxu0 %vm1432_vm5, %v12076_v9 }
 0x250   : > { %13909 = vst [vmem:[#allocation38_spill] sm:$0xff] %v12234_v49  ;;  %13911 = vst [vmem:[#allocation45_spill] sm:$0xff] %v12237_v31  ;;  %v6040_v22 = vshll.u32 %v5673_v13, 16  ;;  %v12245_v60 = vadd.f32 %v4081_v0, %v13913_v30  ;;  %v12248_v6 = vadd.f32 %v8966_v16, %v13915_v37  ;;  %v6046_v3 = vshll.u32 %v13917_v8, 16  ;;  %v8928_v23 = vpop.f32.mrf.mxu0  ;;  %v4308_v32 = vpop.f32.mrf.mxu1  ;;  %v13918_v16 = vld [vmem:[#allocation57_spill] sm:$0xff]  ;;  %v13920_v37 = vld [vmem:[#allocation44_spill] sm:$0xff]  ;;  %9134 = vmatprep.mubr.msk.bf16.mxu0 %vm1432_vm5, %v12078_v50 }
 0x251   : > { %v6050_v28 = vshrl.u32 %v13917_v8, 16  ;;  %v12256_v36 = vcombine.low %v5953_v57, %v5963_v12  ;;  %v12258_v13 = vcombine.low %v5977_v38, %v5987_v17  ;;  %v5996_v0 = vrot.slane %v5995_v62, 4  ;;  %v13922_v17 = vld [vmem:[#allocation12_spill] sm:$0xff]  ;;  %v13924_v50 = vld [vmem:[#allocation59_spill] sm:$0xff] }
 0x252   : > { %13914 = vst [vmem:[#allocation46_spill] sm:$0xff] %v12245_v60  ;;  %13916 = vst [vmem:[#allocation47_spill] sm:$0xff] %v12248_v6  ;;  %v6010_v46 = vrot.slane %v6008_v44, 5  ;;  %v12261_v30 = vadd.f32 %v8928_v23, %v13918_v16  ;;  %v12264_v6 = vadd.f32 %v4308_v32, %v13920_v37  ;;  %v6006_v8 = vrot.slane %v6005_v21, 4  ;;  %v4094_v31 = vpop.f32.mrf.mxu0  ;;  %v8967_v9 = vpop.f32.mrf.mxu1  ;;  %v13923_v44 = vld [vmem:[#allocation58_spill] sm:$0xff] }
 0x253   : > { %v6020_v60 = vrot.slane %v6019_v1, 4  ;;  %v6030_v49 = vrot.slane %v6029_v52, 4  ;;  %v6034_v57 = vrot.slane %v6032_v26, 5  ;;  %v6039_v12 = vrot.slane %v6037_v18, 4  ;;  %v13925_v1 = vld [vmem:[#allocation28_spill] sm:$0xff] }
 0x254   : > { %13919 = vst [vmem:[#allocation48_spill] sm:$0xff] %v12261_v30  ;;  %13921 = vst [vmem:[#allocation11_spill] sm:$0xff] %v12264_v6  ;;  %v6042_v38 = vrot.slane %v6040_v22, 5  ;;  %v12269_v62 = vadd.f32 %v4094_v31, %v13922_v17  ;;  %v12272_v23 = vadd.f32 %v8967_v9, %v13923_v44  ;;  %v12274_v16 = vrot.slane %v6046_v3, 5  ;;  %v8929_v37 = vpop.f32.mrf.mxu0  ;;  %v4311_v6 = vpop.f32.mrf.mxu1  ;;  %v13927_v17 = vld [vmem:[#allocation41_spill] sm:$0xff]  ;;  %v13931_v44 = vld [vmem:[#allocation7_spill] sm:$0xff] }
 0x255   : > { %v6052_v32 = vrot.slane %v6050_v28, 4  ;;  %v12277_v21 = vadd.f32 %v8929_v37, %v13924_v50  ;;  %v12280_v30 = vadd.f32 %v4311_v6, %v13925_v1  ;;  %v6001_v52 = vsel %vm9575_vm12, %v5996_v0, %v12198_v4  ;;  %9173 = vmatmul.mubr.msk.bf16.gmra.mxu1 %vm1432_vm5, %v12256_v36  ;;  %v13926_v28 = vld [vmem:[#allocation32_spill] sm:$0xff]  ;;  %v6552_v50 = vld [vmem:[#allocation2 + $0x18] sm:$0xe] }
 0x256   : > { %v4097_v31 = vpop.f32.mrf.mxu0  ;;  %v8970_v26 = vpop.f32.mrf.mxu1  ;;  %v6011_v18 = vsel %vm9575_vm12, %v6006_v8, %v6010_v46  ;;  %v6025_v22 = vsel %vm9575_vm12, %v6020_v60, %v12212_v42  ;;  %v6043_v3 = vor.u32 %v6042_v38, %v6039_v12  ;;  %v6056_v6 = vshll.u32 %v11903_v19, 16  ;;  %9176 = vmatprep.mubr.msk.bf16.mxu1 %vm1432_vm5, %v12258_v13  ;;  %v9352_v19 = vld [vmem:[#allocation2 + $0x1c] sm:$0xf]  ;;  %v13929_v12 = vld [vmem:[#allocation8_spill] sm:$0xff] }
 0x257   : > { %v12294_v9 = vadd.f32 %v4097_v31, %v13926_v28  ;;  %v12297_v4 = vadd.f32 %v8970_v26, %v13927_v17  ;;  %v6035_v0 = vsel %vm9575_vm12, %v6030_v49, %v6034_v57  ;;  %v6053_v46 = vor.u32 %v6052_v32, %v12274_v16  ;;  %9135 = vmatmul.mubr.msk.bf16.gmra.mxu0 %vm1432_vm5, %v12208_v58  ;;  %v13933_v31 = vld [vmem:[#allocation9_spill] sm:$0xff]  ;;  %v13934_v28 = vld [vmem:[#allocation23_spill] sm:$0xff] }
 0x258   : > { %v8932_v8 = vpop.f32.mrf.mxu0  ;;  %v4324_v42 = vpop.f32.mrf.mxu1  ;;  %v6618_v60 = vrot.slane %v9352_v19, 5  ;;  %9138 = vmatprep.mubr.msk.bf16.mxu0 %vm1432_vm5, %v12210_v41  ;;  %v12314_v32 = vcombine.low %v6001_v52, %v6011_v18  ;;  %v12316_v1 = vcombine.low %v6025_v22, %v6035_v0  ;;  %v6044_v58 = vrot.slane %v6043_v3, 4  ;;  %v13936_v18 = vld [vmem:[#allocation5_spill] sm:$0xff] }
 0x259   : > { %13928 = vst [vmem:[#allocation62_spill] sm:$0xff] %v12297_v4  ;;  %v12307_v38 = vadd.f32 %v8932_v8, %v13929_v12  ;;  %v12310_v37 = vadd.f32 %v4324_v42, %v13931_v44  ;;  %v6054_v8 = vrot.slane %v6053_v46, 4  ;;  %v6058_v42 = vrot.slane %v6056_v6, 5  ;;  %v13935_v4 = vld [vmem:[#allocation4_spill] sm:$0xff]  ;;  %v13937_v46 = vld [vmem:[#allocation13_spill] sm:$0xff] }
 0x25a   : > { %v4110_v49 = vpop.f32.mrf.mxu0  ;;  %v8971_v57 = vpop.f32.mrf.mxu1  ;;  %v8163_v44 = vrot.slane %v6552_v50, 9  ;;  %v6620_v41 = vrot.slane %v6618_v60, 4  ;;  %v6049_v6 = vsel %vm9575_vm12, %v6044_v58, %v12274_v16  ;;  %vm7569_vm0 = vcmask 64512  }
 0x25b   : > { %13930 = vst [vmem:[#allocation6_spill] sm:$0xff] %v12307_v38  ;;  %13932 = vst [vmem:[#allocation14_spill] sm:$0xff] %v12310_v37  ;;  %v12319_v26 = vadd.f32 %v4110_v49, %v13933_v31  ;;  %v12322_v17 = vadd.f32 %v8971_v57, %v13934_v28  ;;  %v9353_v37 = vld [vmem:[#allocation2 + $0x20] sm:$0x1]  ;;  %v6553_v57 = vld [vmem:[#allocation2 + $0x24] sm:$0xe] }
 0x25c   : > { %v8933_v19 = vpop.f32.mrf.mxu0  ;;  %v4327_v12 = vpop.f32.mrf.mxu1  ;;  %v6621_v38 = vrot.slane %v9353_v37, 5  ;;  %v13939_v49 = vld [vmem:[#allocation24_spill] sm:$0xff]  ;;  %v9354_v31 = vld [vmem:[#allocation2 + $0x28] sm:$0xf]  ;;  %v6619_v58 = vsel %vm10032_vm15, %v8163_v44, %v6618_v60  ;;  %v8164_v60 = vrot.slane %v6553_v57, 9 }
 0x25d   : > { %v12325_v52 = vadd.f32 %v8933_v19, %v13935_v4  ;;  %v12328_v22 = vadd.f32 %v4327_v12, %v13936_v18  ;;  %9177 = vmatmul.mubr.msk.bf16.gmra.mxu1 %vm1432_vm5, %v12314_v32  ;;  %v6059_v4 = vsel %vm9575_vm12, %v6054_v8, %v6058_v42  ;;  %v6625_v28 = vrot.slane %v9354_v31, 5  ;;  %v9355_v18 = vld [vmem:[#allocation2 + $0x34] sm:$0xf]  ;;  %v6554_v42 = vld [vmem:[#allocation2 + $0x30] sm:$0xe] }
 0x25e   : > { %v4113_v3 = vpop.f32.mrf.mxu0  ;;  %v8974_v0 = vpop.f32.mrf.mxu1  ;;  %9180 = vmatprep.mubr.msk.bf16.mxu1 %vm1432_vm5, %v12316_v1  ;;  %v6622_v12 = vsel %vm10032_vm15, %v6620_v41, %v6621_v38  ;;  %v12359_v31 = vcombine.low %v6049_v6, %v6059_v4  ;;  %v9356_v44 = vld [vmem:[#allocation2 + $0x2c] sm:$0x1]  ;;  %v13945_v41 = vld [vmem:[#allocation16_spill] sm:$0xff] }
 0x25f   : > { %v12336_v50 = vadd.f32 %v4113_v3, %v13937_v46  ;;  %v12339_v37 = vadd.f32 %v8974_v0, %v13939_v49  ;;  %9139 = vmatmul.mubr.msk.bf16.gmra.mxu0 %vm1432_vm5, %v12256_v36  ;;  %v6632_v3 = vrot.slane %v9355_v18, 5  ;;  %v13941_v0 = vld [vmem:[#allocation29_spill] sm:$0xff]  ;;  %v12367_v18 = vcombine.low %v6619_v58, %v6622_v12  ;;  %v9358_v58 = vld [vmem:[#allocation2 + $0x40] sm:$0xf] }
 0x260   : > { %v8936_v19 = vpop.f32.mrf.mxu0  ;;  %v4340_v16 = vpop.f32.mrf.mxu1  ;;  %9142 = vmatprep.mubr.msk.bf16.mxu0 %vm1432_vm5, %v12258_v13  ;;  %v8165_v13 = vrot.slane %v6554_v42, 9  ;;  %v6639_v12 = vrot.slane %v9358_v58, 5 }
 0x261   : > { %13938 = vst [vmem:[#allocation61_spill] sm:$0xff] %v12336_v50  ;;  %13940 = vst [vmem:[#allocation10_spill] sm:$0xff] %v12339_v37  ;;  %v12352_v46 = vadd.f32 %v8936_v19, %v13941_v0  ;;  %v12355_v8 = vadd.f32 %v4340_v16, %v13943_v54  ;;  %v6628_v37 = vrot.slane %v9356_v44, 5  ;;  %v6627_v16 = vrot.slane %v6625_v28, 4 }
 0x262   : > { %v4126_v36 = vpop.f32.mrf.mxu0  ;;  %v8975_v49 = vpop.f32.mrf.mxu1 }
 0x263   : > { %13942 = vst [vmem:[#allocation49_spill] sm:$0xff] %v12352_v46  ;;  %13944 = vst [vmem:[#allocation69_spill] sm:$0xff] %v12355_v8  ;;  %v12362_v38 = vadd.f32 %v4126_v36, %v11910_v5  ;;  %v12365_v19 = vadd.f32 %v8975_v49, %v13945_v41  ;;  %v6634_v8 = vrot.slane %v6632_v3, 4  ;;  %v9357_v46 = vld [vmem:[#allocation2 + $0x38] sm:$0x1] }
 0x264   : > { %v8937_v0 = vpop.f32.mrf.mxu0  ;;  %v4343_v54 = vpop.f32.mrf.mxu1  ;;  %v6635_v50 = vrot.slane %v9357_v46, 5  ;;  %v6555_v46 = vld [vmem:[#allocation2 + $0x3c] sm:$0xe]  ;;  %v9359_v41 = vld [vmem:[#allocation2 + $0x4c] sm:$0xf] }
 0x265   : > { %v12370_v6 = vadd.f32 %v8937_v0, %v11927_v40  ;;  %v12373_v4 = vadd.f32 %v4343_v54, %v11930_v63  ;;  %9181 = vmatmul.mubr.msk.bf16.gmra.mxu1 %vm1432_vm5, %v12359_v31  ;;  %v6626_v63 = vsel %vm10032_vm15, %v8164_v60, %v6625_v28  ;;  %v6629_v40 = vsel %vm10032_vm15, %v6627_v16, %v6628_v37  ;;  %v6556_v37 = vld [vmem:[#allocation2 + $0x48] sm:$0xe] }
 0x266   : > { %v4129_v5 = vpop.f32.mrf.mxu0  ;;  %v8978_v57 = vpop.f32.mrf.mxu1  ;;  %9220 = vmatprep.mubr.msk.bf16.mxu1 %vm1432_vm5, %v12367_v18  ;;  %v6646_v0 = vrot.slane %v9359_v41, 5  ;;  %v12403_v16 = vcombine.low %v6626_v63, %v6629_v40 }
 0x267   : > { %v12378_v36 = vadd.f32 %v4129_v5, %v11943_v53  ;;  %v12381_v42 = vadd.f32 %v8978_v57, %v11946_v2  ;;  %9143 = vmatmul.mubr.msk.bf16.gmra.mxu0 %vm1432_vm5, %v12314_v32  ;;  %v6633_v53 = vsel %vm10032_vm15, %v8165_v13, %v6632_v3  ;;  %v6636_v2 = vsel %vm10032_vm15, %v6634_v8, %v6635_v50  ;;  %v13948_v5 = vld [vmem:[#allocation19_spill] sm:$0xff]  ;;  %v13949_v8 = vld [vmem:[#allocation20_spill] sm:$0xff] }
 0x268   : > { %v8940_v49 = vpop.f32.mrf.mxu0  ;;  %v4356_v44 = vpop.f32.mrf.mxu1  ;;  %9146 = vmatprep.mubr.msk.bf16.mxu0 %vm1432_vm5, %v12316_v1  ;;  %v8166_v3 = vrot.slane %v6555_v46, 9  ;;  %v6641_v13 = vrot.slane %v6639_v12, 4  ;;  %v8167_v1 = vrot.slane %v6556_v37, 9  ;;  %v6648_v41 = vrot.slane %v6646_v0, 4  ;;  %v13952_v37 = vld [vmem:[#allocation21_spill] sm:$0xff] }
 0x269   : > { %v12396_v54 = vadd.f32 %v8940_v49, %v11970_v25  ;;  %v12399_v28 = vadd.f32 %v4356_v44, %v11973_v33  ;;  %v12411_v25 = vcombine.low %v6633_v53, %v6636_v2  ;;  %v9360_v33 = vld [vmem:[#allocation2 + $0x44] sm:$0x1] }
 0x26a   : > { %v4142_v32 = vpop.f32.mrf.mxu0  ;;  %v8979_v60 = vpop.f32.mrf.mxu1  ;;  %v6642_v58 = vrot.slane %v9360_v33, 5  ;;  %v6640_v53 = vsel %vm10032_vm15, %v8166_v3, %v6639_v12  ;;  %v9363_v33 = vld [vmem:[#allocation2 + $0x64] sm:$0xf] }
 0x26b   : > { %13946 = vst [vmem:[#allocation50_spill] sm:$0xff] %v12396_v54  ;;  %13947 = vst [vmem:[#allocation3_spill] sm:$0xff] %v12399_v28  ;;  %v12406_v50 = vadd.f32 %v4142_v32, %v13948_v5  ;;  %v12409_v57 = vadd.f32 %v8979_v60, %v13949_v8  ;;  %v9361_v28 = vld [vmem:[#allocation2 + $0x50] sm:$0x1] }
 0x26c   : > { %v8941_v49 = vpop.f32.mrf.mxu0  ;;  %v4359_v44 = vpop.f32.mrf.mxu1  ;;  %v6649_v54 = vrot.slane %v9361_v28, 5  ;;  %v9362_v28 = vld [vmem:[#allocation2 + $0x58] sm:$0xf] }
 0x26d   : > { %v12414_v63 = vadd.f32 %v8941_v49, %v12005_v48  ;;  %v12417_v40 = vadd.f32 %v4359_v44, %v12008_v45  ;;  %9221 = vmatmul.mubr.msk.bf16.vlgmr.msra.gmra.mxu1 %vm1432_vm5, %v12403_v16  ;;  %v6643_v48 = vsel %vm10032_vm15, %v6641_v13, %v6642_v58  ;;  %v6557_v45 = vld [vmem:[#allocation2 + $0x54] sm:$0xe]  ;;  %v6653_v5 = vrot.slane %v9362_v28, 5 }
 0x26e   : > { %v4145_v46 = vpop.f32.mrf.mxu0  ;;  %v9018_v32 = vpop.f32.mrf.mxu1  ;;  %9224 = vmatprep.mubr.msk.bf16.mxu1 %vm1432_vm5, %v12411_v25  ;;  %v6650_v3 = vsel %vm10032_vm15, %v6648_v41, %v6649_v54  ;;  %v6660_v49 = vrot.slane %v9363_v33, 5  ;;  %v13954_v44 = vld [vmem:[#allocation34_spill] sm:$0xff]  ;;  %v8183_v28 = vcombine.low %v6640_v53, %v6643_v48  ;;  %v13958_v41 = vld [vmem:[#allocation39_spill] sm:$0xff] }
 0x26f   : > { %13950 = vst [vmem:[#allocation51_spill] sm:$0xff] %v12417_v40  ;;  %v12424_v2 = vadd.f32 %v4145_v46, %v12013_v34  ;;  %v12427_v60 = vadd.f32 %v9018_v32, %v13952_v37  ;;  %9147 = vmatmul.mubr.msk.bf16.gmra.mxu0 %vm1432_vm5, %v12359_v31  ;;  %v6647_v34 = vsel %vm10032_vm15, %v8167_v1, %v6646_v0  ;;  %v13956_v13 = vld [vmem:[#allocation22_spill] sm:$0xff]  ;;  %v6558_v32 = vld [vmem:[#allocation2 + $0x60] sm:$0xe]  ;;  %v9364_v0 = vld [vmem:[#allocation2 + $0x5c] sm:$0x1] }
 0x270   : > { %v8944_v8 = vpop.f32.mrf.mxu0  ;;  %v4912_v12 = vpop.f32.mrf.mxu1  ;;  %9186 = vmatprep.mubr.msk.bf16.mxu0 %vm1432_vm5, %v12367_v18  ;;  %v6656_v1 = vrot.slane %v9364_v0, 5  ;;  %v9365_v18 = vld [vmem:[#allocation2 + $0x68] sm:$0x1] }
 0x271   : > { %13951 = vst [vmem:[#allocation52_spill] sm:$0xff] %v12424_v2  ;;  %13953 = vst [vmem:[#allocation53_spill] sm:$0xff] %v12427_v60  ;;  %v12440_v46 = vadd.f32 %v8944_v8, %v13954_v44  ;;  %v12443_v58 = vadd.f32 %v4912_v12, %v13956_v13  ;;  %v8168_v60 = vrot.slane %v6557_v45, 9  ;;  %v8184_v8 = vcombine.low %v6647_v34, %v6650_v3 }
 0x272   : > { %v4158_v31 = vpop.f32.mrf.mxu0  ;;  %v9019_v37 = vpop.f32.mrf.mxu1  ;;  %v6655_v44 = vrot.slane %v6653_v5, 4  ;;  %v6663_v2 = vrot.slane %v9365_v18, 5 }
 0x273   : > { %13955 = vst [vmem:[#allocation54_spill] sm:$0xff] %v12440_v46  ;;  %13957 = vst [vmem:[#allocation65_spill] sm:$0xff] %v12443_v58  ;;  %v12448_v54 = vadd.f32 %v4158_v31, %v12045_v51  ;;  %v12451_v33 = vadd.f32 %v9019_v37, %v13958_v41  ;;  %v8169_v58 = vrot.slane %v6558_v32, 9  ;;  %v6662_v46 = vrot.slane %v6660_v49, 4  ;;  %v13959_v32 = vld [vmem:[#allocation64_spill] sm:$0xff] }
 0x274   : > { %v8945_v12 = vpop.f32.mrf.mxu0  ;;  %v4915_v13 = vpop.f32.mrf.mxu1  ;;  %v6654_v45 = vsel %vm10032_vm15, %v8168_v60, %v6653_v5  ;;  %v6667_v31 = vrot.slane %v13959_v32, 5  ;;  %v13960_v60 = vld [vmem:[#allocation67_spill] sm:$0xff] }
 0x275   : > { %v12454_v40 = vadd.f32 %v8945_v12, %v12055_v11  ;;  %v12457_v53 = vadd.f32 %v4915_v13, %v12058_v15  ;;  %9225 = vmatmul.mubr.msk.bf16.gmra.mxu1 %vm1432_vm5, %v8183_v28  ;;  %v6657_v11 = vsel %vm10032_vm15, %v6655_v44, %v6656_v1  ;;  %v6559_v15 = vld [vmem:[#allocation2 + $0x6c] sm:$0xe]  ;;  %v6674_v5 = vrot.slane %v13960_v60, 5  ;;  %v6560_v44 = vld [vmem:[#allocation2 + $0x78] sm:$0xe] }
 0x276   : > { %v4161_v48 = vpop.f32.mrf.mxu0  ;;  %v9022_v51 = vpop.f32.mrf.mxu1  ;;  %9228 = vmatprep.mubr.msk.bf16.mxu1 %vm1432_vm5, %v8184_v8  ;;  %v8185_v13 = vcombine.low %v6654_v45, %v6657_v11  ;;  %v8170_v18 = vrot.slane %v6559_v15, 9  ;;  %v8171_v32 = vrot.slane %v6560_v44, 9 }
 0x277   : > { %v12463_v34 = vadd.f32 %v4161_v48, %v12069_v24  ;;  %v12466_v3 = vadd.f32 %v9022_v51, %v12072_v47  ;;  %9187 = vmatmul.mubr.msk.bf16.vlgmr.msra.gmra.mxu0 %vm1432_vm5, %v12403_v16  ;;  %v6661_v24 = vsel %vm10032_vm15, %v8169_v58, %v6660_v49  ;;  %v6664_v47 = vsel %vm10032_vm15, %v6662_v46, %v6663_v2  ;;  %v13961_v49 = vld [vmem:[#allocation18_spill] sm:$0xff] }
 0x278   : > { %v8984_v37 = vpop.f32.mrf.mxu0  ;;  %v4928_v0 = vpop.f32.mrf.mxu1  ;;  %9190 = vmatprep.mubr.msk.bf16.mxu0 %vm1432_vm5, %v12411_v25  ;;  %v6670_v58 = vrot.slane %v13961_v49, 5  ;;  %v6669_v48 = vrot.slane %v6667_v31, 4  ;;  %v13962_v25 = vld [vmem:[#allocation33_spill] sm:$0xff]  ;;  %v6675_v44 = vsel %vm10032_vm15, %v8171_v32, %v6674_v5 }
 0x279   : > { %v12480_v41 = vadd.f32 %v8984_v37, %v12088_v55  ;;  %v12483_v1 = vadd.f32 %v4928_v0, %v12092_v7  ;;  %v8186_v55 = vcombine.low %v6661_v24, %v6664_v47  ;;  %v6676_v37 = vrot.slane %v6674_v5, 4 }
 0x27a   : > { %v4714_v16 = vpop.f32.mrf.mxu0  ;;  %v9023_v12 = vpop.f32.mrf.mxu1  ;;  %v6677_v0 = vrot.slane %v13962_v25, 5  ;;  %v6668_v24 = vsel %vm10032_vm15, %v8170_v18, %v6667_v31 }
 0x27b   : > { %v12489_v2 = vadd.f32 %v4714_v16, %v12101_v29  ;;  %v12492_v46 = vadd.f32 %v9023_v12, %v12104_v10  ;;  %v13964_v12 = vld [vmem:[#allocation26_spill] sm:$0xff] }
 0x27c   : > { %v8985_v7 = vpop.f32.mrf.mxu0  ;;  %v4931_v51 = vpop.f32.mrf.mxu1 }
 0x27d   : > { %v12496_v60 = vadd.f32 %v8985_v7, %v12113_v27  ;;  %v12499_v45 = vadd.f32 %v4931_v51, %v12116_v35  ;;  %9229 = vmatmul.mubr.msk.bf16.gmra.mxu1 %vm1432_vm5, %v8185_v13  ;;  %v6671_v27 = vsel %vm10032_vm15, %v6669_v48, %v6670_v58  ;;  %v13965_v48 = vld [vmem:[#allocation27_spill] sm:$0xff]  ;;  %v13966_v7 = vld [vmem:[#allocation40_spill] sm:$0xff] }
 0x27e   : > { %v4717_v11 = vpop.f32.mrf.mxu0  ;;  %v9026_v29 = vpop.f32.mrf.mxu1  ;;  %9232 = vmatprep.mubr.msk.bf16.mxu1 %vm1432_vm5, %v8186_v55  ;;  %v8187_v58 = vcombine.low %v6668_v24, %v6671_v27  ;;  %v13969_v24 = vld [vmem:[#allocation36_spill] sm:$0xff] }
 0x27f   : > { %v12503_v10 = vadd.f32 %v4717_v11, %v12128_v39  ;;  %v12506_v15 = vadd.f32 %v9026_v29, %v12131_v56  ;;  %9191 = vmatmul.mubr.msk.bf16.gmra.mxu0 %vm1432_vm5, %v8183_v28  ;;  %v6678_v39 = vsel %vm10032_vm15, %v6676_v37, %v6677_v0  ;;  %v13963_v56 = vld [vmem:[#allocation25_spill] sm:$0xff]  ;;  %v13967_v37 = vld [vmem:[#allocation30_spill] sm:$0xff]  ;;  %v13968_v0 = vld [vmem:[#allocation35_spill] sm:$0xff] }
 0x280   : > { %v8988_v35 = vpop.f32.mrf.mxu0  ;;  %v4944_v47 = vpop.f32.mrf.mxu1  ;;  %9194 = vmatprep.mubr.msk.bf16.mxu0 %vm1432_vm5, %v8184_v8  ;;  %v8188_v5 = vcombine.low %v6675_v44, %v6678_v39 }
 0x281   : > { %v12519_v16 = vadd.f32 %v8988_v35, %v13963_v56  ;;  %v12522_v49 = vadd.f32 %v4944_v47, %v13964_v12  ;;  %v13970_v35 = vld [vmem:[#allocation37_spill] sm:$0xff] }
 0x282   : > { %v4730_v31 = vpop.f32.mrf.mxu0  ;;  %v9027_v18 = vpop.f32.mrf.mxu1 }
 0x283   : > { %v12526_v28 = vadd.f32 %v4730_v31, %v13965_v48  ;;  %v12529_v51 = vadd.f32 %v9027_v18, %v13966_v7 }
 0x284   : > { %v8989_v20 = vpop.f32.mrf.mxu0  ;;  %v4947_v32 = vpop.f32.mrf.mxu1 }
 0x285   : > { %v12532_v25 = vadd.f32 %v8989_v20, %v13967_v37  ;;  %v12535_v11 = vadd.f32 %v4947_v32, %v13968_v0  ;;  %9233 = vmatmul.mubr.msk.bf16.gmra.mxu1 %vm1432_vm5, %v8187_v58 }
 0x286   : > { %v4733_v29 = vpop.f32.mrf.mxu0  ;;  %v9030_v8 = vpop.f32.mrf.mxu1  ;;  %9236 = vmatprep.mubr.msk.bf16.mxu1 %vm1432_vm5, %v8188_v5 }
 0x287   : > { %v12539_v27 = vadd.f32 %v4733_v29, %v13969_v24  ;;  %v12542_v47 = vadd.f32 %v9030_v8, %v13970_v35  ;;  %9195 = vmatmul.mubr.msk.bf16.gmra.mxu0 %vm1432_vm5, %v8185_v13  ;;  %v13971_v13 = vld [vmem:[#allocation38_spill] sm:$0xff]  ;;  %v13973_v8 = vld [vmem:[#allocation60_spill] sm:$0xff] }
 0x288   : > { %v8992_v44 = vpop.f32.mrf.mxu0  ;;  %v4960_v39 = vpop.f32.mrf.mxu1  ;;  %9198 = vmatprep.mubr.msk.bf16.mxu0 %vm1432_vm5, %v8186_v55  ;;  %v13974_v55 = vld [vmem:[#allocation46_spill] sm:$0xff] }
 0x289   : > { %v12547_v56 = vadd.f32 %v8992_v44, %v12201_v43  ;;  %v12550_v12 = vadd.f32 %v4960_v39, %v12204_v59  ;;  %v13972_v43 = vld [vmem:[#allocation45_spill] sm:$0xff] }
 0x28a   : > { %v4746_v31 = vpop.f32.mrf.mxu0  ;;  %v9031_v18 = vpop.f32.mrf.mxu1 }
 0x28b   : > { %v12554_v48 = vadd.f32 %v4746_v31, %v12215_v14  ;;  %v12557_v7 = vadd.f32 %v9031_v18, %v12218_v61  ;;  %v13975_v14 = vld [vmem:[#allocation47_spill] sm:$0xff]  ;;  %v13977_v31 = vld [vmem:[#allocation48_spill] sm:$0xff] }
 0x28c   : > { %v8993_v20 = vpop.f32.mrf.mxu0  ;;  %v4963_v32 = vpop.f32.mrf.mxu1  ;;  %v13976_v61 = vld [vmem:[#allocation63_spill] sm:$0xff] }
 0x28d   : > { %v12560_v37 = vadd.f32 %v8993_v20, %v13971_v13  ;;  %v12563_v0 = vadd.f32 %v4963_v32, %v13972_v43  ;;  %9237 = vmatmul.mubr.msk.bf16.gmra.mxu1 %vm1432_vm5, %v13973_v8  ;;  %v13978_v20 = vld [vmem:[#allocation11_spill] sm:$0xff] }
 0x28e   : > { %v4749_v59 = vpop.f32.mrf.mxu0  ;;  %v9034_v29 = vpop.f32.mrf.mxu1  ;;  %9240 = vmatprep.mubr.msk.bf16.mxu1 %vm1432_vm5, %v13976_v61 }
 0x28f   : > { %v12568_v24 = vadd.f32 %v4749_v59, %v13974_v55  ;;  %v12571_v35 = vadd.f32 %v9034_v29, %v13975_v14  ;;  %9199 = vmatmul.mubr.msk.bf16.gmra.mxu0 %vm1432_vm5, %v8187_v58 }
 0x290   : > { %v8996_v44 = vpop.f32.mrf.mxu0  ;;  %v4976_v39 = vpop.f32.mrf.mxu1  ;;  %9202 = vmatprep.mubr.msk.bf16.mxu0 %vm1432_vm5, %v8188_v5 }
 0x291   : > { %v12577_v18 = vadd.f32 %v8996_v44, %v13977_v31  ;;  %v12580_v32 = vadd.f32 %v4976_v39, %v13978_v20  ;;  %v13980_v20 = vld [vmem:[#allocation66_spill] sm:$0xff] }
 0x292   : > { %v4762_v13 = vpop.f32.mrf.mxu0  ;;  %v9035_v43 = vpop.f32.mrf.mxu1 }
 0x293   : > { %v12584_v59 = vadd.f32 %v4762_v13, %v12269_v62  ;;  %v12587_v29 = vadd.f32 %v9035_v43, %v12272_v23  ;;  %v13982_v62 = vld [vmem:[#allocation62_spill] sm:$0xff]  ;;  %v13984_v23 = vld [vmem:[#allocation68_spill] sm:$0xff] }
 0x294   : > { %v8997_v55 = vpop.f32.mrf.mxu0  ;;  %v4979_v14 = vpop.f32.mrf.mxu1 }
 0x295   : > { %v12590_v58 = vadd.f32 %v8997_v55, %v12277_v21  ;;  %v12593_v44 = vadd.f32 %v4979_v14, %v12280_v30  ;;  %9241 = vmatmul.mubr.msk.bf16.gmra.mxu1 %vm1432_vm5, %v13980_v20  ;;  %v13985_v21 = vld [vmem:[#allocation6_spill] sm:$0xff] }
 0x296   : > { %v4765_v39 = vpop.f32.mrf.mxu0  ;;  %v9038_v31 = vpop.f32.mrf.mxu1  ;;  %9244 = vmatprep.mubr.msk.bf16.mxu1 %vm1432_vm5, %v13984_v23  ;;  %v13986_v14 = vld [vmem:[#allocation14_spill] sm:$0xff] }
 0x297   : > { %13979 = vst [vmem:[#allocation55_spill] sm:$0xff] %v12593_v44  ;;  %v12598_v5 = vadd.f32 %v4765_v39, %v12294_v9  ;;  %v12601_v13 = vadd.f32 %v9038_v31, %v13982_v62  ;;  %9203 = vmatmul.mubr.msk.bf16.gmra.mxu0 %vm1432_vm5, %v13973_v8 }
 0x298   : > { %v9000_v43 = vpop.f32.mrf.mxu0  ;;  %v4992_v30 = vpop.f32.mrf.mxu1  ;;  %9206 = vmatprep.mubr.msk.bf16.mxu0 %vm1432_vm5, %v13976_v61  ;;  %v13990_v61 = vld [vmem:[#allocation61_spill] sm:$0xff] }
 0x299   : > { %13981 = vst [vmem:[#allocation56_spill] sm:$0xff] %v12598_v5  ;;  %13983 = vst [vmem:[#allocation72_spill] sm:$0xff] %v12601_v13  ;;  %v12608_v55 = vadd.f32 %v9000_v43, %v13985_v21  ;;  %v12611_v44 = vadd.f32 %v4992_v30, %v13986_v14  ;;  %v13989_v14 = vld [vmem:[#allocation71_spill] sm:$0xff] }
 0x29a   : > { %v4778_v9 = vpop.f32.mrf.mxu0  ;;  %v9039_v39 = vpop.f32.mrf.mxu1 }
 0x29b   : > { %13987 = vst [vmem:[#allocation42_spill] sm:$0xff] %v12611_v44  ;;  %v12616_v31 = vadd.f32 %v4778_v9, %v12319_v26  ;;  %v12619_v62 = vadd.f32 %v9039_v39, %v12322_v17  ;;  %v13992_v26 = vld [vmem:[#allocation10_spill] sm:$0xff]  ;;  %v13994_v17 = vld [vmem:[#allocation17_spill] sm:$0xff] }
 0x29c   : > { %v9001_v13 = vpop.f32.mrf.mxu0  ;;  %v4995_v8 = vpop.f32.mrf.mxu1 }
 0x29d   : > { %v12622_v5 = vadd.f32 %v9001_v13, %v12325_v52  ;;  %v12625_v43 = vadd.f32 %v4995_v8, %v12328_v22  ;;  %9245 = vmatmul.mubr.msk.bf16.gmra.mxu1 %vm1432_vm5, %v13989_v14  ;;  %v13995_v22 = vld [vmem:[#allocation49_spill] sm:$0xff] }
 0x29e   : > { %v4781_v30 = vpop.f32.mrf.mxu0  ;;  %v9042_v21 = vpop.f32.mrf.mxu1  ;;  %9248 = vmatprep.mubr.msk.bf16.mxu1 %vm1432_vm5, %v13994_v17  ;;  %v13996_v8 = vld [vmem:[#allocation69_spill] sm:$0xff] }
 0x29f   : > { %13988 = vst [vmem:[#allocation43_spill] sm:$0xff] %v12625_v43  ;;  %v12630_v44 = vadd.f32 %v4781_v30, %v13990_v61  ;;  %v12633_v9 = vadd.f32 %v9042_v21, %v13992_v26  ;;  %9207 = vmatmul.mubr.msk.bf16.gmra.mxu0 %vm1432_vm5, %v13980_v20 }
 0x2a0   : > { %v9004_v39 = vpop.f32.mrf.mxu0  ;;  %v5008_v52 = vpop.f32.mrf.mxu1  ;;  %9210 = vmatprep.mubr.msk.bf16.mxu0 %vm1432_vm5, %v13984_v23 }
 0x2a1   : > { %13991 = vst [vmem:[#allocation70_spill] sm:$0xff] %v12630_v44  ;;  %13993 = vst [vmem:[#allocation57_spill] sm:$0xff] %v12633_v9  ;;  %v12640_v13 = vadd.f32 %v9004_v39, %v13995_v22  ;;  %v12643_v43 = vadd.f32 %v5008_v52, %v13996_v8  ;;  %v13997_v8 = vld [vmem:[#allocation31_spill] sm:$0xff] }
 0x2a2   : > { %v4794_v30 = vpop.f32.mrf.mxu0  ;;  %v9043_v21 = vpop.f32.mrf.mxu1 }
 0x2a3   : > { %v12648_v61 = vadd.f32 %v4794_v30, %v12362_v38  ;;  %v12651_v26 = vadd.f32 %v9043_v21, %v12365_v19 }
 0x2a4   : > { %v9005_v9 = vpop.f32.mrf.mxu0  ;;  %v5011_v20 = vpop.f32.mrf.mxu1 }
 0x2a5   : > { %v12654_v44 = vadd.f32 %v9005_v9, %v12370_v6  ;;  %v12657_v39 = vadd.f32 %v5011_v20, %v12373_v4  ;;  %9249 = vmatmul.mubr.msk.bf16.gmra.mxu1 %vm1432_vm5, %v13997_v8  ;;  %v14000_v9 = vld [vmem:[#allocation50_spill] sm:$0xff]  ;;  %v14002_v4 = vld [vmem:[#allocation3_spill] sm:$0xff] }
 0x2a6   : > { %v4797_v52 = vpop.f32.mrf.mxu0  ;;  %v9046_v22 = vpop.f32.mrf.mxu1 }
 0x2a7   : > { %v12662_v23 = vadd.f32 %v4797_v52, %v12378_v36  ;;  %v12665_v38 = vadd.f32 %v9046_v22, %v12381_v42  ;;  %9211 = vmatmul.mubr.msk.bf16.gmra.mxu0 %vm1432_vm5, %v13989_v14 }
 0x2a8   : > { %v9008_v19 = vpop.f32.mrf.mxu0  ;;  %v5024_v6 = vpop.f32.mrf.mxu1  ;;  %9214 = vmatprep.mubr.msk.bf16.mxu0 %vm1432_vm5, %v13994_v17 }
 0x2a9   : > { %13998 = vst [vmem:[#allocation44_spill] sm:$0xff] %v12662_v23  ;;  %13999 = vst [vmem:[#allocation12_spill] sm:$0xff] %v12665_v38  ;;  %v12670_v30 = vadd.f32 %v9008_v19, %v14000_v9  ;;  %v12673_v21 = vadd.f32 %v5024_v6, %v14002_v4  ;;  %v14004_v19 = vld [vmem:[#allocation51_spill] sm:$0xff] }
 0x2aa   : > { %v4810_v20 = vpop.f32.mrf.mxu0  ;;  %v9047_v36 = vpop.f32.mrf.mxu1 }
 0x2ab   : > { %14001 = vst [vmem:[#allocation58_spill] sm:$0xff] %v12670_v30  ;;  %14003 = vst [vmem:[#allocation59_spill] sm:$0xff] %v12673_v21  ;;  %v12678_v52 = vadd.f32 %v4810_v20, %v12406_v50  ;;  %v12681_v42 = vadd.f32 %v9047_v36, %v12409_v57  ;;  %v14006_v21 = vld [vmem:[#allocation52_spill] sm:$0xff]  ;;  %v14007_v30 = vld [vmem:[#allocation53_spill] sm:$0xff] }
 0x2ac   : > { %v9009_v22 = vpop.f32.mrf.mxu0  ;;  %v5027_v14 = vpop.f32.mrf.mxu1  ;;  %v14008_v20 = vld [vmem:[#allocation54_spill] sm:$0xff] }
 0x2ad   : > { %v12684_v38 = vadd.f32 %v9009_v22, %v12414_v63  ;;  %v12687_v9 = vadd.f32 %v5027_v14, %v14004_v19  ;;  %v14009_v63 = vld [vmem:[#allocation65_spill] sm:$0xff] }
 0x2ae   : > { %v4813_v6 = vpop.f32.mrf.mxu0  ;;  %v9086_v4 = vpop.f32.mrf.mxu1 }
 0x2af   : > { %14005 = vst [vmem:[#allocation28_spill] sm:$0xff] %v12687_v9  ;;  %v12690_v17 = vadd.f32 %v4813_v6, %v14006_v21  ;;  %v12693_v23 = vadd.f32 %v9086_v4, %v14007_v30  ;;  %9215 = vmatmul.mubr.msk.bf16.gmra.mxu0 %vm1432_vm5, %v13997_v8 }
 0x2b0   : > { %v9012_v50 = vpop.f32.mrf.mxu0  ;;  %v5469_v57 = vpop.f32.mrf.mxu1 }
 0x2b1   : > { %v12698_v36 = vadd.f32 %v9012_v50, %v14008_v20  ;;  %v12701_v22 = vadd.f32 %v5469_v57, %v14009_v63 }
 0x2b2   : > { %v4826_v14 = vpop.f32.mrf.mxu0  ;;  %v9087_v19 = vpop.f32.mrf.mxu1 }
 0x2b3   : > { %v12704_v9 = vadd.f32 %v4826_v14, %v12448_v54  ;;  %v12707_v21 = vadd.f32 %v9087_v19, %v12451_v33 }
 0x2b4   : > { %v9013_v30 = vpop.f32.mrf.mxu0  ;;  %v5472_v6 = vpop.f32.mrf.mxu1 }
 0x2b5   : > { %v12710_v4 = vadd.f32 %v9013_v30, %v12454_v40  ;;  %v12713_v8 = vadd.f32 %v5472_v6, %v12457_v53 }
 0x2b6   : > { %v4829_v50 = vpop.f32.mrf.mxu0  ;;  %v9090_v20 = vpop.f32.mrf.mxu1 }
 0x2b7   : > { %v12716_v57 = vadd.f32 %v4829_v50, %v12463_v34  ;;  %v12719_v63 = vadd.f32 %v9090_v20, %v12466_v3 }
 0x2b8   : > { %v9052_v54 = vpop.f32.mrf.mxu0  ;;  %v5485_v14 = vpop.f32.mrf.mxu1 }
 0x2b9   : > { %v12722_v33 = vadd.f32 %v9052_v54, %v12480_v41  ;;  %v12725_v19 = vadd.f32 %v5485_v14, %v12483_v1 }
 0x2ba   : > { %v5271_v40 = vpop.f32.mrf.mxu0  ;;  %v9091_v30 = vpop.f32.mrf.mxu1 }
 0x2bb   : > { %v12728_v53 = vadd.f32 %v5271_v40, %v12489_v2  ;;  %v12731_v6 = vadd.f32 %v9091_v30, %v12492_v46 }
 0x2bc   : > { %v9053_v34 = vpop.f32.mrf.mxu0  ;;  %v5488_v50 = vpop.f32.mrf.mxu1 }
 0x2bd   : > { %v12734_v3 = vadd.f32 %v9053_v34, %v12496_v60  ;;  %v12737_v20 = vadd.f32 %v5488_v50, %v12499_v45 }
 0x2be   : > { %v5274_v41 = vpop.f32.mrf.mxu0  ;;  %v9094_v54 = vpop.f32.mrf.mxu1 }
 0x2bf   : > { %v12740_v1 = vadd.f32 %v5274_v41, %v12503_v10  ;;  %v12743_v14 = vadd.f32 %v9094_v54, %v12506_v15 }
 0x2c0   : > { %v9056_v2 = vpop.f32.mrf.mxu0  ;;  %v5501_v40 = vpop.f32.mrf.mxu1 }
 0x2c1   : > { %v12746_v46 = vadd.f32 %v9056_v2, %v12519_v16  ;;  %v12749_v30 = vadd.f32 %v5501_v40, %v12522_v49 }
 0x2c2   : > { %v5287_v60 = vpop.f32.mrf.mxu0  ;;  %v9095_v34 = vpop.f32.mrf.mxu1 }
 0x2c3   : > { %v12752_v45 = vadd.f32 %v5287_v60, %v12526_v28  ;;  %v12755_v50 = vadd.f32 %v9095_v34, %v12529_v51 }
 0x2c4   : > { %v9057_v10 = vpop.f32.mrf.mxu0  ;;  %v5504_v41 = vpop.f32.mrf.mxu1 }
 0x2c5   : > { %v12758_v15 = vadd.f32 %v9057_v10, %v12532_v25  ;;  %v12761_v54 = vadd.f32 %v5504_v41, %v12535_v11 }
 0x2c6   : > { %v5290_v16 = vpop.f32.mrf.mxu0  ;;  %v9098_v2 = vpop.f32.mrf.mxu1 }
 0x2c7   : > { %v12764_v49 = vadd.f32 %v5290_v16, %v12539_v27  ;;  %v12767_v40 = vadd.f32 %v9098_v2, %v12542_v47 }
 0x2c8   : > { %v9060_v28 = vpop.f32.mrf.mxu0  ;;  %v5517_v60 = vpop.f32.mrf.mxu1 }
 0x2c9   : > { %v12770_v51 = vadd.f32 %v9060_v28, %v12547_v56  ;;  %v12773_v34 = vadd.f32 %v5517_v60, %v12550_v12 }
 0x2ca   : > { %v5303_v25 = vpop.f32.mrf.mxu0  ;;  %v9099_v10 = vpop.f32.mrf.mxu1 }
 0x2cb   : > { %v12776_v11 = vadd.f32 %v5303_v25, %v12554_v48  ;;  %v12779_v41 = vadd.f32 %v9099_v10, %v12557_v7 }
 0x2cc   : > { %v9061_v27 = vpop.f32.mrf.mxu0  ;;  %v5520_v16 = vpop.f32.mrf.mxu1 }
 0x2cd   : > { %v12782_v47 = vadd.f32 %v9061_v27, %v12560_v37  ;;  %v12785_v2 = vadd.f32 %v5520_v16, %v12563_v0 }
 0x2ce   : > { %v5306_v56 = vpop.f32.mrf.mxu0  ;;  %v9102_v28 = vpop.f32.mrf.mxu1 }
 0x2cf   : > { %v12788_v12 = vadd.f32 %v5306_v56, %v12568_v24  ;;  %v12791_v60 = vadd.f32 %v9102_v28, %v12571_v35  ;;  %v14017_v28 = vld [vmem:[#allocation55_spill] sm:$0xff] }
 0x2d0   : > { %v9064_v48 = vpop.f32.mrf.mxu0  ;;  %v5533_v25 = vpop.f32.mrf.mxu1 }
 0x2d1   : > { %14010 = vst [vmem:[#allocation32_spill] sm:$0xff] %v12788_v12  ;;  %14011 = vst [vmem:[#allocation41_spill] sm:$0xff] %v12791_v60  ;;  %v12794_v7 = vadd.f32 %v9064_v48, %v12577_v18  ;;  %v12797_v10 = vadd.f32 %v5533_v25, %v12580_v32  ;;  %v14019_v32 = vld [vmem:[#allocation56_spill] sm:$0xff] }
 0x2d2   : > { %v5319_v37 = vpop.f32.mrf.mxu0  ;;  %v9103_v27 = vpop.f32.mrf.mxu1 }
 0x2d3   : > { %14012 = vst [vmem:[#allocation8_spill] sm:$0xff] %v12794_v7  ;;  %14013 = vst [vmem:[#allocation7_spill] sm:$0xff] %v12797_v10  ;;  %v12800_v0 = vadd.f32 %v5319_v37, %v12584_v59  ;;  %v12803_v16 = vadd.f32 %v9103_v27, %v12587_v29  ;;  %v14021_v10 = vld [vmem:[#allocation72_spill] sm:$0xff]  ;;  %v14024_v27 = vld [vmem:[#allocation42_spill] sm:$0xff] }
 0x2d4   : > { %v9065_v24 = vpop.f32.mrf.mxu0  ;;  %v5536_v56 = vpop.f32.mrf.mxu1 }
 0x2d5   : > { %14014 = vst [vmem:[#allocation9_spill] sm:$0xff] %v12800_v0  ;;  %14015 = vst [vmem:[#allocation23_spill] sm:$0xff] %v12803_v16  ;;  %v12806_v35 = vadd.f32 %v9065_v24, %v12590_v58  ;;  %v12809_v60 = vadd.f32 %v5536_v56, %v14017_v28 }
 0x2d6   : > { %v5322_v18 = vpop.f32.mrf.mxu0  ;;  %v9106_v48 = vpop.f32.mrf.mxu1 }
 0x2d7   : > { %14016 = vst [vmem:[#allocation4_spill] sm:$0xff] %v12806_v35  ;;  %14018 = vst [vmem:[#allocation5_spill] sm:$0xff] %v12809_v60  ;;  %v12812_v25 = vadd.f32 %v5322_v18, %v14019_v32  ;;  %v12815_v7 = vadd.f32 %v9106_v48, %v14021_v10  ;;  %v14029_v48 = vld [vmem:[#allocation43_spill] sm:$0xff] }
 0x2d8   : > { %v9068_v59 = vpop.f32.mrf.mxu0  ;;  %v5549_v37 = vpop.f32.mrf.mxu1 }
 0x2d9   : > { %14020 = vst [vmem:[#allocation13_spill] sm:$0xff] %v12812_v25  ;;  %14022 = vst [vmem:[#allocation24_spill] sm:$0xff] %v12815_v7  ;;  %v12818_v29 = vadd.f32 %v9068_v59, %v12608_v55  ;;  %v12821_v16 = vadd.f32 %v5549_v37, %v14024_v27  ;;  %v14031_v37 = vld [vmem:[#allocation70_spill] sm:$0xff] }
 0x2da   : > { %v5335_v58 = vpop.f32.mrf.mxu0  ;;  %v9107_v24 = vpop.f32.mrf.mxu1 }
 0x2db   : > { %14023 = vst [vmem:[#allocation29_spill] sm:$0xff] %v12818_v29  ;;  %14025 = vst [vmem:[#allocation15_spill] sm:$0xff] %v12821_v16  ;;  %v12824_v56 = vadd.f32 %v5335_v58, %v12616_v31  ;;  %v12827_v28 = vadd.f32 %v9107_v24, %v12619_v62  ;;  %v14033_v16 = vld [vmem:[#allocation57_spill] sm:$0xff] }
 0x2dc   : > { %v9069_v18 = vpop.f32.mrf.mxu0  ;;  %v5552_v32 = vpop.f32.mrf.mxu1 }
 0x2dd   : > { %14026 = vst [vmem:[#allocation16_spill] sm:$0xff] %v12824_v56  ;;  %14027 = vst [vmem:[#allocation19_spill] sm:$0xff] %v12827_v28  ;;  %v12830_v10 = vadd.f32 %v9069_v18, %v12622_v5  ;;  %v12833_v7 = vadd.f32 %v5552_v32, %v14029_v48 }
 0x2de   : > { %v5338_v55 = vpop.f32.mrf.mxu0  ;;  %v9110_v59 = vpop.f32.mrf.mxu1 }
 0x2df   : > { %14028 = vst [vmem:[#allocation20_spill] sm:$0xff] %v12830_v10  ;;  %14030 = vst [vmem:[#allocation21_spill] sm:$0xff] %v12833_v7  ;;  %v12836_v27 = vadd.f32 %v5338_v55, %v14031_v37  ;;  %v12839_v29 = vadd.f32 %v9110_v59, %v14033_v16 }
 0x2e0   : > { %v9072_v31 = vpop.f32.mrf.mxu0  ;;  %v5565_v58 = vpop.f32.mrf.mxu1 }
 0x2e1   : > { %14032 = vst [vmem:[#allocation34_spill] sm:$0xff] %v12836_v27  ;;  %14034 = vst [vmem:[#allocation22_spill] sm:$0xff] %v12839_v29  ;;  %v12842_v62 = vadd.f32 %v9072_v31, %v12640_v13  ;;  %v12845_v24 = vadd.f32 %v5565_v58, %v12643_v43  ;;  %v14041_v43 = vld [vmem:[#allocation44_spill] sm:$0xff] }
 0x2e2   : > { %v5351_v5 = vpop.f32.mrf.mxu0  ;;  %v9111_v18 = vpop.f32.mrf.mxu1 }
 0x2e3   : > { %14035 = vst [vmem:[#allocation39_spill] sm:$0xff] %v12842_v62  ;;  %14036 = vst [vmem:[#allocation64_spill] sm:$0xff] %v12845_v24  ;;  %v12848_v32 = vadd.f32 %v5351_v5, %v12648_v61  ;;  %v12851_v48 = vadd.f32 %v9111_v18, %v12651_v26  ;;  %v14043_v24 = vld [vmem:[#allocation12_spill] sm:$0xff]  ;;  %v14045_v26 = vld [vmem:[#allocation58_spill] sm:$0xff] }
 0x2e4   : > { %v9073_v55 = vpop.f32.mrf.mxu0  ;;  %v5568_v37 = vpop.f32.mrf.mxu1 }
 0x2e5   : > { %14037 = vst [vmem:[#allocation67_spill] sm:$0xff] %v12848_v32  ;;  %14038 = vst [vmem:[#allocation18_spill] sm:$0xff] %v12851_v48  ;;  %v12854_v16 = vadd.f32 %v9073_v55, %v12654_v44  ;;  %v12857_v59 = vadd.f32 %v5568_v37, %v12657_v39  ;;  %v14047_v48 = vld [vmem:[#allocation59_spill] sm:$0xff] }
 0x2e6   : > { %v5354_v13 = vpop.f32.mrf.mxu0  ;;  %v9114_v31 = vpop.f32.mrf.mxu1 }
 0x2e7   : > { %14039 = vst [vmem:[#allocation33_spill] sm:$0xff] %v12854_v16  ;;  %14040 = vst [vmem:[#allocation25_spill] sm:$0xff] %v12857_v59  ;;  %v12860_v58 = vadd.f32 %v5354_v13, %v14041_v43  ;;  %v12863_v62 = vadd.f32 %v9114_v31, %v14043_v24  ;;  %v14052_v31 = vld [vmem:[#allocation28_spill] sm:$0xff] }
 0x2e8   : > { %v9076_v61 = vpop.f32.mrf.mxu0  ;;  %v5581_v5 = vpop.f32.mrf.mxu1 }
 0x2e9   : > { %14042 = vst [vmem:[#allocation26_spill] sm:$0xff] %v12860_v58  ;;  %14044 = vst [vmem:[#allocation27_spill] sm:$0xff] %v12863_v62  ;;  %v12866_v18 = vadd.f32 %v9076_v61, %v14045_v26  ;;  %v12869_v32 = vadd.f32 %v5581_v5, %v14047_v48 }
 0x2ea   : > { %v5367_v44 = vpop.f32.mrf.mxu0  ;;  %v9115_v55 = vpop.f32.mrf.mxu1 }
 0x2eb   : > { %14046 = vst [vmem:[#allocation40_spill] sm:$0xff] %v12866_v18  ;;  %14048 = vst [vmem:[#allocation30_spill] sm:$0xff] %v12869_v32  ;;  %v12872_v39 = vadd.f32 %v5367_v44, %v12678_v52  ;;  %v12875_v37 = vadd.f32 %v9115_v55, %v12681_v42 }
 0x2ec   : > { %v9077_v13 = vpop.f32.mrf.mxu0  ;;  %v5584_v43 = vpop.f32.mrf.mxu1 }
 0x2ed   : > { %14049 = vst [vmem:[#allocation35_spill] sm:$0xff] %v12872_v39  ;;  %14050 = vst [vmem:[#allocation36_spill] sm:$0xff] %v12875_v37  ;;  %v12878_v24 = vadd.f32 %v9077_v13, %v12684_v38  ;;  %v12881_v62 = vadd.f32 %v5584_v43, %v14052_v31 }
 0x2ee   : > { %v5370_v61 = vpop.f32.mrf.mxu0  ;;  %v12883_v26 = vpop.f32.mrf.mxu1 }
 0x2ef   : > { %14051 = vst [vmem:[#allocation37_spill] sm:$0xff] %v12878_v24  ;;  %14053 = vst [vmem:[#allocation38_spill] sm:$0xff] %v12881_v62  ;;  %v12886_v48 = vadd.f32 %v5370_v61, %v12690_v17 }
 0x2f0   : > { %v9080_v5 = vpop.f32.mrf.mxu0  ;;  %v6393_v52 = vpop.f32.mrf.mxu1 }
 0x2f1   : > { %14054 = vst [vmem:[#allocation45_spill] sm:$0xff] %v12886_v48  ;;  %v12889_v44 = vadd.f32 %v9080_v5, %v12698_v36 }
 0x2f2   : > { %v5383_v42 = vpop.f32.mrf.mxu0  ;;  %v9155_v55 = vpop.f32.mrf.mxu1 }
 0x2f3   : > { %14055 = vst [vmem:[#allocation60_spill] sm:$0xff] %v12889_v44  ;;  %v12892_v37 = vadd.f32 %v5383_v42, %v12704_v9 }
 0x2f4   : > { %v9081_v38 = vpop.f32.mrf.mxu0  ;;  %v6396_v13 = vpop.f32.mrf.mxu1 }
 0x2f5   : > { %14056 = vst [vmem:[#allocation46_spill] sm:$0xff] %v12892_v37  ;;  %v12895_v43 = vadd.f32 %v9081_v38, %v12710_v4 }
 0x2f6   : > { %v5386_v31 = vpop.f32.mrf.mxu0  ;;  %v9158_v62 = vpop.f32.mrf.mxu1 }
 0x2f7   : > { %14057 = vst [vmem:[#allocation47_spill] sm:$0xff] %v12895_v43  ;;  %v12898_v17 = vadd.f32 %v5386_v31, %v12716_v57 }
 0x2f8   : > { %v9120_v61 = vpop.f32.mrf.mxu0  ;;  %v6409_v48 = vpop.f32.mrf.mxu1 }
 0x2f9   : > { %14058 = vst [vmem:[#allocation63_spill] sm:$0xff] %v12898_v17 }
 0x2fa   : > { %v6195_v24 = vpop.f32.mrf.mxu0  ;;  %v9159_v36 = vpop.f32.mrf.mxu1 }
 0x2fc   : > { %v9121_v5 = vpop.f32.mrf.mxu0  ;;  %v6412_v44 = vpop.f32.mrf.mxu1 }
 0x2fe   : > { %v6198_v39 = vpop.f32.mrf.mxu0  ;;  %v9162_v32 = vpop.f32.mrf.mxu1 }
 0x300   : > { %v9124_v9 = vpop.f32.mrf.mxu0  ;;  %v6425_v42 = vpop.f32.mrf.mxu1 }
 0x302   : > { %v6211_v37 = vpop.f32.mrf.mxu0  ;;  %v9163_v18 = vpop.f32.mrf.mxu1 }
 0x304   : > { %v9125_v58 = vpop.f32.mrf.mxu0  ;;  %v6428_v4 = vpop.f32.mrf.mxu1 }
 0x306   : > { %v6214_v38 = vpop.f32.mrf.mxu0  ;;  %v9166_v43 = vpop.f32.mrf.mxu1 }
 0x308   : > { %v9128_v59 = vpop.f32.mrf.mxu0  ;;  %v6441_v16 = vpop.f32.mrf.mxu1 }
 0x30a   : > { %v12900_v57 = vpop.f32.mrf.mxu0  ;;  %v12902_v31 = vpop.f32.mrf.mxu1 }
 0x30c   : > { %v12904_v17 = vpop.f32.mrf.mxu0  ;;  %v12906_v29 = vpop.f32.mrf.mxu1 }
 0x30d   : > { %14059 = vst [vmem:[#allocation48_spill] sm:$0xff] %v12906_v29 }
 0x30e   : > { %v12908_v27 = vpop.f32.mrf.mxu0  ;;  %v12910_v7 = vpop.f32.mrf.mxu1 }
 0x30f   : > { %14060 = vst [vmem:[#allocation11_spill] sm:$0xff] %v12908_v27  ;;  %14061 = vst [vmem:[#allocation66_spill] sm:$0xff] %v12910_v7 }
 0x310   : > { %v12912_v10 = vpop.f32.mrf.mxu0  ;;  %v12914_v28 = vpop.f32.mrf.mxu1 }
 0x311   : > { %14062 = vst [vmem:[#allocation62_spill] sm:$0xff] %v12912_v10  ;;  %14063 = vst [vmem:[#allocation68_spill] sm:$0xff] %v12914_v28 }
 0x312   : > { %v12916_v56 = vpop.f32.mrf.mxu0  ;;  %v12918_v25 = vpop.f32.mrf.mxu1 }
 0x313   : > { %14064 = vst [vmem:[#allocation6_spill] sm:$0xff] %v12916_v56  ;;  %14065 = vst [vmem:[#allocation14_spill] sm:$0xff] %v12918_v25 }
 0x314   : > { %v12920_v60 = vpop.f32.mrf.mxu0  ;;  %v12922_v35 = vpop.f32.mrf.mxu1 }
 0x315   : > { %14066 = vst [vmem:[#allocation71_spill] sm:$0xff] %v12920_v60  ;;  %14067 = vst [vmem:[#allocation61_spill] sm:$0xff] %v12922_v35 }
 0x316   : > { %v12924_v0 = vpop.f32.mrf.mxu0  ;;  %v12926_v12 = vpop.f32.mrf.mxu1 }
 0x317   : > { %14068 = vst [vmem:[#allocation10_spill] sm:$0xff] %v12924_v0  ;;  %14069 = vst [vmem:[#allocation17_spill] sm:$0xff] %v12926_v12 }
 0x318   : > { %v12928_v29 = vpop.f32.mrf.mxu0  ;;  %v12930_v27 = vpop.f32.mrf.mxu1 }
 0x319   : > { %14070 = vst [vmem:[#allocation49_spill] sm:$0xff] %v12928_v29  ;;  %14071 = vst [vmem:[#allocation69_spill] sm:$0xff] %v12930_v27 }
 0x31a   : > { %v12932_v7 = vpop.f32.mrf.mxu0  ;;  %v12934_v10 = vpop.f32.mrf.mxu1 }
 0x31b   : > { %14072 = vst [vmem:[#allocation31_spill] sm:$0xff] %v12932_v7  ;;  %14073 = vst [vmem:[#allocation50_spill] sm:$0xff] %v12934_v10 }
 0x31c   : > { %v12936_v28 = vpop.f32.mrf.mxu0  ;;  %v12938_v56 = vpop.f32.mrf.mxu1 }
 0x31d   : > { %14074 = vst [vmem:[#allocation3_spill] sm:$0xff] %v12936_v28  ;;  %14075 = vst [vmem:[#allocation51_spill] sm:$0xff] %v12938_v56 }
 0x31e   : > { %v12940_v25 = vpop.f32.mrf.mxu0  ;;  %v12942_v60 = vpop.f32.mrf.mxu1 }
 0x31f   : > { %14076 = vst [vmem:[#allocation52_spill] sm:$0xff] %v12940_v25 }
 0x320   : > { %v12944_v35 = vpop.f32.mrf.mxu0  ;;  %v12946_v0 = vpop.f32.mrf.mxu1 }
 0x321   : > { %14077 = vst [vmem:[#allocation53_spill] sm:$0xff] %v12944_v35  ;;  %14078 = vst [vmem:[#allocation54_spill] sm:$0xff] %v12946_v0  ;;  %v6522_v35 = vadd.f32 %v12883_v26, %v12693_v23  ;;  %v6520_v0 = vadd.f32 %v6393_v52, %v12701_v22  ;;  %v12985_v23 = vadd.f32 %v6195_v24, %v12728_v53  ;;  %v14092_v26 = vld [vmem:[#allocation62_spill] sm:$0xff]  ;;  %v14093_v52 = vld [vmem:[#allocation7_spill] sm:$0xff] }
 0x322   : > { %v12948_v12 = vpop.f32.mrf.mxu0  ;;  %v12950_v29 = vpop.f32.mrf.mxu1  ;;  %v12988_v22 = vadd.f32 %v9159_v36, %v12731_v6  ;;  %v13006_v53 = vadd.f32 %v6425_v42, %v12749_v30  ;;  %v13028_v30 = vadd.f32 %v9166_v43, %v12767_v40  ;;  %v13053_v40 = vadd.f32 %v12904_v17, %v12782_v47  ;;  %v13074_v47 = vld [vmem:[%s13560_s6] ss:$0 sm:$0xff]  ;;  %v14096_v43 = vld [vmem:[#allocation6_spill] sm:$0xff] }
 0x323   : > { %14079 = vst [vmem:[#allocation65_spill] sm:$0xff] %v12948_v12  ;;  %14080 = vst [vmem:[#allocation55_spill] sm:$0xff] %v12950_v29  ;;  %v6523_v12 = vadd.f32 %v9155_v55, %v12707_v21  ;;  %v12969_v29 = vadd.f32 %v6396_v13, %v12713_v8  ;;  %v12991_v21 = vadd.f32 %v9121_v5, %v12734_v3  ;;  %v14095_v13 = vld [vmem:[#allocation9_spill] sm:$0xff]  ;;  %v14097_v5 = vld [vmem:[#allocation23_spill] sm:$0xff] }
 0x324   : > { %v12952_v27 = vpop.f32.mrf.mxu0  ;;  %v12954_v7 = vpop.f32.mrf.mxu1  ;;  %v12994_v8 = vadd.f32 %v6412_v44, %v12737_v20  ;;  %v13013_v3 = vadd.f32 %v6211_v37, %v12752_v45  ;;  %v13016_v20 = vadd.f32 %v9163_v18, %v12755_v50  ;;  %v13034_v45 = vadd.f32 %v6441_v16, %v12773_v34  ;;  %v14086_v34 = vld [vmem:[#allocation48_spill] sm:$0xff]  ;;  %v14090_v37 = vld [vmem:[#allocation66_spill] sm:$0xff] }
 0x325   : > { %14081 = vst [vmem:[#allocation56_spill] sm:$0xff] %v12954_v7  ;;  %v12972_v7 = vadd.f32 %v9158_v62, %v12719_v63  ;;  %v12997_v63 = vadd.f32 %v6198_v39, %v12740_v1  ;;  %v13019_v1 = vadd.f32 %v9125_v58, %v12758_v15  ;;  %v13041_v15 = vld [vmem:[%s13559_s5] ss:$0 sm:$0xff]  ;;  %v13057_v16 = vadd.f32 %v14086_v34, %v12785_v2  ;;  %v14088_v58 = vld [vmem:[#allocation11_spill] sm:$0xff] }
 0x326   : > { %v12956_v10 = vpop.f32.mrf.mxu0  ;;  %v12958_v28 = vpop.f32.mrf.mxu1  ;;  %v14094_v44 = vld [vmem:[#allocation68_spill] sm:$0xff]  ;;  %v13084_v17 = vadd.f32 %v14096_v43, %v14095_v13  ;;  %v14108_v13 = vld [vmem:[#allocation29_spill] sm:$0xff] }
 0x327   : > { %14082 = vst [vmem:[#allocation72_spill] sm:$0xff] %v12956_v10  ;;  %14083 = vst [vmem:[#allocation42_spill] sm:$0xff] %v12958_v28  ;;  %v12975_v10 = vadd.f32 %v9120_v61, %v12722_v33  ;;  %v13000_v33 = vadd.f32 %v9162_v32, %v12743_v14  ;;  %v13022_v14 = vadd.f32 %v6428_v4, %v12761_v54  ;;  %v14099_v4 = vld [vmem:[#allocation4_spill] sm:$0xff]  ;;  %v14109_v43 = vld [vmem:[#allocation49_spill] sm:$0xff] }
 0x328   : > { %v12960_v56 = vpop.f32.mrf.mxu0  ;;  %v12962_v25 = vpop.f32.mrf.mxu1  ;;  %v13031_v32 = vadd.f32 %v9128_v59, %v12770_v51  ;;  %v13045_v54 = vadd.f32 %v12900_v57, %v12776_v11  ;;  %v14087_v59 = vld [vmem:[#allocation32_spill] sm:$0xff]  ;;  %v14089_v11 = vld [vmem:[#allocation41_spill] sm:$0xff]  ;;  %v13080_v55 = vadd.f32 %v14094_v44, %v14093_v52 }
 0x329   : > { %14084 = vst [vmem:[#allocation43_spill] sm:$0xff] %v12960_v56  ;;  %14085 = vst [vmem:[#allocation70_spill] sm:$0xff] %v12962_v25  ;;  %v12978_v56 = vadd.f32 %v6409_v48, %v12725_v19  ;;  %v13003_v19 = vadd.f32 %v9124_v9, %v12746_v46  ;;  %v13025_v46 = vadd.f32 %v6214_v38, %v12764_v49  ;;  %v14098_v9 = vld [vmem:[#allocation14_spill] sm:$0xff]  ;;  %v14100_v38 = vld [vmem:[#allocation71_spill] sm:$0xff] }
 0x32a   : > { %v12980_v25 = vpop.f32.mrf.mxu0  ;;  %v12982_v28 = vpop.f32.mrf.mxu1  ;;  %v13049_v49 = vadd.f32 %v12902_v31, %v12779_v41  ;;  %v13061_v39 = vadd.f32 %v14088_v58, %v14087_v59  ;;  %v13065_v24 = vadd.f32 %v14090_v37, %v14089_v11  ;;  %v14091_v41 = vld [vmem:[#allocation8_spill] sm:$0xff]  ;;  %v13089_v42 = vadd.f32 %v14098_v9, %v14097_v5  ;;  %v14101_v31 = vld [vmem:[#allocation5_spill] sm:$0xff]  ;;  %v14104_v58 = vld [vmem:[#allocation10_spill] sm:$0xff] }
 0x32b   : > { %v13069_v48 = vadd.f32 %v14092_v26, %v14091_v41  ;;  %v13093_v57 = vadd.f32 %v14100_v38, %v14099_v4  ;;  %v14103_v59 = vld [vmem:[#allocation13_spill] sm:$0xff]  ;;  %v14106_v37 = vld [vmem:[#allocation24_spill] sm:$0xff]  ;;  %v13120_v5 = vadd.f32 %v14109_v43, %v14108_v13  ;;  %v14110_v9 = vld [vmem:[#allocation15_spill] sm:$0xff] }
 0x32c   : > { %v13008_v6 = vpop.f32.mrf.mxu0  ;;  %v13010_v62 = vpop.f32.mrf.mxu1  ;;  %v13101_v11 = vadd.f32 %v14104_v58, %v14103_v59  ;;  %v14107_v41 = vld [vmem:[#allocation17_spill] sm:$0xff]  ;;  %v14114_v58 = vld [vmem:[#allocation19_spill] sm:$0xff] }
 0x32d   : > { %v13114_v26 = vadd.f32 %v14107_v41, %v14106_v37  ;;  %v14111_v4 = vld [vmem:[#allocation69_spill] sm:$0xff]  ;;  %v14115_v37 = vld [vmem:[#allocation50_spill] sm:$0xff] }
 0x32e   : > { %v13036_v50 = vpop.f32.mrf.mxu0  ;;  %v9222_v18 = vpop.f32.mrf.mxu1  ;;  %v13124_v38 = vadd.f32 %v14111_v4, %v14110_v9  ;;  %v13132_v41 = vadd.f32 %v14115_v37, %v14114_v58  ;;  %v14123_v58 = vld [vmem:[#allocation34_spill] sm:$0xff]  ;;  %v14124_v37 = vld [vmem:[#allocation52_spill] sm:$0xff] }
 0x32f   : > { %v7190_v51 = vadd.f32 %v9222_v18, %v6522_v35  ;;  %v14102_v18 = vld [vmem:[#allocation61_spill] sm:$0xff] }
 0x330   : > { %v13076_v35 = vpop.f32.mrf.mxu0  ;;  %v7061_v2 = vpop.f32.mrf.mxu1  ;;  %v13097_v34 = vadd.f32 %v14102_v18, %v14101_v31  ;;  %v14112_v31 = vld [vmem:[#allocation16_spill] sm:$0xff]  ;;  %v14113_v18 = vld [vmem:[#allocation31_spill] sm:$0xff]  ;;  %14116 = vst [vmem:[#allocation44_spill] sm:$0xff] %v13132_v41  ;;  %v14125_v41 = vld [vmem:[#allocation22_spill] sm:$0xff] }
 0x331   : > { %v7500_v61 = vmul.f32 %v13041_v15, %v7190_v51  ;;  %v7188_v36 = vadd.f32 %v7061_v2, %v6520_v0  ;;  %v13128_v59 = vadd.f32 %v14113_v18, %v14112_v31  ;;  %v14121_v31 = vld [vmem:[#allocation21_spill] sm:$0xff]  ;;  %v14122_v18 = vld [vmem:[#allocation51_spill] sm:$0xff] }
 0x332   : > { %v13110_v0 = vpop.f32.mrf.mxu0  ;;  %v9223_v51 = vpop.f32.mrf.mxu1 }
 0x333   : > { %14105 = vst [vmem:[#allocation57_spill] sm:$0xff] %v13110_v0  ;;  %v7539_v2 = vadd.f32 %v13074_v47, %v7500_v61  ;;  %v7498_v52 = vmul.f32 %v13041_v15, %v7188_v36  ;;  %v7191_v44 = vadd.f32 %v9223_v51, %v6523_v12  ;;  %v14118_v36 = vld [vmem:[#allocation20_spill] sm:$0xff]  ;;  %v14119_v51 = vld [vmem:[#allocation3_spill] sm:$0xff]  ;;  %v13147_v0 = vadd.f32 %v14122_v18, %v14121_v31 }
 0x334   : > { %v13134_v61 = vpop.f32.mrf.mxu0  ;;  %v7064_v12 = vpop.f32.mrf.mxu1  ;;  %v13138_v13 = vadd.f32 %v14119_v51, %v14118_v36  ;;  %v13155_v36 = vadd.f32 %v12942_v60, %v14125_v41  ;;  %v14127_v51 = vld [vmem:[#allocation39_spill] sm:$0xff] }
 0x335   : > { %14117 = vst [vmem:[#allocation12_spill] sm:$0xff] %v13134_v61  ;;  %7572 = vst.msk [vmem:[%s13108_s20 + $0x10] sm:$0xff] %vm7569_vm0, %v7539_v2  ;;  %v7537_v43 = vadd.f32 %v13074_v47, %v7498_v52  ;;  %v7501_v9 = vmul.f32 %v13041_v15, %v7191_v44  ;;  %v7189_v4 = vadd.f32 %v7064_v12, %v12969_v29  ;;  %v14128_v2 = vld [vmem:[#allocation53_spill] sm:$0xff]  ;;  %v14131_v44 = vld [vmem:[#allocation64_spill] sm:$0xff] }
 0x336   : > { %14120 = vst [vmem:[#allocation58_spill] sm:$0xff] %v13138_v13  ;;  %v13151_v61 = vadd.f32 %v14124_v37, %v14123_v58  ;;  %14126 = vst [vmem:[#allocation59_spill] sm:$0xff] %v13155_v36  ;;  %v13159_v13 = vadd.f32 %v14128_v2, %v14127_v51  ;;  %v13161_v52 = vpop.f32.mrf.mxu0  ;;  %v9226_v29 = vpop.f32.mrf.mxu1  ;;  %v14132_v12 = vld [vmem:[#allocation54_spill] sm:$0xff]  ;;  %v14134_v41 = vld [vmem:[#allocation67_spill] sm:$0xff] }
 0x337   : > { %14130 = vst [vmem:[#allocation48_spill] sm:$0xff] %v13161_v52  ;;  %v13165_v31 = vadd.f32 %v14132_v12, %v14131_v44  ;;  %7570 = vst.msk [vmem:[%s13108_s20] sm:$0xff] %vm7569_vm0, %v7537_v43  ;;  %v7540_v18 = vadd.f32 %v13074_v47, %v7501_v9  ;;  %v7499_v58 = vmul.f32 %v13041_v15, %v7189_v4  ;;  %v14135_v37 = vld [vmem:[#allocation65_spill] sm:$0xff]  ;;  %v14137_v2 = vld [vmem:[#allocation18_spill] sm:$0xff] }
 0x338   : > { %14129 = vst [vmem:[#allocation28_spill] sm:$0xff] %v13159_v13  ;;  %v7194_v60 = vadd.f32 %v9226_v29, %v12972_v7  ;;  %v13174_v51 = vadd.f32 %v14135_v37, %v14134_v41  ;;  %v14138_v13 = vld [vmem:[#allocation55_spill] sm:$0xff]  ;;  %v14140_v36 = vld [vmem:[#allocation33_spill] sm:$0xff]  ;;  %v14143_v43 = vld [vmem:[#allocation56_spill] sm:$0xff]  ;;  %v9188_v9 = vpop.f32.mrf.mxu0  ;;  %v7077_v4 = vpop.f32.mrf.mxu1 }
 0x339   : > { %14133 = vst [vmem:[#allocation32_spill] sm:$0xff] %v13165_v31  ;;  %v13178_v52 = vadd.f32 %v14138_v13, %v14137_v2  ;;  %v13182_v44 = vadd.f32 %v12952_v27, %v14140_v36  ;;  %v14142_v12 = vld [vmem:[#allocation25_spill] sm:$0xff]  ;;  %v13191_v7 = vld [vmem:[%s13556_s2] ss:$0 sm:$0xff]  ;;  %7573 = vst.msk [vmem:[%s13108_s20 + $0x18] sm:$0xff] %vm7569_vm0, %v7540_v18  ;;  %v7538_v13 = vadd.f32 %v13074_v47, %v7499_v58 }
 0x33a   : > { %14136 = vst [vmem:[#allocation11_spill] sm:$0xff] %v13174_v51  ;;  %v13186_v31 = vadd.f32 %v14143_v43, %v14142_v12  ;;  %v7504_v27 = vmul.f32 %v13041_v15, %v7194_v60  ;;  %v6992_v36 = vadd.f32 %v9188_v9, %v12975_v10  ;;  %v7192_v29 = vadd.f32 %v7077_v4, %v12978_v56  ;;  %v14145_v41 = vld [vmem:[#allocation26_spill] sm:$0xff]  ;;  %v14146_v37 = vld [vmem:[#allocation72_spill] sm:$0xff]  ;;  %v14147_v12 = vld [vmem:[#allocation27_spill] sm:$0xff]  ;;  %v6863_v10 = vpop.f32.mrf.mxu0  ;;  %v9227_v9 = vpop.f32.mrf.mxu1 }
 0x33b   : > { %14139 = vst [vmem:[#allocation41_spill] sm:$0xff] %v13178_v52  ;;  %14141 = vst [vmem:[#allocation66_spill] sm:$0xff] %v13182_v44  ;;  %v13201_v2 = vadd.f32 %v14146_v37, %v14145_v41  ;;  %v14148_v43 = vld [vmem:[#allocation42_spill] sm:$0xff]  ;;  %v14149_v44 = vld [vmem:[#allocation40_spill] sm:$0xff]  ;;  %v6990_v41 = vadd.f32 %v6863_v10, %v12985_v23 }
 0x33c   : > { %14144 = vst [vmem:[#allocation8_spill] sm:$0xff] %v13186_v31  ;;  %v13205_v31 = vadd.f32 %v14148_v43, %v14147_v12  ;;  %v14150_v52 = vld [vmem:[#allocation43_spill] sm:$0xff]  ;;  %v14151_v18 = vld [vmem:[#allocation30_spill] sm:$0xff]  ;;  %v13218_v56 = vld [vmem:[%s13557_s3] ss:$0 sm:$0xff]  ;;  %v7543_v4 = vadd.f32 %v13074_v47, %v7504_v27  ;;  %v9189_v27 = vpop.f32.mrf.mxu0 }
 0x33d   : > { %v13209_v51 = vadd.f32 %v14150_v52, %v14149_v44  ;;  %v14152_v58 = vld [vmem:[#allocation70_spill] sm:$0xff]  ;;  %7571 = vst.msk [vmem:[%s13108_s20 + $0x8] sm:$0xff] %vm7569_vm0, %v7538_v13  ;;  %v7229_v52 = vmul.f32 %v13191_v7, %v6992_v36  ;;  %v7502_v44 = vmul.f32 %v13041_v15, %v7192_v29  ;;  %v14154_v37 = vld [vmem:[#allocation35_spill] sm:$0xff]  ;;  %v14155_v43 = vld [vmem:[#allocation36_spill] sm:$0xff]  ;;  %v7195_v13 = vadd.f32 %v9227_v9, %v12988_v22  ;;  %v7080_v36 = vpop.f32.mrf.mxu1 }
 0x33e   : > { %v13213_v60 = vadd.f32 %v14152_v58, %v14151_v18  ;;  %v13228_v12 = vadd.f32 %v12980_v25, %v14154_v37  ;;  %v13232_v18 = vadd.f32 %v12982_v28, %v14155_v43  ;;  %v14156_v58 = vld [vmem:[#allocation37_spill] sm:$0xff]  ;;  %7576 = vst.msk [vmem:[%s13108_s20 + $0x30] sm:$0xff] %vm7569_vm0, %v7543_v4  ;;  %v7227_v29 = vmul.f32 %v13191_v7, %v6990_v41  ;;  %v14157_v10 = vld [vmem:[#allocation38_spill] sm:$0xff]  ;;  %v6866_v43 = vpop.f32.mrf.mxu0  ;;  %v14159_v41 = vld [vmem:[#allocation60_spill] sm:$0xff] }
 0x33f   : > { %v7268_v23 = vadd.f32 %v13218_v56, %v7229_v52  ;;  %v7541_v25 = vadd.f32 %v13074_v47, %v7502_v44  ;;  %v6993_v28 = vadd.f32 %v9189_v27, %v12991_v21  ;;  %v14158_v37 = vld [vmem:[#allocation45_spill] sm:$0xff]  ;;  %v7505_v9 = vmul.f32 %v13041_v15, %v7195_v13  ;;  %v9230_v52 = vpop.f32.mrf.mxu1 }
 0x340   : > { %14153 = vst [vmem:[#allocation62_spill] sm:$0xff] %v13213_v60  ;;  %v13236_v60 = vadd.f32 %v13008_v6, %v14156_v58  ;;  %v13248_v6 = vadd.f32 %v13010_v62, %v14157_v10  ;;  %v13252_v22 = vadd.f32 %v13036_v50, %v14158_v37  ;;  %v7193_v4 = vadd.f32 %v7080_v36, %v12994_v8  ;;  %v9192_v36 = vpop.f32.mrf.mxu0 }
 0x341   : > { %v7300_v58 = vmax.f32 %v7268_v23, 0.0  ;;  %7574 = vst.msk [vmem:[%s13108_s20 + $0x20] sm:$0xff] %vm7569_vm0, %v7541_v25  ;;  %v7266_v21 = vadd.f32 %v13218_v56, %v7227_v29  ;;  %v7230_v44 = vmul.f32 %v13191_v7, %v6993_v28  ;;  %v6991_v62 = vadd.f32 %v6866_v43, %v12997_v63  ;;  %v7093_v23 = vpop.f32.mrf.mxu1 }
 0x342   : > { %v13263_v50 = vadd.f32 %v13076_v35, %v14159_v41  ;;  %v7544_v8 = vadd.f32 %v13074_v47, %v7505_v9  ;;  %v7503_v13 = vmul.f32 %v13041_v15, %v7193_v4  ;;  %v7198_v27 = vadd.f32 %v9230_v52, %v13000_v33  ;;  %v6879_v9 = vpop.f32.mrf.mxu0 }
 0x343   : > { %v8304_v25 = vpack.c.bf16 %v7300_v58, %v7300_v58  ;;  %v7298_v63 = vmax.f32 %v7266_v21, 0.0  ;;  %v7269_v35 = vadd.f32 %v13218_v56, %v7230_v44  ;;  %v7228_v29 = vmul.f32 %v13191_v7, %v6991_v62  ;;  %v9231_v4 = vpop.f32.mrf.mxu1 }
 0x344   : > { %7577 = vst.msk [vmem:[%s13108_s20 + $0x38] sm:$0xff] %vm7569_vm0, %v7544_v8  ;;  %v7542_v28 = vadd.f32 %v13074_v47, %v7503_v13  ;;  %v7508_v10 = vmul.f32 %v13041_v15, %v7198_v27  ;;  %v6996_v37 = vadd.f32 %v9192_v36, %v13003_v19  ;;  %v7196_v33 = vadd.f32 %v7093_v23, %v13006_v53  ;;  %v9193_v41 = vpop.f32.mrf.mxu0 }
 0x345   : > { %7461 = vst.msk [vmem:[%s13268_s26 + $0x8] sm:$0xf] %vm7458_vm1, %v8304_v25  ;;  %v8302_v43 = vpack.c.bf16 %v7298_v63, %v7298_v63  ;;  %v7301_v52 = vmax.f32 %v7269_v35, 0.0  ;;  %v7267_v58 = vadd.f32 %v13218_v56, %v7228_v29  ;;  %v6994_v21 = vadd.f32 %v6879_v9, %v13013_v3  ;;  %v7096_v8 = vpop.f32.mrf.mxu1 }
 0x346   : > { %7575 = vst.msk [vmem:[%s13108_s20 + $0x28] sm:$0xff] %vm7569_vm0, %v7542_v28  ;;  %v7547_v44 = vadd.f32 %v13074_v47, %v7508_v10  ;;  %v7233_v19 = vmul.f32 %v13191_v7, %v6996_v37  ;;  %v7506_v62 = vmul.f32 %v13041_v15, %v7196_v33  ;;  %v7199_v53 = vadd.f32 %v9231_v4, %v13016_v20  ;;  %v6882_v35 = vpop.f32.mrf.mxu0 }
 0x347   : > { %7459 = vst.msk [vmem:[%s13268_s26] sm:$0xf] %vm7458_vm1, %v8302_v43  ;;  %v8305_v13 = vpack.c.bf16 %v7301_v52, %v7301_v52  ;;  %v7299_v27 = vmax.f32 %v7267_v58, 0.0  ;;  %v7231_v3 = vmul.f32 %v13191_v7, %v6994_v21  ;;  %v6997_v36 = vadd.f32 %v9193_v41, %v13019_v1  ;;  %v9234_v29 = vpop.f32.mrf.mxu1 }
 0x348   : > { %7580 = vst.msk [vmem:[%s13108_s20 + $0x50] sm:$0xff] %vm7569_vm0, %v7547_v44  ;;  %v7272_v23 = vadd.f32 %v13218_v56, %v7233_v19  ;;  %v7545_v25 = vadd.f32 %v13074_v47, %v7506_v62  ;;  %v7509_v63 = vmul.f32 %v13041_v15, %v7199_v53  ;;  %v7197_v20 = vadd.f32 %v7096_v8, %v13022_v14  ;;  %v9196_v43 = vpop.f32.mrf.mxu0 }
 0x349   : > { %7462 = vst.msk [vmem:[%s13268_s26 + $0xc] sm:$0xf] %vm7458_vm1, %v8305_v13  ;;  %v8303_v28 = vpack.c.bf16 %v7299_v27, %v7299_v27  ;;  %v7270_v10 = vadd.f32 %v13218_v56, %v7231_v3  ;;  %v7234_v1 = vmul.f32 %v13191_v7, %v6997_v36  ;;  %v6995_v37 = vadd.f32 %v6882_v35, %v13025_v46  ;;  %v7109_v52 = vpop.f32.mrf.mxu1 }
 0x34a   : > { %v7304_v33 = vmax.f32 %v7272_v23, 0.0  ;;  %7578 = vst.msk [vmem:[%s13108_s20 + $0x40] sm:$0xff] %vm7569_vm0, %v7545_v25  ;;  %v7548_v9 = vadd.f32 %v13074_v47, %v7509_v63  ;;  %v7507_v4 = vmul.f32 %v13041_v15, %v7197_v20  ;;  %v7202_v14 = vadd.f32 %v9234_v29, %v13028_v30  ;;  %v6895_v41 = vpop.f32.mrf.mxu0 }
 0x34b   : > { %7460 = vst.msk [vmem:[%s13268_s26 + $0x4] sm:$0xf] %vm7458_vm1, %v8303_v28  ;;  %v7302_v58 = vmax.f32 %v7270_v10, 0.0  ;;  %v7273_v21 = vadd.f32 %v13218_v56, %v7234_v1  ;;  %v7232_v46 = vmul.f32 %v13191_v7, %v6995_v37  ;;  %v7000_v44 = vadd.f32 %v9196_v43, %v13031_v32  ;;  %v9235_v8 = vpop.f32.mrf.mxu1 }
 0x34c   : > { %v8308_v19 = vpack.c.bf16 %v7304_v33, %v7304_v33  ;;  %7581 = vst.msk [vmem:[%s13108_s20 + $0x58] sm:$0xff] %vm7569_vm0, %v7548_v9  ;;  %v7546_v62 = vadd.f32 %v13074_v47, %v7507_v4  ;;  %v7512_v30 = vmul.f32 %v13041_v15, %v7202_v14  ;;  %v7200_v53 = vadd.f32 %v7109_v52, %v13034_v45  ;;  %v9197_v63 = vpop.f32.mrf.mxu0 }
 0x34d   : > { %v8306_v13 = vpack.c.bf16 %v7302_v58, %v7302_v58  ;;  %v7305_v27 = vmax.f32 %v7273_v21, 0.0  ;;  %v7271_v3 = vadd.f32 %v13218_v56, %v7232_v46  ;;  %v7237_v36 = vmul.f32 %v13191_v7, %v7000_v44  ;;  %v7112_v20 = vpop.f32.mrf.mxu1 }
 0x34e   : > { %7465 = vst.msk [vmem:[%s13268_s26 + $0x18] sm:$0xf] %vm7458_vm1, %v8308_v19  ;;  %v7551_v32 = vadd.f32 %v13074_v47, %v7512_v30  ;;  %v7510_v23 = vmul.f32 %v13041_v15, %v7200_v53  ;;  %v6998_v25 = vadd.f32 %v6895_v41, %v13045_v54  ;;  %v7203_v45 = vadd.f32 %v9235_v8, %v13049_v49  ;;  %v6898_v33 = vpop.f32.mrf.mxu0 }
 0x34f   : > { %7579 = vst.msk [vmem:[%s13108_s20 + $0x48] sm:$0xff] %vm7569_vm0, %v7546_v62  ;;  %v8309_v35 = vpack.c.bf16 %v7305_v27, %v7305_v27  ;;  %v7303_v29 = vmax.f32 %v7271_v3, 0.0  ;;  %v7276_v28 = vadd.f32 %v13218_v56, %v7237_v36  ;;  %v7001_v10 = vadd.f32 %v9197_v63, %v13053_v40  ;;  %v9238_v9 = vpop.f32.mrf.mxu1 }
 0x350   : > { %7463 = vst.msk [vmem:[%s13268_s26 + $0x10] sm:$0xf] %vm7458_vm1, %v8306_v13  ;;  %v7549_v1 = vadd.f32 %v13074_v47, %v7510_v23  ;;  %v7235_v54 = vmul.f32 %v13191_v7, %v6998_v25  ;;  %v7513_v37 = vmul.f32 %v13041_v15, %v7203_v45  ;;  %v7201_v49 = vadd.f32 %v7112_v20, %v13057_v16  ;;  %v9200_v46 = vpop.f32.mrf.mxu0 }
 0x351   : > { %7584 = vst.msk [vmem:[%s13108_s20 + $0x70] sm:$0xff] %vm7569_vm0, %v7551_v32  ;;  %v8307_v4 = vpack.c.bf16 %v7303_v29, %v7303_v29  ;;  %v7308_v14 = vmax.f32 %v7276_v28, 0.0  ;;  %v7238_v40 = vmul.f32 %v13191_v7, %v7001_v10  ;;  %v6999_v43 = vadd.f32 %v6898_v33, %v13061_v39  ;;  %v7125_v44 = vpop.f32.mrf.mxu1 }
 0x352   : > { %7466 = vst.msk [vmem:[%s13268_s26 + $0x1c] sm:$0xf] %vm7458_vm1, %v8309_v35  ;;  %v7274_v52 = vadd.f32 %v13218_v56, %v7235_v54  ;;  %v7552_v58 = vadd.f32 %v13074_v47, %v7513_v37  ;;  %v7511_v21 = vmul.f32 %v13041_v15, %v7201_v49  ;;  %v7206_v16 = vadd.f32 %v9238_v9, %v13065_v24  ;;  %v6911_v13 = vpop.f32.mrf.mxu0 }
 0x353   : > { %7582 = vst.msk [vmem:[%s13108_s20 + $0x60] sm:$0xff] %vm7569_vm0, %v7549_v1  ;;  %v8312_v19 = vpack.c.bf16 %v7308_v14, %v7308_v14  ;;  %v7277_v62 = vadd.f32 %v13218_v56, %v7238_v40  ;;  %v7236_v39 = vmul.f32 %v13191_v7, %v6999_v43  ;;  %v7004_v30 = vadd.f32 %v9200_v46, %v13069_v48  ;;  %v9239_v27 = vpop.f32.mrf.mxu1 }
 0x354   : > { %7464 = vst.msk [vmem:[%s13268_s26 + $0x14] sm:$0xf] %vm7458_vm1, %v8307_v4  ;;  %v7306_v53 = vmax.f32 %v7274_v52, 0.0  ;;  %v7550_v41 = vadd.f32 %v13074_v47, %v7511_v21  ;;  %v7516_v8 = vmul.f32 %v13041_v15, %v7206_v16  ;;  %v7204_v24 = vadd.f32 %v7125_v44, %v13080_v55  ;;  %v9201_v63 = vpop.f32.mrf.mxu0 }
 0x355   : > { %7585 = vst.msk [vmem:[%s13108_s20 + $0x78] sm:$0xff] %vm7569_vm0, %v7552_v58  ;;  %v7309_v3 = vmax.f32 %v7277_v62, 0.0  ;;  %v7275_v36 = vadd.f32 %v13218_v56, %v7236_v39  ;;  %v7241_v48 = vmul.f32 %v13191_v7, %v7004_v30  ;;  %v7002_v32 = vadd.f32 %v6911_v13, %v13084_v17  ;;  %v7128_v20 = vpop.f32.mrf.mxu1 }
 0x356   : > { %7469 = vst.msk [vmem:[%s13268_s26 + $0x28] sm:$0xf] %vm7458_vm1, %v8312_v19  ;;  %v8310_v23 = vpack.c.bf16 %v7306_v53, %v7306_v53  ;;  %v7555_v25 = vadd.f32 %v13074_v47, %v7516_v8  ;;  %v7514_v55 = vmul.f32 %v13041_v15, %v7204_v24  ;;  %v7207_v45 = vadd.f32 %v9239_v27, %v13089_v42  ;;  %v6914_v37 = vpop.f32.mrf.mxu0 }
 0x357   : > { %7583 = vst.msk [vmem:[%s13108_s20 + $0x68] sm:$0xff] %vm7569_vm0, %v7550_v41  ;;  %v8313_v35 = vpack.c.bf16 %v7309_v3, %v7309_v3  ;;  %v7307_v29 = vmax.f32 %v7275_v36, 0.0  ;;  %v7280_v28 = vadd.f32 %v13218_v56, %v7241_v48  ;;  %v7239_v10 = vmul.f32 %v13191_v7, %v7002_v32  ;;  %v9242_v49 = vpop.f32.mrf.mxu1 }
 0x358   : > { %7467 = vst.msk [vmem:[%s13268_s26 + $0x20] sm:$0xf] %vm7458_vm1, %v8310_v23  ;;  %v7553_v17 = vadd.f32 %v13074_v47, %v7514_v55  ;;  %v7517_v1 = vmul.f32 %v13041_v15, %v7207_v45  ;;  %v7005_v54 = vadd.f32 %v9201_v63, %v13093_v57  ;;  %v7205_v42 = vadd.f32 %v7128_v20, %v13097_v34  ;;  %v9204_v52 = vpop.f32.mrf.mxu0 }
 0x359   : > { %7588 = vst.msk [vmem:[%s13108_s20 + $0x90] sm:$0xff] %vm7569_vm0, %v7555_v25  ;;  %v8311_v33 = vpack.c.bf16 %v7307_v29, %v7307_v29  ;;  %v7312_v9 = vmax.f32 %v7280_v28, 0.0  ;;  %v7278_v4 = vadd.f32 %v13218_v56, %v7239_v10  ;;  %v7003_v14 = vadd.f32 %v6914_v37, %v13101_v11  ;;  %v7141_v58 = vpop.f32.mrf.mxu1  ;;  %v14161_v25 = vld [vmem:[#allocation58_spill] sm:$0xff] }
 0x35a   : > { %7470 = vst.msk [vmem:[%s13268_s26 + $0x2c] sm:$0xf] %vm7458_vm1, %v8313_v35  ;;  %v7556_v40 = vadd.f32 %v13074_v47, %v7517_v1  ;;  %v7242_v57 = vmul.f32 %v13191_v7, %v7005_v54  ;;  %v7515_v43 = vmul.f32 %v13041_v15, %v7205_v42  ;;  %v7210_v34 = vadd.f32 %v9242_v49, %v13114_v26  ;;  %v6927_v39 = vpop.f32.mrf.mxu0 }
 0x35b   : > { %7586 = vst.msk [vmem:[%s13108_s20 + $0x80] sm:$0xff] %vm7569_vm0, %v7553_v17  ;;  %v8316_v21 = vpack.c.bf16 %v7312_v9, %v7312_v9  ;;  %v7310_v16 = vmax.f32 %v7278_v4, 0.0  ;;  %v7240_v11 = vmul.f32 %v13191_v7, %v7003_v14  ;;  %v7008_v46 = vadd.f32 %v9204_v52, %v13120_v5  ;;  %v9243_v30 = vpop.f32.mrf.mxu1 }
 0x35c   : > { %7468 = vst.msk [vmem:[%s13268_s26 + $0x24] sm:$0xf] %vm7458_vm1, %v8311_v33  ;;  %v7281_v44 = vadd.f32 %v13218_v56, %v7242_v57  ;;  %v7554_v19 = vadd.f32 %v13074_v47, %v7515_v43  ;;  %v7520_v62 = vmul.f32 %v13041_v15, %v7210_v34  ;;  %v7208_v26 = vadd.f32 %v7141_v58, %v13124_v38  ;;  %v14160_v38 = vld [vmem:[#allocation44_spill] sm:$0xff]  ;;  %v9205_v36 = vpop.f32.mrf.mxu0 }
 0x35d   : > { %7589 = vst.msk [vmem:[%s13108_s20 + $0x98] sm:$0xff] %vm7569_vm0, %v7556_v40  ;;  %v8314_v53 = vpack.c.bf16 %v7310_v16, %v7310_v16  ;;  %v7279_v41 = vadd.f32 %v13218_v56, %v7240_v11  ;;  %v7245_v5 = vmul.f32 %v13191_v7, %v7008_v46  ;;  %v7006_v8 = vadd.f32 %v6927_v39, %v13128_v59  ;;  %v7144_v48 = vpop.f32.mrf.mxu1  ;;  %v14163_v43 = vld [vmem:[#allocation28_spill] sm:$0xff] }
 0x35e   : > { %7473 = vst.msk [vmem:[%s13268_s26 + $0x38] sm:$0xf] %vm7458_vm1, %v8316_v21  ;;  %v7313_v24 = vmax.f32 %v7281_v44, 0.0  ;;  %v7559_v13 = vadd.f32 %v13074_v47, %v7520_v62  ;;  %v7518_v27 = vmul.f32 %v13041_v15, %v7208_v26  ;;  %v7211_v3 = vadd.f32 %v9243_v30, %v14160_v38  ;;  %v6930_v29 = vpop.f32.mrf.mxu0  ;;  %v14164_v21 = vld [vmem:[#allocation32_spill] sm:$0xff]  ;;  %v14165_v26 = vld [vmem:[#allocation11_spill] sm:$0xff] }
 0x35f   : > { %7587 = vst.msk [vmem:[%s13108_s20 + $0x88] sm:$0xff] %vm7569_vm0, %v7554_v19  ;;  %v7311_v32 = vmax.f32 %v7279_v41, 0.0  ;;  %v7284_v23 = vadd.f32 %v13218_v56, %v7245_v5  ;;  %v7243_v59 = vmul.f32 %v13191_v7, %v7006_v8  ;;  %v7009_v55 = vadd.f32 %v9205_v36, %v14161_v25  ;;  %v9246_v28 = vpop.f32.mrf.mxu1  ;;  %v14166_v5 = vld [vmem:[#allocation41_spill] sm:$0xff]  ;;  %v14167_v36 = vld [vmem:[#allocation66_spill] sm:$0xff]  ;;  %v14168_v25 = vld [vmem:[#allocation8_spill] sm:$0xff] }
 0x360   : > { %7471 = vst.msk [vmem:[%s13268_s26 + $0x30] sm:$0xf] %vm7458_vm1, %v8314_v53  ;;  %v8317_v45 = vpack.c.bf16 %v7313_v24, %v7313_v24  ;;  %v7557_v63 = vadd.f32 %v13074_v47, %v7518_v27  ;;  %v7521_v20 = vmul.f32 %v13041_v15, %v7211_v3  ;;  %v7209_v35 = vadd.f32 %v7144_v48, %v13147_v0  ;;  %v14162_v0 = vld [vmem:[#allocation59_spill] sm:$0xff]  ;;  %v9208_v9 = vpop.f32.mrf.mxu0 }
 0x361   : > { %7592 = vst.msk [vmem:[%s13108_s20 + $0xb0] sm:$0xff] %vm7569_vm0, %v7559_v13  ;;  %v8315_v10 = vpack.c.bf16 %v7311_v32, %v7311_v32  ;;  %v7316_v17 = vmax.f32 %v7284_v23, 0.0  ;;  %v7282_v1 = vadd.f32 %v13218_v56, %v7243_v59  ;;  %v7246_v54 = vmul.f32 %v13191_v7, %v7009_v55  ;;  %v7157_v4 = vpop.f32.mrf.mxu1 }
 0x362   : > { %7474 = vst.msk [vmem:[%s13268_s26 + $0x3c] sm:$0xf] %vm7458_vm1, %v8317_v45  ;;  %v7560_v42 = vadd.f32 %v13074_v47, %v7521_v20  ;;  %v7519_v37 = vmul.f32 %v13041_v15, %v7209_v35  ;;  %v7007_v49 = vadd.f32 %v6930_v29, %v13151_v61  ;;  %v7214_v33 = vadd.f32 %v9246_v28, %v14162_v0  ;;  %v6943_v11 = vpop.f32.mrf.mxu0 }
 0x363   : > { %7590 = vst.msk [vmem:[%s13108_s20 + $0xa0] sm:$0xff] %vm7569_vm0, %v7557_v63  ;;  %v8320_v14 = vpack.c.bf16 %v7316_v17, %v7316_v17  ;;  %v7314_v40 = vmax.f32 %v7282_v1, 0.0  ;;  %v7285_v57 = vadd.f32 %v13218_v56, %v7246_v54  ;;  %v7012_v34 = vadd.f32 %v9208_v9, %v14163_v43  ;;  %v9247_v46 = vpop.f32.mrf.mxu1 }
 0x364   : > { %7472 = vst.msk [vmem:[%s13268_s26 + $0x34] sm:$0xf] %vm7458_vm1, %v8315_v10  ;;  %v7558_v52 = vadd.f32 %v13074_v47, %v7519_v37  ;;  %v7244_v61 = vmul.f32 %v13191_v7, %v7007_v49  ;;  %v7524_v58 = vmul.f32 %v13041_v15, %v7214_v33  ;;  %v7212_v16 = vadd.f32 %v7157_v4, %v14164_v21  ;;  %v9209_v24 = vpop.f32.mrf.mxu0 }
 0x365   : > { %7593 = vst.msk [vmem:[%s13108_s20 + $0xb8] sm:$0xff] %vm7569_vm0, %v7560_v42  ;;  %v8318_v44 = vpack.c.bf16 %v7314_v40, %v7314_v40  ;;  %v7317_v19 = vmax.f32 %v7285_v57, 0.0  ;;  %v7249_v62 = vmul.f32 %v13191_v7, %v7012_v34  ;;  %v7010_v39 = vadd.f32 %v6943_v11, %v14165_v26  ;;  %v7160_v13 = vpop.f32.mrf.mxu1 }
 0x366   : > { %7477 = vst.msk [vmem:[%s13268_s26 + $0x48] sm:$0xf] %vm7458_vm1, %v8320_v14  ;;  %v7283_v30 = vadd.f32 %v13218_v56, %v7244_v61  ;;  %v7563_v53 = vadd.f32 %v13074_v47, %v7524_v58  ;;  %v7522_v41 = vmul.f32 %v13041_v15, %v7212_v16  ;;  %v7215_v8 = vadd.f32 %v9247_v46, %v14166_v5  ;;  %v6946_v45 = vpop.f32.mrf.mxu0 }
 0x367   : > { %7591 = vst.msk [vmem:[%s13108_s20 + $0xa8] sm:$0xff] %vm7569_vm0, %v7558_v52  ;;  %v8321_v27 = vpack.c.bf16 %v7317_v19, %v7317_v19  ;;  %v7288_v38 = vadd.f32 %v13218_v56, %v7249_v62  ;;  %v7247_v3 = vmul.f32 %v13191_v7, %v7010_v39  ;;  %v7013_v48 = vadd.f32 %v9209_v24, %v14167_v36  ;;  %v9250_v63 = vpop.f32.mrf.mxu1 }
 0x368   : > { %7475 = vst.msk [vmem:[%s13268_s26 + $0x40] sm:$0xf] %vm7458_vm1, %v8318_v44  ;;  %v7315_v32 = vmax.f32 %v7283_v30, 0.0  ;;  %v7561_v23 = vadd.f32 %v13074_v47, %v7522_v41  ;;  %v7525_v59 = vmul.f32 %v13041_v15, %v7215_v8  ;;  %v7213_v55 = vadd.f32 %v7160_v13, %v14168_v25  ;;  %v9212_v42 = vpop.f32.mrf.mxu0  ;;  %v14172_v25 = vld [vmem:[#allocation47_spill] sm:$0xff] }
 0x369   : > { %7596 = vst.msk [vmem:[%s13108_s20 + $0xd0] sm:$0xff] %vm7569_vm0, %v7563_v53  ;;  %v7320_v20 = vmax.f32 %v7288_v38, 0.0  ;;  %v7286_v35 = vadd.f32 %v13218_v56, %v7247_v3  ;;  %v7250_v29 = vmul.f32 %v13191_v7, %v7013_v48  ;;  %v7011_v28 = vadd.f32 %v6946_v45, %v13201_v2  ;;  %v7173_v37 = vpop.f32.mrf.mxu1 }
 0x36a   : > { %7478 = vst.msk [vmem:[%s13268_s26 + $0x4c] sm:$0xf] %vm7458_vm1, %v8321_v27  ;;  %v8319_v10 = vpack.c.bf16 %v7315_v32, %v7315_v32  ;;  %v7564_v17 = vadd.f32 %v13074_v47, %v7525_v59  ;;  %v7523_v1 = vmul.f32 %v13041_v15, %v7213_v55  ;;  %v7218_v54 = vadd.f32 %v9250_v63, %v13205_v31  ;;  %v14169_v31 = vld [vmem:[#allocation62_spill] sm:$0xff]  ;;  %v6959_v57 = vpop.f32.mrf.mxu0  ;;  %v14173_v55 = vld [vmem:[#allocation12_spill] sm:$0xff] }
 0x36b   : > { %7594 = vst.msk [vmem:[%s13108_s20 + $0xc0] sm:$0xff] %vm7569_vm0, %v7561_v23  ;;  %v8324_v49 = vpack.c.bf16 %v7320_v20, %v7320_v20  ;;  %v7318_v0 = vmax.f32 %v7286_v35, 0.0  ;;  %v7289_v33 = vadd.f32 %v13218_v56, %v7250_v29  ;;  %v7248_v9 = vmul.f32 %v13191_v7, %v7011_v28  ;;  %v9251_v43 = vpop.f32.mrf.mxu1  ;;  %v14171_v23 = vld [vmem:[#allocation57_spill] sm:$0xff] }
 0x36c   : > { %7476 = vst.msk [vmem:[%s13268_s26 + $0x44] sm:$0xf] %vm7458_vm1, %v8319_v10  ;;  %v7562_v2 = vadd.f32 %v13074_v47, %v7523_v1  ;;  %v7528_v4 = vmul.f32 %v13041_v15, %v7218_v54  ;;  %v7016_v14 = vadd.f32 %v9212_v42, %v13209_v51  ;;  %v7216_v40 = vadd.f32 %v7173_v37, %v14169_v31  ;;  %v9213_v46 = vpop.f32.mrf.mxu0  ;;  %v14174_v10 = vld [vmem:[#allocation63_spill] sm:$0xff] }
 0x36d   : > { %7597 = vst.msk [vmem:[%s13108_s20 + $0xd8] sm:$0xff] %vm7569_vm0, %v7564_v17  ;;  %v8322_v34 = vpack.c.bf16 %v7318_v0, %v7318_v0  ;;  %v7321_v52 = vmax.f32 %v7289_v33, 0.0  ;;  %v7287_v61 = vadd.f32 %v13218_v56, %v7248_v9  ;;  %v7014_v58 = vadd.f32 %v6959_v57, %v13228_v12  ;;  %v7176_v44 = vpop.f32.mrf.mxu1  ;;  %v14175_v17 = vld [vmem:[#allocation48_spill] sm:$0xff] }
 0x36e   : > { %7481 = vst.msk [vmem:[%s13268_s26 + $0x58] sm:$0xf] %vm7458_vm1, %v8324_v49  ;;  %v7567_v21 = vadd.f32 %v13074_v47, %v7528_v4  ;;  %v7253_v51 = vmul.f32 %v13191_v7, %v7016_v14  ;;  %v7526_v16 = vmul.f32 %v13041_v15, %v7216_v40  ;;  %v7219_v11 = vadd.f32 %v9251_v43, %v13232_v18  ;;  %v6962_v41 = vpop.f32.mrf.mxu0 }
 0x36f   : > { %7595 = vst.msk [vmem:[%s13108_s20 + $0xc8] sm:$0xff] %vm7569_vm0, %v7562_v2  ;;  %v8325_v19 = vpack.c.bf16 %v7321_v52, %v7321_v52  ;;  %v7319_v62 = vmax.f32 %v7287_v61, 0.0  ;;  %v7251_v12 = vmul.f32 %v13191_v7, %v7014_v58  ;;  %v7017_v26 = vadd.f32 %v9213_v46, %v13236_v60 }
 0x370   : > { %7479 = vst.msk [vmem:[%s13268_s26 + $0x50] sm:$0xf] %vm7458_vm1, %v8322_v34  ;;  %v7292_v39 = vadd.f32 %v13218_v56, %v7253_v51  ;;  %v7565_v30 = vadd.f32 %v13074_v47, %v7526_v16  ;;  %v7529_v18 = vmul.f32 %v13041_v15, %v7219_v11  ;;  %v7217_v53 = vadd.f32 %v7176_v44, %v13248_v6  ;;  %v9216_v3 = vpop.f32.mrf.mxu0 }
 0x371   : > { %7600 = vst.msk [vmem:[%s13108_s20 + $0xf0] sm:$0xff] %vm7569_vm0, %v7567_v21  ;;  %v8323_v5 = vpack.c.bf16 %v7319_v62, %v7319_v62  ;;  %v7290_v8 = vadd.f32 %v13218_v56, %v7251_v12  ;;  %v7254_v60 = vmul.f32 %v13191_v7, %v7017_v26  ;;  %v7015_v24 = vadd.f32 %v6962_v41, %v13252_v22  ;;  %v14170_v22 = vld [vmem:[#allocation46_spill] sm:$0xff] }
 0x372   : > { %7482 = vst.msk [vmem:[%s13268_s26 + $0x5c] sm:$0xf] %vm7458_vm1, %v8325_v19  ;;  %v7324_v13 = vmax.f32 %v7292_v39, 0.0  ;;  %v7568_v27 = vadd.f32 %v13074_v47, %v7529_v18  ;;  %v7527_v38 = vmul.f32 %v13041_v15, %v7217_v53  ;;  %v7020_v32 = vadd.f32 %v9216_v3, %v13263_v50  ;;  %v6975_v20 = vpop.f32.mrf.mxu0 }
 0x373   : > { %7598 = vst.msk [vmem:[%s13108_s20 + $0xe0] sm:$0xff] %vm7569_vm0, %v7565_v30  ;;  %v7322_v6 = vmax.f32 %v7290_v8, 0.0  ;;  %v7293_v36 = vadd.f32 %v13218_v56, %v7254_v60  ;;  %v7252_v48 = vmul.f32 %v13191_v7, %v7015_v24  ;;  %v6350_v59 = vadd.f32 %v14171_v23, %v14170_v22 }
 0x374   : > { %7480 = vst.msk [vmem:[%s13268_s26 + $0x54] sm:$0xf] %vm7458_vm1, %v8323_v5  ;;  %v6353_v45 = vadd.f32 %v14173_v55, %v14172_v25  ;;  %v8328_v15 = vpack.c.bf16 %v7324_v13, %v7324_v13  ;;  %v7566_v63 = vadd.f32 %v13074_v47, %v7527_v38  ;;  %v7257_v50 = vmul.f32 %v13191_v7, %v7020_v32  ;;  %v9217_v42 = vpop.f32.mrf.mxu0 }
 0x375   : > { %7601 = vst.msk [vmem:[%s13108_s20 + $0xf8] sm:$0xff] %vm7569_vm0, %v7568_v27  ;;  %v8326_v35 = vpack.c.bf16 %v7322_v6, %v7322_v6  ;;  %v7325_v29 = vmax.f32 %v7293_v36, 0.0  ;;  %v7291_v28 = vadd.f32 %v13218_v56, %v7252_v48  ;;  %v6351_v1 = vadd.f32 %v14175_v17, %v14174_v10 }
 0x376   : > { %7485 = vst.msk [vmem:[%s13268_s26 + $0x68] sm:$0xf] %vm7458_vm1, %v8328_v15  ;;  %v7018_v54 = vadd.f32 %v6975_v20, %v6350_v59  ;;  %v7296_v49 = vadd.f32 %v13218_v56, %v7257_v50  ;;  %v7021_v0 = vadd.f32 %v9217_v42, %v6353_v45  ;;  %v6978_v9 = vpop.f32.mrf.mxu0 }
 0x377   : > { %7599 = vst.msk [vmem:[%s13108_s20 + $0xe8] sm:$0xff] %vm7569_vm0, %v7566_v63  ;;  %v8329_v47 = vpack.c.bf16 %v7325_v29, %v7325_v29  ;;  %v7323_v37 = vmax.f32 %v7291_v28, 0.0  ;;  %v7019_v31 = vadd.f32 %v6978_v9, %v6351_v1 }
 0x378   : > { %7483 = vst.msk [vmem:[%s13268_s26 + $0x60] sm:$0xf] %vm7458_vm1, %v8326_v35  ;;  %v7255_v33 = vmul.f32 %v13191_v7, %v7018_v54  ;;  %v7328_v4 = vmax.f32 %v7296_v49, 0.0  ;;  %v7258_v14 = vmul.f32 %v13191_v7, %v7021_v0 }
 0x379   : > { %7486 = vst.msk [vmem:[%s13268_s26 + $0x6c] sm:$0xf] %vm7458_vm1, %v8329_v47  ;;  %v8327_v2 = vpack.c.bf16 %v7323_v37, %v7323_v37  ;;  %v7256_v34 = vmul.f32 %v13191_v7, %v7019_v31 }
 0x37a   : > { %v7294_v40 = vadd.f32 %v13218_v56, %v7255_v33  ;;  %v8332_v57 = vpack.c.bf16 %v7328_v4, %v7328_v4  ;;  %v7297_v43 = vadd.f32 %v13218_v56, %v7258_v14 }
 0x37b   : > { %7484 = vst.msk [vmem:[%s13268_s26 + $0x64] sm:$0xf] %vm7458_vm1, %v8327_v2  ;;  %v7295_v58 = vadd.f32 %v13218_v56, %v7256_v34 }
 0x37c   : > { %v7326_v52 = vmax.f32 %v7294_v40, 0.0  ;;  %7489 = vst.msk [vmem:[%s13268_s26 + $0x78] sm:$0xf] %vm7458_vm1, %v8332_v57  ;;  %v7329_v61 = vmax.f32 %v7297_v43, 0.0 }
 0x37d   : > { %v7327_v16 = vmax.f32 %v7295_v58, 0.0 }
 0x37e   : > { %v8330_v21 = vpack.c.bf16 %v7326_v52, %v7326_v52  ;;  %v8333_v51 = vpack.c.bf16 %v7329_v61, %v7329_v61 }
 0x37f   : > { %v8331_v11 = vpack.c.bf16 %v7327_v16, %v7327_v16 }
 0x380   : > { %7487 = vst.msk [vmem:[%s13268_s26 + $0x70] sm:$0xf] %vm7458_vm1, %v8330_v21  ;;  %7490 = vst.msk [vmem:[%s13268_s26 + $0x7c] sm:$0xf] %vm7458_vm1, %v8333_v51 }
 0x381   : > { %7488 = vst.msk [vmem:[%s13268_s26 + $0x74] sm:$0xf] %vm7458_vm1, %v8331_v11 }
 0x382 PF: > { %s19_s27 = sadd.s32 1, %s9372_s27  }
 0x383   : > { %p16_p4 = scmp.ge.s32.totalorder %s19_s27, 4  }
 0x385   :  { %18 = sbr.rel (!%p16_p4) target bundleno = 1 (0x1), region = 108 }

</bundles_post_ra>
